<compile_context>
chip_gen: v7x
topology: tpu7x:2x2x1
jax: 0.10.0
libtpu: 0.0.40
codegen_flags: <defaults>
</compile_context>

<pallas_src>
import jax
import jax.numpy as jnp
import numpy as np
from jax.experimental import pallas as pl
from jax.experimental.pallas import tpu as pltpu

_K = 5  # conv kernel size (padding=2, "same")


# ----------------------------------------------------------------------------
# Host-side parameter packing: one weight slab + one bias slab.
# ----------------------------------------------------------------------------
def _pack_params(params, mxu_dtype):
    """Pack conv / up-conv weights into one (rows, 128) slab (16-row-aligned
    blocks, so bf16 tiles stay aligned) and all biases into one (rows, 128)
    f32 slab.  Returns (w_slab, b_slab, meta) with static offsets for
    in-kernel slicing."""
    f32 = jnp.float32
    w_entries, b_entries = [], []

    def add_conv(name, w, b):                        # w: (K, Cin, Cout)
        K, Cin, Cout = w.shape
        w_entries.append((name, w.reshape(K * Cin, Cout)))
        b_entries.append((name, b))

    for lname in ("enc1", "enc2", "enc3", "bottleneck", "dec3", "dec2", "dec1"):
        blk = params[lname]
        add_conv(lname + ".1", blk["w1"], blk["b1"])
        add_conv(lname + ".2", blk["w2"], blk["b2"])
    add_conv("head", params["head"]["w"], params["head"]["b"])
    for uname in ("up3", "up2", "up1"):
        w, b = params[uname]["w"], params[uname]["b"]
        w_entries.append((uname + ".0", w[0]))       # even-phase tap (Cin, Cout)
        w_entries.append((uname + ".1", w[1]))       # odd-phase tap
        b_entries.append((uname, b))

    w_meta, blocks, off = {}, [], 0
    for name, m in w_entries:
        r, c = m.shape
        assert c <= 128, "TODO(synk): lane-tile the weight slab for Cout > 128"
        rp = ((r + 15) // 16) * 16                   # 16-row aligned blocks
        blocks.append(jnp.zeros((rp, 128), f32).at[:r, :c].set(m.astype(f32)))
        w_meta[name] = (off, r, c)
        off += rp
    w_slab = jnp.concatenate(blocks, axis=0).astype(mxu_dtype)

    b_meta = {}
    nb = ((len(b_entries) + 7) // 8) * 8
    b_slab = jnp.zeros((nb, 128), f32)
    for i, (name, v) in enumerate(b_entries):
        b_slab = b_slab.at[i, :v.shape[0]].set(v.astype(f32))
        b_meta[name] = (i, v.shape[0])

    return w_slab, b_slab, {"w": w_meta, "b": b_meta}


# ----------------------------------------------------------------------------
# Fused Pallas kernel (whole UNet forward for B batch-packed elements)
# ----------------------------------------------------------------------------
def _make_unet_kernel(meta, B, L, mxu_dtype):
    f32 = jnp.float32

    def kernel(x_ref, w_ref, b_ref, o_ref):
        # --- per-size constants, built once per grid step and cached --------
        sel_cache, il_cache, mask_cache = {}, {}, {}

        def sel_even(R):
            # (R//2, R) 0/1 matrix selecting even rows.
            if R not in sel_cache:
                r = jax.lax.broadcasted_iota(jnp.int32, (R // 2, R), 0)
                c = jax.lax.broadcasted_iota(jnp.int32, (R // 2, R), 1)
                sel_cache[R] = jnp.where(c == 2 * r, 1.0, 0.0).astype(mxu_dtype)
            return sel_cache[R]

        def interleave(R):
            # (2R, 2R): row 2i <- col i (even phase), row 2i+1 <- col R+i (odd).
            if R not in il_cache:
                r = jax.lax.broadcasted_iota(jnp.int32, (2 * R, 2 * R), 0)
                c = jax.lax.broadcasted_iota(jnp.int32, (2 * R, 2 * R), 1)
                hit = (r == 2 * c) | (r == 2 * (c - R) + 1)
                il_cache[R] = jnp.where(hit, 1.0, 0.0).astype(mxu_dtype)
            return il_cache[R]

        def shift_masks(Lc, R):
            # Zero rows whose shifted source crosses a batch-element boundary
            # (same-padding).  Keyed by per-element length Lc; R = B * Lc.
            if Lc not in mask_cache:
                i = jax.lax.broadcasted_iota(jnp.int32, (R, 1), 0)
                l = (i & (Lc - 1)) if (Lc & (Lc - 1)) == 0 else (i % Lc)
                mask_cache[Lc] = {
                    d: (jnp.where(l < Lc - d, 1.0, 0.0) if d > 0
                        else jnp.where(l >= -d, 1.0, 0.0))
                    for d in (-2, -1, 1, 2)}
            return mask_cache[Lc]

        def conv5(X, name, Lc, relu):
            # Same-padded K=5 conv as ONE im2col matmul on the MXU.
            R = X.shape[0]
            woff, wr, wc = meta["w"][name]
            bi, bc = meta["b"][name]
            masks = shift_masks(Lc, R)
            cols = []
            for k in range(_K):
                d = k - _K // 2
                if d == 0:
                    cols.append(X)
                else:
                    cols.append(pltpu.roll(X, shift=(-d) % R, axis=0) * masks[d])
            col = jnp.concatenate(cols, axis=1)                   # (R, 5*Cin)
            w = w_ref[woff:woff + wr, :wc]                        # (5*Cin, Cout)
            acc = jnp.dot(col.astype(mxu_dtype), w,
                          preferred_element_type=f32)
            acc = acc + b_ref[bi:bi + 1, :bc]
            return jnp.maximum(acc, 0.0) if relu else acc

        def double_conv(X, name, Lc):
            h = conv5(X, name + ".1", Lc, relu=True)
            return conv5(h, name + ".2", Lc, relu=True)

        def maxpool2(X):
            # MaxPool1d(2,2): roll+max, then one even-row selection matmul.
            R = X.shape[0]
            m = jnp.maximum(X, pltpu.roll(X, shift=R - 1, axis=0))
            return jnp.dot(sel_even(R), m.astype(mxu_dtype),
                           preferred_element_type=f32)

        def upconv2(X, name):
            # ConvTranspose1d(kernel=2, stride=2): even/odd phase matmuls +
            # one precomputed interleave matmul; bias added once at the end.
            R = X.shape[0]
            o0, r0, c0 = meta["w"][name + ".0"]
            o1, r1, c1 = meta["w"][name + ".1"]
            bi, bc = meta["b"][name]
            Xq = X.astype(mxu_dtype)
            even = jnp.dot(Xq, w_ref[o0:o0 + r0, :c0],
                           preferred_element_type=f32)
            odd = jnp.dot(Xq, w_ref[o1:o1 + r1, :c1],
                          preferred_element_type=f32)
            both = jnp.concatenate([even, odd], axis=0)           # (2R, Cout)
            up = jnp.dot(interleave(R), both.astype(mxu_dtype),
                         preferred_element_type=f32)
            return up + b_ref[bi:bi + 1, :bc]

        # ------------------------------ forward ------------------------------
        # Batch-pack: the B elements of this grid step are stacked along the
        # sublane (length) axis, so every matmul sees M = B*L rows.
        xs = [jnp.transpose(x_ref[b], (1, 0)).astype(f32) for b in range(B)]
        X0 = jnp.concatenate(xs, axis=0) if B > 1 else xs[0]      # (B*L, Cin)

        e1 = double_conv(X0, "enc1", L)
        e2 = double_conv(maxpool2(e1), "enc2", L // 2)
        e3 = double_conv(maxpool2(e2), "enc3", L // 4)
        bt = double_conv(maxpool2(e3), "bottleneck", L // 8)

        d3 = double_conv(jnp.concatenate([upconv2(bt, "up3"), e3], axis=1),
                         "dec3", L // 4)
        d2 = double_conv(jnp.concatenate([upconv2(d3, "up2"), e2], axis=1),
                         "dec2", L // 2)
        d1 = double_conv(jnp.concatenate([upconv2(d2, "up1"), e1], axis=1),
                         "dec1", L)

        out = conv5(d1, "head", L, relu=False)                    # (B*L, Cout)
        for b in range(B):
            o_ref[b] = jnp.transpose(out[b * L:(b + 1) * L, :],
                                     (1, 0)).astype(o_ref.dtype)  # (Cout, L)

    return kernel


def _flops_estimate(N, L, f, cin, cout):
    convs = [
        (L, cin, f), (L, f, f),
        (L // 2, f, 2 * f), (L // 2, 2 * f, 2 * f),
        (L // 4, 2 * f, 4 * f), (L // 4, 4 * f, 4 * f),
        (L // 8, 4 * f, 8 * f), (L // 8, 8 * f, 8 * f),
        (L // 4, 8 * f, 4 * f), (L // 4, 4 * f, 4 * f),
        (L // 2, 4 * f, 2 * f), (L // 2, 2 * f, 2 * f),
        (L, 2 * f, f), (L, f, f),
        (L, f, cout),
    ]
    ups = [(L // 8, 8 * f, 4 * f), (L // 4, 4 * f, 2 * f), (L // 2, 2 * f, f)]
    fl = sum(2 * _K * li * ci * co for li, ci, co in convs)
    fl += sum(2 * 2 * li * ci * co for li, ci, co in ups)
    return int(N * fl)


# ----------------------------------------------------------------------------
# Wrapper
# ----------------------------------------------------------------------------
def unet_forward_pallas(x_ncl, params, *, batch_block=None,
                        mxu_dtype=jnp.bfloat16):
    """Fused UNet forward.  x_ncl: (N, Cin, L) in NCL; returns (N, Cout, L).

    batch_block: number of batch elements packed per grid step.  Default packs
    the whole batch into one step (best for the single-TC v5e/v6e); on v7x
    pass N//2 so both TensorCores get a "parallel" grid step."""
    N, Cin, L = x_ncl.shape
    assert L % 64 == 0, "fused kernel assumes L % 64 == 0 (3 pools + 8-row tiles)"
    B = N if batch_block is None else batch_block
    assert N % B == 0, "batch_block must divide N"

    w_slab, b_slab, meta = _pack_params(params, mxu_dtype)
    Cout = params["head"]["b"].shape[-1]
    f = params["enc1"]["w1"].shape[-1]

    kernel = _make_unet_kernel(meta, B, L, mxu_dtype)
    flops = _flops_estimate(N, L, f, Cin, Cout)
    bytes_accessed = int(4 * (x_ncl.size + N * Cout * L)
                         + w_slab.size * w_slab.dtype.itemsize
                         + b_slab.size * 4)

    return pl.pallas_call(
        kernel,
        out_shape=jax.ShapeDtypeStruct((N, Cout, L), jnp.float32),
        grid=(N // B,),
        in_specs=[
            pl.BlockSpec((B, Cin, L), lambda n: (n, 0, 0)),   # NCL activations
            pl.BlockSpec(w_slab.shape, lambda n: (0, 0)),     # resident weights
            pl.BlockSpec(b_slab.shape, lambda n: (0, 0)),     # resident biases
        ],
        out_specs=pl.BlockSpec((B, Cout, L), lambda n: (n, 0, 0)),
        compiler_params=pltpu.CompilerParams(
            dimension_semantics=("parallel",)),
        cost_estimate=pl.CostEstimate(flops=flops, transcendentals=0,
                                      bytes_accessed=bytes_accessed),
    )(x_ncl.astype(jnp.float32), w_slab, b_slab)


# ----------------------------------------------------------------------------
# Pure-JAX f32 reference (eval-mode semantics of the PyTorch module)
# ----------------------------------------------------------------------------
def _conv1d_same_ref(x, w, b, relu):
    K = w.shape[0]
    pad = K // 2
    L = x.shape[1]
    xp = jnp.pad(x, ((0, 0), (pad, pad), (0, 0)))
    acc = jnp.zeros((x.shape[0], L, w.shape[2]), jnp.float32)
    for k in range(K):
        acc = acc + jnp.einsum("nlc,cd->nld", xp[:, k:k + L, :], w[k])
    acc = acc + b
    return jnp.maximum(acc, 0.0) if relu else acc


def _maxpool2_ref(x):
    N, L, C = x.shape
    return jnp.max(x.reshape(N, L // 2, 2, C), axis=2)


def _conv_transpose2_ref(x, w, b):
    even = jnp.einsum("nlc,cd->nld", x, w[0]) + b
    odd = jnp.einsum("nlc,cd->nld", x, w[1]) + b
    N, L, C = even.shape
    return jnp.stack([even, odd], axis=2).reshape(N, 2 * L, C)


def _double_conv_ref(x, p):
    x = _conv1d_same_ref(x, p["w1"], p["b1"], relu=True)
    return _conv1d_same_ref(x, p["w2"], p["b2"], relu=True)


def unet_forward_ref(x_ncl, params):
    x = jnp.transpose(x_ncl, (0, 2, 1))
    e1 = _double_conv_ref(x, params["enc1"])
    e2 = _double_conv_ref(_maxpool2_ref(e1), params["enc2"])
    e3 = _double_conv_ref(_maxpool2_ref(e2), params["enc3"])
    bt = _double_conv_ref(_maxpool2_ref(e3), params["bottleneck"])
    d3 = _conv_transpose2_ref(bt, params["up3"]["w"], params["up3"]["b"])
    d3 = _double_conv_ref(jnp.concatenate([d3, e3], axis=-1), params["dec3"])
    d2 = _conv_transpose2_ref(d3, params["up2"]["w"], params["up2"]["b"])
    d2 = _double_conv_ref(jnp.concatenate([d2, e2], axis=-1), params["dec2"])
    d1 = _conv_transpose2_ref(d2, params["up1"]["w"], params["up1"]["b"])
    d1 = _double_conv_ref(jnp.concatenate([d1, e1], axis=-1), params["dec1"])
    out = _conv1d_same_ref(d1, params["head"]["w"], params["head"]["b"],
                           relu=False)
    return jnp.transpose(out, (0, 2, 1))


# ----------------------------------------------------------------------------
# Deterministic synthetic parameters (BN folded into convs, eval mode)
# ----------------------------------------------------------------------------
def _fold_bn(w, b, gamma, beta, mean, var, eps=1e-5):
    scale = gamma / jnp.sqrt(var + eps)
    return w * scale[None, None, :], (b - mean) * scale + beta


def _init_conv(key, cin, cout, k):
    kw, kb = jax.random.split(key)
    w = jax.random.normal(kw, (k, cin, cout), jnp.float32) / np.sqrt(k * cin)
    b = 0.05 * jax.random.normal(kb, (cout,), jnp.float32)
    return w, b


def _init_bn(key, c):
    kg, kb, km, kv = jax.random.split(key, 4)
    gamma = 1.0 + 0.1 * jax.random.normal(kg, (c,), jnp.float32)
    beta = 0.1 * jax.random.normal(kb, (c,), jnp.float32)
    mean = 0.1 * jax.random.normal(km, (c,), jnp.float32)
    var = jax.random.uniform(kv, (c,), jnp.float32, 0.5, 1.5)
    return gamma, beta, mean, var


def _init_double_conv(key, cin, cout):
    k1, k2, k3, k4 = jax.random.split(key, 4)
    w1, b1 = _init_conv(k1, cin, cout, _K)
    w1, b1 = _fold_bn(w1, b1, *_init_bn(k2, cout))
    w2, b2 = _init_conv(k3, cout, cout, _K)
    w2, b2 = _fold_bn(w2, b2, *_init_bn(k4, cout))
    return {"w1": w1, "b1": b1, "w2": w2, "b2": b2}


def _init_upconv(key, cin, cout):
    w, b = _init_conv(key, cin, cout, 2)   # (2, Cin, Cout): ConvTranspose taps
    return {"w": w, "b": b}


def init_unet(key, in_channels, out_channels, features):
    ks = jax.random.split(key, 12)
    f = features
    params = {
        "enc1": _init_double_conv(ks[0], in_channels, f),
        "enc2": _init_double_conv(ks[1], f, 2 * f),
        "enc3": _init_double_conv(ks[2], 2 * f, 4 * f),
        "bottleneck": _init_double_conv(ks[3], 4 * f, 8 * f),
        "up3": _init_upconv(ks[4], 8 * f, 4 * f),
        "dec3": _init_double_conv(ks[5], 8 * f, 4 * f),
        "up2": _init_upconv(ks[6], 4 * f, 2 * f),
        "dec2": _init_double_conv(ks[7], 4 * f, 2 * f),
        "up1": _init_upconv(ks[8], 2 * f, f),
        "dec1": _init_double_conv(ks[9], 2 * f, f),
    }
    hw, hb = _init_conv(ks[10], f, out_channels, _K)
    params["head"] = {"w": hw, "b": hb}
    return params


# ----------------------------------------------------------------------------
if __name__ == "__main__":
    N, in_channels, L = 2, 2, 64           # L divisible by 64 (3 pooling stages)
    out_channels, features = 4, 8

    key = jax.random.PRNGKey(0)
    k_par, k_x = jax.random.split(key)
    params = init_unet(k_par, in_channels, out_channels, features)
    x = jax.random.normal(k_x, (N, in_channels, L), jnp.float32)   # NCL input

    fwd = jax.jit(lambda inp: unet_forward_pallas(inp, params))
    y = jax.block_until_ready(fwd(x))                              # (N, Cout, L)

    y_ref = unet_forward_ref(x, params)

    assert y.shape == (N, out_channels, L), y.shape
    # bf16 MXU operands (f32 accumulation) over 15 conv layers accumulate ~1e-2
    # relative error vs. the pure-f32 reference, hence the 5e-2 tolerance.
    np.testing.assert_allclose(np.asarray(y), np.asarray(y_ref),
                               rtol=5e-2, atol=5e-2)
    print("KERNEL_OK")
</pallas_src>

<mosaic_0001>
module attributes {stable_mosaic.version = 11 : i64} {
  func.func @kernel(%arg0: i32, %arg1: memref<2x2x64xf32, #tpu.memory_space<vmem>>, %arg2: memref<2032x128xbf16, #tpu.memory_space<vmem>>, %arg3: memref<24x128xf32, #tpu.memory_space<vmem>>, %arg4: memref<2x4x64xf32, #tpu.memory_space<vmem>>) attributes {dimension_semantics = [#tpu.dimension_semantics<parallel>], iteration_bounds = array<i64: 1>, scalar_prefetch = 0 : i64, scratch_operands = 0 : i64, tpu.core_type = #tpu.core_type<tc>, window_params = [{transform_indices = @transform_0, window_bounds = array<i64: 2, 2, 64>}, {pipeline_mode = #tpu.pipeline_mode<synchronous>, transform_indices = @transform_1, window_bounds = array<i64: 2032, 128>}, {pipeline_mode = #tpu.pipeline_mode<synchronous>, transform_indices = @transform_2, window_bounds = array<i64: 24, 128>}, {transform_indices = @transform_3, window_bounds = array<i64: 2, 4, 64>}]} {
    %c0 = arith.constant 0 : index
    %c0_0 = arith.constant 0 : index
    %c0_1 = arith.constant 0 : index
    %0 = vector.load %arg1[%c0, %c0_0, %c0_1] : memref<2x2x64xf32, #tpu.memory_space<vmem>>, vector<1x2x64xf32>
    %1 = vector.shape_cast %0 : vector<1x2x64xf32> to vector<2x64xf32>
    %2 = tpu.transpose %1, [1, 0] : vector<2x64xf32> -> vector<64x2xf32>
    %c1 = arith.constant 1 : index
    %c0_2 = arith.constant 0 : index
    %c0_3 = arith.constant 0 : index
    %3 = vector.load %arg1[%c1, %c0_2, %c0_3] : memref<2x2x64xf32, #tpu.memory_space<vmem>>, vector<1x2x64xf32>
    %4 = vector.shape_cast %3 : vector<1x2x64xf32> to vector<2x64xf32>
    %5 = tpu.transpose %4, [1, 0] : vector<2x64xf32> -> vector<64x2xf32>
    %6 = tpu.concatenate %2, %5 in 0 : vector<64x2xf32>, vector<64x2xf32> -> vector<128x2xf32>
    %7 = tpu.iota {dimensions = array<i32: 0>} : vector<128x1xi32>
    %c63_i32 = arith.constant 63 : i32
    %8 = vector.broadcast %c63_i32 : i32 to vector<128x1xi32>
    %9 = arith.andi %7, %8 : vector<128x1xi32>
    %c2_i32 = arith.constant 2 : i32
    %10 = vector.broadcast %c2_i32 : i32 to vector<128x1xi32>
    %11 = arith.cmpi sge, %9, %10 : vector<128x1xi32>
    %cst = arith.constant 1.000000e+00 : f32
    %cst_4 = arith.constant 0.000000e+00 : f32
    %12 = vector.broadcast %cst : f32 to vector<128x1xf32>
    %13 = vector.broadcast %cst_4 : f32 to vector<128x1xf32>
    %14 = arith.select %11, %12, %13 : vector<128x1xi1>, vector<128x1xf32>
    %c1_i32 = arith.constant 1 : i32
    %15 = vector.broadcast %c1_i32 : i32 to vector<128x1xi32>
    %16 = arith.cmpi sge, %9, %15 : vector<128x1xi32>
    %cst_5 = arith.constant 1.000000e+00 : f32
    %cst_6 = arith.constant 0.000000e+00 : f32
    %17 = vector.broadcast %cst_5 : f32 to vector<128x1xf32>
    %18 = vector.broadcast %cst_6 : f32 to vector<128x1xf32>
    %19 = arith.select %16, %17, %18 : vector<128x1xi1>, vector<128x1xf32>
    %c63_i32_7 = arith.constant 63 : i32
    %20 = vector.broadcast %c63_i32_7 : i32 to vector<128x1xi32>
    %21 = arith.cmpi slt, %9, %20 : vector<128x1xi32>
    %cst_8 = arith.constant 1.000000e+00 : f32
    %cst_9 = arith.constant 0.000000e+00 : f32
    %22 = vector.broadcast %cst_8 : f32 to vector<128x1xf32>
    %23 = vector.broadcast %cst_9 : f32 to vector<128x1xf32>
    %24 = arith.select %21, %22, %23 : vector<128x1xi1>, vector<128x1xf32>
    %c62_i32 = arith.constant 62 : i32
    %25 = vector.broadcast %c62_i32 : i32 to vector<128x1xi32>
    %26 = arith.cmpi slt, %9, %25 : vector<128x1xi32>
    %cst_10 = arith.constant 1.000000e+00 : f32
    %cst_11 = arith.constant 0.000000e+00 : f32
    %27 = vector.broadcast %cst_10 : f32 to vector<128x1xf32>
    %28 = vector.broadcast %cst_11 : f32 to vector<128x1xf32>
    %29 = arith.select %26, %27, %28 : vector<128x1xi1>, vector<128x1xf32>
    %c2_i32_12 = arith.constant 2 : i32
    %30 = tpu.dynamic_rotate %6 by %c2_i32_12 dim 0 : vector<128x2xf32>, i32 -> vector<128x2xf32>
    %31 = vector.broadcast %14 : vector<128x1xf32> to vector<128x2xf32>
    %32 = arith.mulf %30, %31 : vector<128x2xf32>
    %c1_i32_13 = arith.constant 1 : i32
    %33 = tpu.dynamic_rotate %6 by %c1_i32_13 dim 0 : vector<128x2xf32>, i32 -> vector<128x2xf32>
    %34 = vector.broadcast %19 : vector<128x1xf32> to vector<128x2xf32>
    %35 = arith.mulf %33, %34 : vector<128x2xf32>
    %c127_i32 = arith.constant 127 : i32
    %36 = tpu.dynamic_rotate %6 by %c127_i32 dim 0 : vector<128x2xf32>, i32 -> vector<128x2xf32>
    %37 = vector.broadcast %24 : vector<128x1xf32> to vector<128x2xf32>
    %38 = arith.mulf %36, %37 : vector<128x2xf32>
    %c126_i32 = arith.constant 126 : i32
    %39 = tpu.dynamic_rotate %6 by %c126_i32 dim 0 : vector<128x2xf32>, i32 -> vector<128x2xf32>
    %40 = vector.broadcast %29 : vector<128x1xf32> to vector<128x2xf32>
    %41 = arith.mulf %39, %40 : vector<128x2xf32>
    %42 = tpu.concatenate %32, %35, %6, %38, %41 in 1 : vector<128x2xf32>, vector<128x2xf32>, vector<128x2xf32>, vector<128x2xf32>, vector<128x2xf32> -> vector<128x10xf32>
    %c0_14 = arith.constant 0 : index
    %c0_15 = arith.constant 0 : index
    %43 = vector.load %arg2[%c0_14, %c0_15] : memref<2032x128xbf16, #tpu.memory_space<vmem>>, vector<10x8xbf16>
    %44 = arith.truncf %42 : vector<128x10xf32> to vector<128x10xbf16>
    %cst_16 = arith.constant dense<0.000000e+00> : vector<128x8xf32>
    %45 = tpu.matmul %44, %43, %cst_16 {dimension_numbers = #tpu.dot_dimension_numbers<[1], [0], [0], [1], [0, 0, 1, 1], [], []>} : vector<128x10xbf16>, vector<10x8xbf16>, vector<128x8xf32> -> vector<128x8xf32>
    %c0_17 = arith.constant 0 : index
    %c0_18 = arith.constant 0 : index
    %46 = vector.load %arg3[%c0_17, %c0_18] : memref<24x128xf32, #tpu.memory_space<vmem>>, vector<1x8xf32>
    %47 = vector.broadcast %46 : vector<1x8xf32> to vector<128x8xf32>
    %48 = arith.addf %45, %47 : vector<128x8xf32>
    %cst_19 = arith.constant 0.000000e+00 : f32
    %49 = vector.broadcast %cst_19 : f32 to vector<128x8xf32>
    %50 = arith.maximumf %48, %49 : vector<128x8xf32>
    %c2_i32_20 = arith.constant 2 : i32
    %51 = tpu.dynamic_rotate %50 by %c2_i32_20 dim 0 : vector<128x8xf32>, i32 -> vector<128x8xf32>
    %52 = vector.broadcast %14 : vector<128x1xf32> to vector<128x8xf32>
    %53 = arith.mulf %51, %52 : vector<128x8xf32>
    %c1_i32_21 = arith.constant 1 : i32
    %54 = tpu.dynamic_rotate %50 by %c1_i32_21 dim 0 : vector<128x8xf32>, i32 -> vector<128x8xf32>
    %55 = vector.broadcast %19 : vector<128x1xf32> to vector<128x8xf32>
    %56 = arith.mulf %54, %55 : vector<128x8xf32>
    %c127_i32_22 = arith.constant 127 : i32
    %57 = tpu.dynamic_rotate %50 by %c127_i32_22 dim 0 : vector<128x8xf32>, i32 -> vector<128x8xf32>
    %58 = vector.broadcast %24 : vector<128x1xf32> to vector<128x8xf32>
    %59 = arith.mulf %57, %58 : vector<128x8xf32>
    %c126_i32_23 = arith.constant 126 : i32
    %60 = tpu.dynamic_rotate %50 by %c126_i32_23 dim 0 : vector<128x8xf32>, i32 -> vector<128x8xf32>
    %61 = vector.broadcast %29 : vector<128x1xf32> to vector<128x8xf32>
    %62 = arith.mulf %60, %61 : vector<128x8xf32>
    %63 = tpu.concatenate %53, %56, %50, %59, %62 in 1 : vector<128x8xf32>, vector<128x8xf32>, vector<128x8xf32>, vector<128x8xf32>, vector<128x8xf32> -> vector<128x40xf32>
    %c16 = arith.constant 16 : index
    %c0_24 = arith.constant 0 : index
    %64 = vector.load %arg2[%c16, %c0_24] : memref<2032x128xbf16, #tpu.memory_space<vmem>>, vector<40x8xbf16>
    %65 = arith.truncf %63 : vector<128x40xf32> to vector<128x40xbf16>
    %cst_25 = arith.constant dense<0.000000e+00> : vector<128x8xf32>
    %66 = tpu.matmul %65, %64, %cst_25 {dimension_numbers = #tpu.dot_dimension_numbers<[1], [0], [0], [1], [0, 0, 1, 1], [], []>} : vector<128x40xbf16>, vector<40x8xbf16>, vector<128x8xf32> -> vector<128x8xf32>
    %c1_26 = arith.constant 1 : index
    %c0_27 = arith.constant 0 : index
    %67 = vector.load %arg3[%c1_26, %c0_27] : memref<24x128xf32, #tpu.memory_space<vmem>>, vector<1x8xf32>
    %68 = vector.broadcast %67 : vector<1x8xf32> to vector<128x8xf32>
    %69 = arith.addf %66, %68 : vector<128x8xf32>
    %cst_28 = arith.constant 0.000000e+00 : f32
    %70 = vector.broadcast %cst_28 : f32 to vector<128x8xf32>
    %71 = arith.maximumf %69, %70 : vector<128x8xf32>
    %c127_i32_29 = arith.constant 127 : i32
    %72 = tpu.dynamic_rotate %71 by %c127_i32_29 dim 0 : vector<128x8xf32>, i32 -> vector<128x8xf32>
    %73 = arith.maximumf %71, %72 : vector<128x8xf32>
    %74 = tpu.iota {dimensions = array<i32: 0>} : vector<64x128xi32>
    %75 = tpu.iota {dimensions = array<i32: 1>} : vector<64x128xi32>
    %c2_i32_30 = arith.constant 2 : i32
    %76 = vector.broadcast %c2_i32_30 : i32 to vector<64x128xi32>
    %77 = arith.muli %76, %74 : vector<64x128xi32>
    %78 = arith.cmpi eq, %75, %77 : vector<64x128xi32>
    %cst_31 = arith.constant 1.000000e+00 : f32
    %cst_32 = arith.constant 0.000000e+00 : f32
    %79 = vector.broadcast %cst_31 : f32 to vector<64x128xf32>
    %80 = vector.broadcast %cst_32 : f32 to vector<64x128xf32>
    %81 = arith.select %78, %79, %80 : vector<64x128xi1>, vector<64x128xf32>
    %82 = arith.truncf %81 : vector<64x128xf32> to vector<64x128xbf16>
    %83 = arith.truncf %73 : vector<128x8xf32> to vector<128x8xbf16>
    %cst_33 = arith.constant dense<0.000000e+00> : vector<64x8xf32>
    %84 = tpu.matmul %82, %83, %cst_33 {dimension_numbers = #tpu.dot_dimension_numbers<[1], [0], [0], [1], [0, 0, 1, 1], [], []>} : vector<64x128xbf16>, vector<128x8xbf16>, vector<64x8xf32> -> vector<64x8xf32>
    %85 = tpu.iota {dimensions = array<i32: 0>} : vector<64x1xi32>
    %c31_i32 = arith.constant 31 : i32
    %86 = vector.broadcast %c31_i32 : i32 to vector<64x1xi32>
    %87 = arith.andi %85, %86 : vector<64x1xi32>
    %c2_i32_34 = arith.constant 2 : i32
    %88 = vector.broadcast %c2_i32_34 : i32 to vector<64x1xi32>
    %89 = arith.cmpi sge, %87, %88 : vector<64x1xi32>
    %cst_35 = arith.constant 1.000000e+00 : f32
    %cst_36 = arith.constant 0.000000e+00 : f32
    %90 = vector.broadcast %cst_35 : f32 to vector<64x1xf32>
    %91 = vector.broadcast %cst_36 : f32 to vector<64x1xf32>
    %92 = arith.select %89, %90, %91 : vector<64x1xi1>, vector<64x1xf32>
    %c1_i32_37 = arith.constant 1 : i32
    %93 = vector.broadcast %c1_i32_37 : i32 to vector<64x1xi32>
    %94 = arith.cmpi sge, %87, %93 : vector<64x1xi32>
    %cst_38 = arith.constant 1.000000e+00 : f32
    %cst_39 = arith.constant 0.000000e+00 : f32
    %95 = vector.broadcast %cst_38 : f32 to vector<64x1xf32>
    %96 = vector.broadcast %cst_39 : f32 to vector<64x1xf32>
    %97 = arith.select %94, %95, %96 : vector<64x1xi1>, vector<64x1xf32>
    %c31_i32_40 = arith.constant 31 : i32
    %98 = vector.broadcast %c31_i32_40 : i32 to vector<64x1xi32>
    %99 = arith.cmpi slt, %87, %98 : vector<64x1xi32>
    %cst_41 = arith.constant 1.000000e+00 : f32
    %cst_42 = arith.constant 0.000000e+00 : f32
    %100 = vector.broadcast %cst_41 : f32 to vector<64x1xf32>
    %101 = vector.broadcast %cst_42 : f32 to vector<64x1xf32>
    %102 = arith.select %99, %100, %101 : vector<64x1xi1>, vector<64x1xf32>
    %c30_i32 = arith.constant 30 : i32
    %103 = vector.broadcast %c30_i32 : i32 to vector<64x1xi32>
    %104 = arith.cmpi slt, %87, %103 : vector<64x1xi32>
    %cst_43 = arith.constant 1.000000e+00 : f32
    %cst_44 = arith.constant 0.000000e+00 : f32
    %105 = vector.broadcast %cst_43 : f32 to vector<64x1xf32>
    %106 = vector.broadcast %cst_44 : f32 to vector<64x1xf32>
    %107 = arith.select %104, %105, %106 : vector<64x1xi1>, vector<64x1xf32>
    %c2_i32_45 = arith.constant 2 : i32
    %108 = tpu.dynamic_rotate %84 by %c2_i32_45 dim 0 : vector<64x8xf32>, i32 -> vector<64x8xf32>
    %109 = vector.broadcast %92 : vector<64x1xf32> to vector<64x8xf32>
    %110 = arith.mulf %108, %109 : vector<64x8xf32>
    %c1_i32_46 = arith.constant 1 : i32
    %111 = tpu.dynamic_rotate %84 by %c1_i32_46 dim 0 : vector<64x8xf32>, i32 -> vector<64x8xf32>
    %112 = vector.broadcast %97 : vector<64x1xf32> to vector<64x8xf32>
    %113 = arith.mulf %111, %112 : vector<64x8xf32>
    %c63_i32_47 = arith.constant 63 : i32
    %114 = tpu.dynamic_rotate %84 by %c63_i32_47 dim 0 : vector<64x8xf32>, i32 -> vector<64x8xf32>
    %115 = vector.broadcast %102 : vector<64x1xf32> to vector<64x8xf32>
    %116 = arith.mulf %114, %115 : vector<64x8xf32>
    %c62_i32_48 = arith.constant 62 : i32
    %117 = tpu.dynamic_rotate %84 by %c62_i32_48 dim 0 : vector<64x8xf32>, i32 -> vector<64x8xf32>
    %118 = vector.broadcast %107 : vector<64x1xf32> to vector<64x8xf32>
    %119 = arith.mulf %117, %118 : vector<64x8xf32>
    %120 = tpu.concatenate %110, %113, %84, %116, %119 in 1 : vector<64x8xf32>, vector<64x8xf32>, vector<64x8xf32>, vector<64x8xf32>, vector<64x8xf32> -> vector<64x40xf32>
    %c64 = arith.constant 64 : index
    %c0_49 = arith.constant 0 : index
    %121 = vector.load %arg2[%c64, %c0_49] : memref<2032x128xbf16, #tpu.memory_space<vmem>>, vector<40x16xbf16>
    %122 = arith.truncf %120 : vector<64x40xf32> to vector<64x40xbf16>
    %cst_50 = arith.constant dense<0.000000e+00> : vector<64x16xf32>
    %123 = tpu.matmul %122, %121, %cst_50 {dimension_numbers = #tpu.dot_dimension_numbers<[1], [0], [0], [1], [0, 0, 1, 1], [], []>} : vector<64x40xbf16>, vector<40x16xbf16>, vector<64x16xf32> -> vector<64x16xf32>
    %c2 = arith.constant 2 : index
    %c0_51 = arith.constant 0 : index
    %124 = vector.load %arg3[%c2, %c0_51] : memref<24x128xf32, #tpu.memory_space<vmem>>, vector<1x16xf32>
    %125 = vector.broadcast %124 : vector<1x16xf32> to vector<64x16xf32>
    %126 = arith.addf %123, %125 : vector<64x16xf32>
    %cst_52 = arith.constant 0.000000e+00 : f32
    %127 = vector.broadcast %cst_52 : f32 to vector<64x16xf32>
    %128 = arith.maximumf %126, %127 : vector<64x16xf32>
    %c2_i32_53 = arith.constant 2 : i32
    %129 = tpu.dynamic_rotate %128 by %c2_i32_53 dim 0 : vector<64x16xf32>, i32 -> vector<64x16xf32>
    %130 = vector.broadcast %92 : vector<64x1xf32> to vector<64x16xf32>
    %131 = arith.mulf %129, %130 : vector<64x16xf32>
    %c1_i32_54 = arith.constant 1 : i32
    %132 = tpu.dynamic_rotate %128 by %c1_i32_54 dim 0 : vector<64x16xf32>, i32 -> vector<64x16xf32>
    %133 = vector.broadcast %97 : vector<64x1xf32> to vector<64x16xf32>
    %134 = arith.mulf %132, %133 : vector<64x16xf32>
    %c63_i32_55 = arith.constant 63 : i32
    %135 = tpu.dynamic_rotate %128 by %c63_i32_55 dim 0 : vector<64x16xf32>, i32 -> vector<64x16xf32>
    %136 = vector.broadcast %102 : vector<64x1xf32> to vector<64x16xf32>
    %137 = arith.mulf %135, %136 : vector<64x16xf32>
    %c62_i32_56 = arith.constant 62 : i32
    %138 = tpu.dynamic_rotate %128 by %c62_i32_56 dim 0 : vector<64x16xf32>, i32 -> vector<64x16xf32>
    %139 = vector.broadcast %107 : vector<64x1xf32> to vector<64x16xf32>
    %140 = arith.mulf %138, %139 : vector<64x16xf32>
    %141 = tpu.concatenate %131, %134, %128, %137, %140 in 1 : vector<64x16xf32>, vector<64x16xf32>, vector<64x16xf32>, vector<64x16xf32>, vector<64x16xf32> -> vector<64x80xf32>
    %c112 = arith.constant 112 : index
    %c0_57 = arith.constant 0 : index
    %142 = vector.load %arg2[%c112, %c0_57] : memref<2032x128xbf16, #tpu.memory_space<vmem>>, vector<80x16xbf16>
    %143 = arith.truncf %141 : vector<64x80xf32> to vector<64x80xbf16>
    %cst_58 = arith.constant dense<0.000000e+00> : vector<64x16xf32>
    %144 = tpu.matmul %143, %142, %cst_58 {dimension_numbers = #tpu.dot_dimension_numbers<[1], [0], [0], [1], [0, 0, 1, 1], [], []>} : vector<64x80xbf16>, vector<80x16xbf16>, vector<64x16xf32> -> vector<64x16xf32>
    %c3 = arith.constant 3 : index
    %c0_59 = arith.constant 0 : index
    %145 = vector.load %arg3[%c3, %c0_59] : memref<24x128xf32, #tpu.memory_space<vmem>>, vector<1x16xf32>
    %146 = vector.broadcast %145 : vector<1x16xf32> to vector<64x16xf32>
    %147 = arith.addf %144, %146 : vector<64x16xf32>
    %cst_60 = arith.constant 0.000000e+00 : f32
    %148 = vector.broadcast %cst_60 : f32 to vector<64x16xf32>
    %149 = arith.maximumf %147, %148 : vector<64x16xf32>
    %c63_i32_61 = arith.constant 63 : i32
    %150 = tpu.dynamic_rotate %149 by %c63_i32_61 dim 0 : vector<64x16xf32>, i32 -> vector<64x16xf32>
    %151 = arith.maximumf %149, %150 : vector<64x16xf32>
    %152 = tpu.iota {dimensions = array<i32: 0>} : vector<32x64xi32>
    %153 = tpu.iota {dimensions = array<i32: 1>} : vector<32x64xi32>
    %c2_i32_62 = arith.constant 2 : i32
    %154 = vector.broadcast %c2_i32_62 : i32 to vector<32x64xi32>
    %155 = arith.muli %154, %152 : vector<32x64xi32>
    %156 = arith.cmpi eq, %153, %155 : vector<32x64xi32>
    %cst_63 = arith.constant 1.000000e+00 : f32
    %cst_64 = arith.constant 0.000000e+00 : f32
    %157 = vector.broadcast %cst_63 : f32 to vector<32x64xf32>
    %158 = vector.broadcast %cst_64 : f32 to vector<32x64xf32>
    %159 = arith.select %156, %157, %158 : vector<32x64xi1>, vector<32x64xf32>
    %160 = arith.truncf %159 : vector<32x64xf32> to vector<32x64xbf16>
    %161 = arith.truncf %151 : vector<64x16xf32> to vector<64x16xbf16>
    %cst_65 = arith.constant dense<0.000000e+00> : vector<32x16xf32>
    %162 = tpu.matmul %160, %161, %cst_65 {dimension_numbers = #tpu.dot_dimension_numbers<[1], [0], [0], [1], [0, 0, 1, 1], [], []>} : vector<32x64xbf16>, vector<64x16xbf16>, vector<32x16xf32> -> vector<32x16xf32>
    %163 = tpu.iota {dimensions = array<i32: 0>} : vector<32x1xi32>
    %c15_i32 = arith.constant 15 : i32
    %164 = vector.broadcast %c15_i32 : i32 to vector<32x1xi32>
    %165 = arith.andi %163, %164 : vector<32x1xi32>
    %c2_i32_66 = arith.constant 2 : i32
    %166 = vector.broadcast %c2_i32_66 : i32 to vector<32x1xi32>
    %167 = arith.cmpi sge, %165, %166 : vector<32x1xi32>
    %cst_67 = arith.constant 1.000000e+00 : f32
    %cst_68 = arith.constant 0.000000e+00 : f32
    %168 = vector.broadcast %cst_67 : f32 to vector<32x1xf32>
    %169 = vector.broadcast %cst_68 : f32 to vector<32x1xf32>
    %170 = arith.select %167, %168, %169 : vector<32x1xi1>, vector<32x1xf32>
    %c1_i32_69 = arith.constant 1 : i32
    %171 = vector.broadcast %c1_i32_69 : i32 to vector<32x1xi32>
    %172 = arith.cmpi sge, %165, %171 : vector<32x1xi32>
    %cst_70 = arith.constant 1.000000e+00 : f32
    %cst_71 = arith.constant 0.000000e+00 : f32
    %173 = vector.broadcast %cst_70 : f32 to vector<32x1xf32>
    %174 = vector.broadcast %cst_71 : f32 to vector<32x1xf32>
    %175 = arith.select %172, %173, %174 : vector<32x1xi1>, vector<32x1xf32>
    %c15_i32_72 = arith.constant 15 : i32
    %176 = vector.broadcast %c15_i32_72 : i32 to vector<32x1xi32>
    %177 = arith.cmpi slt, %165, %176 : vector<32x1xi32>
    %cst_73 = arith.constant 1.000000e+00 : f32
    %cst_74 = arith.constant 0.000000e+00 : f32
    %178 = vector.broadcast %cst_73 : f32 to vector<32x1xf32>
    %179 = vector.broadcast %cst_74 : f32 to vector<32x1xf32>
    %180 = arith.select %177, %178, %179 : vector<32x1xi1>, vector<32x1xf32>
    %c14_i32 = arith.constant 14 : i32
    %181 = vector.broadcast %c14_i32 : i32 to vector<32x1xi32>
    %182 = arith.cmpi slt, %165, %181 : vector<32x1xi32>
    %cst_75 = arith.constant 1.000000e+00 : f32
    %cst_76 = arith.constant 0.000000e+00 : f32
    %183 = vector.broadcast %cst_75 : f32 to vector<32x1xf32>
    %184 = vector.broadcast %cst_76 : f32 to vector<32x1xf32>
    %185 = arith.select %182, %183, %184 : vector<32x1xi1>, vector<32x1xf32>
    %c2_i32_77 = arith.constant 2 : i32
    %186 = tpu.dynamic_rotate %162 by %c2_i32_77 dim 0 : vector<32x16xf32>, i32 -> vector<32x16xf32>
    %187 = vector.broadcast %170 : vector<32x1xf32> to vector<32x16xf32>
    %188 = arith.mulf %186, %187 : vector<32x16xf32>
    %c1_i32_78 = arith.constant 1 : i32
    %189 = tpu.dynamic_rotate %162 by %c1_i32_78 dim 0 : vector<32x16xf32>, i32 -> vector<32x16xf32>
    %190 = vector.broadcast %175 : vector<32x1xf32> to vector<32x16xf32>
    %191 = arith.mulf %189, %190 : vector<32x16xf32>
    %c31_i32_79 = arith.constant 31 : i32
    %192 = tpu.dynamic_rotate %162 by %c31_i32_79 dim 0 : vector<32x16xf32>, i32 -> vector<32x16xf32>
    %193 = vector.broadcast %180 : vector<32x1xf32> to vector<32x16xf32>
    %194 = arith.mulf %192, %193 : vector<32x16xf32>
    %c30_i32_80 = arith.constant 30 : i32
    %195 = tpu.dynamic_rotate %162 by %c30_i32_80 dim 0 : vector<32x16xf32>, i32 -> vector<32x16xf32>
    %196 = vector.broadcast %185 : vector<32x1xf32> to vector<32x16xf32>
    %197 = arith.mulf %195, %196 : vector<32x16xf32>
    %198 = tpu.concatenate %188, %191, %162, %194, %197 in 1 : vector<32x16xf32>, vector<32x16xf32>, vector<32x16xf32>, vector<32x16xf32>, vector<32x16xf32> -> vector<32x80xf32>
    %c192 = arith.constant 192 : index
    %c0_81 = arith.constant 0 : index
    %199 = vector.load %arg2[%c192, %c0_81] : memref<2032x128xbf16, #tpu.memory_space<vmem>>, vector<80x32xbf16>
    %200 = arith.truncf %198 : vector<32x80xf32> to vector<32x80xbf16>
    %cst_82 = arith.constant dense<0.000000e+00> : vector<32x32xf32>
    %201 = tpu.matmul %200, %199, %cst_82 {dimension_numbers = #tpu.dot_dimension_numbers<[1], [0], [0], [1], [0, 0, 1, 1], [], []>} : vector<32x80xbf16>, vector<80x32xbf16>, vector<32x32xf32> -> vector<32x32xf32>
    %c4 = arith.constant 4 : index
    %c0_83 = arith.constant 0 : index
    %202 = vector.load %arg3[%c4, %c0_83] : memref<24x128xf32, #tpu.memory_space<vmem>>, vector<1x32xf32>
    %203 = vector.broadcast %202 : vector<1x32xf32> to vector<32x32xf32>
    %204 = arith.addf %201, %203 : vector<32x32xf32>
    %cst_84 = arith.constant 0.000000e+00 : f32
    %205 = vector.broadcast %cst_84 : f32 to vector<32x32xf32>
    %206 = arith.maximumf %204, %205 : vector<32x32xf32>
    %c2_i32_85 = arith.constant 2 : i32
    %207 = tpu.dynamic_rotate %206 by %c2_i32_85 dim 0 : vector<32x32xf32>, i32 -> vector<32x32xf32>
    %208 = vector.broadcast %170 : vector<32x1xf32> to vector<32x32xf32>
    %209 = arith.mulf %207, %208 : vector<32x32xf32>
    %c1_i32_86 = arith.constant 1 : i32
    %210 = tpu.dynamic_rotate %206 by %c1_i32_86 dim 0 : vector<32x32xf32>, i32 -> vector<32x32xf32>
    %211 = vector.broadcast %175 : vector<32x1xf32> to vector<32x32xf32>
    %212 = arith.mulf %210, %211 : vector<32x32xf32>
    %c31_i32_87 = arith.constant 31 : i32
    %213 = tpu.dynamic_rotate %206 by %c31_i32_87 dim 0 : vector<32x32xf32>, i32 -> vector<32x32xf32>
    %214 = vector.broadcast %180 : vector<32x1xf32> to vector<32x32xf32>
    %215 = arith.mulf %213, %214 : vector<32x32xf32>
    %c30_i32_88 = arith.constant 30 : i32
    %216 = tpu.dynamic_rotate %206 by %c30_i32_88 dim 0 : vector<32x32xf32>, i32 -> vector<32x32xf32>
    %217 = vector.broadcast %185 : vector<32x1xf32> to vector<32x32xf32>
    %218 = arith.mulf %216, %217 : vector<32x32xf32>
    %219 = tpu.concatenate %209, %212, %206, %215, %218 in 1 : vector<32x32xf32>, vector<32x32xf32>, vector<32x32xf32>, vector<32x32xf32>, vector<32x32xf32> -> vector<32x160xf32>
    %c272 = arith.constant 272 : index
    %c0_89 = arith.constant 0 : index
    %220 = vector.load %arg2[%c272, %c0_89] : memref<2032x128xbf16, #tpu.memory_space<vmem>>, vector<160x32xbf16>
    %221 = arith.truncf %219 : vector<32x160xf32> to vector<32x160xbf16>
    %cst_90 = arith.constant dense<0.000000e+00> : vector<32x32xf32>
    %222 = tpu.matmul %221, %220, %cst_90 {dimension_numbers = #tpu.dot_dimension_numbers<[1], [0], [0], [1], [0, 0, 1, 1], [], []>} : vector<32x160xbf16>, vector<160x32xbf16>, vector<32x32xf32> -> vector<32x32xf32>
    %c5 = arith.constant 5 : index
    %c0_91 = arith.constant 0 : index
    %223 = vector.load %arg3[%c5, %c0_91] : memref<24x128xf32, #tpu.memory_space<vmem>>, vector<1x32xf32>
    %224 = vector.broadcast %223 : vector<1x32xf32> to vector<32x32xf32>
    %225 = arith.addf %222, %224 : vector<32x32xf32>
    %cst_92 = arith.constant 0.000000e+00 : f32
    %226 = vector.broadcast %cst_92 : f32 to vector<32x32xf32>
    %227 = arith.maximumf %225, %226 : vector<32x32xf32>
    %c31_i32_93 = arith.constant 31 : i32
    %228 = tpu.dynamic_rotate %227 by %c31_i32_93 dim 0 : vector<32x32xf32>, i32 -> vector<32x32xf32>
    %229 = arith.maximumf %227, %228 : vector<32x32xf32>
    %230 = tpu.iota {dimensions = array<i32: 0>} : vector<16x32xi32>
    %231 = tpu.iota {dimensions = array<i32: 1>} : vector<16x32xi32>
    %c2_i32_94 = arith.constant 2 : i32
    %232 = vector.broadcast %c2_i32_94 : i32 to vector<16x32xi32>
    %233 = arith.muli %232, %230 : vector<16x32xi32>
    %234 = arith.cmpi eq, %231, %233 : vector<16x32xi32>
    %cst_95 = arith.constant 1.000000e+00 : f32
    %cst_96 = arith.constant 0.000000e+00 : f32
    %235 = vector.broadcast %cst_95 : f32 to vector<16x32xf32>
    %236 = vector.broadcast %cst_96 : f32 to vector<16x32xf32>
    %237 = arith.select %234, %235, %236 : vector<16x32xi1>, vector<16x32xf32>
    %238 = arith.truncf %237 : vector<16x32xf32> to vector<16x32xbf16>
    %239 = arith.truncf %229 : vector<32x32xf32> to vector<32x32xbf16>
    %cst_97 = arith.constant dense<0.000000e+00> : vector<16x32xf32>
    %240 = tpu.matmul %238, %239, %cst_97 {dimension_numbers = #tpu.dot_dimension_numbers<[1], [0], [0], [1], [0, 0, 1, 1], [], []>} : vector<16x32xbf16>, vector<32x32xbf16>, vector<16x32xf32> -> vector<16x32xf32>
    %241 = tpu.iota {dimensions = array<i32: 0>} : vector<16x1xi32>
    %c7_i32 = arith.constant 7 : i32
    %242 = vector.broadcast %c7_i32 : i32 to vector<16x1xi32>
    %243 = arith.andi %241, %242 : vector<16x1xi32>
    %c2_i32_98 = arith.constant 2 : i32
    %244 = vector.broadcast %c2_i32_98 : i32 to vector<16x1xi32>
    %245 = arith.cmpi sge, %243, %244 : vector<16x1xi32>
    %cst_99 = arith.constant 1.000000e+00 : f32
    %cst_100 = arith.constant 0.000000e+00 : f32
    %246 = vector.broadcast %cst_99 : f32 to vector<16x1xf32>
    %247 = vector.broadcast %cst_100 : f32 to vector<16x1xf32>
    %248 = arith.select %245, %246, %247 : vector<16x1xi1>, vector<16x1xf32>
    %c1_i32_101 = arith.constant 1 : i32
    %249 = vector.broadcast %c1_i32_101 : i32 to vector<16x1xi32>
    %250 = arith.cmpi sge, %243, %249 : vector<16x1xi32>
    %cst_102 = arith.constant 1.000000e+00 : f32
    %cst_103 = arith.constant 0.000000e+00 : f32
    %251 = vector.broadcast %cst_102 : f32 to vector<16x1xf32>
    %252 = vector.broadcast %cst_103 : f32 to vector<16x1xf32>
    %253 = arith.select %250, %251, %252 : vector<16x1xi1>, vector<16x1xf32>
    %c7_i32_104 = arith.constant 7 : i32
    %254 = vector.broadcast %c7_i32_104 : i32 to vector<16x1xi32>
    %255 = arith.cmpi slt, %243, %254 : vector<16x1xi32>
    %cst_105 = arith.constant 1.000000e+00 : f32
    %cst_106 = arith.constant 0.000000e+00 : f32
    %256 = vector.broadcast %cst_105 : f32 to vector<16x1xf32>
    %257 = vector.broadcast %cst_106 : f32 to vector<16x1xf32>
    %258 = arith.select %255, %256, %257 : vector<16x1xi1>, vector<16x1xf32>
    %c6_i32 = arith.constant 6 : i32
    %259 = vector.broadcast %c6_i32 : i32 to vector<16x1xi32>
    %260 = arith.cmpi slt, %243, %259 : vector<16x1xi32>
    %cst_107 = arith.constant 1.000000e+00 : f32
    %cst_108 = arith.constant 0.000000e+00 : f32
    %261 = vector.broadcast %cst_107 : f32 to vector<16x1xf32>
    %262 = vector.broadcast %cst_108 : f32 to vector<16x1xf32>
    %263 = arith.select %260, %261, %262 : vector<16x1xi1>, vector<16x1xf32>
    %c2_i32_109 = arith.constant 2 : i32
    %264 = tpu.dynamic_rotate %240 by %c2_i32_109 dim 0 : vector<16x32xf32>, i32 -> vector<16x32xf32>
    %265 = vector.broadcast %248 : vector<16x1xf32> to vector<16x32xf32>
    %266 = arith.mulf %264, %265 : vector<16x32xf32>
    %c1_i32_110 = arith.constant 1 : i32
    %267 = tpu.dynamic_rotate %240 by %c1_i32_110 dim 0 : vector<16x32xf32>, i32 -> vector<16x32xf32>
    %268 = vector.broadcast %253 : vector<16x1xf32> to vector<16x32xf32>
    %269 = arith.mulf %267, %268 : vector<16x32xf32>
    %c15_i32_111 = arith.constant 15 : i32
    %270 = tpu.dynamic_rotate %240 by %c15_i32_111 dim 0 : vector<16x32xf32>, i32 -> vector<16x32xf32>
    %271 = vector.broadcast %258 : vector<16x1xf32> to vector<16x32xf32>
    %272 = arith.mulf %270, %271 : vector<16x32xf32>
    %c14_i32_112 = arith.constant 14 : i32
    %273 = tpu.dynamic_rotate %240 by %c14_i32_112 dim 0 : vector<16x32xf32>, i32 -> vector<16x32xf32>
    %274 = vector.broadcast %263 : vector<16x1xf32> to vector<16x32xf32>
    %275 = arith.mulf %273, %274 : vector<16x32xf32>
    %276 = tpu.concatenate %266, %269, %240, %272, %275 in 1 : vector<16x32xf32>, vector<16x32xf32>, vector<16x32xf32>, vector<16x32xf32>, vector<16x32xf32> -> vector<16x160xf32>
    %c432 = arith.constant 432 : index
    %c0_113 = arith.constant 0 : index
    %277 = vector.load %arg2[%c432, %c0_113] : memref<2032x128xbf16, #tpu.memory_space<vmem>>, vector<160x64xbf16>
    %278 = arith.truncf %276 : vector<16x160xf32> to vector<16x160xbf16>
    %cst_114 = arith.constant dense<0.000000e+00> : vector<16x64xf32>
    %279 = tpu.matmul %278, %277, %cst_114 {dimension_numbers = #tpu.dot_dimension_numbers<[1], [0], [0], [1], [0, 0, 1, 1], [], []>} : vector<16x160xbf16>, vector<160x64xbf16>, vector<16x64xf32> -> vector<16x64xf32>
    %c6 = arith.constant 6 : index
    %c0_115 = arith.constant 0 : index
    %280 = vector.load %arg3[%c6, %c0_115] : memref<24x128xf32, #tpu.memory_space<vmem>>, vector<1x64xf32>
    %281 = vector.broadcast %280 : vector<1x64xf32> to vector<16x64xf32>
    %282 = arith.addf %279, %281 : vector<16x64xf32>
    %cst_116 = arith.constant 0.000000e+00 : f32
    %283 = vector.broadcast %cst_116 : f32 to vector<16x64xf32>
    %284 = arith.maximumf %282, %283 : vector<16x64xf32>
    %c2_i32_117 = arith.constant 2 : i32
    %285 = tpu.dynamic_rotate %284 by %c2_i32_117 dim 0 : vector<16x64xf32>, i32 -> vector<16x64xf32>
    %286 = vector.broadcast %248 : vector<16x1xf32> to vector<16x64xf32>
    %287 = arith.mulf %285, %286 : vector<16x64xf32>
    %c1_i32_118 = arith.constant 1 : i32
    %288 = tpu.dynamic_rotate %284 by %c1_i32_118 dim 0 : vector<16x64xf32>, i32 -> vector<16x64xf32>
    %289 = vector.broadcast %253 : vector<16x1xf32> to vector<16x64xf32>
    %290 = arith.mulf %288, %289 : vector<16x64xf32>
    %c15_i32_119 = arith.constant 15 : i32
    %291 = tpu.dynamic_rotate %284 by %c15_i32_119 dim 0 : vector<16x64xf32>, i32 -> vector<16x64xf32>
    %292 = vector.broadcast %258 : vector<16x1xf32> to vector<16x64xf32>
    %293 = arith.mulf %291, %292 : vector<16x64xf32>
    %c14_i32_120 = arith.constant 14 : i32
    %294 = tpu.dynamic_rotate %284 by %c14_i32_120 dim 0 : vector<16x64xf32>, i32 -> vector<16x64xf32>
    %295 = vector.broadcast %263 : vector<16x1xf32> to vector<16x64xf32>
    %296 = arith.mulf %294, %295 : vector<16x64xf32>
    %297 = tpu.concatenate %287, %290, %284, %293, %296 in 1 : vector<16x64xf32>, vector<16x64xf32>, vector<16x64xf32>, vector<16x64xf32>, vector<16x64xf32> -> vector<16x320xf32>
    %c592 = arith.constant 592 : index
    %c0_121 = arith.constant 0 : index
    %298 = vector.load %arg2[%c592, %c0_121] : memref<2032x128xbf16, #tpu.memory_space<vmem>>, vector<320x64xbf16>
    %299 = arith.truncf %297 : vector<16x320xf32> to vector<16x320xbf16>
    %cst_122 = arith.constant dense<0.000000e+00> : vector<16x64xf32>
    %300 = tpu.matmul %299, %298, %cst_122 {dimension_numbers = #tpu.dot_dimension_numbers<[1], [0], [0], [1], [0, 0, 1, 1], [], []>} : vector<16x320xbf16>, vector<320x64xbf16>, vector<16x64xf32> -> vector<16x64xf32>
    %c7 = arith.constant 7 : index
    %c0_123 = arith.constant 0 : index
    %301 = vector.load %arg3[%c7, %c0_123] : memref<24x128xf32, #tpu.memory_space<vmem>>, vector<1x64xf32>
    %302 = vector.broadcast %301 : vector<1x64xf32> to vector<16x64xf32>
    %303 = arith.addf %300, %302 : vector<16x64xf32>
    %cst_124 = arith.constant 0.000000e+00 : f32
    %304 = vector.broadcast %cst_124 : f32 to vector<16x64xf32>
    %305 = arith.maximumf %303, %304 : vector<16x64xf32>
    %306 = arith.truncf %305 : vector<16x64xf32> to vector<16x64xbf16>
    %c1808 = arith.constant 1808 : index
    %c0_125 = arith.constant 0 : index
    %307 = vector.load %arg2[%c1808, %c0_125] : memref<2032x128xbf16, #tpu.memory_space<vmem>>, vector<64x32xbf16>
    %cst_126 = arith.constant dense<0.000000e+00> : vector<16x32xf32>
    %308 = tpu.matmul %306, %307, %cst_126 {dimension_numbers = #tpu.dot_dimension_numbers<[1], [0], [0], [1], [0, 0, 1, 1], [], []>} : vector<16x64xbf16>, vector<64x32xbf16>, vector<16x32xf32> -> vector<16x32xf32>
    %c1872 = arith.constant 1872 : index
    %c0_127 = arith.constant 0 : index
    %309 = vector.load %arg2[%c1872, %c0_127] : memref<2032x128xbf16, #tpu.memory_space<vmem>>, vector<64x32xbf16>
    %cst_128 = arith.constant dense<0.000000e+00> : vector<16x32xf32>
    %310 = tpu.matmul %306, %309, %cst_128 {dimension_numbers = #tpu.dot_dimension_numbers<[1], [0], [0], [1], [0, 0, 1, 1], [], []>} : vector<16x64xbf16>, vector<64x32xbf16>, vector<16x32xf32> -> vector<16x32xf32>
    %311 = tpu.concatenate %308, %310 in 0 : vector<16x32xf32>, vector<16x32xf32> -> vector<32x32xf32>
    %312 = tpu.iota {dimensions = array<i32: 0>} : vector<32x32xi32>
    %313 = tpu.iota {dimensions = array<i32: 1>} : vector<32x32xi32>
    %c2_i32_129 = arith.constant 2 : i32
    %314 = vector.broadcast %c2_i32_129 : i32 to vector<32x32xi32>
    %315 = arith.muli %314, %313 : vector<32x32xi32>
    %316 = arith.cmpi eq, %312, %315 : vector<32x32xi32>
    %c16_i32 = arith.constant 16 : i32
    %317 = vector.broadcast %c16_i32 : i32 to vector<32x32xi32>
    %318 = arith.subi %313, %317 : vector<32x32xi32>
    %c2_i32_130 = arith.constant 2 : i32
    %319 = vector.broadcast %c2_i32_130 : i32 to vector<32x32xi32>
    %320 = arith.muli %319, %318 : vector<32x32xi32>
    %c1_i32_131 = arith.constant 1 : i32
    %321 = vector.broadcast %c1_i32_131 : i32 to vector<32x32xi32>
    %322 = arith.addi %320, %321 : vector<32x32xi32>
    %323 = arith.cmpi eq, %312, %322 : vector<32x32xi32>
    %324 = arith.ori %316, %323 : vector<32x32xi1>
    %cst_132 = arith.constant 1.000000e+00 : f32
    %cst_133 = arith.constant 0.000000e+00 : f32
    %325 = vector.broadcast %cst_132 : f32 to vector<32x32xf32>
    %326 = vector.broadcast %cst_133 : f32 to vector<32x32xf32>
    %327 = arith.select %324, %325, %326 : vector<32x32xi1>, vector<32x32xf32>
    %328 = arith.truncf %327 : vector<32x32xf32> to vector<32x32xbf16>
    %329 = arith.truncf %311 : vector<32x32xf32> to vector<32x32xbf16>
    %cst_134 = arith.constant dense<0.000000e+00> : vector<32x32xf32>
    %330 = tpu.matmul %328, %329, %cst_134 {dimension_numbers = #tpu.dot_dimension_numbers<[1], [0], [0], [1], [0, 0, 1, 1], [], []>} : vector<32x32xbf16>, vector<32x32xbf16>, vector<32x32xf32> -> vector<32x32xf32>
    %c15 = arith.constant 15 : index
    %c0_135 = arith.constant 0 : index
    %331 = vector.load %arg3[%c15, %c0_135] : memref<24x128xf32, #tpu.memory_space<vmem>>, vector<1x32xf32>
    %332 = vector.broadcast %331 : vector<1x32xf32> to vector<32x32xf32>
    %333 = arith.addf %330, %332 : vector<32x32xf32>
    %334 = tpu.concatenate %333, %227 in 1 : vector<32x32xf32>, vector<32x32xf32> -> vector<32x64xf32>
    %c2_i32_136 = arith.constant 2 : i32
    %335 = tpu.dynamic_rotate %334 by %c2_i32_136 dim 0 : vector<32x64xf32>, i32 -> vector<32x64xf32>
    %336 = vector.broadcast %170 : vector<32x1xf32> to vector<32x64xf32>
    %337 = arith.mulf %335, %336 : vector<32x64xf32>
    %c1_i32_137 = arith.constant 1 : i32
    %338 = tpu.dynamic_rotate %334 by %c1_i32_137 dim 0 : vector<32x64xf32>, i32 -> vector<32x64xf32>
    %339 = vector.broadcast %175 : vector<32x1xf32> to vector<32x64xf32>
    %340 = arith.mulf %338, %339 : vector<32x64xf32>
    %c31_i32_138 = arith.constant 31 : i32
    %341 = tpu.dynamic_rotate %334 by %c31_i32_138 dim 0 : vector<32x64xf32>, i32 -> vector<32x64xf32>
    %342 = vector.broadcast %180 : vector<32x1xf32> to vector<32x64xf32>
    %343 = arith.mulf %341, %342 : vector<32x64xf32>
    %c30_i32_139 = arith.constant 30 : i32
    %344 = tpu.dynamic_rotate %334 by %c30_i32_139 dim 0 : vector<32x64xf32>, i32 -> vector<32x64xf32>
    %345 = vector.broadcast %185 : vector<32x1xf32> to vector<32x64xf32>
    %346 = arith.mulf %344, %345 : vector<32x64xf32>
    %347 = tpu.concatenate %337, %340, %334, %343, %346 in 1 : vector<32x64xf32>, vector<32x64xf32>, vector<32x64xf32>, vector<32x64xf32>, vector<32x64xf32> -> vector<32x320xf32>
    %c912 = arith.constant 912 : index
    %c0_140 = arith.constant 0 : index
    %348 = vector.load %arg2[%c912, %c0_140] : memref<2032x128xbf16, #tpu.memory_space<vmem>>, vector<320x32xbf16>
    %349 = arith.truncf %347 : vector<32x320xf32> to vector<32x320xbf16>
    %cst_141 = arith.constant dense<0.000000e+00> : vector<32x32xf32>
    %350 = tpu.matmul %349, %348, %cst_141 {dimension_numbers = #tpu.dot_dimension_numbers<[1], [0], [0], [1], [0, 0, 1, 1], [], []>} : vector<32x320xbf16>, vector<320x32xbf16>, vector<32x32xf32> -> vector<32x32xf32>
    %c8 = arith.constant 8 : index
    %c0_142 = arith.constant 0 : index
    %351 = vector.load %arg3[%c8, %c0_142] : memref<24x128xf32, #tpu.memory_space<vmem>>, vector<1x32xf32>
    %352 = vector.broadcast %351 : vector<1x32xf32> to vector<32x32xf32>
    %353 = arith.addf %350, %352 : vector<32x32xf32>
    %cst_143 = arith.constant 0.000000e+00 : f32
    %354 = vector.broadcast %cst_143 : f32 to vector<32x32xf32>
    %355 = arith.maximumf %353, %354 : vector<32x32xf32>
    %c2_i32_144 = arith.constant 2 : i32
    %356 = tpu.dynamic_rotate %355 by %c2_i32_144 dim 0 : vector<32x32xf32>, i32 -> vector<32x32xf32>
    %357 = vector.broadcast %170 : vector<32x1xf32> to vector<32x32xf32>
    %358 = arith.mulf %356, %357 : vector<32x32xf32>
    %c1_i32_145 = arith.constant 1 : i32
    %359 = tpu.dynamic_rotate %355 by %c1_i32_145 dim 0 : vector<32x32xf32>, i32 -> vector<32x32xf32>
    %360 = vector.broadcast %175 : vector<32x1xf32> to vector<32x32xf32>
    %361 = arith.mulf %359, %360 : vector<32x32xf32>
    %c31_i32_146 = arith.constant 31 : i32
    %362 = tpu.dynamic_rotate %355 by %c31_i32_146 dim 0 : vector<32x32xf32>, i32 -> vector<32x32xf32>
    %363 = vector.broadcast %180 : vector<32x1xf32> to vector<32x32xf32>
    %364 = arith.mulf %362, %363 : vector<32x32xf32>
    %c30_i32_147 = arith.constant 30 : i32
    %365 = tpu.dynamic_rotate %355 by %c30_i32_147 dim 0 : vector<32x32xf32>, i32 -> vector<32x32xf32>
    %366 = vector.broadcast %185 : vector<32x1xf32> to vector<32x32xf32>
    %367 = arith.mulf %365, %366 : vector<32x32xf32>
    %368 = tpu.concatenate %358, %361, %355, %364, %367 in 1 : vector<32x32xf32>, vector<32x32xf32>, vector<32x32xf32>, vector<32x32xf32>, vector<32x32xf32> -> vector<32x160xf32>
    %c1232 = arith.constant 1232 : index
    %c0_148 = arith.constant 0 : index
    %369 = vector.load %arg2[%c1232, %c0_148] : memref<2032x128xbf16, #tpu.memory_space<vmem>>, vector<160x32xbf16>
    %370 = arith.truncf %368 : vector<32x160xf32> to vector<32x160xbf16>
    %cst_149 = arith.constant dense<0.000000e+00> : vector<32x32xf32>
    %371 = tpu.matmul %370, %369, %cst_149 {dimension_numbers = #tpu.dot_dimension_numbers<[1], [0], [0], [1], [0, 0, 1, 1], [], []>} : vector<32x160xbf16>, vector<160x32xbf16>, vector<32x32xf32> -> vector<32x32xf32>
    %c9 = arith.constant 9 : index
    %c0_150 = arith.constant 0 : index
    %372 = vector.load %arg3[%c9, %c0_150] : memref<24x128xf32, #tpu.memory_space<vmem>>, vector<1x32xf32>
    %373 = vector.broadcast %372 : vector<1x32xf32> to vector<32x32xf32>
    %374 = arith.addf %371, %373 : vector<32x32xf32>
    %cst_151 = arith.constant 0.000000e+00 : f32
    %375 = vector.broadcast %cst_151 : f32 to vector<32x32xf32>
    %376 = arith.maximumf %374, %375 : vector<32x32xf32>
    %377 = arith.truncf %376 : vector<32x32xf32> to vector<32x32xbf16>
    %c1936 = arith.constant 1936 : index
    %c0_152 = arith.constant 0 : index
    %378 = vector.load %arg2[%c1936, %c0_152] : memref<2032x128xbf16, #tpu.memory_space<vmem>>, vector<32x16xbf16>
    %cst_153 = arith.constant dense<0.000000e+00> : vector<32x16xf32>
    %379 = tpu.matmul %377, %378, %cst_153 {dimension_numbers = #tpu.dot_dimension_numbers<[1], [0], [0], [1], [0, 0, 1, 1], [], []>} : vector<32x32xbf16>, vector<32x16xbf16>, vector<32x16xf32> -> vector<32x16xf32>
    %c1968 = arith.constant 1968 : index
    %c0_154 = arith.constant 0 : index
    %380 = vector.load %arg2[%c1968, %c0_154] : memref<2032x128xbf16, #tpu.memory_space<vmem>>, vector<32x16xbf16>
    %cst_155 = arith.constant dense<0.000000e+00> : vector<32x16xf32>
    %381 = tpu.matmul %377, %380, %cst_155 {dimension_numbers = #tpu.dot_dimension_numbers<[1], [0], [0], [1], [0, 0, 1, 1], [], []>} : vector<32x32xbf16>, vector<32x16xbf16>, vector<32x16xf32> -> vector<32x16xf32>
    %382 = tpu.concatenate %379, %381 in 0 : vector<32x16xf32>, vector<32x16xf32> -> vector<64x16xf32>
    %383 = tpu.iota {dimensions = array<i32: 0>} : vector<64x64xi32>
    %384 = tpu.iota {dimensions = array<i32: 1>} : vector<64x64xi32>
    %c2_i32_156 = arith.constant 2 : i32
    %385 = vector.broadcast %c2_i32_156 : i32 to vector<64x64xi32>
    %386 = arith.muli %385, %384 : vector<64x64xi32>
    %387 = arith.cmpi eq, %383, %386 : vector<64x64xi32>
    %c32_i32 = arith.constant 32 : i32
    %388 = vector.broadcast %c32_i32 : i32 to vector<64x64xi32>
    %389 = arith.subi %384, %388 : vector<64x64xi32>
    %c2_i32_157 = arith.constant 2 : i32
    %390 = vector.broadcast %c2_i32_157 : i32 to vector<64x64xi32>
    %391 = arith.muli %390, %389 : vector<64x64xi32>
    %c1_i32_158 = arith.constant 1 : i32
    %392 = vector.broadcast %c1_i32_158 : i32 to vector<64x64xi32>
    %393 = arith.addi %391, %392 : vector<64x64xi32>
    %394 = arith.cmpi eq, %383, %393 : vector<64x64xi32>
    %395 = arith.ori %387, %394 : vector<64x64xi1>
    %cst_159 = arith.constant 1.000000e+00 : f32
    %cst_160 = arith.constant 0.000000e+00 : f32
    %396 = vector.broadcast %cst_159 : f32 to vector<64x64xf32>
    %397 = vector.broadcast %cst_160 : f32 to vector<64x64xf32>
    %398 = arith.select %395, %396, %397 : vector<64x64xi1>, vector<64x64xf32>
    %399 = arith.truncf %398 : vector<64x64xf32> to vector<64x64xbf16>
    %400 = arith.truncf %382 : vector<64x16xf32> to vector<64x16xbf16>
    %cst_161 = arith.constant dense<0.000000e+00> : vector<64x16xf32>
    %401 = tpu.matmul %399, %400, %cst_161 {dimension_numbers = #tpu.dot_dimension_numbers<[1], [0], [0], [1], [0, 0, 1, 1], [], []>} : vector<64x64xbf16>, vector<64x16xbf16>, vector<64x16xf32> -> vector<64x16xf32>
    %c16_162 = arith.constant 16 : index
    %c0_163 = arith.constant 0 : index
    %402 = vector.load %arg3[%c16_162, %c0_163] : memref<24x128xf32, #tpu.memory_space<vmem>>, vector<1x16xf32>
    %403 = vector.broadcast %402 : vector<1x16xf32> to vector<64x16xf32>
    %404 = arith.addf %401, %403 : vector<64x16xf32>
    %405 = tpu.concatenate %404, %149 in 1 : vector<64x16xf32>, vector<64x16xf32> -> vector<64x32xf32>
    %c2_i32_164 = arith.constant 2 : i32
    %406 = tpu.dynamic_rotate %405 by %c2_i32_164 dim 0 : vector<64x32xf32>, i32 -> vector<64x32xf32>
    %407 = vector.broadcast %92 : vector<64x1xf32> to vector<64x32xf32>
    %408 = arith.mulf %406, %407 : vector<64x32xf32>
    %c1_i32_165 = arith.constant 1 : i32
    %409 = tpu.dynamic_rotate %405 by %c1_i32_165 dim 0 : vector<64x32xf32>, i32 -> vector<64x32xf32>
    %410 = vector.broadcast %97 : vector<64x1xf32> to vector<64x32xf32>
    %411 = arith.mulf %409, %410 : vector<64x32xf32>
    %c63_i32_166 = arith.constant 63 : i32
    %412 = tpu.dynamic_rotate %405 by %c63_i32_166 dim 0 : vector<64x32xf32>, i32 -> vector<64x32xf32>
    %413 = vector.broadcast %102 : vector<64x1xf32> to vector<64x32xf32>
    %414 = arith.mulf %412, %413 : vector<64x32xf32>
    %c62_i32_167 = arith.constant 62 : i32
    %415 = tpu.dynamic_rotate %405 by %c62_i32_167 dim 0 : vector<64x32xf32>, i32 -> vector<64x32xf32>
    %416 = vector.broadcast %107 : vector<64x1xf32> to vector<64x32xf32>
    %417 = arith.mulf %415, %416 : vector<64x32xf32>
    %418 = tpu.concatenate %408, %411, %405, %414, %417 in 1 : vector<64x32xf32>, vector<64x32xf32>, vector<64x32xf32>, vector<64x32xf32>, vector<64x32xf32> -> vector<64x160xf32>
    %c1392 = arith.constant 1392 : index
    %c0_168 = arith.constant 0 : index
    %419 = vector.load %arg2[%c1392, %c0_168] : memref<2032x128xbf16, #tpu.memory_space<vmem>>, vector<160x16xbf16>
    %420 = arith.truncf %418 : vector<64x160xf32> to vector<64x160xbf16>
    %cst_169 = arith.constant dense<0.000000e+00> : vector<64x16xf32>
    %421 = tpu.matmul %420, %419, %cst_169 {dimension_numbers = #tpu.dot_dimension_numbers<[1], [0], [0], [1], [0, 0, 1, 1], [], []>} : vector<64x160xbf16>, vector<160x16xbf16>, vector<64x16xf32> -> vector<64x16xf32>
    %c10 = arith.constant 10 : index
    %c0_170 = arith.constant 0 : index
    %422 = vector.load %arg3[%c10, %c0_170] : memref<24x128xf32, #tpu.memory_space<vmem>>, vector<1x16xf32>
    %423 = vector.broadcast %422 : vector<1x16xf32> to vector<64x16xf32>
    %424 = arith.addf %421, %423 : vector<64x16xf32>
    %cst_171 = arith.constant 0.000000e+00 : f32
    %425 = vector.broadcast %cst_171 : f32 to vector<64x16xf32>
    %426 = arith.maximumf %424, %425 : vector<64x16xf32>
    %c2_i32_172 = arith.constant 2 : i32
    %427 = tpu.dynamic_rotate %426 by %c2_i32_172 dim 0 : vector<64x16xf32>, i32 -> vector<64x16xf32>
    %428 = vector.broadcast %92 : vector<64x1xf32> to vector<64x16xf32>
    %429 = arith.mulf %427, %428 : vector<64x16xf32>
    %c1_i32_173 = arith.constant 1 : i32
    %430 = tpu.dynamic_rotate %426 by %c1_i32_173 dim 0 : vector<64x16xf32>, i32 -> vector<64x16xf32>
    %431 = vector.broadcast %97 : vector<64x1xf32> to vector<64x16xf32>
    %432 = arith.mulf %430, %431 : vector<64x16xf32>
    %c63_i32_174 = arith.constant 63 : i32
    %433 = tpu.dynamic_rotate %426 by %c63_i32_174 dim 0 : vector<64x16xf32>, i32 -> vector<64x16xf32>
    %434 = vector.broadcast %102 : vector<64x1xf32> to vector<64x16xf32>
    %435 = arith.mulf %433, %434 : vector<64x16xf32>
    %c62_i32_175 = arith.constant 62 : i32
    %436 = tpu.dynamic_rotate %426 by %c62_i32_175 dim 0 : vector<64x16xf32>, i32 -> vector<64x16xf32>
    %437 = vector.broadcast %107 : vector<64x1xf32> to vector<64x16xf32>
    %438 = arith.mulf %436, %437 : vector<64x16xf32>
    %439 = tpu.concatenate %429, %432, %426, %435, %438 in 1 : vector<64x16xf32>, vector<64x16xf32>, vector<64x16xf32>, vector<64x16xf32>, vector<64x16xf32> -> vector<64x80xf32>
    %c1552 = arith.constant 1552 : index
    %c0_176 = arith.constant 0 : index
    %440 = vector.load %arg2[%c1552, %c0_176] : memref<2032x128xbf16, #tpu.memory_space<vmem>>, vector<80x16xbf16>
    %441 = arith.truncf %439 : vector<64x80xf32> to vector<64x80xbf16>
    %cst_177 = arith.constant dense<0.000000e+00> : vector<64x16xf32>
    %442 = tpu.matmul %441, %440, %cst_177 {dimension_numbers = #tpu.dot_dimension_numbers<[1], [0], [0], [1], [0, 0, 1, 1], [], []>} : vector<64x80xbf16>, vector<80x16xbf16>, vector<64x16xf32> -> vector<64x16xf32>
    %c11 = arith.constant 11 : index
    %c0_178 = arith.constant 0 : index
    %443 = vector.load %arg3[%c11, %c0_178] : memref<24x128xf32, #tpu.memory_space<vmem>>, vector<1x16xf32>
    %444 = vector.broadcast %443 : vector<1x16xf32> to vector<64x16xf32>
    %445 = arith.addf %442, %444 : vector<64x16xf32>
    %cst_179 = arith.constant 0.000000e+00 : f32
    %446 = vector.broadcast %cst_179 : f32 to vector<64x16xf32>
    %447 = arith.maximumf %445, %446 : vector<64x16xf32>
    %448 = arith.truncf %447 : vector<64x16xf32> to vector<64x16xbf16>
    %c2000 = arith.constant 2000 : index
    %c0_180 = arith.constant 0 : index
    %449 = vector.load %arg2[%c2000, %c0_180] : memref<2032x128xbf16, #tpu.memory_space<vmem>>, vector<16x8xbf16>
    %cst_181 = arith.constant dense<0.000000e+00> : vector<64x8xf32>
    %450 = tpu.matmul %448, %449, %cst_181 {dimension_numbers = #tpu.dot_dimension_numbers<[1], [0], [0], [1], [0, 0, 1, 1], [], []>} : vector<64x16xbf16>, vector<16x8xbf16>, vector<64x8xf32> -> vector<64x8xf32>
    %c2016 = arith.constant 2016 : index
    %c0_182 = arith.constant 0 : index
    %451 = vector.load %arg2[%c2016, %c0_182] : memref<2032x128xbf16, #tpu.memory_space<vmem>>, vector<16x8xbf16>
    %cst_183 = arith.constant dense<0.000000e+00> : vector<64x8xf32>
    %452 = tpu.matmul %448, %451, %cst_183 {dimension_numbers = #tpu.dot_dimension_numbers<[1], [0], [0], [1], [0, 0, 1, 1], [], []>} : vector<64x16xbf16>, vector<16x8xbf16>, vector<64x8xf32> -> vector<64x8xf32>
    %453 = tpu.concatenate %450, %452 in 0 : vector<64x8xf32>, vector<64x8xf32> -> vector<128x8xf32>
    %454 = tpu.iota {dimensions = array<i32: 0>} : vector<128x128xi32>
    %455 = tpu.iota {dimensions = array<i32: 1>} : vector<128x128xi32>
    %c2_i32_184 = arith.constant 2 : i32
    %456 = vector.broadcast %c2_i32_184 : i32 to vector<128x128xi32>
    %457 = arith.muli %456, %455 : vector<128x128xi32>
    %458 = arith.cmpi eq, %454, %457 : vector<128x128xi32>
    %c64_i32 = arith.constant 64 : i32
    %459 = vector.broadcast %c64_i32 : i32 to vector<128x128xi32>
    %460 = arith.subi %455, %459 : vector<128x128xi32>
    %c2_i32_185 = arith.constant 2 : i32
    %461 = vector.broadcast %c2_i32_185 : i32 to vector<128x128xi32>
    %462 = arith.muli %461, %460 : vector<128x128xi32>
    %c1_i32_186 = arith.constant 1 : i32
    %463 = vector.broadcast %c1_i32_186 : i32 to vector<128x128xi32>
    %464 = arith.addi %462, %463 : vector<128x128xi32>
    %465 = arith.cmpi eq, %454, %464 : vector<128x128xi32>
    %466 = arith.ori %458, %465 : vector<128x128xi1>
    %cst_187 = arith.constant 1.000000e+00 : f32
    %cst_188 = arith.constant 0.000000e+00 : f32
    %467 = vector.broadcast %cst_187 : f32 to vector<128x128xf32>
    %468 = vector.broadcast %cst_188 : f32 to vector<128x128xf32>
    %469 = arith.select %466, %467, %468 : vector<128x128xi1>, vector<128x128xf32>
    %470 = arith.truncf %469 : vector<128x128xf32> to vector<128x128xbf16>
    %471 = arith.truncf %453 : vector<128x8xf32> to vector<128x8xbf16>
    %cst_189 = arith.constant dense<0.000000e+00> : vector<128x8xf32>
    %472 = tpu.matmul %470, %471, %cst_189 {dimension_numbers = #tpu.dot_dimension_numbers<[1], [0], [0], [1], [0, 0, 1, 1], [], []>} : vector<128x128xbf16>, vector<128x8xbf16>, vector<128x8xf32> -> vector<128x8xf32>
    %c17 = arith.constant 17 : index
    %c0_190 = arith.constant 0 : index
    %473 = vector.load %arg3[%c17, %c0_190] : memref<24x128xf32, #tpu.memory_space<vmem>>, vector<1x8xf32>
    %474 = vector.broadcast %473 : vector<1x8xf32> to vector<128x8xf32>
    %475 = arith.addf %472, %474 : vector<128x8xf32>
    %476 = tpu.concatenate %475, %71 in 1 : vector<128x8xf32>, vector<128x8xf32> -> vector<128x16xf32>
    %c2_i32_191 = arith.constant 2 : i32
    %477 = tpu.dynamic_rotate %476 by %c2_i32_191 dim 0 : vector<128x16xf32>, i32 -> vector<128x16xf32>
    %478 = vector.broadcast %14 : vector<128x1xf32> to vector<128x16xf32>
    %479 = arith.mulf %477, %478 : vector<128x16xf32>
    %c1_i32_192 = arith.constant 1 : i32
    %480 = tpu.dynamic_rotate %476 by %c1_i32_192 dim 0 : vector<128x16xf32>, i32 -> vector<128x16xf32>
    %481 = vector.broadcast %19 : vector<128x1xf32> to vector<128x16xf32>
    %482 = arith.mulf %480, %481 : vector<128x16xf32>
    %c127_i32_193 = arith.constant 127 : i32
    %483 = tpu.dynamic_rotate %476 by %c127_i32_193 dim 0 : vector<128x16xf32>, i32 -> vector<128x16xf32>
    %484 = vector.broadcast %24 : vector<128x1xf32> to vector<128x16xf32>
    %485 = arith.mulf %483, %484 : vector<128x16xf32>
    %c126_i32_194 = arith.constant 126 : i32
    %486 = tpu.dynamic_rotate %476 by %c126_i32_194 dim 0 : vector<128x16xf32>, i32 -> vector<128x16xf32>
    %487 = vector.broadcast %29 : vector<128x1xf32> to vector<128x16xf32>
    %488 = arith.mulf %486, %487 : vector<128x16xf32>
    %489 = tpu.concatenate %479, %482, %476, %485, %488 in 1 : vector<128x16xf32>, vector<128x16xf32>, vector<128x16xf32>, vector<128x16xf32>, vector<128x16xf32> -> vector<128x80xf32>
    %c1632 = arith.constant 1632 : index
    %c0_195 = arith.constant 0 : index
    %490 = vector.load %arg2[%c1632, %c0_195] : memref<2032x128xbf16, #tpu.memory_space<vmem>>, vector<80x8xbf16>
    %491 = arith.truncf %489 : vector<128x80xf32> to vector<128x80xbf16>
    %cst_196 = arith.constant dense<0.000000e+00> : vector<128x8xf32>
    %492 = tpu.matmul %491, %490, %cst_196 {dimension_numbers = #tpu.dot_dimension_numbers<[1], [0], [0], [1], [0, 0, 1, 1], [], []>} : vector<128x80xbf16>, vector<80x8xbf16>, vector<128x8xf32> -> vector<128x8xf32>
    %c12 = arith.constant 12 : index
    %c0_197 = arith.constant 0 : index
    %493 = vector.load %arg3[%c12, %c0_197] : memref<24x128xf32, #tpu.memory_space<vmem>>, vector<1x8xf32>
    %494 = vector.broadcast %493 : vector<1x8xf32> to vector<128x8xf32>
    %495 = arith.addf %492, %494 : vector<128x8xf32>
    %cst_198 = arith.constant 0.000000e+00 : f32
    %496 = vector.broadcast %cst_198 : f32 to vector<128x8xf32>
    %497 = arith.maximumf %495, %496 : vector<128x8xf32>
    %c2_i32_199 = arith.constant 2 : i32
    %498 = tpu.dynamic_rotate %497 by %c2_i32_199 dim 0 : vector<128x8xf32>, i32 -> vector<128x8xf32>
    %499 = vector.broadcast %14 : vector<128x1xf32> to vector<128x8xf32>
    %500 = arith.mulf %498, %499 : vector<128x8xf32>
    %c1_i32_200 = arith.constant 1 : i32
    %501 = tpu.dynamic_rotate %497 by %c1_i32_200 dim 0 : vector<128x8xf32>, i32 -> vector<128x8xf32>
    %502 = vector.broadcast %19 : vector<128x1xf32> to vector<128x8xf32>
    %503 = arith.mulf %501, %502 : vector<128x8xf32>
    %c127_i32_201 = arith.constant 127 : i32
    %504 = tpu.dynamic_rotate %497 by %c127_i32_201 dim 0 : vector<128x8xf32>, i32 -> vector<128x8xf32>
    %505 = vector.broadcast %24 : vector<128x1xf32> to vector<128x8xf32>
    %506 = arith.mulf %504, %505 : vector<128x8xf32>
    %c126_i32_202 = arith.constant 126 : i32
    %507 = tpu.dynamic_rotate %497 by %c126_i32_202 dim 0 : vector<128x8xf32>, i32 -> vector<128x8xf32>
    %508 = vector.broadcast %29 : vector<128x1xf32> to vector<128x8xf32>
    %509 = arith.mulf %507, %508 : vector<128x8xf32>
    %510 = tpu.concatenate %500, %503, %497, %506, %509 in 1 : vector<128x8xf32>, vector<128x8xf32>, vector<128x8xf32>, vector<128x8xf32>, vector<128x8xf32> -> vector<128x40xf32>
    %c1712 = arith.constant 1712 : index
    %c0_203 = arith.constant 0 : index
    %511 = vector.load %arg2[%c1712, %c0_203] : memref<2032x128xbf16, #tpu.memory_space<vmem>>, vector<40x8xbf16>
    %512 = arith.truncf %510 : vector<128x40xf32> to vector<128x40xbf16>
    %cst_204 = arith.constant dense<0.000000e+00> : vector<128x8xf32>
    %513 = tpu.matmul %512, %511, %cst_204 {dimension_numbers = #tpu.dot_dimension_numbers<[1], [0], [0], [1], [0, 0, 1, 1], [], []>} : vector<128x40xbf16>, vector<40x8xbf16>, vector<128x8xf32> -> vector<128x8xf32>
    %c13 = arith.constant 13 : index
    %c0_205 = arith.constant 0 : index
    %514 = vector.load %arg3[%c13, %c0_205] : memref<24x128xf32, #tpu.memory_space<vmem>>, vector<1x8xf32>
    %515 = vector.broadcast %514 : vector<1x8xf32> to vector<128x8xf32>
    %516 = arith.addf %513, %515 : vector<128x8xf32>
    %cst_206 = arith.constant 0.000000e+00 : f32
    %517 = vector.broadcast %cst_206 : f32 to vector<128x8xf32>
    %518 = arith.maximumf %516, %517 : vector<128x8xf32>
    %c2_i32_207 = arith.constant 2 : i32
    %519 = tpu.dynamic_rotate %518 by %c2_i32_207 dim 0 : vector<128x8xf32>, i32 -> vector<128x8xf32>
    %520 = vector.broadcast %14 : vector<128x1xf32> to vector<128x8xf32>
    %521 = arith.mulf %519, %520 : vector<128x8xf32>
    %c1_i32_208 = arith.constant 1 : i32
    %522 = tpu.dynamic_rotate %518 by %c1_i32_208 dim 0 : vector<128x8xf32>, i32 -> vector<128x8xf32>
    %523 = vector.broadcast %19 : vector<128x1xf32> to vector<128x8xf32>
    %524 = arith.mulf %522, %523 : vector<128x8xf32>
    %c127_i32_209 = arith.constant 127 : i32
    %525 = tpu.dynamic_rotate %518 by %c127_i32_209 dim 0 : vector<128x8xf32>, i32 -> vector<128x8xf32>
    %526 = vector.broadcast %24 : vector<128x1xf32> to vector<128x8xf32>
    %527 = arith.mulf %525, %526 : vector<128x8xf32>
    %c126_i32_210 = arith.constant 126 : i32
    %528 = tpu.dynamic_rotate %518 by %c126_i32_210 dim 0 : vector<128x8xf32>, i32 -> vector<128x8xf32>
    %529 = vector.broadcast %29 : vector<128x1xf32> to vector<128x8xf32>
    %530 = arith.mulf %528, %529 : vector<128x8xf32>
    %531 = tpu.concatenate %521, %524, %518, %527, %530 in 1 : vector<128x8xf32>, vector<128x8xf32>, vector<128x8xf32>, vector<128x8xf32>, vector<128x8xf32> -> vector<128x40xf32>
    %c1760 = arith.constant 1760 : index
    %c0_211 = arith.constant 0 : index
    %532 = vector.load %arg2[%c1760, %c0_211] : memref<2032x128xbf16, #tpu.memory_space<vmem>>, vector<40x4xbf16>
    %533 = arith.truncf %531 : vector<128x40xf32> to vector<128x40xbf16>
    %cst_212 = arith.constant dense<0.000000e+00> : vector<128x4xf32>
    %534 = tpu.matmul %533, %532, %cst_212 {dimension_numbers = #tpu.dot_dimension_numbers<[1], [0], [0], [1], [0, 0, 1, 1], [], []>} : vector<128x40xbf16>, vector<40x4xbf16>, vector<128x4xf32> -> vector<128x4xf32>
    %c14 = arith.constant 14 : index
    %c0_213 = arith.constant 0 : index
    %535 = vector.load %arg3[%c14, %c0_213] : memref<24x128xf32, #tpu.memory_space<vmem>>, vector<1x4xf32>
    %536 = vector.broadcast %535 : vector<1x4xf32> to vector<128x4xf32>
    %537 = arith.addf %534, %536 : vector<128x4xf32>
    %538 = vector.extract_strided_slice %537 {offsets = [0, 0], sizes = [64, 4], strides = [1, 1]} : vector<128x4xf32> to vector<64x4xf32>
    %539 = tpu.transpose %538, [1, 0] : vector<64x4xf32> -> vector<4x64xf32>
    %c0_214 = arith.constant 0 : index
    %c0_215 = arith.constant 0 : index
    %c0_216 = arith.constant 0 : index
    %540 = vector.load %arg4[%c0_214, %c0_215, %c0_216] : memref<2x4x64xf32, #tpu.memory_space<vmem>>, vector<1x4x64xf32>
    %541 = vector.shape_cast %540 : vector<1x4x64xf32> to vector<4x64xf32>
    %542 = vector.shape_cast %539 : vector<4x64xf32> to vector<1x4x64xf32>
    tpu.vector_store %arg4[%c0_214, %c0_215, %c0_216], %542 {strides = array<i32>} : memref<2x4x64xf32, #tpu.memory_space<vmem>>, vector<1x4x64xf32>,
    %543 = vector.extract_strided_slice %537 {offsets = [64, 0], sizes = [64, 4], strides = [1, 1]} : vector<128x4xf32> to vector<64x4xf32>
    %544 = tpu.transpose %543, [1, 0] : vector<64x4xf32> -> vector<4x64xf32>
    %c1_217 = arith.constant 1 : index
    %c0_218 = arith.constant 0 : index
    %c0_219 = arith.constant 0 : index
    %545 = vector.load %arg4[%c1_217, %c0_218, %c0_219] : memref<2x4x64xf32, #tpu.memory_space<vmem>>, vector<1x4x64xf32>
    %546 = vector.shape_cast %545 : vector<1x4x64xf32> to vector<4x64xf32>
    %547 = vector.shape_cast %544 : vector<4x64xf32> to vector<1x4x64xf32>
    tpu.vector_store %arg4[%c1_217, %c0_218, %c0_219], %547 {strides = array<i32>} : memref<2x4x64xf32, #tpu.memory_space<vmem>>, vector<1x4x64xf32>,
    return
  }
  func.func @transform_0(%arg0: i32) -> (i32, i32, i32) {
    %c0_i32 = arith.constant 0 : i32
    %c0_i32_0 = arith.constant 0 : i32
    %c0_i32_1 = arith.constant 0 : i32
    return %arg0, %c0_i32, %c0_i32_0 : i32, i32, i32
  }
  func.func @transform_1(%arg0: i32) -> (i32, i32) {
    %c0_i32 = arith.constant 0 : i32
    %c0_i32_0 = arith.constant 0 : i32
    %c0_i32_1 = arith.constant 0 : i32
    return %c0_i32, %c0_i32_0 : i32, i32
  }
  func.func @transform_2(%arg0: i32) -> (i32, i32) {
    %c0_i32 = arith.constant 0 : i32
    %c0_i32_0 = arith.constant 0 : i32
    %c0_i32_1 = arith.constant 0 : i32
    return %c0_i32, %c0_i32_0 : i32, i32
  }
  func.func @transform_3(%arg0: i32) -> (i32, i32, i32) {
    %c0_i32 = arith.constant 0 : i32
    %c0_i32_0 = arith.constant 0 : i32
    %c0_i32_1 = arith.constant 0 : i32
    return %arg0, %c0_i32, %c0_i32_0 : i32, i32, i32
  }
}

</mosaic_0001>

<bundles_post_ra>
// kernel: _lambda_.1
= control target key start
LH: loop header
LB: loop body
LE: loop exit
PB: predicated region body
PF: predicated region fallthrough
CT: control target
= control target key end

     0   :  { %s15993_s0 = inlined_call_operand.vmem [shape: f32[2,2,64], index: 0, kind: input, shape index: {}]   ;;  %s15994_s1 = inlined_call_operand.vmem [shape: bf16[2032,128], index: 1, kind: input, shape index: {}]   ;;  %s15995_s2 = inlined_call_operand.vmem [shape: f32[24,128], index: 2, kind: input, shape index: {}]   ;;  %s15996_s3 = inlined_call_operand.hbm [shape: f32[2,4,64], index: 3, kind: output, shape index: {}]  }
   0x1   :  { %v8295_v0 = vld [vmem:[%s15993_s0 + $0x2] sm:$0x3]  ;;  %v16_v1 = vld [vmem:[%s15993_s0] sm:$0x3] }
   0x2   :  { %51 = vxpose.xlu0.b32.start.end [1/1] (short) (narrow) %v8295_v0, 64 }
  0x1f   :  { %17 = vxpose.xlu0.b32.start.end [1/1] (short) (narrow) %v16_v1, 64 }
  0x20   :  { %8 = vsyncpa [#allocation3], 0  ;;  %v15999_v11 = vlaneseq  ;;  %s10593_s0 = smov 4   ;;  %s10594_s16 = smov 6   ;;  %v15997_v62 = vmov 0.0   ;;  %vm809_vm6 = vcmask 1044480  }
  0x21   :  { %s10595_s17 = smov 8   ;;  %s10596_s18 = smov 2   ;;  %vm696_vm13 = vcmask 15360   ;;  %vm713_vm14 = vcmask 31744   ;;  %vm730_vm15 = vcmask 48128  }
  0x22   :  { %v10657_v14 = vshrl.u32 %v15999_v11, 7  ;;  %s10598_s23 = smov 16   ;;  %s10599_s24 = smov 24  }
  0x23   :  { %s10600_s25 = smov 32   ;;  %s10602_s22 = smov 48  }
  0x24   :  { %vm16070_vm0 = vcmp.lt.s32.totalorder %v10657_v14, 7  ;;  %vm16068_vm1 = vcmp.lt.s32.totalorder %v10657_v14, 6  ;;  %vm16071_vm2 = vcmp.lt.s32.totalorder %v10657_v14, 1  ;;  %v10697_v37 = vadd.s32 120, %v10657_v14  ;;  %s10603_s26 = smov 64  }
  0x25   :  { %vm16067_vm11 = vcmp.lt.s32.totalorder %v10657_v14, 2 }
  0x26   :  { %16072 = vst [vmem:[#allocation5_spill] sm:$0xff] %v10697_v37  ;;  %v115_v45 = vand.u32 63, %v10697_v37 }
  0x28   :  { %vm195_vm3 = vcmp.lt.s32.totalorder %v115_v45, 63  ;;  %vm227_vm4 = vcmp.lt.s32.totalorder %v115_v45, 62 }
  0x29   :  { %v10737_v63 = vsel %vm195_vm3, 1.0, %v15997_v62  ;;  %vm16055_vm3 = vcmask 64512  }
  0x2a   :  { %16073 = vst [vmem:[#allocation6_spill] sm:$0xff] %v10737_v63 }
  0x82   :  { %v10634_v2 = vpop.trf.xlu0 }
  0x86   :  { %v10636_v3 = vpop.trf.xlu0 }
  0x8a   :  { %v10638_v4 = vpop.trf.xlu0 }
  0x8e   :  { %v10640_v5 = vpop.trf.xlu0 }
  0x92   :  { %v10642_v6 = vpop.trf.xlu0 }
  0x96   :  { %v10644_v7 = vpop.trf.xlu0 }
  0x9a   :  { %v10646_v8 = vpop.trf.xlu0 }
  0x9e   :  { %v10648_v9 = vpop.trf.xlu0 }
  0x9f   :  { %v357_v57 = vrot.slane %v10648_v9, 1  ;;  %v406_v1 = vrot.slane %v10648_v9, 2 }
  0xa2   :  { %v10650_v10 = vpop.trf.xlu0 }
  0xa3   :  { %v342_v17 = vrot.slane %v10650_v10, 1  ;;  %v391_v25 = vrot.slane %v10650_v10, 2 }
  0xa5   :  { %v374_v0 = vsel %vm16070_vm0, %v357_v57, %v342_v17 }
  0xa6   :  { %v10652_v12 = vpop.trf.xlu0 }
  0xa7   :  { %v9167_v13 = vpack.i.bf16 %v10652_v12, %v10650_v10  ;;  %v343_v15 = vrot.slane %v10652_v12, 1  ;;  %v392_v22 = vrot.slane %v10652_v12, 2  ;;  %v294_v34 = vrot.slane %v10652_v12, 7 }
  0xa9   :  { %9168 = vrot.lane.b32.xlu1 %v9167_v13, %s10593_s0  ;;  %v373_v21 = vsel %vm16070_vm0, %v342_v17, %v343_v15  ;;  %v422_v27 = vsel %vm16068_vm1, %v391_v25, %v392_v22  ;;  %v423_v17 = vsel %vm16068_vm1, %v406_v1, %v391_v25 }
  0xaa   :  { %v10661_v16 = vpop.trf.xlu0 }
  0xab   :  { %v344_v18 = vrot.slane %v10661_v16, 1  ;;  %v393_v19 = vrot.slane %v10661_v16, 2  ;;  %v295_v31 = vrot.slane %v10661_v16, 7 }
  0xad   :  { %v372_v20 = vsel %vm16070_vm0, %v343_v15, %v344_v18  ;;  %v421_v26 = vsel %vm16068_vm1, %v392_v22, %v393_v19  ;;  %v323_v38 = vsel %vm16071_vm2, %v294_v34, %v295_v31  ;;  %v9302_v15 = vpack.i.bf16 %v10648_v9, %v10646_v8 }
  0xae   :  { %v10672_v23 = vpop.trf.xlu0  ;;  %v9172_v24 = vpack.i.bf16 %v372_v20, %v373_v21  ;;  %v9177_v29 = vpack.i.bf16 %v421_v26, %v422_v27  ;;  %v10749_v20 = vsel %vm227_vm4, 1.0, %v15997_v62  ;;  %v405_v27 = vrot.slane %v10646_v8, 2 }
  0xaf   :  { %v296_v30 = vrot.slane %v10672_v23, 7  ;;  %v9182_v33 = vpack.i.bf16 %v10672_v23, %v10661_v16  ;;  %v345_v39 = vrot.slane %v10672_v23, 1  ;;  %v394_v47 = vrot.slane %v10672_v23, 2  ;;  %16074 = vst [vmem:[#allocation7_spill] sm:$0xff] %v10749_v20 }
  0xb0   :  { %9173 = vrot.lane.b32.xlu1 %v9172_v24, %s10594_s16  ;;  %v439_v26 = vmul.f32 %v423_v17, %v10749_v20  ;;  %vm784_vm4 = vcmask 80896  }
  0xb1   :  { %v322_v35 = vsel %vm16071_vm2, %v295_v31, %v296_v30  ;;  %v371_v46 = vsel %vm16070_vm0, %v344_v18, %v345_v39  ;;  %v420_v55 = vsel %vm16068_vm1, %v393_v19, %v394_v47  ;;  %v390_v18 = vmul.f32 %v374_v0, %v10737_v63 }
  0xb2   :  { %v10681_v28 = vpop.trf.xlu0  ;;  %v9187_v41 = vpack.i.bf16 %v322_v35, %v323_v38  ;;  %v356_v19 = vrot.slane %v10646_v8, 1 }
  0xb3   :  { %v346_v36 = vrot.slane %v10681_v28, 1  ;;  %v395_v43 = vrot.slane %v10681_v28, 2  ;;  %v297_v54 = vrot.slane %v10681_v28, 7 }
  0xb4   :  { %9178 = vrot.lane.b32.xlu1 %v9177_v29, %s10595_s17  ;;  %v359_v21 = vsel %vm16070_vm0, %v356_v19, %v357_v57  ;;  %v350_v57 = vrot.slane %v10634_v2, 1 }
  0xb5   :  { %v370_v42 = vsel %vm16070_vm0, %v345_v39, %v346_v36  ;;  %v419_v51 = vsel %vm16068_vm1, %v394_v47, %v395_v43  ;;  %v321_v61 = vsel %vm16071_vm2, %v296_v30, %v297_v54  ;;  %v9312_v24 = vpack.i.bf16 %v390_v18, %v359_v21 }
  0xb6   :  { %v10686_v32 = vpop.trf.xlu0  ;;  %v9192_v50 = vpack.i.bf16 %v370_v42, %v371_v46  ;;  %v9197_v58 = vpack.i.bf16 %v419_v51, %v420_v55  ;;  %v408_v30 = vsel %vm16068_vm1, %v405_v27, %v406_v1  ;;  %v304_v46 = vrot.slane %v10640_v5, 7 }
  0xb7   :  { %v298_v48 = vrot.slane %v10686_v32, 7  ;;  %v9212_v22 = vpack.i.bf16 %v10686_v32, %v10681_v28  ;;  %v347_v29 = vrot.slane %v10686_v32, 1  ;;  %v9322_v31 = vpack.i.bf16 %v439_v26, %v408_v30 }
  0xb8   :  { %9183 = vrot.lane.b32.xlu1 %v9182_v33, %s10593_s0  ;;  %v396_v39 = vrot.slane %v10686_v32, 2  ;;  %v351_v55 = vrot.slane %v10636_v3, 1  ;;  %v400_v18 = vrot.slane %v10636_v3, 2  ;;  %v399_v21 = vrot.slane %v10634_v2, 2 }
  0xb9   :  { %v320_v60 = vsel %vm16071_vm2, %v297_v54, %v298_v48  ;;  %v369_v38 = vsel %vm16070_vm0, %v346_v36, %v347_v29  ;;  %v303_v36 = vrot.slane %v10638_v4, 7  ;;  %v352_v54 = vrot.slane %v10638_v4, 1 }
  0xba   :  { %v10704_v40 = vpop.trf.xlu0  ;;  %v9202_v13 = vpack.i.bf16 %v320_v60, %v321_v61  ;;  %v418_v45 = vsel %vm16068_vm1, %v395_v43, %v396_v39  ;;  %v365_v60 = vsel %vm16070_vm0, %v350_v57, %v351_v55  ;;  %v353_v61 = vrot.slane %v10640_v5, 1 }
  0xbb   :  { %v299_v44 = vrot.slane %v10704_v40, 7  ;;  %v348_v25 = vrot.slane %v10704_v40, 1  ;;  %v414_v26 = vsel %vm16068_vm1, %v399_v21, %v400_v18 }
  0xbc   :  { %9188 = vrot.lane.b32.xlu1 %v9187_v41, %s10596_s18  ;;  %v397_v41 = vrot.slane %v10704_v40, 2 }
  0xbd   :  { %v319_v53 = vsel %vm16071_vm2, %v298_v48, %v299_v44  ;;  %v368_v35 = vsel %vm16070_vm0, %v347_v29, %v348_v25  ;;  %v302_v48 = vrot.slane %v10636_v3, 7  ;;  %v402_v29 = vrot.slane %v10640_v5, 2 }
  0xbe   :  { %v10716_v49 = vpop.trf.xlu0  ;;  %v9222_v42 = vpack.i.bf16 %v368_v35, %v369_v38  ;;  %v306_v35 = vrot.slane %v10644_v7, 7  ;;  %v10841_v38 = vadd.s32 56, %v10657_v14 }
  0xbf   :  { %v300_v52 = vrot.slane %v10716_v49, 7  ;;  %v9217_v33 = vpack.i.bf16 %v10716_v49, %v10704_v40  ;;  %v315_v51 = vsel %vm16071_vm2, %v302_v48, %v303_v36 }
  0xc0   :  { %9193 = vrot.lane.b32.xlu1 %v9192_v50, %s10594_s16  ;;  %v314_v50 = vsel %vm16071_vm2, %v303_v36, %v304_v46  ;;  %16075 = vst [vmem:[#allocation8_spill] sm:$0xff] %v10841_v38 }
  0xc1   :  { %v318_v56 = vsel %vm16071_vm2, %v299_v44, %v300_v52  ;;  %v417_v44 = vsel %vm16068_vm1, %v396_v39, %v397_v41  ;;  %v9232_v43 = vpack.i.bf16 %v314_v50, %v315_v51  ;;  %v107_v50 = vand.u32 63, %v10841_v38  ;;  %v10442_v51 = vld [vmem:[%s15994_s1] sm:$0x1f]  }
  0xc2   :  { %v9207_v59 = vpack.i.bf16 %v318_v56, %v319_v53  ;;  %v9227_v47 = vpack.i.bf16 %v417_v44, %v418_v45  ;;  %v9237_v53 = vpack.i.bf16 %v10636_v3, %v10634_v2  ;;  %v9242_v56 = vpack.i.bf16 %v10640_v5, %v10638_v4  ;;  %9146 = vmatprep.subr.msk.bf16.mxu0 %vm809_vm6, %v10442_v51 }
  0xc3   :  { %v293_v44 = vrot.slane %v10650_v10, 7  ;;  %vm187_vm7 = vcmp.lt.s32.totalorder %v107_v50, 63  ;;  %vm219_vm8 = vcmp.lt.s32.totalorder %v107_v50, 62  ;;  %v355_v50 = vrot.slane %v10644_v7, 1 }
  0xc4   :  { %9198 = vrot.lane.b32.xlu1 %v9197_v58, %s10595_s17  ;;  %9208 = vrot.lane.b32.xlu0 %v9207_v59, %s10596_s18  ;;  %v364_v58 = vsel %vm16070_vm0, %v351_v55, %v352_v54  ;;  %v354_v59 = vrot.slane %v10642_v6, 1 }
  0xc5   :  { %v9247_v0 = vpack.i.bf16 %v364_v58, %v365_v60  ;;  %v324_v58 = vsel %vm16071_vm2, %v293_v44, %v294_v34  ;;  %v349_v60 = vrot.slane %v10716_v49, 1 }
  0xc6   :  { %v362_v1 = vsel %vm16070_vm0, %v353_v61, %v354_v59 }
  0xc7   :  { %v366_v34 = vsel %vm16070_vm0, %v349_v60, %v350_v57  ;;  %v10893_v57 = vsel %vm219_vm8, 1.0, %v15997_v62  ;;  %vm16011_vm8 = vcmask 261120  }
  0xc8   :  { %9203 = vrot.lane.b32.xlu1 %v9202_v13, %s10596_s18  ;;  %9303 = vrot.lane.b32.xlu0 %v9302_v15, %s10593_s0  ;;  %v401_v13 = vrot.slane %v10638_v4, 2  ;;  %v363_v15 = vsel %vm16070_vm0, %v352_v54, %v353_v61  ;;  %v10872_v61 = vadd.s32 64, %v10657_v14  ;;  %16079 = vst [vmem:[#allocation12_spill] sm:$0xff] %v10893_v57 }
  0xc9   :  { %v9252_v17 = vpack.i.bf16 %v362_v1, %v363_v15  ;;  %v10878_v15 = vsel %vm187_vm7, 1.0, %v15997_v62  ;;  %vm16012_vm7 = vcmask 195584  }
  0xca   :  { %v412_v39 = vsel %vm16068_vm1, %v401_v13, %v402_v29  ;;  %16077 = vst [vmem:[#allocation10_spill] sm:$0xff] %v10872_v61  ;;  %16078 = vst [vmem:[#allocation11_spill] sm:$0xff] %v10878_v15 }
  0xcc   :  { %9213 = vrot.lane.b32.xlu1 %v9212_v22, %s10593_s0  ;;  %9313 = vrot.lane.b32.xlu0 %v9312_v24, %s10594_s16  ;;  %v413_v22 = vsel %vm16068_vm1, %v400_v18, %v401_v13  ;;  %v403_v24 = vrot.slane %v10642_v6, 2  ;;  %v398_v18 = vrot.slane %v10716_v49, 2 }
  0xcd   :  { %v9257_v30 = vpack.i.bf16 %v413_v22, %v414_v26 }
  0xd0   :  { %9323 = vrot.lane.b32.xlu0 %v9322_v31, %s10595_s17  ;;  %9218 = vrot.lane.b32.xlu1 %v9217_v33, %s10593_s0  ;;  %v100_v31 = vand.u32 63, %v10657_v14  ;;  %v411_v33 = vsel %vm16068_vm1, %v402_v29, %v403_v24  ;;  %v382_v29 = vmul.f32 %v366_v34, %v10878_v15 }
  0xd1   :  { %v9262_v45 = vpack.i.bf16 %v411_v33, %v412_v39  ;;  %v415_v33 = vsel %vm16068_vm1, %v398_v18, %v399_v21  ;;  %v301_v39 = vrot.slane %v10634_v2, 7 }
  0xd2   :  { %vm148_vm5 = vcmp.ge.s32.totalorder %v100_v31, 1  ;;  %vm116_vm10 = vcmp.ge.s32.totalorder %v100_v31, 2 }
  0xd3   :  { %v317_v21 = vsel %vm16071_vm2, %v300_v52, %v301_v39  ;;  %v9297_v52 = vpack.i.bf16 %v10644_v7, %v10642_v6  ;;  %v10989_v31 = vsel %vm116_vm10, 1.0, %v15997_v62 }
  0xd4   :  { %9223 = vrot.lane.b32.xlu1 %v9222_v42, %s10594_s16  ;;  %v305_v42 = vrot.slane %v10642_v6, 7  ;;  %16081 = vst [vmem:[#allocation14_spill] sm:$0xff] %v10989_v31 }
  0xd6   :  { %v312_v36 = vsel %vm16071_vm2, %v305_v42, %v306_v35 }
  0xd8   :  { %9228 = vrot.lane.b32.xlu1 %v9227_v47, %s10595_s17  ;;  %v308_v47 = vrot.slane %v10648_v9, 7 }
  0xda   :  { %v325_v54 = vsel %vm16071_vm2, %v308_v47, %v293_v44  ;;  %v416_v44 = vsel %vm16068_vm1, %v397_v41, %v398_v18  ;;  %v316_v41 = vsel %vm16071_vm2, %v301_v39, %v302_v48  ;;  %v361_v48 = vsel %vm16070_vm0, %v354_v59, %v355_v50 }
  0xdc   :  { %9233 = vrot.lane.b32.xlu1 %v9232_v43, %s10596_s18  ;;  %v313_v43 = vsel %vm16071_vm2, %v304_v46, %v305_v42  ;;  %v431_v42 = vmul.f32 %v415_v33, %v10893_v57 }
  0xdd   :  { %v9267_v55 = vpack.i.bf16 %v312_v36, %v313_v43  ;;  %v404_v43 = vrot.slane %v10644_v7, 2 }
  0xe0   :  { %9238 = vrot.lane.b32.xlu1 %v9237_v53, %s10593_s0  ;;  %v10860_v53 = vsel %vm148_vm5, 1.0, %v15997_v62  ;;  %vm16054_vm5 = vcmask 1043456  }
  0xe1   :  { %16076 = vst [vmem:[#allocation9_spill] sm:$0xff] %v10860_v53  ;;  %v326_v46 = vmul.f32 %v325_v54, %v10860_v53 }
  0xe3   :  { %v9272_v1 = vpack.i.bf16 %v324_v58, %v326_v46 }
  0xe4   :  { %9243 = vrot.lane.b32.xlu1 %v9242_v56, %s10593_s0  ;;  %v811_v56 = vsel %vm809_vm6, %v10442_v51, 0  ;;  %v360_v51 = vsel %vm16070_vm0, %v355_v50, %v356_v19  ;;  %v410_v19 = vsel %vm16068_vm1, %v403_v24, %v404_v43  ;;  %v16001_v50 = vrot.slane %v10686_v32, 6 }
  0xe5   :  { %8783 = vmatpush3.bf16.msra.mxu0 %v811_v56  ;;  %v9307_v54 = vpack.i.bf16 %v360_v51, %v361_v48  ;;  %vm16062_vm6 = vcmask 130048  }
  0xe8   :  { %9248 = vrot.lane.b32.xlu1 %v9247_v0, %s10594_s16  ;;  %v307_v0 = vrot.slane %v10646_v8, 7 }
  0xea   :  { %v310_v13 = vsel %vm16071_vm2, %v307_v0, %v308_v47  ;;  %v311_v22 = vsel %vm16071_vm2, %v306_v35, %v307_v0 }
  0xeb   :  { %v9277_v26 = vpack.i.bf16 %v310_v13, %v311_v22 }
  0xec   :  { %9253 = vrot.lane.b32.xlu1 %v9252_v17, %s10594_s16  ;;  %v108_v17 = vand.u32 63, %v10872_v61 }
  0xee   :  { %vm156_vm9 = vcmp.ge.s32.totalorder %v108_v17, 1  ;;  %vm124_vm12 = vcmp.ge.s32.totalorder %v108_v17, 2  ;;  %v248_v17 = vrot.slane %v10681_v28, 6 }
  0xf0   :  { %9258 = vrot.lane.b32.xlu1 %v9257_v30, %s10595_s17  ;;  %v367_v30 = vsel %vm16070_vm0, %v348_v25, %v349_v60  ;;  %v10905_v25 = vsel %vm156_vm9, 1.0, %v15997_v62  ;;  %vm16010_vm9 = vcmask 326656  }
  0xf1   :  { %v9282_v35 = vpack.i.bf16 %v382_v29, %v367_v30  ;;  %16080 = vst [vmem:[#allocation13_spill] sm:$0xff] %v10905_v25  ;;  %v334_v36 = vmul.f32 %v317_v21, %v10905_v25  ;;  %v16000_v21 = vrot.slane %v10640_v5, 6 }
  0xf3   :  { %v9292_v47 = vpack.i.bf16 %v316_v41, %v334_v36  ;;  %v16003_v36 = vrot.slane %v10634_v2, 6  ;;  %v245_v41 = vrot.slane %v10652_v12, 6  ;;  %v10998_v12 = vsel %vm124_vm12, 1.0, %v15997_v62 }
  0xf4   :  { %9263 = vrot.lane.b32.xlu1 %v9262_v45, %s10595_s17  ;;  %v9287_v45 = vpack.i.bf16 %v431_v42, %v416_v44  ;;  %v253_v42 = vrot.slane %v10636_v3, 6  ;;  %v254_v44 = vrot.slane %v10638_v4, 6  ;;  %v246_v3 = vrot.slane %v10661_v16, 6  ;;  %16082 = vst [vmem:[#allocation15_spill] sm:$0xff] %v10998_v12 }
  0xf6   :  { %v11004_v16 = vsel %vm16067_vm11, %v16003_v36, %v253_v42  ;;  %v11012_v28 = vsel %vm16067_vm11, %v254_v44, %v16000_v21  ;;  %v11016_v51 = vsel %vm16067_vm11, %v253_v42, %v254_v44  ;;  %v274_v62 = vsel %vm16067_vm11, %v245_v41, %v246_v3 }
  0xf8   :  { %9268 = vrot.lane.b32.xlu1 %v9267_v55, %s10596_s18  ;;  %v409_v55 = vsel %vm16068_vm1, %v404_v43, %v405_v27 }
  0xf9   :  { %v9317_v56 = vpack.i.bf16 %v409_v55, %v410_v19 }
  0xfc   :  { %9273 = vrot.lane.b32.xlu1 %v9272_v1, %s10596_s18 }
 0x100   :  { %9278 = vrot.lane.b32.xlu1 %v9277_v26, %s10596_s18 }
 0x104   :  { %9283 = vrot.lane.b32.xlu1 %v9282_v35, %s10594_s16  ;;  %v244_v35 = vrot.slane %v10650_v10, 6  ;;  %v247_v10 = vrot.slane %v10672_v23, 6 }
 0x106   :  { %v275_v55 = vsel %vm16067_vm11, %v244_v35, %v245_v41 }
 0x108   :  { %9288 = vrot.lane.b32.xlu1 %v9287_v45, %s10595_s17  ;;  %v16002_v45 = vrot.slane %v10648_v9, 6 }
 0x10a   :  { %v276_v4 = vsel %vm16067_vm11, %v16002_v45, %v244_v35  ;;  %v271_v35 = vsel %vm16067_vm11, %v248_v17, %v16001_v50 }
 0x10b   :  { %v277_v19 = vmul.f32 %v276_v4, %v10989_v31 }
 0x10c   :  { %9293 = vrot.lane.b32.xlu1 %v9292_v47, %s10596_s18  ;;  %s10605_s18 = smov 96  }
 0x110   :  { %9298 = vrot.lane.b32.xlu1 %v9297_v52, %s10593_s0 }
 0x114   :  { %9308 = vrot.lane.b32.xlu1 %v9307_v54, %s10594_s16 }
 0x118   :  { %9318 = vrot.lane.b32.xlu1 %v9317_v56, %s10595_s17  ;;  %v273_v56 = vsel %vm16067_vm11, %v246_v3, %v247_v10 }
 0x11b   :  { %v10942_v58 = vpop.permute.xlu1 %9168 }
 0x11c   :  { %v9171_v4 = vunpack.i.h.bf16 %v10942_v58  ;;  %v9170_v41 = vunpack.i.l.bf16 %v10942_v58 }
 0x122   :  { %v10944_v59 = vpop.permute.xlu1 %9173 }
 0x123   :  { %v9175_v50 = vunpack.i.l.bf16 %v10944_v59 }
 0x126   :  { %v10946_v60 = vpop.permute.xlu1 %9178 }
 0x127   :  { %v9181_v58 = vunpack.i.h.bf16 %v10946_v60 }
 0x12a   :  { %v10948_v46 = vpop.permute.xlu1 %9183 }
 0x12b   :  { %v9186_v42 = vunpack.i.h.bf16 %v10948_v46  ;;  %v9185_v52 = vunpack.i.l.bf16 %v10948_v46 }
 0x12e   :  { %v9189_v0 = vpop.permute.xlu1 %9188 }
 0x12f   :  { %v9191_v48 = vunpack.i.h.bf16 %v9189_v0  ;;  %v9190_v43 = vunpack.i.l.bf16 %v9189_v0  ;;  %v272_v0 = vsel %vm16067_vm11, %v247_v10, %v248_v17  ;;  %v9176_v17 = vunpack.i.h.bf16 %v10944_v59 }
 0x131   :  { %v700_v3 = vsel %vm696_vm13, %v273_v56, %v9191_v48  ;;  %v699_v11 = vsel %vm696_vm13, %v274_v62, %v9190_v43  ;;  %v9180_v48 = vunpack.i.l.bf16 %v10946_v60 }
 0x132   :  { %v10950_v27 = vpop.permute.xlu1 %9193  ;;  %v717_v56 = vsel %vm713_vm14, %v700_v3, %v9186_v42 }
 0x133   :  { %v9196_v21 = vunpack.i.h.bf16 %v10950_v27  ;;  %v9195_v10 = vunpack.i.l.bf16 %v10950_v27  ;;  %v716_v27 = vsel %vm713_vm14, %v699_v11, %v9185_v52 }
 0x135   :  { %v734_v44 = vsel %vm730_vm15, %v717_v56, %v9196_v21  ;;  %v733_v46 = vsel %vm730_vm15, %v716_v27, %v9195_v10 }
 0x136   :  { %v10952_v1 = vpop.permute.xlu1 %9198  ;;  %v9209_v38 = vpop.permute.xlu0 %9208 }
 0x137   :  { %v9201_v62 = vunpack.i.h.bf16 %v10952_v1  ;;  %v9200_v43 = vunpack.i.l.bf16 %v10952_v1 }
 0x139   :  { %v750_v42 = vsel %vm16055_vm3, %v733_v46, %v9200_v43  ;;  %v751_v3 = vsel %vm16055_vm3, %v734_v44, %v9201_v62  ;;  %v9211_v46 = vunpack.i.h.bf16 %v9209_v38 }
 0x13a   :  { %v10954_v13 = vpop.permute.xlu1 %9203 }
 0x13b   :  { %v9206_v45 = vunpack.i.h.bf16 %v10954_v13  ;;  %v9205_v59 = vunpack.i.l.bf16 %v10954_v13 }
 0x13d   :  { %v701_v10 = vsel %vm696_vm13, %v272_v0, %v9205_v59  ;;  %v702_v27 = vsel %vm696_vm13, %v271_v35, %v9206_v45 }
 0x13e   :  { %v10956_v34 = vpop.permute.xlu1 %9213 }
 0x13f   :  { %v9216_v36 = vunpack.i.h.bf16 %v10956_v34  ;;  %v9215_v60 = vunpack.i.l.bf16 %v10956_v34 }
 0x142   :  { %v10958_v24 = vpop.permute.xlu1 %9218 }
 0x146   :  { %v10960_v18 = vpop.permute.xlu1 %9223 }
 0x147   :  { %v9226_v1 = vunpack.i.h.bf16 %v10960_v18  ;;  %v9225_v61 = vunpack.i.l.bf16 %v10960_v18  ;;  %v719_v18 = vsel %vm713_vm14, %v702_v27, %v9216_v36 }
 0x14a   :  { %v10962_v22 = vpop.permute.xlu1 %9228 }
 0x14b   :  { %v9231_v13 = vunpack.i.h.bf16 %v10962_v22  ;;  %v9230_v21 = vunpack.i.l.bf16 %v10962_v22  ;;  %v736_v22 = vsel %vm730_vm15, %v719_v18, %v9226_v1  ;;  %v16084_v1 = vrot.slane %v10716_v49, 6 }
 0x14d   :  { %v753_v36 = vsel %vm16055_vm3, %v736_v22, %v9231_v13  ;;  %v16086_v13 = vrot.slane %v10646_v8, 6 }
 0x14e   :  { %v10964_v26 = vpop.permute.xlu1 %9233 }
 0x152   :  { %v10966_v29 = vpop.permute.xlu1 %9238 }
 0x156   :  { %v10968_v30 = vpop.permute.xlu1 %9243 }
 0x15a   :  { %v10970_v33 = vpop.permute.xlu1 %9248 }
 0x15e   :  { %v10972_v39 = vpop.permute.xlu1 %9253 }
 0x162   :  { %v10984_v47 = vpop.permute.xlu1 %9258 }
 0x166   :  { %v11018_v54 = vpop.permute.xlu1 %9263 }
 0x16a   :  { %v11041_v23 = vpop.permute.xlu1 %9268 }
 0x16e   :  { %v9274_v37 = vpop.permute.xlu1 %9273 }
 0x16f   :  { %v9276_v11 = vunpack.i.h.bf16 %v9274_v37  ;;  %v9275_v52 = vunpack.i.l.bf16 %v9274_v37  ;;  %v718_v37 = vsel %vm713_vm14, %v701_v10, %v9215_v60  ;;  %v16088_v10 = vrot.slane %v10644_v7, 6 }
 0x170   :  { %v735_v0 = vsel %vm730_vm15, %v718_v37, %v9225_v61 }
 0x171   :  { %v698_v34 = vsel %vm696_vm13, %v275_v55, %v9276_v11  ;;  %v697_v56 = vsel %vm696_vm13, %v277_v19, %v9275_v52  ;;  %v752_v19 = vsel %vm16055_vm3, %v735_v0, %v9230_v21  ;;  %v9236_v11 = vunpack.i.h.bf16 %v10964_v26 }
 0x172   :  { %v11071_v43 = vpop.permute.xlu1 %9278  ;;  %v714_v44 = vsel %vm713_vm14, %v697_v56, %v9170_v41  ;;  %v715_v62 = vsel %vm713_vm14, %v698_v34, %v9171_v4  ;;  %v9210_v41 = vunpack.i.l.bf16 %v9209_v38  ;;  %v16083_v4 = vrot.slane %v10634_v2, 6 }
 0x173   :  { %v731_v45 = vsel %vm730_vm15, %v714_v44, %v9175_v50  ;;  %v732_v55 = vsel %vm730_vm15, %v715_v62, %v9176_v17  ;;  %v9221_v50 = vunpack.i.h.bf16 %v10958_v24  ;;  %v9220_v17 = vunpack.i.l.bf16 %v10958_v24 }
 0x174   :  { %v748_v35 = vsel %vm16055_vm3, %v731_v45, %v9180_v48  ;;  %v749_v59 = vsel %vm16055_vm3, %v732_v55, %v9181_v58  ;;  %v268_v61 = vsel %vm16067_vm11, %v16084_v1, %v16083_v4  ;;  %v767_v48 = vpack.c.bf16 %v751_v3, %v750_v42  ;;  %v9304_v55 = vpop.permute.xlu0 %9303 }
 0x175   :  { %v766_v60 = vpack.c.bf16 %v749_v59, %v748_v35  ;;  %v9235_v58 = vunpack.i.l.bf16 %v10964_v26  ;;  %v16085_v38 = vrot.slane %v10648_v9, 6  ;;  %v16087_v21 = vmov %v16086_v13 }
 0x176   :  { %v9284_v52 = vpop.permute.xlu1 %9283  ;;  %v262_v24 = vsel %vm16067_vm11, %v16088_v10, %v16087_v21  ;;  %v768_v27 = vpack.c.bf16 %v753_v36, %v752_v19  ;;  %v16089_v42 = vrot.slane %v10704_v40, 6  ;;  %v16090_v26 = vrot.slane %v10686_v32, 6 }
 0x177   :  { %v261_v2 = vsel %vm16067_vm11, %v16086_v13, %v16085_v38  ;;  %8784 = vmatprep.mubr.msk.bf16.mxu0 %vm784_vm4, %v766_v60  ;;  %v16091_v3 = vmov %v16084_v1  ;;  %v9286_v56 = vunpack.i.h.bf16 %v9284_v52  ;;  %v9285_v18 = vunpack.i.l.bf16 %v9284_v52 }
 0x178   :  { %v270_v9 = vsel %vm16067_vm11, %v16090_v26, %v16089_v42  ;;  %v16092_v34 = vmov %v16089_v42  ;;  %8785 = vmatmul.mubr.msk.bf16.vlgmr.msra.gmra.mrb[0].mxu0 %vm784_vm4, %v767_v48  ;;  %v9245_v32 = vunpack.i.l.bf16 %v10968_v30  ;;  %v285_v62 = vmul.f32 %v268_v61, %v10998_v12 }
 0x179   :  { %v269_v8 = vsel %vm16067_vm11, %v16092_v34, %v16091_v3  ;;  %v703_v37 = vsel %vm696_vm13, %v270_v9, %v9210_v41  ;;  %8788 = vmatprep.mubr.msk.bf16.mxu0 %vm784_vm4, %v768_v27  ;;  %v708_v22 = vsel %vm696_vm13, %v11012_v28, %v9236_v11  ;;  %v9246_v0 = vunpack.i.h.bf16 %v10968_v30  ;;  %v9314_v27 = vpop.permute.xlu0 %9313 }
 0x17a   :  { %v704_v44 = vsel %vm696_vm13, %v269_v8, %v9211_v46  ;;  %v720_v40 = vsel %vm713_vm14, %v703_v37, %v9220_v17  ;;  %v9289_v45 = vpop.permute.xlu1 %9288  ;;  %v707_v19 = vsel %vm696_vm13, %v11016_v51, %v9235_v58  ;;  %v9241_v36 = vunpack.i.h.bf16 %v10966_v29 }
 0x17b   :  { %v721_v49 = vsel %vm713_vm14, %v704_v44, %v9221_v50  ;;  %v9291_v35 = vunpack.i.h.bf16 %v9289_v45  ;;  %v9290_v59 = vunpack.i.l.bf16 %v9289_v45  ;;  %v9256_v46 = vunpack.i.h.bf16 %v10972_v39 }
 0x17c   :  { %v9255_v41 = vunpack.i.l.bf16 %v10972_v39  ;;  %v737_v60 = vsel %vm730_vm15, %v720_v40, %v9285_v18  ;;  %v738_v4 = vsel %vm730_vm15, %v721_v49, %v9286_v56  ;;  %v9240_v28 = vunpack.i.l.bf16 %v10966_v29 }
 0x17d   :  { %v724_v30 = vsel %vm713_vm14, %v707_v19, %v9245_v32  ;;  %v754_v1 = vsel %vm16055_vm3, %v737_v60, %v9290_v59  ;;  %v755_v51 = vsel %vm16055_vm3, %v738_v4, %v9291_v35  ;;  %v725_v61 = vsel %vm713_vm14, %v708_v22, %v9246_v0 }
 0x17e   :  { %v9266_v50 = vunpack.i.h.bf16 %v11018_v54  ;;  %v9265_v17 = vunpack.i.l.bf16 %v11018_v54  ;;  %v9294_v11 = vpop.permute.xlu1 %9293  ;;  %v769_v39 = vpack.c.bf16 %v755_v51, %v754_v1  ;;  %v9281_v52 = vunpack.i.h.bf16 %v11071_v43 }
 0x17f   :  { %v9280_v48 = vunpack.i.l.bf16 %v11071_v43  ;;  %v9296_v58 = vunpack.i.h.bf16 %v9294_v11  ;;  %v9295_v29 = vunpack.i.l.bf16 %v9294_v11  ;;  %v9251_v38 = vunpack.i.h.bf16 %v10970_v33 }
 0x180   :  { %v9250_v13 = vunpack.i.l.bf16 %v10970_v33  ;;  %v741_v21 = vsel %vm730_vm15, %v724_v30, %v9255_v41  ;;  %v742_v10 = vsel %vm730_vm15, %v725_v61, %v9256_v46  ;;  %8789 = vmatmul.mubr.msk.bf16.gmra.mrb[4].mxu0 %vm784_vm4, %v769_v39  ;;  %v9261_v54 = vunpack.i.h.bf16 %v10984_v47 }
 0x181   :  { %v9260_v42 = vunpack.i.l.bf16 %v10984_v47  ;;  %v706_v43 = vsel %vm696_vm13, %v11004_v16, %v9296_v58  ;;  %v705_v26 = vsel %vm696_vm13, %v285_v62, %v9295_v29  ;;  %v758_v9 = vsel %vm16055_vm3, %v741_v21, %v9265_v17 }
 0x182   :  { %v759_v33 = vsel %vm16055_vm3, %v742_v10, %v9266_v50  ;;  %v722_v3 = vsel %vm713_vm14, %v705_v26, %v9240_v28  ;;  %v723_v34 = vsel %vm713_vm14, %v706_v43, %v9241_v36  ;;  %v9299_v8 = vpop.permute.xlu1 %9298  ;;  %v712_v56 = vsel %vm696_vm13, %v261_v2, %v9281_v52 }
 0x183   :  { %v711_v18 = vsel %vm696_vm13, %v262_v24, %v9280_v48  ;;  %v739_v47 = vsel %vm730_vm15, %v722_v3, %v9250_v13  ;;  %v740_v37 = vsel %vm730_vm15, %v723_v34, %v9251_v38  ;;  %v9306_v16 = vunpack.i.h.bf16 %v9304_v55 }
 0x184   :  { %v9305_v44 = vunpack.i.l.bf16 %v9304_v55  ;;  %v756_v32 = vsel %vm16055_vm3, %v739_v47, %v9260_v42  ;;  %v757_v62 = vsel %vm16055_vm3, %v740_v37, %v9261_v54  ;;  %v256_v49 = vrot.slane %v10642_v6, 6  ;;  %v9324_v55 = vpop.permute.xlu0 %9323  ;;  %v11197_v54 = vld [vmem:[%s15995_s2] ss:$0 sm:$0xff] }
 0x185   :  { %v770_v40 = vpack.c.bf16 %v757_v62, %v756_v32  ;;  %v771_v22 = vpack.c.bf16 %v759_v33, %v758_v9  ;;  %v9271_v0 = vunpack.i.h.bf16 %v11041_v23  ;;  %v9270_v2 = vunpack.i.l.bf16 %v11041_v23 }
 0x186   :  { %v729_v24 = vsel %vm713_vm14, %v712_v56, %v9306_v16  ;;  %v728_v45 = vsel %vm713_vm14, %v711_v18, %v9305_v44  ;;  %v9309_v19 = vpop.permute.xlu1 %9308  ;;  %v9316_v36 = vunpack.i.h.bf16 %v9314_v27  ;;  %v9315_v35 = vunpack.i.l.bf16 %v9314_v27 }
 0x187   :  { %v9301_v59 = vunpack.i.h.bf16 %v9299_v8  ;;  %v9300_v46 = vunpack.i.l.bf16 %v9299_v8  ;;  %8792 = vmatprep.mubr.msk.bf16.mxu0 %vm784_vm4, %v770_v40  ;;  %v9311_v41 = vunpack.i.h.bf16 %v9309_v19  ;;  %v9310_v6 = vunpack.i.l.bf16 %v9309_v19 }
 0x188   :  { %8793 = vmatmul.mubr.msk.bf16.gmra.mrb[8].mxu0 %vm784_vm4, %v771_v22  ;;  %v16093_v60 = vrot.slane %v10644_v7, 6  ;;  %v16094_v4 = vrot.slane %v10640_v5, 6  ;;  %v745_v30 = vsel %vm730_vm15, %v728_v45, %v9315_v35  ;;  %v746_v1 = vsel %vm730_vm15, %v729_v24, %v9316_v36 }
 0x189   :  { %v9326_v51 = vunpack.i.h.bf16 %v9324_v55  ;;  %v9325_v61 = vunpack.i.l.bf16 %v9324_v55 }
 0x18a   :  { %v263_v23 = vsel %vm16067_vm11, %v256_v49, %v16093_v60  ;;  %v264_v28 = vsel %vm16067_vm11, %v16094_v4, %v256_v49  ;;  %v9319_v11 = vpop.permute.xlu1 %9318 }
 0x18b   :  { %v710_v50 = vsel %vm696_vm13, %v263_v23, %v9271_v0  ;;  %v709_v17 = vsel %vm696_vm13, %v264_v28, %v9270_v2  ;;  %v9321_v52 = vunpack.i.h.bf16 %v9319_v11  ;;  %v9320_v5 = vunpack.i.l.bf16 %v9319_v11 }
 0x18c   :  { %v726_v7 = vsel %vm713_vm14, %v709_v17, %v9300_v46  ;;  %v727_v39 = vsel %vm713_vm14, %v710_v50, %v9301_v59  ;;  %v762_v29 = vsel %vm16055_vm3, %v745_v30, %v9325_v61  ;;  %v763_v38 = vsel %vm16055_vm3, %v746_v1, %v9326_v51 }
 0x18d   :  { %v743_v48 = vsel %vm730_vm15, %v726_v7, %v9310_v6  ;;  %v744_v58 = vsel %vm730_vm15, %v727_v39, %v9311_v41  ;;  %v773_v27 = vpack.c.bf16 %v763_v38, %v762_v29 }
 0x18e   :  { %v760_v13 = vsel %vm16055_vm3, %v743_v48, %v9320_v5  ;;  %v761_v21 = vsel %vm16055_vm3, %v744_v58, %v9321_v52 }
 0x18f   :  { %v772_v10 = vpack.c.bf16 %v761_v21, %v760_v13 }
 0x191   :  { %8796 = vmatprep.mubr.msk.bf16.mxu0 %vm784_vm4, %v772_v10 }
 0x192   :  { %8797 = vmatmul.mubr.msk.bf16.gmra.mrb[12].mxu0 %vm784_vm4, %v773_v27 }
 0x24b   :  { %v8786_v42 = vpop.f32.mrb[0].mxu0 }
 0x24c   :  { %v856_v43 = vadd.f32 %v8786_v42, %v11197_v54  ;;  %v847_v26 = vpop.f32.mrb[1].mxu0 }
 0x24d   :  { %v848_v9 = vadd.f32 %v11197_v54, %v847_v26  ;;  %v8787_v33 = vpop.f32.mrb[2].mxu0 }
 0x24e   :  { %v11201_v3 = vmax.f32 %v856_v43, 0.0  ;;  %v859_v34 = vadd.f32 %v8787_v33, %v11197_v54  ;;  %v850_v8 = vpop.f32.mrb[3].mxu0 }
 0x24f   :  { %v11204_v56 = vmax.f32 %v848_v9, 0.0  ;;  %v851_v18 = vadd.f32 %v11197_v54, %v850_v8 }
 0x250   :  { %v11207_v47 = vmax.f32 %v859_v34, 0.0  ;;  %v928_v37 = vrot.slane %v11201_v3, 6  ;;  %v976_v44 = vrot.slane %v11201_v3, 7  ;;  %v1024_v32 = vrot.slane %v11201_v3, 1 }
 0x251   :  { %v11210_v16 = vmax.f32 %v851_v18, 0.0  ;;  %v1022_v40 = vrot.slane %v11204_v56, 1  ;;  %v1070_v22 = vrot.slane %v11204_v56, 2  ;;  %v1072_v19 = vrot.slane %v11201_v3, 2 }
 0x252   :  { %v9327_v62 = vpack.i.bf16 %v11207_v47, %v11201_v3  ;;  %v977_v49 = vrot.slane %v11207_v47, 7  ;;  %v1025_v46 = vrot.slane %v11207_v47, 1  ;;  %v926_v39 = vrot.slane %v11204_v56, 6 }
 0x253   :  { %v8790_v0 = vpop.f32.mrb[4].mxu0  ;;  %v9332_v2 = vpack.i.bf16 %v11210_v16, %v11204_v56  ;;  %v975_v24 = vrot.slane %v11210_v16, 7  ;;  %v1023_v45 = vrot.slane %v11210_v16, 1  ;;  %v1071_v59 = vrot.slane %v11210_v16, 2 }
 0x254   :  { %v872_v36 = vadd.f32 %v8790_v0, %v11197_v54  ;;  %9328 = vrot.lane.b32.xlu0 %v9327_v62, %s10598_s23  ;;  %v863_v35 = vpop.f32.mrb[5].mxu0  ;;  %v1002_v55 = vsel %vm16071_vm2, %v976_v44, %v977_v49  ;;  %v1050_v48 = vsel %vm16070_vm0, %v1024_v32, %v1025_v46  ;;  %v929_v58 = vrot.slane %v11207_v47, 6 }
 0x255   :  { %v864_v41 = vadd.f32 %v11197_v54, %v863_v35  ;;  %9333 = vrot.lane.b32.xlu1 %v9332_v2, %s10598_s23  ;;  %v8791_v6 = vpop.f32.mrb[6].mxu0  ;;  %v1003_v60 = vsel %vm16071_vm2, %v975_v24, %v976_v44  ;;  %v1051_v23 = vsel %vm16070_vm0, %v1023_v45, %v1024_v32  ;;  %v1052_v4 = vsel %vm16070_vm0, %v1022_v40, %v1023_v45 }
 0x256   :  { %v11242_v28 = vmax.f32 %v872_v36, 0.0  ;;  %v875_v30 = vadd.f32 %v8791_v6, %v11197_v54  ;;  %v866_v1 = vpop.f32.mrb[7].mxu0  ;;  %v9337_v51 = vpack.i.bf16 %v1002_v55, %v1003_v60  ;;  %v9342_v61 = vpack.i.bf16 %v1051_v23, %v1052_v4 }
 0x257   :  { %v11245_v50 = vmax.f32 %v864_v41, 0.0  ;;  %v867_v17 = vadd.f32 %v11197_v54, %v866_v1  ;;  %v1099_v11 = vsel %vm16068_vm1, %v1071_v59, %v1072_v19  ;;  %v1100_v7 = vsel %vm16068_vm1, %v1070_v22, %v1071_v59 }
 0x258   :  { %v11255_v52 = vmax.f32 %v875_v30, 0.0  ;;  %9338 = vrot.lane.b32.xlu0 %v9337_v51, %s10595_s17  ;;  %v9347_v5 = vpack.i.bf16 %v1099_v11, %v1100_v7  ;;  %v1073_v13 = vrot.slane %v11207_v47, 2  ;;  %v927_v21 = vrot.slane %v11210_v16, 6  ;;  %v10445_v47 = vld [vmem:[%s15994_s1 + $0x18] ss:$0 sps:$4 sm:$0xff]  }
 0x259   :  { %v11261_v29 = vmax.f32 %v867_v17, 0.0  ;;  %9343 = vrot.lane.b32.xlu1 %v9342_v61, %s10599_s24  ;;  %v1026_v38 = vrot.slane %v11245_v50, 1  ;;  %v1074_v27 = vrot.slane %v11245_v50, 2  ;;  %v978_v42 = vrot.slane %v11245_v50, 7 }
 0x25a   :  { %v9352_v10 = vpack.i.bf16 %v11255_v52, %v11242_v28  ;;  %v932_v43 = vrot.slane %v11242_v28, 6  ;;  %v1098_v34 = vsel %vm16068_vm1, %v1072_v19, %v1073_v13  ;;  %v980_v36 = vrot.slane %v11242_v28, 7 }
 0x25b   :  { %v8794_v26 = vpop.f32.mrb[8].mxu0  ;;  %v1049_v9 = vsel %vm16070_vm0, %v1025_v46, %v1026_v38  ;;  %v9357_v33 = vpack.i.bf16 %v11261_v29, %v11245_v50  ;;  %v1097_v32 = vsel %vm16068_vm1, %v1073_v13, %v1074_v27  ;;  %v979_v62 = vrot.slane %v11261_v29, 7 }
 0x25c   :  { %v888_v8 = vadd.f32 %v8794_v26, %v11197_v54  ;;  %9353 = vrot.lane.b32.xlu0 %v9352_v10, %s10598_s23  ;;  %v879_v18 = vpop.f32.mrb[9].mxu0  ;;  %v9362_v44 = vpack.i.bf16 %v1049_v9, %v1050_v48  ;;  %v9367_v45 = vpack.i.bf16 %v1097_v32, %v1098_v34  ;;  %v1001_v19 = vsel %vm16071_vm2, %v977_v49, %v978_v42 }
 0x25d   :  { %v880_v0 = vadd.f32 %v11197_v54, %v879_v18  ;;  %9348 = vrot.lane.b32.xlu1 %v9347_v5, %s10600_s25  ;;  %v8795_v2 = vpop.f32.mrb[10].mxu0  ;;  %v1000_v46 = vsel %vm16071_vm2, %v978_v42, %v979_v62  ;;  %v981_v41 = vrot.slane %v11255_v52, 7  ;;  %v999_v49 = vsel %vm16071_vm2, %v979_v62, %v980_v36 }
 0x25e   :  { %v11288_v35 = vmax.f32 %v888_v8, 0.0  ;;  %v891_v55 = vadd.f32 %v8795_v2, %v11197_v54  ;;  %v882_v59 = vpop.f32.mrb[11].mxu0  ;;  %v9372_v23 = vpack.i.bf16 %v1000_v46, %v1001_v19  ;;  %v930_v4 = vrot.slane %v11245_v50, 6 }
 0x25f   :  { %v11294_v6 = vmax.f32 %v880_v0, 0.0  ;;  %v883_v60 = vadd.f32 %v11197_v54, %v882_v59  ;;  %v933_v30 = vrot.slane %v11255_v52, 6  ;;  %v998_v1 = vsel %vm16071_vm2, %v980_v36, %v981_v41 }
 0x260   :  { %9363 = vrot.lane.b32.xlu0 %v9362_v44, %s10599_s24  ;;  %v1027_v51 = vrot.slane %v11261_v29, 1  ;;  %v931_v61 = vrot.slane %v11261_v29, 6  ;;  %v936_v17 = vrot.slane %v11288_v35, 6  ;;  %v9377_v11 = vpack.i.bf16 %v998_v1, %v999_v49 }
 0x261   :  { %9358 = vrot.lane.b32.xlu1 %v9357_v33, %s10598_s23  ;;  %v1028_v7 = vrot.slane %v11242_v28, 1  ;;  %v11309_v5 = vmax.f32 %v891_v55, 0.0  ;;  %v1029_v13 = vrot.slane %v11255_v52, 1  ;;  %v1030_v10 = vrot.slane %v11294_v6, 1 }
 0x262   :  { %v1048_v48 = vsel %vm16070_vm0, %v1026_v38, %v1027_v51  ;;  %v11315_v42 = vmax.f32 %v883_v60, 0.0  ;;  %v1075_v9 = vrot.slane %v11261_v29, 2  ;;  %v1076_v33 = vrot.slane %v11242_v28, 2  ;;  %v10443_v60 = vld [vmem:[%s15994_s1 + $0x8] sm:$0xff]  }
 0x263   :  { %v1047_v26 = vsel %vm16070_vm0, %v1027_v51, %v1028_v7  ;;  %v1045_v38 = vsel %vm16070_vm0, %v1029_v13, %v1030_v10  ;;  %v1046_v18 = vsel %vm16070_vm0, %v1028_v7, %v1029_v13  ;;  %v1077_v44 = vrot.slane %v11255_v52, 2  ;;  %8800 = vmatprep.subr.bf16.mxu1 %v10443_v60 }
 0x264   :  { %9368 = vrot.lane.b32.xlu0 %v9367_v45, %s10600_s25  ;;  %v9382_v8 = vpack.i.bf16 %v1047_v26, %v1048_v48  ;;  %v1061_v0 = vmul.f32 %v1045_v38, %v10878_v15  ;;  %v1095_v2 = vsel %vm16068_vm1, %v1075_v9, %v1076_v33  ;;  %v1096_v45 = vsel %vm16068_vm1, %v1074_v27, %v1075_v9 }
 0x265   :  { %v8798_v34 = vpop.f32.mrb[12].mxu0  ;;  %9373 = vrot.lane.b32.xlu1 %v9372_v23, %s10595_s17  ;;  %v9387_v55 = vpack.i.bf16 %v1095_v2, %v1096_v45  ;;  %v1078_v59 = vrot.slane %v11294_v6, 2  ;;  %v1094_v46 = vsel %vm16068_vm1, %v1076_v33, %v1077_v44  ;;  %v982_v27 = vrot.slane %v11294_v6, 7  ;;  %8801 = vmatpush3.bf16.msra.mxu1 %v10443_v60 }
 0x266   :  { %v904_v32 = vadd.f32 %v8798_v34, %v11197_v54  ;;  %v895_v62 = vpop.f32.mrb[13].mxu0  ;;  %v9392_v51 = vpack.i.bf16 %v1061_v0, %v1046_v18  ;;  %v934_v7 = vrot.slane %v11294_v6, 6  ;;  %v983_v26 = vrot.slane %v11315_v42, 7 }
 0x267   :  { %v896_v19 = vadd.f32 %v11197_v54, %v895_v62  ;;  %v8799_v36 = vpop.f32.mrb[14].mxu0  ;;  %v1093_v13 = vsel %vm16068_vm1, %v1077_v44, %v1078_v59  ;;  %v937_v9 = vrot.slane %v11309_v5, 6  ;;  %v984_v0 = vrot.slane %v11288_v35, 7 }
 0x268   :  { %v11343_v23 = vmax.f32 %v904_v32, 0.0  ;;  %v907_v49 = vadd.f32 %v8799_v36, %v11197_v54  ;;  %v898_v1 = vpop.f32.mrb[15].mxu0  ;;  %9378 = vrot.lane.b32.xlu0 %v9377_v11, %s10595_s17  ;;  %v1109_v34 = vmul.f32 %v1093_v13, %v10893_v57  ;;  %v935_v11 = vrot.slane %v11315_v42, 6  ;;  %v10444_v32 = vld [vmem:[%s15994_s1 + $0x10] sm:$0xff]  }
 0x269   :  { %v899_v48 = vadd.f32 %v11197_v54, %v898_v1  ;;  %9383 = vrot.lane.b32.xlu1 %v9382_v8, %s10599_s24  ;;  %v997_v54 = vsel %vm16071_vm2, %v981_v41, %v982_v27  ;;  %v11363_v38 = vmax.f32 %v896_v19, 0.0  ;;  %v996_v18 = vsel %vm16071_vm2, %v982_v27, %v983_v26  ;;  %8802 = vmatprep.subr.bf16.mxu1 %v10444_v32 }
 0x26a   :  { %v11356_v33 = vmax.f32 %v907_v49, 0.0  ;;  %v1014_v44 = vmul.f32 %v997_v54, %v10905_v25  ;;  %v9397_v62 = vpack.i.bf16 %v1109_v34, %v1094_v46  ;;  %v985_v41 = vrot.slane %v11309_v5, 7  ;;  %8803 = vmatpush3.bf16.msra.mxu1 %v10444_v32 }
 0x26b   :  { %v11374_v2 = vmax.f32 %v899_v48, 0.0  ;;  %v974_v19 = vrot.slane %v11204_v56, 7  ;;  %v995_v46 = vsel %vm16071_vm2, %v983_v26, %v984_v0  ;;  %v9422_v49 = vpack.i.bf16 %v11309_v5, %v11288_v35  ;;  %9147 = vmatprep.subr.msk.bf16.mxu1 %vm16054_vm5, %v10445_v47 }
 0x26c   :  { %9393 = vrot.lane.b32.xlu0 %v9392_v51, %s10599_s24  ;;  %v9402_v45 = vpack.i.bf16 %v996_v18, %v1014_v44  ;;  %v989_v36 = vrot.slane %v11356_v33, 7  ;;  %v994_v60 = vsel %vm16071_vm2, %v984_v0, %v985_v41  ;;  %v9417_v1 = vpack.i.bf16 %v11315_v42, %v11294_v6 }
 0x26d   :  { %9388 = vrot.lane.b32.xlu1 %v9387_v55, %s10600_s25  ;;  %v9407_v51 = vpack.i.bf16 %v994_v60, %v995_v46  ;;  %v1004_v27 = vsel %vm16071_vm2, %v974_v19, %v975_v24  ;;  %v1032_v48 = vrot.slane %v11288_v35, 1  ;;  %v1033_v26 = vrot.slane %v11309_v5, 1 }
 0x26e   :  { %v1005_v55 = vsel %vm16071_vm2, %v989_v36, %v974_v19  ;;  %v1034_v34 = vrot.slane %v11363_v38, 1  ;;  %v1031_v54 = vrot.slane %v11315_v42, 1  ;;  %v1080_v18 = vrot.slane %v11288_v35, 2 }
 0x26f   :  { %v1006_v13 = vmul.f32 %v1005_v55, %v10860_v53  ;;  %v1081_v24 = vrot.slane %v11309_v5, 2  ;;  %v1082_v44 = vrot.slane %v11363_v38, 2  ;;  %v1079_v0 = vrot.slane %v11315_v42, 2 }
 0x270   :  { %9398 = vrot.lane.b32.xlu0 %v9397_v62, %s10600_s25  ;;  %v1041_v19 = vsel %vm16070_vm0, %v1033_v26, %v1034_v34  ;;  %v1042_v60 = vsel %vm16070_vm0, %v1032_v48, %v1033_v26  ;;  %v1043_v62 = vsel %vm16070_vm0, %v1031_v54, %v1032_v48  ;;  %v1044_v55 = vsel %vm16070_vm0, %v1030_v10, %v1031_v54 }
 0x271   :  { %9403 = vrot.lane.b32.xlu1 %v9402_v45, %s10595_s17  ;;  %v9412_v32 = vpack.i.bf16 %v1004_v27, %v1006_v13  ;;  %v9432_v46 = vpack.i.bf16 %v1041_v19, %v1042_v60  ;;  %v1089_v8 = vsel %vm16068_vm1, %v1081_v24, %v1082_v44  ;;  %v1090_v45 = vsel %vm16068_vm1, %v1080_v18, %v1081_v24 }
 0x272   :  { %v9427_v27 = vpack.i.bf16 %v1043_v62, %v1044_v55  ;;  %v9442_v13 = vpack.i.bf16 %v1089_v8, %v1090_v45  ;;  %v1091_v26 = vsel %vm16068_vm1, %v1079_v0, %v1080_v18  ;;  %v1092_v48 = vsel %vm16068_vm1, %v1078_v59, %v1079_v0 }
 0x273   :  { %v9437_v19 = vpack.i.bf16 %v1091_v26, %v1092_v48  ;;  %v987_v10 = vrot.slane %v11374_v2, 7  ;;  %v988_v54 = vrot.slane %v11343_v23, 7  ;;  %v986_v60 = vrot.slane %v11363_v38, 7 }
 0x274   :  { %9408 = vrot.lane.b32.xlu0 %v9407_v51, %s10595_s17  ;;  %v9462_v8 = vpack.i.bf16 %v11356_v33, %v11343_v23  ;;  %v9457_v18 = vpack.i.bf16 %v11374_v2, %v11363_v38  ;;  %v1036_v24 = vrot.slane %v11343_v23, 1  ;;  %v1037_v59 = vrot.slane %v11356_v33, 1 }
 0x275   :  { %9413 = vrot.lane.b32.xlu1 %v9412_v32, %s10595_s17  ;;  %v990_v51 = vsel %vm16071_vm2, %v988_v54, %v989_v36  ;;  %v991_v0 = vsel %vm16071_vm2, %v987_v10, %v988_v54  ;;  %v992_v62 = vsel %vm16071_vm2, %v986_v60, %v987_v10  ;;  %v993_v32 = vsel %vm16071_vm2, %v985_v41, %v986_v60 }
 0x276   :  { %v9452_v55 = vpack.i.bf16 %v990_v51, %v991_v0  ;;  %v9447_v45 = vpack.i.bf16 %v992_v62, %v993_v32  ;;  %v1038_v26 = vsel %vm16070_vm0, %v1036_v24, %v1037_v59  ;;  %v1053_v48 = vsel %vm16070_vm0, %v1037_v59, %v1022_v40 }
 0x277   :  { %v1069_v36 = vmul.f32 %v1053_v48, %v10737_v63  ;;  %v1035_v54 = vrot.slane %v11374_v2, 1  ;;  %v1084_v10 = vrot.slane %v11343_v23, 2  ;;  %v1085_v41 = vrot.slane %v11356_v33, 2 }
 0x278   :  { %9423 = vrot.lane.b32.xlu0 %v9422_v49, %s10598_s23  ;;  %v941_v60 = vrot.slane %v11356_v33, 6  ;;  %v1083_v51 = vrot.slane %v11374_v2, 2  ;;  %v954_v40 = vsel %vm16067_vm11, %v928_v37, %v929_v58  ;;  %v955_v49 = vsel %vm16067_vm11, %v927_v21, %v928_v37 }
 0x279   :  { %9418 = vrot.lane.b32.xlu1 %v9417_v1, %s10598_s23  ;;  %v9477_v59 = vpack.i.bf16 %v1069_v36, %v1038_v26  ;;  %v1039_v33 = vsel %vm16070_vm0, %v1035_v54, %v1036_v24  ;;  %v1040_v1 = vsel %vm16070_vm0, %v1034_v34, %v1035_v54  ;;  %v1086_v0 = vsel %vm16068_vm1, %v1084_v10, %v1085_v41 }
 0x27a   :  { %v9467_v62 = vpack.i.bf16 %v1039_v33, %v1040_v1  ;;  %v1101_v3 = vsel %vm16068_vm1, %v1085_v41, %v1070_v22  ;;  %v1087_v32 = vsel %vm16068_vm1, %v1083_v51, %v1084_v10  ;;  %v1088_v37 = vsel %vm16068_vm1, %v1082_v44, %v1083_v51 }
 0x27b   :  { %v938_v24 = vrot.slane %v11363_v38, 6  ;;  %v939_v26 = vrot.slane %v11374_v2, 6  ;;  %v1117_v34 = vmul.f32 %v1101_v3, %v10749_v20  ;;  %v9472_v48 = vpack.i.bf16 %v1087_v32, %v1088_v37 }
 0x27c   :  { %9433 = vrot.lane.b32.xlu0 %v9432_v46, %s10599_s24  ;;  %v11495_v22 = vsel %vm16067_vm11, %v930_v4, %v931_v61  ;;  %v11503_v38 = vsel %vm16067_vm11, %v929_v58, %v930_v4  ;;  %v11511_v2 = vsel %vm16067_vm11, %v932_v43, %v933_v30  ;;  %v11519_v50 = vsel %vm16067_vm11, %v931_v61, %v932_v43 }
 0x27d   :  { %9428 = vrot.lane.b32.xlu1 %v9427_v27, %s10599_s24  ;;  %v9482_v58 = vpack.i.bf16 %v1117_v34, %v1086_v0  ;;  %v11530_v4 = vsel %vm16067_vm11, %v934_v7, %v935_v11  ;;  %v11538_v28 = vsel %vm16067_vm11, %v933_v30, %v934_v7  ;;  %v11546_v29 = vsel %vm16067_vm11, %v936_v17, %v937_v9 }
 0x27e   :  { %v11554_v43 = vsel %vm16067_vm11, %v935_v11, %v936_v17  ;;  %v11562_v52 = vsel %vm16067_vm11, %v926_v39, %v927_v21  ;;  %v11568_v6 = vsel %vm16067_vm11, %v941_v60, %v926_v39  ;;  %v16095_v35 = vrot.slane %v11343_v23, 6 }
 0x27f   :  { %v1501_v21 = vsel %vm16054_vm5, %v10445_v47, 0  ;;  %v11588_v30 = vsel %vm16067_vm11, %v938_v24, %v939_v26  ;;  %v11594_v61 = vsel %vm16067_vm11, %v937_v9, %v938_v24 }
 0x280   :  { %9443 = vrot.lane.b32.xlu0 %v9442_v13, %s10600_s25  ;;  %v11575_v16 = vsel %vm16067_vm11, %v16095_v35, %v941_v60  ;;  %v16096_v56 = vmov %v16095_v35  ;;  %8805 = vmatpush3.bf16.msra.mxu1 %v1501_v21 }
 0x281   :  { %9438 = vrot.lane.b32.xlu1 %v9437_v19, %s10600_s25  ;;  %v11584_v39 = vsel %vm16067_vm11, %v939_v26, %v16096_v56 }
 0x284   :  { %9453 = vrot.lane.b32.xlu0 %v9452_v55, %s10595_s17 }
 0x285   :  { %9448 = vrot.lane.b32.xlu1 %v9447_v45, %s10595_s17 }
 0x288   :  { %9463 = vrot.lane.b32.xlu0 %v9462_v8, %s10598_s23 }
 0x289   :  { %9458 = vrot.lane.b32.xlu1 %v9457_v18, %s10598_s23 }
 0x28c   :  { %9478 = vrot.lane.b32.xlu0 %v9477_v59, %s10599_s24 }
 0x28d   :  { %9468 = vrot.lane.b32.xlu1 %v9467_v62, %s10599_s24 }
 0x290   :  { %9483 = vrot.lane.b32.xlu0 %v9482_v58, %s10600_s25 }
 0x291   :  { %9473 = vrot.lane.b32.xlu1 %v9472_v48, %s10600_s25 }
 0x2c6   :  { %v9329_v17 = vpop.permute.xlu0 %9328 }
 0x2c7   :  { %v11604_v5 = vpop.permute.xlu1 %9333  ;;  %v9331_v55 = vunpack.i.h.bf16 %v9329_v17  ;;  %v9330_v45 = vunpack.i.l.bf16 %v9329_v17 }
 0x2ca   :  { %v9339_v42 = vpop.permute.xlu0 %9338 }
 0x2cb   :  { %v11606_v23 = vpop.permute.xlu1 %9343  ;;  %v9341_v11 = vunpack.i.h.bf16 %v9339_v42  ;;  %v9340_v44 = vunpack.i.l.bf16 %v9339_v42 }
 0x2cd   :  { %v1377_v13 = vsel %vm16055_vm3, %v954_v40, %v9341_v11  ;;  %v1376_v19 = vsel %vm16055_vm3, %v955_v49, %v9340_v44 }
 0x2ce   :  { %v9354_v7 = vpop.permute.xlu0 %9353  ;;  %v1393_v54 = vsel %vm16062_vm6, %v1376_v19, %v9330_v45  ;;  %v1394_v10 = vsel %vm16062_vm6, %v1377_v13, %v9331_v55 }
 0x2cf   :  { %v11608_v9 = vpop.permute.xlu1 %9348  ;;  %v9355_v21 = vunpack.i.l.bf16 %v9354_v7 }
 0x2d2   :  { %v9364_v46 = vpop.permute.xlu0 %9363 }
 0x2d3   :  { %v9359_v27 = vpop.permute.xlu1 %9358  ;;  %v9366_v8 = vunpack.i.h.bf16 %v9364_v46  ;;  %v9365_v18 = vunpack.i.l.bf16 %v9364_v46 }
 0x2d4   :  { %v9361_v48 = vunpack.i.h.bf16 %v9359_v27  ;;  %v9360_v47 = vunpack.i.l.bf16 %v9359_v27  ;;  %v9356_v27 = vunpack.i.h.bf16 %v9354_v7 }
 0x2d5   :  { %v1411_v59 = vsel %vm16012_vm7, %v1394_v10, %v9366_v8  ;;  %v1410_v40 = vsel %vm16012_vm7, %v1393_v54, %v9365_v18 }
 0x2d6   :  { %v9369_v36 = vpop.permute.xlu0 %9368 }
 0x2d7   :  { %v9371_v41 = vunpack.i.h.bf16 %v9369_v36  ;;  %v9370_v60 = vunpack.i.l.bf16 %v9369_v36  ;;  %v9374_v51 = vpop.permute.xlu1 %9373 }
 0x2d8   :  { %v9376_v33 = vunpack.i.h.bf16 %v9374_v51  ;;  %v9375_v49 = vunpack.i.l.bf16 %v9374_v51 }
 0x2d9   :  { %v11617_v1 = vsel %vm16011_vm8, %v1410_v40, %v9370_v60  ;;  %v11620_v0 = vsel %vm16011_vm8, %v1411_v59, %v9371_v41 }
 0x2da   :  { %v9379_v62 = vpop.permute.xlu0 %9378  ;;  %v1447_v3 = vpack.c.bf16 %v11620_v0, %v11617_v1  ;;  %v1378_v26 = vsel %vm16055_vm3, %v11503_v38, %v9375_v49  ;;  %v1379_v34 = vsel %vm16055_vm3, %v11495_v22, %v9376_v33 }
 0x2db   :  { %v9381_v32 = vunpack.i.h.bf16 %v9379_v62  ;;  %v9380_v37 = vunpack.i.l.bf16 %v9379_v62  ;;  %v9384_v24 = vpop.permute.xlu1 %9383  ;;  %v1395_v11 = vsel %vm16062_vm6, %v1378_v26, %v9360_v47  ;;  %v1396_v44 = vsel %vm16062_vm6, %v1379_v34, %v9361_v48 }
 0x2dc   :  { %v9386_v58 = vunpack.i.h.bf16 %v9384_v24  ;;  %v9385_v35 = vunpack.i.l.bf16 %v9384_v24  ;;  %v9336_v26 = vunpack.i.h.bf16 %v11604_v5  ;;  %v9335_v34 = vunpack.i.l.bf16 %v11604_v5 }
 0x2dd   :  { %v1381_v17 = vsel %vm16055_vm3, %v11511_v2, %v9381_v32  ;;  %v1380_v42 = vsel %vm16055_vm3, %v11519_v50, %v9380_v37  ;;  %v958_v32 = vmul.f32 %v11568_v6, %v10989_v31  ;;  %v9346_v48 = vunpack.i.h.bf16 %v11606_v23 }
 0x2de   :  { %v9394_v56 = vpop.permute.xlu0 %9393  ;;  %v1412_v8 = vsel %vm16012_vm7, %v1395_v11, %v9385_v35  ;;  %v1413_v18 = vsel %vm16012_vm7, %v1396_v44, %v9386_v58  ;;  %v1397_v55 = vsel %vm16062_vm6, %v1380_v42, %v9355_v21  ;;  %v1398_v36 = vsel %vm16062_vm6, %v1381_v17, %v9356_v27 }
 0x2df   :  { %v9389_v38 = vpop.permute.xlu1 %9388  ;;  %v9396_v46 = vunpack.i.h.bf16 %v9394_v56  ;;  %v9395_v13 = vunpack.i.l.bf16 %v9394_v56  ;;  %v9345_v47 = vunpack.i.l.bf16 %v11606_v23  ;;  %v9351_v56 = vunpack.i.h.bf16 %v11608_v9 }
 0x2e0   :  { %v9391_v22 = vunpack.i.h.bf16 %v9389_v38  ;;  %v9390_v19 = vunpack.i.l.bf16 %v9389_v38  ;;  %v9350_v6 = vunpack.i.l.bf16 %v11608_v9 }
 0x2e1   :  { %v1414_v51 = vsel %vm16012_vm7, %v1397_v55, %v9395_v13  ;;  %v1415_v7 = vsel %vm16012_vm7, %v1398_v36, %v9396_v46 }
 0x2e2   :  { %v1429_v2 = vsel %vm16011_vm8, %v1412_v8, %v9390_v19  ;;  %v1430_v50 = vsel %vm16011_vm8, %v1413_v18, %v9391_v22  ;;  %v9399_v45 = vpop.permute.xlu0 %9398 }
 0x2e3   :  { %v9401_v54 = vunpack.i.h.bf16 %v9399_v45  ;;  %v9400_v10 = vunpack.i.l.bf16 %v9399_v45  ;;  %v9404_v41 = vpop.permute.xlu1 %9403  ;;  %v1448_v60 = vpack.c.bf16 %v1430_v50, %v1429_v2  ;;  %v966_v50 = vmul.f32 %v11538_v28, %v10998_v12 }
 0x2e4   :  { %v9406_v5 = vunpack.i.h.bf16 %v9404_v41  ;;  %v9405_v22 = vunpack.i.l.bf16 %v9404_v41 }
 0x2e5   :  { %v11643_v59 = vsel %vm16011_vm8, %v1414_v51, %v9400_v10  ;;  %v11646_v40 = vsel %vm16011_vm8, %v1415_v7, %v9401_v54 }
 0x2e6   :  { %v9409_v33 = vpop.permute.xlu0 %9408  ;;  %v1449_v49 = vpack.c.bf16 %v11646_v40, %v11643_v59  ;;  %v1383_v28 = vsel %vm16055_vm3, %v11530_v4, %v9406_v5  ;;  %v1382_v7 = vsel %vm16055_vm3, %v966_v50, %v9405_v22 }
 0x2e7   :  { %v9414_v62 = vpop.permute.xlu1 %9413  ;;  %v9411_v38 = vunpack.i.h.bf16 %v9409_v33 }
 0x2e8   :  { %v9416_v37 = vunpack.i.h.bf16 %v9414_v62  ;;  %v9415_v24 = vunpack.i.l.bf16 %v9414_v62 }
 0x2e9   :  { %v1385_v54 = vsel %vm16055_vm3, %v11546_v29, %v9411_v38 }
 0x2ea   :  { %v1375_v58 = vsel %vm16055_vm3, %v11562_v52, %v9416_v37  ;;  %v1374_v35 = vsel %vm16055_vm3, %v958_v32, %v9415_v24  ;;  %v9424_v21 = vpop.permute.xlu0 %9423  ;;  %v9410_v52 = vunpack.i.l.bf16 %v9409_v33 }
 0x2eb   :  { %v9419_v17 = vpop.permute.xlu1 %9418  ;;  %v1391_v42 = vsel %vm16062_vm6, %v1374_v35, %v9335_v34  ;;  %v1392_v11 = vsel %vm16062_vm6, %v1375_v58, %v9336_v26  ;;  %v9426_v19 = vunpack.i.h.bf16 %v9424_v21  ;;  %v9425_v9 = vunpack.i.l.bf16 %v9424_v21 }
 0x2ec   :  { %v1408_v44 = vsel %vm16012_vm7, %v1391_v42, %v9345_v47  ;;  %v1409_v23 = vsel %vm16012_vm7, %v1392_v11, %v9346_v48  ;;  %v9421_v18 = vunpack.i.h.bf16 %v9419_v17  ;;  %v9420_v55 = vunpack.i.l.bf16 %v9419_v17 }
 0x2ed   :  { %v1425_v46 = vsel %vm16011_vm8, %v1408_v44, %v9350_v6  ;;  %v1426_v13 = vsel %vm16011_vm8, %v1409_v23, %v9351_v56  ;;  %v1384_v10 = vsel %vm16055_vm3, %v11554_v43, %v9410_v52  ;;  %v1402_v62 = vsel %vm16062_vm6, %v1385_v54, %v9426_v19 }
 0x2ee   :  { %v9434_v27 = vpop.permute.xlu0 %9433  ;;  %v1446_v8 = vpack.c.bf16 %v1426_v13, %v1425_v46  ;;  %v1401_v33 = vsel %vm16062_vm6, %v1384_v10, %v9425_v9  ;;  %v1399_v43 = vsel %vm16062_vm6, %v1382_v7, %v9420_v55  ;;  %v1400_v32 = vsel %vm16062_vm6, %v1383_v28, %v9421_v18 }
 0x2ef   :  { %v9429_v2 = vpop.permute.xlu1 %9428  ;;  %v9436_v45 = vunpack.i.h.bf16 %v9434_v27  ;;  %v9435_v36 = vunpack.i.l.bf16 %v9434_v27 }
 0x2f0   :  { %8806 = vmatprep.mubr.msk.bf16.mxu1 %vm16010_vm9, %v1446_v8  ;;  %v9431_v41 = vunpack.i.h.bf16 %v9429_v2  ;;  %v9430_v51 = vunpack.i.l.bf16 %v9429_v2 }
 0x2f1   :  { %8807 = vmatmul.mubr.msk.bf16.vlgmr.msra.gmra.mrb[0].mxu1 %vm16010_vm9, %v1447_v3  ;;  %v1418_v3 = vsel %vm16012_vm7, %v1401_v33, %v9435_v36  ;;  %v1419_v4 = vsel %vm16012_vm7, %v1402_v62, %v9436_v45 }
 0x2f2   :  { %v9444_v29 = vpop.permute.xlu0 %9443  ;;  %8810 = vmatprep.mubr.msk.bf16.mxu1 %vm16010_vm9, %v1448_v60  ;;  %v1416_v34 = vsel %vm16012_vm7, %v1399_v43, %v9430_v51  ;;  %v1417_v48 = vsel %vm16012_vm7, %v1400_v32, %v9431_v41 }
 0x2f3   :  { %v9446_v37 = vunpack.i.h.bf16 %v9444_v29  ;;  %v9445_v1 = vunpack.i.l.bf16 %v9444_v29  ;;  %v9439_v0 = vpop.permute.xlu1 %9438 }
 0x2f4   :  { %v9441_v24 = vunpack.i.h.bf16 %v9439_v0  ;;  %v9440_v26 = vunpack.i.l.bf16 %v9439_v0  ;;  %v11723_v0 = vadd.s32 8, %v10657_v14 }
 0x2f5   :  { %v1435_v47 = vsel %vm16011_vm8, %v1418_v3, %v9445_v1  ;;  %v1436_v60 = vsel %vm16011_vm8, %v1419_v4, %v9446_v37  ;;  %v16097_v3 = vlaneseq }
 0x2f6   :  { %v1433_v58 = vsel %vm16011_vm8, %v1416_v34, %v9440_v26  ;;  %v1434_v35 = vsel %vm16011_vm8, %v1417_v48, %v9441_v24  ;;  %v9454_v21 = vpop.permute.xlu0 %9453  ;;  %v1451_v56 = vpack.c.bf16 %v1436_v60, %v1435_v47  ;;  %v1666_v24 = vmul.u32 2, %v10657_v14 }
 0x2f7   :  { %v9449_v6 = vpop.permute.xlu1 %9448  ;;  %v1450_v17 = vpack.c.bf16 %v1434_v35, %v1433_v58  ;;  %v9456_v5 = vunpack.i.h.bf16 %v9454_v21  ;;  %v9455_v44 = vunpack.i.l.bf16 %v9454_v21  ;;  %v11726_v4 = vand.u32 127, %v16097_v3 }
 0x2f8   :  { %v9451_v23 = vunpack.i.h.bf16 %v9449_v6  ;;  %v9450_v38 = vunpack.i.l.bf16 %v9449_v6  ;;  %v11730_v26 = vadd.s32 16, %v10657_v14  ;;  %v11733_v34 = vadd.s32 24, %v10657_v14 }
 0x2f9   :  { %8811 = vmatmul.mubr.msk.bf16.gmra.mrb[4].mxu1 %vm16010_vm9, %v1449_v49  ;;  %v1389_v59 = vsel %vm16055_vm3, %v11575_v16, %v9456_v5  ;;  %v1388_v40 = vsel %vm16055_vm3, %v11584_v39, %v9455_v44  ;;  %v1667_v48 = vmul.u32 2, %v11723_v0  ;;  %vm1674_vm10 = vcmp.eq.s32.totalorder %v11726_v4, %v1666_v24 }
 0x2fa   :  { %v9464_v42 = vpop.permute.xlu0 %9463  ;;  %8814 = vmatprep.mubr.msk.bf16.mxu1 %vm16010_vm9, %v1450_v17  ;;  %v1387_v55 = vsel %vm16055_vm3, %v11588_v30, %v9451_v23  ;;  %v1386_v2 = vsel %vm16055_vm3, %v11594_v61, %v9450_v38  ;;  %v16098_v47 = vmov 0.0   ;;  %v1668_v58 = vmul.u32 2, %v11730_v26  ;;  %v11770_v23 = vld [vmem:[%s15995_s2 + $0x1] ss:$0 sm:$0xff] }
 0x2fb   :  { %v9459_v11 = vpop.permute.xlu1 %9458  ;;  %v9466_v52 = vunpack.i.h.bf16 %v9464_v42  ;;  %v9465_v46 = vunpack.i.l.bf16 %v9464_v42  ;;  %v1682_v60 = vsel %vm1674_vm10, 1.0, %v16098_v47  ;;  %v1669_v35 = vmul.u32 2, %v11733_v34 }
 0x2fc   :  { %v9461_v22 = vunpack.i.h.bf16 %v9459_v11  ;;  %v9460_v19 = vunpack.i.l.bf16 %v9459_v11  ;;  %vm1675_vm12 = vcmp.eq.s32.totalorder %v11726_v4, %v1667_v48  ;;  %vm11743_vm14 = vcmp.eq.s32.totalorder %v11726_v4, %v1668_v58 }
 0x2fd   :  { %v1405_v50 = vsel %vm16062_vm6, %v1388_v40, %v9465_v46  ;;  %v1406_v45 = vsel %vm16062_vm6, %v1389_v59, %v9466_v52  ;;  %v1683_v21 = vsel %vm1675_vm12, 1.0, %v16098_v47  ;;  %vm8318_vm13 = vmpackc.low %vm1675_vm12, %vm1674_vm10  ;;  %vm11748_vm15 = vcmp.eq.s32.totalorder %v11726_v4, %v1669_v35 }
 0x2fe   :  { %v9479_v13 = vpop.permute.xlu0 %9478  ;;  %v1403_v16 = vsel %vm16062_vm6, %v1386_v2, %v9460_v19  ;;  %v1404_v54 = vsel %vm16062_vm6, %v1387_v55, %v9461_v22  ;;  %v11752_v17 = vpack.c.bf16 %v1683_v21, %v1682_v60  ;;  %v16013_v42 = vmov 1.0|1.0   ;;  %vm8320_vm12 = vmpackc.low %vm11748_vm15, %vm11743_vm14 }
 0x2ff   :  { %v9469_v9 = vpop.permute.xlu1 %9468  ;;  %v9481_v27 = vunpack.i.h.bf16 %v9479_v13  ;;  %v9480_v8 = vunpack.i.l.bf16 %v9479_v13  ;;  %8838 = vmatprep.mubr.msk.bf16.mxu0 %vm8318_vm13, %v16013_v42  ;;  %v11758_v11 = vsel %vm11743_vm14, 1.0, %v16098_v47  ;;  %v11763_v5 = vsel %vm11748_vm15, 1.0, %v16098_v47 }
 0x300   :  { %v9471_v49 = vunpack.i.h.bf16 %v9469_v9  ;;  %v9470_v18 = vunpack.i.l.bf16 %v9469_v9  ;;  %v1770_v6 = vand.u32 31, %v11733_v34 }
 0x301   :  { %8815 = vmatmul.mubr.msk.bf16.gmra.mrb[8].mxu1 %vm16010_vm9, %v1451_v56  ;;  %v1422_v51 = vsel %vm16012_vm7, %v1405_v50, %v9480_v8  ;;  %v1423_v28 = vsel %vm16012_vm7, %v1406_v45, %v9481_v27  ;;  %v10446_v56 = vld [vmem:[%s15994_s1 + $0x20] sm:$0xff]  }
 0x302   :  { %v9484_v36 = vpop.permute.xlu0 %9483  ;;  %v1420_v61 = vsel %vm16012_vm7, %v1403_v16, %v9470_v18  ;;  %v1421_v33 = vsel %vm16012_vm7, %v1404_v54, %v9471_v49  ;;  %8846 = vmatprep.subr.bf16.mxu1 %v10446_v56  ;;  %vm1810_vm14 = vcmp.lt.s32.totalorder %v1770_v6, 31 }
 0x303   :  { %v9486_v39 = vunpack.i.h.bf16 %v9484_v36  ;;  %v9485_v10 = vunpack.i.l.bf16 %v9484_v36  ;;  %v9474_v41 = vpop.permute.xlu1 %9473  ;;  %8847 = vmatpush3.bf16.msra.mxu1 %v10446_v56 }
 0x304   :  { %v9476_v30 = vunpack.i.h.bf16 %v9474_v41  ;;  %v9475_v7 = vunpack.i.l.bf16 %v9474_v41 }
 0x305   :  { %v1439_v62 = vsel %vm16011_vm8, %v1422_v51, %v9485_v10  ;;  %v1440_v29 = vsel %vm16011_vm8, %v1423_v28, %v9486_v39 }
 0x306   :  { %v1437_v43 = vsel %vm16011_vm8, %v1420_v61, %v9475_v7  ;;  %v1438_v32 = vsel %vm16011_vm8, %v1421_v33, %v9476_v30  ;;  %v1453_v37 = vpack.c.bf16 %v1440_v29, %v1439_v62 }
 0x307   :  { %v1452_v1 = vpack.c.bf16 %v1438_v32, %v1437_v43 }
 0x309   :  { %8818 = vmatprep.mubr.msk.bf16.mxu1 %vm16010_vm9, %v1452_v1 }
 0x30a   :  { %8819 = vmatmul.mubr.msk.bf16.gmra.mrb[12].mxu1 %vm16010_vm9, %v1453_v37 }
 0x3c4   :  { %v8808_v38 = vpop.f32.mrb[0].mxu1 }
 0x3c5   :  { %v1546_v52 = vadd.f32 %v8808_v38, %v11770_v23  ;;  %v1537_v46 = vpop.f32.mrb[1].mxu1 }
 0x3c6   :  { %v1538_v13 = vadd.f32 %v11770_v23, %v1537_v46  ;;  %v8809_v22 = vpop.f32.mrb[2].mxu1 }
 0x3c7   :  { %v11774_v19 = vmax.f32 %v1546_v52, 0.0  ;;  %v1549_v9 = vadd.f32 %v8809_v22, %v11770_v23  ;;  %v1540_v27 = vpop.f32.mrb[3].mxu1 }
 0x3c8   :  { %v11777_v8 = vmax.f32 %v1538_v13, 0.0  ;;  %v1541_v59 = vadd.f32 %v11770_v23, %v1540_v27 }
 0x3c9   :  { %16103 = vst [vmem:[#allocation16_spill] sm:$0xff] %v11774_v19  ;;  %v11780_v40 = vmax.f32 %v1549_v9, 0.0  ;;  %v1618_v18 = vrot.slane %v11774_v19, 1 }
 0x3ca   :  { %16104 = vst [vmem:[#allocation17_spill] sm:$0xff] %v11777_v8  ;;  %v11782_v49 = vmax.f32 %v1541_v59, 0.0  ;;  %v1616_v2 = vrot.slane %v11777_v8, 1 }
 0x3cb   :  { %16105 = vst [vmem:[#allocation18_spill] sm:$0xff] %v11780_v40  ;;  %v1619_v55 = vrot.slane %v11780_v40, 1 }
 0x3cc   :  { %16106 = vst [vmem:[#allocation19_spill] sm:$0xff] %v11782_v49  ;;  %v1617_v45 = vrot.slane %v11782_v49, 1  ;;  %v8812_v36 = vpop.f32.mrb[4].mxu1 }
 0x3cd   :  { %v1562_v16 = vadd.f32 %v8812_v36, %v11770_v23  ;;  %v1553_v54 = vpop.f32.mrb[5].mxu1  ;;  %v1644_v39 = vsel %vm16070_vm0, %v1618_v18, %v1619_v55 }
 0x3ce   :  { %v1645_v10 = vsel %vm16070_vm0, %v1617_v45, %v1618_v18  ;;  %v1554_v41 = vadd.f32 %v11770_v23, %v1553_v54  ;;  %v8813_v51 = vpop.f32.mrb[6].mxu1  ;;  %v1646_v28 = vsel %vm16070_vm0, %v1616_v2, %v1617_v45  ;;  %v1650_v30 = vmax.f32 %v11774_v19, %v1644_v39 }
 0x3cf   :  { %v1649_v7 = vmax.f32 %v11782_v49, %v1645_v10  ;;  %v1565_v61 = vadd.f32 %v8813_v51, %v11770_v23  ;;  %v1556_v33 = vpop.f32.mrb[7].mxu1  ;;  %v1648_v62 = vmax.f32 %v11777_v8, %v1646_v28  ;;  %v11804_v29 = vmax.f32 %v1562_v16, 0.0 }
 0x3d0   :  { %v11806_v43 = vmax.f32 %v1554_v41, 0.0  ;;  %v1557_v32 = vadd.f32 %v11770_v23, %v1556_v33 }
 0x3d1   :  { %16107 = vst [vmem:[#allocation20_spill] sm:$0xff] %v11804_v29  ;;  %v1694_v37 = vpack.c.bf16 %v1649_v7, %v1648_v62  ;;  %v11812_v24 = vmax.f32 %v1565_v61, 0.0  ;;  %v1622_v60 = vrot.slane %v11804_v29, 1 }
 0x3d2   :  { %16108 = vst [vmem:[#allocation21_spill] sm:$0xff] %v11806_v43  ;;  %v1620_v3 = vrot.slane %v11806_v43, 1  ;;  %v11814_v48 = vmax.f32 %v1557_v32, 0.0 }
 0x3d3   :  { %16109 = vst [vmem:[#allocation22_spill] sm:$0xff] %v11812_v24  ;;  %8822 = vmatprep.subr.bf16.mxu0 %v1694_v37  ;;  %v1623_v22 = vrot.slane %v11812_v24, 1 }
 0x3d4   :  { %16110 = vst [vmem:[#allocation23_spill] sm:$0xff] %v11814_v48  ;;  %v1621_v35 = vrot.slane %v11814_v48, 1  ;;  %v8816_v21 = vpop.f32.mrb[8].mxu1  ;;  %8823 = vmatpush3.bf16.msra.mxu0 %v1694_v37  ;;  %v1643_v38 = vsel %vm16070_vm0, %v1619_v55, %v1620_v3 }
 0x3d5   :  { %v1578_v52 = vadd.f32 %v8816_v21, %v11770_v23  ;;  %v1569_v46 = vpop.f32.mrb[9].mxu1  ;;  %v1651_v13 = vmax.f32 %v11780_v40, %v1643_v38  ;;  %v1640_v33 = vsel %vm16070_vm0, %v1622_v60, %v1623_v22 }
 0x3d6   :  { %v1641_v9 = vsel %vm16070_vm0, %v1621_v35, %v1622_v60  ;;  %v1570_v27 = vadd.f32 %v11770_v23, %v1569_v46  ;;  %v8817_v59 = vpop.f32.mrb[10].mxu1  ;;  %v1642_v18 = vsel %vm16070_vm0, %v1620_v3, %v1621_v35  ;;  %v1654_v21 = vmax.f32 %v11804_v29, %v1640_v33 }
 0x3d7   :  { %v1653_v45 = vmax.f32 %v11814_v48, %v1641_v9  ;;  %v11831_v36 = vmax.f32 %v1578_v52, 0.0  ;;  %v1581_v55 = vadd.f32 %v8817_v59, %v11770_v23  ;;  %v1572_v16 = vpop.f32.mrb[11].mxu1  ;;  %v1695_v54 = vpack.c.bf16 %v1651_v13, %v1650_v30 }
 0x3d8   :  { %v11834_v39 = vmax.f32 %v1570_v27, 0.0  ;;  %v1573_v10 = vadd.f32 %v11770_v23, %v1572_v16  ;;  %v1652_v41 = vmax.f32 %v11806_v43, %v1642_v18 }
 0x3d9   :  { %16111 = vst [vmem:[#allocation24_spill] sm:$0xff] %v11831_v36  ;;  %v11838_v51 = vmax.f32 %v1581_v55, 0.0  ;;  %8824 = vmatprep.subr.bf16.mxu0 %v1695_v54  ;;  %v1626_v30 = vrot.slane %v11831_v36, 1 }
 0x3da   :  { %16112 = vst [vmem:[#allocation25_spill] sm:$0xff] %v11834_v39  ;;  %v1624_v28 = vrot.slane %v11834_v39, 1  ;;  %v11841_v7 = vmax.f32 %v1573_v10, 0.0  ;;  %8825 = vmatpush3.bf16.msra.mxu0 %v1695_v54  ;;  %v1696_v61 = vpack.c.bf16 %v1653_v45, %v1652_v41 }
 0x3db   :  { %16113 = vst [vmem:[#allocation26_spill] sm:$0xff] %v11838_v51  ;;  %v1627_v62 = vrot.slane %v11838_v51, 1 }
 0x3dc   :  { %16114 = vst [vmem:[#allocation27_spill] sm:$0xff] %v11841_v7  ;;  %v1625_v37 = vrot.slane %v11841_v7, 1  ;;  %8826 = vmatprep.subr.bf16.mxu0 %v1696_v61  ;;  %v1639_v3 = vsel %vm16070_vm0, %v1623_v22, %v1624_v28 }
 0x3dd   :  { %v8820_v35 = vpop.f32.mrb[12].mxu1  ;;  %v1655_v38 = vmax.f32 %v11812_v24, %v1639_v3  ;;  %v1636_v60 = vsel %vm16070_vm0, %v1626_v30, %v1627_v62 }
 0x3de   :  { %v1637_v52 = vsel %vm16070_vm0, %v1625_v37, %v1626_v30  ;;  %v1594_v46 = vadd.f32 %v8820_v35, %v11770_v23  ;;  %v1585_v13 = vpop.f32.mrb[13].mxu1  ;;  %8827 = vmatpush3.bf16.msra.mxu0 %v1696_v61  ;;  %v1638_v9 = vsel %vm16070_vm0, %v1624_v28, %v1625_v37  ;;  %v1658_v22 = vmax.f32 %v11831_v36, %v1636_v60 }
 0x3df   :  { %v1657_v27 = vmax.f32 %v11841_v7, %v1637_v52  ;;  %v1586_v59 = vadd.f32 %v11770_v23, %v1585_v13  ;;  %v8821_v18 = vpop.f32.mrb[14].mxu1  ;;  %v1697_v45 = vpack.c.bf16 %v1655_v38, %v1654_v21  ;;  %v1656_v55 = vmax.f32 %v11834_v39, %v1638_v9 }
 0x3e0   :  { %v1597_v16 = vadd.f32 %v8821_v18, %v11770_v23  ;;  %v1588_v54 = vpop.f32.mrb[15].mxu1  ;;  %v11866_v10 = vmax.f32 %v1594_v46, 0.0 }
 0x3e1   :  { %v11868_v41 = vmax.f32 %v1586_v59, 0.0  ;;  %v1589_v61 = vadd.f32 %v11770_v23, %v1588_v54  ;;  %8828 = vmatprep.subr.bf16.mxu0 %v1697_v45  ;;  %v1698_v28 = vpack.c.bf16 %v1657_v27, %v1656_v55  ;;  %v11902_v55 = vadd.s32 40, %v10657_v14 }
 0x3e2   :  { %16115 = vst [vmem:[#allocation28_spill] sm:$0xff] %v11866_v10  ;;  %v11871_v33 = vmax.f32 %v1597_v16, 0.0  ;;  %8829 = vmatpush3.bf16.msra.mxu0 %v1697_v45  ;;  %v1630_v21 = vrot.slane %v11866_v10, 1  ;;  %v11899_v45 = vadd.s32 32, %v10657_v14 }
 0x3e3   :  { %16116 = vst [vmem:[#allocation29_spill] sm:$0xff] %v11868_v41  ;;  %v1628_v37 = vrot.slane %v11868_v41, 1  ;;  %v11876_v3 = vmax.f32 %v1589_v61, 0.0  ;;  %8830 = vmatprep.subr.bf16.mxu0 %v1698_v28 }
 0x3e4   :  { %16117 = vst [vmem:[#allocation30_spill] sm:$0xff] %v11871_v33  ;;  %v1631_v35 = vrot.slane %v11871_v33, 1  ;;  %v1670_v61 = vmul.u32 2, %v11899_v45 }
 0x3e5   :  { %16118 = vst [vmem:[#allocation31_spill] sm:$0xff] %v11876_v3  ;;  %v1629_v38 = vrot.slane %v11876_v3, 1  ;;  %v1635_v60 = vsel %vm16070_vm0, %v1627_v62, %v1628_v37 }
 0x3e6   :  { %8831 = vmatpush3.bf16.msra.mxu0 %v1698_v28  ;;  %v1659_v52 = vmax.f32 %v11838_v51, %v1635_v60  ;;  %v1647_v46 = vsel %vm16070_vm0, %v1631_v35, %v1616_v2  ;;  %v1632_v27 = vsel %vm16070_vm0, %v1630_v21, %v1631_v35  ;;  %vm1678_vm4 = vcmp.eq.s32.totalorder %v11726_v4, %v1670_v61 }
 0x3e7   :  { %v1633_v13 = vsel %vm16070_vm0, %v1629_v38, %v1630_v21  ;;  %v1634_v9 = vsel %vm16070_vm0, %v1628_v37, %v1629_v38  ;;  %v1663_v2 = vmax.f32 %v11871_v33, %v1647_v46  ;;  %v1662_v54 = vmax.f32 %v11866_v10, %v1632_v27  ;;  %v16119_v21 = vld [vmem:[#allocation8_spill] sm:$0xff] }
 0x3e8   :  { %v1661_v59 = vmax.f32 %v11876_v3, %v1633_v13  ;;  %v1699_v62 = vpack.c.bf16 %v1659_v52, %v1658_v22  ;;  %v1660_v18 = vmax.f32 %v11868_v41, %v1634_v9  ;;  %v1671_v22 = vmul.u32 2, %v11902_v55 }
 0x3e9   :  { %v1701_v28 = vpack.c.bf16 %v1663_v2, %v1662_v54  ;;  %v11909_v37 = vadd.s32 48, %v10657_v14  ;;  %v1673_v38 = vmul.u32 2, %v16119_v21  ;;  %v16015_v60 = vand.u32 31, %v11899_v45  ;;  %v10447_v2 = vld [vmem:[%s15994_s1 + $0x28] sm:$0xff]  }
 0x3ea   :  { %8832 = vmatprep.subr.bf16.mxu0 %v1699_v62  ;;  %v1700_v16 = vpack.c.bf16 %v1661_v59, %v1660_v18  ;;  %vm1679_vm10 = vcmp.eq.s32.totalorder %v11726_v4, %v1671_v22  ;;  %v16016_v52 = vand.u32 31, %v10657_v14  ;;  %v1774_v46 = vand.u32 31, %v16119_v21  ;;  %8848 = vmatprep.subr.bf16.mxu1 %v10447_v2 }
 0x3eb   :  { %8833 = vmatpush3.bf16.msra.mxu0 %v1699_v62  ;;  %vm8322_vm13 = vmpackc.low %vm1679_vm10, %vm1678_vm4  ;;  %v1672_v35 = vmul.u32 2, %v11909_v37  ;;  %vm1681_vm8 = vcmp.eq.s32.totalorder %v11726_v4, %v1673_v38  ;;  %v11936_v13 = vsel %vm1810_vm14, 1.0, %v16098_v47  ;;  %8849 = vmatpush3.bf16.msra.mxu1 %v10447_v2 }
 0x3ec   :  { %8834 = vmatprep.subr.bf16.mxu0 %v1700_v16  ;;  %vm1814_vm15 = vcmp.lt.s32.totalorder %v1774_v46, 31  ;;  %vm1830_vm4 = vcmp.lt.s32.totalorder %v1774_v46, 30 }
 0x3ed   :  { %vm1680_vm9 = vcmp.eq.s32.totalorder %v11726_v4, %v1672_v35  ;;  %v11950_v18 = vsel %vm1814_vm15, 1.0, %v16098_v47 }
 0x3ee   :  { %vm8324_vm7 = vmpackc.low %vm1681_vm8, %vm1680_vm9  ;;  %vm1795_vm8 = vcmp.ge.s32.totalorder %v16015_v60, 1  ;;  %vm1826_vm9 = vcmp.lt.s32.totalorder %v1770_v6, 30 }
 0x3ef   :  { %8835 = vmatpush3.bf16.msra.mxu0 %v1700_v16  ;;  %v11941_v27 = vsel %vm1795_vm8, 1.0, %v16098_v47  ;;  %v11944_v59 = vsel %vm1826_vm9, 1.0, %v16098_v47  ;;  %vm16140_vm8 = vcmask 261120  }
 0x3f0   :  { %8836 = vmatprep.subr.bf16.mxu0 %v1701_v28  ;;  %vm16141_vm9 = vmmov %vm16140_vm8 }
 0x3f3   :  { %8837 = vmatpush3.bf16.msra.mxu0 %v1701_v28  ;;  %v11961_v28 = vsel %vm1830_vm4, 1.0, %v16098_v47  ;;  %vm16145_vm4 = vmmov %vm16140_vm8 }
 0x3f6   :  { %8839 = vmatmul.mubr.msk.bf16.vlgmr.msra.gmra.mrb[16].mxu0 %vm8320_vm12, %v16013_v42 }
 0x3f7   :  { %8842 = vmatprep.mubr.msk.bf16.mxu0 %vm8322_vm13, %v16013_v42  ;;  %vm16138_vm13 = vcmask 195584  }
 0x3f8   :  { %vm16139_vm14 = vmmov %vm16138_vm13 }
 0x3fe   :  { %8843 = vmatmul.mubr.msk.bf16.gmra.mrb[20].mxu0 %vm8324_vm7, %v16013_v42  ;;  %vm1791_vm7 = vcmp.ge.s32.totalorder %v16016_v52, 1 }
 0x3ff   :  { %v11947_v62 = vsel %vm1791_vm7, 1.0, %v16098_v47  ;;  %vm16142_vm7 = vmmov %vm16138_vm13 }
 0x400   :  { %vm16143_vm15 = vmmov %vm16142_vm7 }
 0x4c9   :  { %v11938_v9 = vpop.f32.mrb[16].mxu0 }
 0x4ca   :  { %v1865_v54 = vrot.slane %v11938_v9, 7  ;;  %v1889_v61 = vrot.slane %v11938_v9, 1  ;;  %v11958_v22 = vpop.f32.mrb[17].mxu0  ;;  %v1913_v35 = vrot.slane %v11938_v9, 2 }
 0x4cb   :  { %v16029_v6 = vrot.slane %v11958_v22, 1  ;;  %v8841_v46 = vpop.f32.mrb[18].mxu0  ;;  %v16121_v31 = vrot.slane %v11958_v22, 7  ;;  %v16123_v39 = vrot.slane %v11958_v22, 6 }
 0x4cc   :  { %v1842_v30 = vrot.slane %v8841_v46, 6  ;;  %v1866_v23 = vrot.slane %v8841_v46, 7  ;;  %v1890_v32 = vrot.slane %v8841_v46, 1  ;;  %v11968_v58 = vpop.f32.mrb[19].mxu0  ;;  %v1914_v50 = vrot.slane %v8841_v46, 2 }
 0x4cd   :  { %v1864_v1 = vrot.slane %v11968_v58, 7  ;;  %v1888_v44 = vrot.slane %v11968_v58, 1  ;;  %v1912_v60 = vrot.slane %v11968_v58, 2  ;;  %v9487_v52 = vpack.i.bf16 %v8841_v46, %v11938_v9 }
 0x4ce   :  { %v9492_v38 = vpack.i.bf16 %v11968_v58, %v11958_v22  ;;  %v1875_v16 = vsel %vm16071_vm2, %v1865_v54, %v1866_v23  ;;  %v1899_v56 = vsel %vm16070_vm0, %v1889_v61, %v1890_v32 }
 0x4cf   :  { %v1876_v2 = vsel %vm16071_vm2, %v1864_v1, %v1865_v54  ;;  %v1900_v42 = vsel %vm16070_vm0, %v1888_v44, %v1889_v61  ;;  %v1901_v46 = vsel %vm16070_vm0, %v16029_v6, %v1888_v44  ;;  %v1924_v12 = vsel %vm16068_vm1, %v1912_v60, %v1913_v35  ;;  %9488 = vrot.lane.b32.xlu0 %v9487_v52, %s10598_s23 }
 0x4d0   :  { %9493 = vrot.lane.b32.xlu1 %v9492_v38, %s10598_s23  ;;  %v9497_v20 = vpack.i.bf16 %v1875_v16, %v1876_v2  ;;  %v9502_v63 = vpack.i.bf16 %v1900_v42, %v1901_v46  ;;  %v16120_v54 = vrot.slane %v11958_v22, 2  ;;  %v12001_v44 = vsel %vm16068_vm1, %v1913_v35, %v1914_v50 }
 0x4d1   :  { %v11997_v53 = vpop.f32.mrb[20].mxu0  ;;  %v12007_v52 = vsel %vm16071_vm2, %v16121_v31, %v1864_v1  ;;  %v16122_v42 = vrot.slane %v11938_v9, 6 }
 0x4d2   :  { %v1925_v61 = vsel %vm16068_vm1, %v16120_v54, %v1912_v60  ;;  %v1893_v38 = vrot.slane %v11997_v53, 1  ;;  %v1917_v35 = vrot.slane %v11997_v53, 2  ;;  %v12019_v2 = vpop.f32.mrb[21].mxu0 }
 0x4d3   :  { %v9507_v25 = vpack.i.bf16 %v1924_v12, %v1925_v61  ;;  %v12013_v16 = vsel %vm16067_vm11, %v16122_v42, %v1842_v30  ;;  %v1869_v12 = vrot.slane %v11997_v53, 7  ;;  %v1843_v46 = vrot.slane %v12019_v2, 6  ;;  %v8845_v61 = vpop.f32.mrb[22].mxu0  ;;  %9498 = vrot.lane.b32.xlu0 %v9497_v20, %s10595_s17 }
 0x4d4   :  { %v1867_v31 = vrot.slane %v12019_v2, 7  ;;  %v1891_v1 = vrot.slane %v12019_v2, 1  ;;  %v1915_v54 = vrot.slane %v12019_v2, 2  ;;  %9503 = vrot.lane.b32.xlu1 %v9502_v63, %s10599_s24  ;;  %v1846_v42 = vrot.slane %v8845_v61, 6  ;;  %v1755_v15 = vpop.f32.mrb[23].mxu0 }
 0x4d5   :  { %v1870_v60 = vrot.slane %v8845_v61, 7  ;;  %v1894_v6 = vrot.slane %v8845_v61, 1  ;;  %v1918_v57 = vrot.slane %v8845_v61, 2  ;;  %v12029_v51 = vsel %vm16067_vm11, %v1842_v30, %v1843_v46  ;;  %v10448_v30 = vld [vmem:[%s15994_s1 + $0x30] ss:$0 sps:$4 sm:$0xff]  }
 0x4d6   :  { %v1844_v41 = vrot.slane %v1755_v15, 6  ;;  %v1868_v3 = vrot.slane %v1755_v15, 7  ;;  %v1892_v10 = vrot.slane %v1755_v15, 1  ;;  %v12035_v7 = vsel %vm16067_vm11, %v1846_v42, %v16123_v39  ;;  %9148 = vmatprep.subr.msk.bf16.mxu1 %vm16054_vm5, %v10448_v30 }
 0x4d7   :  { %v1916_v20 = vrot.slane %v1755_v15, 2  ;;  %v1898_v63 = vsel %vm16070_vm0, %v1890_v32, %v1891_v1  ;;  %v1874_v36 = vsel %vm16071_vm2, %v1866_v23, %v1867_v31  ;;  %v1922_v39 = vsel %vm16068_vm1, %v1914_v50, %v1915_v54 }
 0x4d8   :  { %v1906_v48 = vmul.f32 %v1898_v63, %v11936_v13  ;;  %v1873_v29 = vsel %vm16071_vm2, %v1867_v31, %v1868_v3  ;;  %v1883_v24 = vmul.f32 %v1874_v36, %v11941_v27  ;;  %9508 = vrot.lane.b32.xlu1 %v9507_v25, %s10600_s25  ;;  %v1930_v32 = vmul.f32 %v1922_v39, %v11944_v59 }
 0x4d9   :  { %v16124_v23 = vrot.slane %v11958_v22, 7  ;;  %v1871_v63 = vsel %vm16071_vm2, %v1869_v12, %v1870_v60  ;;  %v1872_v31 = vsel %vm16071_vm2, %v1868_v3, %v1869_v12  ;;  %v9537_v39 = vpack.i.bf16 %v1755_v15, %v12019_v2 }
 0x4da   :  { %v9512_v19 = vpack.i.bf16 %v1906_v48, %v1899_v56  ;;  %v9522_v36 = vpack.i.bf16 %v1873_v29, %v1883_v24  ;;  %v9527_v50 = vpack.i.bf16 %v1871_v63, %v1872_v31  ;;  %v9517_v25 = vpack.i.bf16 %v1930_v32, %v12001_v44 }
 0x4db   :  { %v1878_v49 = vsel %vm16071_vm2, %v1870_v60, %v16124_v23  ;;  %v9542_v43 = vpack.i.bf16 %v8845_v61, %v11997_v53  ;;  %v1896_v23 = vsel %vm16070_vm0, %v1892_v10, %v1893_v38  ;;  %v1897_v29 = vsel %vm16070_vm0, %v1891_v1, %v1892_v10 }
 0x4dc   :  { %v1879_v40 = vmul.f32 %v1878_v49, %v11947_v62  ;;  %9513 = vrot.lane.b32.xlu0 %v9512_v19, %s10599_s24  ;;  %v1895_v49 = vsel %vm16070_vm0, %v1893_v38, %v1894_v6  ;;  %v16125_v24 = vrot.slane %v11958_v22, 1  ;;  %9523 = vrot.lane.b32.xlu1 %v9522_v36, %s10595_s17  ;;  %v9547_v48 = vpack.i.bf16 %v1896_v23, %v1897_v29 }
 0x4dd   :  { %v1920_v19 = vsel %vm16068_vm1, %v1916_v20, %v1917_v35  ;;  %v1919_v44 = vsel %vm16068_vm1, %v1917_v35, %v1918_v57  ;;  %v16127_v60 = vrot.slane %v11938_v9, 6  ;;  %v16128_v12 = vrot.slane %v11968_v58, 6 }
 0x4de   :  { %v9532_v3 = vpack.i.bf16 %v12007_v52, %v1879_v40  ;;  %v1902_v15 = vsel %vm16070_vm0, %v1894_v6, %v16125_v24  ;;  %v1921_v40 = vsel %vm16068_vm1, %v1915_v54, %v1916_v20  ;;  %v16126_v52 = vrot.slane %v11958_v22, 2 }
 0x4df   :  { %v1910_v56 = vmul.f32 %v1902_v15, %v11950_v18  ;;  %v9552_v10 = vpack.i.bf16 %v1920_v19, %v1921_v40  ;;  %v1852_v38 = vsel %vm16067_vm11, %v16128_v12, %v16127_v60  ;;  %v12098_v54 = vsel %vm16067_vm11, %v1843_v46, %v1844_v41 }
 0x4e0   :  { %v1926_v6 = vsel %vm16068_vm1, %v1918_v57, %v16126_v52  ;;  %9518 = vrot.lane.b32.xlu0 %v9517_v25, %s10600_s25  ;;  %v16129_v35 = vmov %v16128_v12  ;;  %v16130_v57 = vrot.slane %v11958_v22, 6  ;;  %v16131_v61 = vrot.slane %v11997_v53, 6  ;;  %9533 = vrot.lane.b32.xlu1 %v9532_v3, %s10595_s17 }
 0x4e1   :  { %v9557_v2 = vpack.i.bf16 %v1910_v56, %v1895_v49  ;;  %v1934_v1 = vmul.f32 %v1926_v6, %v11961_v28  ;;  %v2137_v22 = vsel %vm16054_vm5, %v10448_v30, 0  ;;  %v16133_v31 = vand.u32 31, %v10657_v14 }
 0x4e2   :  { %v1853_v9 = vsel %vm16067_vm11, %v16130_v57, %v16129_v35  ;;  %v12111_v20 = vsel %vm16067_vm11, %v16131_v61, %v1846_v42  ;;  %v16132_v32 = vmov %v16131_v61  ;;  %8851 = vmatpush3.bf16.msra.mxu1 %v2137_v22 }
 0x4e3   :  { %v12117_v46 = vsel %vm16067_vm11, %v1844_v41, %v16132_v32  ;;  %v9562_v58 = vpack.i.bf16 %v1934_v1, %v1919_v44  ;;  %vm1775_vm10 = vcmp.ge.s32.totalorder %v16133_v31, 2 }
 0x4e4   :  { %9528 = vrot.lane.b32.xlu0 %v9527_v50, %s10595_s17  ;;  %9538 = vrot.lane.b32.xlu1 %v9537_v39, %s10598_s23 }
 0x4e8   :  { %9543 = vrot.lane.b32.xlu0 %v9542_v43, %s10598_s23  ;;  %9548 = vrot.lane.b32.xlu1 %v9547_v48, %s10599_s24  ;;  %v12131_v43 = vsel %vm1775_vm10, 1.0, %v16098_v47  ;;  %v16135_v48 = vand.u32 31, %v11899_v45  ;;  %vm16146_vm10 = vmmov %vm16145_vm4 }
 0x4e9   :  { %16134 = vst [vmem:[#allocation8_spill] sm:$0xff] %v12131_v43 }
 0x4ea   :  { %vm12138_vm12 = vcmp.ge.s32.totalorder %v16135_v48, 2 }
 0x4ec   :  { %9558 = vrot.lane.b32.xlu0 %v9557_v2, %s10599_s24  ;;  %9553 = vrot.lane.b32.xlu1 %v9552_v10, %s10600_s25  ;;  %v1855_v10 = vmul.f32 %v12035_v7, %v12131_v43 }
 0x4f0   :  { %9563 = vrot.lane.b32.xlu0 %v9562_v58, %s10600_s25 }
 0x541   :  { %v9489_v53 = vpop.permute.xlu0 %9488 }
 0x542   :  { %v9494_v41 = vpop.permute.xlu1 %9493  ;;  %v9491_v24 = vunpack.i.h.bf16 %v9489_v53  ;;  %v9490_v15 = vunpack.i.l.bf16 %v9489_v53 }
 0x543   :  { %v9496_v19 = vunpack.i.h.bf16 %v9494_v41  ;;  %v9495_v35 = vunpack.i.l.bf16 %v9494_v41 }
 0x545   :  { %v9499_v63 = vpop.permute.xlu0 %9498 }
 0x546   :  { %v9504_v42 = vpop.permute.xlu1 %9503  ;;  %v9501_v36 = vunpack.i.h.bf16 %v9499_v63  ;;  %v9500_v50 = vunpack.i.l.bf16 %v9499_v63 }
 0x547   :  { %v9506_v57 = vunpack.i.h.bf16 %v9504_v42  ;;  %v9505_v7 = vunpack.i.l.bf16 %v9504_v42  ;;  %v12159_v42 = vsel %vm12138_vm12, 1.0, %v16098_v47 }
 0x548   :  { %v2066_v23 = vsel %vm16055_vm3, %v12013_v16, %v9501_v36  ;;  %v2065_v3 = vsel %vm16055_vm3, %v1852_v38, %v9500_v50  ;;  %16144 = vst [vmem:[#allocation32_spill] sm:$0xff] %v12159_v42 }
 0x549   :  { %v2073_v44 = vsel %vm16062_vm6, %v2065_v3, %v9490_v15  ;;  %v2074_v16 = vsel %vm16062_vm6, %v2066_v23, %v9491_v24 }
 0x54a   :  { %v9509_v30 = vpop.permute.xlu1 %9508 }
 0x54b   :  { %v9511_v31 = vunpack.i.h.bf16 %v9509_v30  ;;  %v9510_v36 = vunpack.i.l.bf16 %v9509_v30 }
 0x54e   :  { %v9514_v25 = vpop.permute.xlu0 %9513  ;;  %v9524_v39 = vpop.permute.xlu1 %9523 }
 0x54f   :  { %v9516_v29 = vunpack.i.h.bf16 %v9514_v25  ;;  %v9515_v49 = vunpack.i.l.bf16 %v9514_v25  ;;  %v9525_v30 = vunpack.i.l.bf16 %v9524_v39 }
 0x551   :  { %v2082_v12 = vsel %vm16138_vm13, %v2074_v16, %v9516_v29  ;;  %v2081_v38 = vsel %vm16139_vm14, %v2073_v44, %v9515_v49  ;;  %v9526_v49 = vunpack.i.h.bf16 %v9524_v39  ;;  %vm16147_vm13 = vcmask 326656   ;;  %vm16149_vm14 = vmmov %vm16142_vm7 }
 0x552   :  { %v9519_v40 = vpop.permute.xlu0 %9518  ;;  %v9534_v60 = vpop.permute.xlu1 %9533  ;;  %vm16148_vm12 = vmmov %vm16147_vm13 }
 0x553   :  { %v9521_v52 = vunpack.i.h.bf16 %v9519_v40  ;;  %v9520_v6 = vunpack.i.l.bf16 %v9519_v40  ;;  %v9536_v2 = vunpack.i.h.bf16 %v9534_v60  ;;  %v9535_v1 = vunpack.i.l.bf16 %v9534_v60 }
 0x554   :  { %v2068_v39 = vsel %vm16055_vm3, %v12098_v54, %v9526_v49  ;;  %v12191_v49 = vld [vmem:[%s15995_s2 + $0x2] ss:$0 sm:$0xff] }
 0x555   :  { %v2089_v61 = vsel %vm16140_vm8, %v2081_v38, %v9520_v6  ;;  %v2090_v32 = vsel %vm16141_vm9, %v2082_v12, %v9521_v52  ;;  %v2064_v22 = vsel %vm16055_vm3, %v1853_v9, %v9536_v2  ;;  %v2063_v53 = vsel %vm16055_vm3, %v1855_v10, %v9535_v1  ;;  %vm16150_vm8 = vmmov %vm16142_vm7 }
 0x556   :  { %v2101_v58 = vpack.c.bf16 %v2090_v32, %v2089_v61  ;;  %v9529_v63 = vpop.permute.xlu0 %9528  ;;  %v2072_v50 = vsel %vm16062_vm6, %v2064_v22, %v9496_v19  ;;  %v2071_v25 = vsel %vm16062_vm6, %v2063_v53, %v9495_v35  ;;  %v9539_v23 = vpop.permute.xlu1 %9538  ;;  %v1859_v10 = vmul.f32 %v12029_v51, %v12159_v42  ;;  %vm16151_vm9 = vmmov %vm16145_vm4 }
 0x557   :  { %v2079_v41 = vsel %vm16142_vm7, %v2071_v25, %v9505_v7  ;;  %v2080_v3 = vsel %vm16143_vm15, %v2072_v50, %v9506_v57  ;;  %v9541_v48 = vunpack.i.h.bf16 %v9539_v23  ;;  %v9540_v19 = vunpack.i.l.bf16 %v9539_v23  ;;  %vm16152_vm7 = vmmov %vm16145_vm4 }
 0x558   :  { %v2087_v9 = vsel %vm16145_vm4, %v2079_v41, %v9510_v36  ;;  %v2088_v29 = vsel %vm16146_vm10, %v2080_v3, %v9511_v31  ;;  %v9530_v44 = vunpack.i.l.bf16 %v9529_v63  ;;  %v2067_v52 = vsel %vm16055_vm3, %v1859_v10, %v9525_v30  ;;  %vm16153_vm15 = vmmov %vm16150_vm8 }
 0x559   :  { %v2100_v15 = vpack.c.bf16 %v2088_v29, %v2087_v9  ;;  %v9531_v6 = vunpack.i.h.bf16 %v9529_v63  ;;  %v2075_v38 = vsel %vm16062_vm6, %v2067_v52, %v9540_v19  ;;  %v2076_v2 = vsel %vm16062_vm6, %v2068_v39, %v9541_v48  ;;  %vm16154_vm4 = vmmov %vm16150_vm8 }
 0x55a   :  { %v9544_v24 = vpop.permute.xlu0 %9543  ;;  %v9549_v40 = vpop.permute.xlu1 %9548  ;;  %v2069_v7 = vsel %vm16055_vm3, %v12117_v46, %v9530_v44  ;;  %vm16155_vm10 = vmmov %vm16152_vm7 }
 0x55b   :  { %8852 = vmatprep.mubr.msk.bf16.mxu1 %vm16147_vm13, %v2100_v15  ;;  %v9551_v56 = vunpack.i.h.bf16 %v9549_v40  ;;  %v9550_v16 = vunpack.i.l.bf16 %v9549_v40  ;;  %v9545_v60 = vunpack.i.l.bf16 %v9544_v24  ;;  %v9546_v51 = vunpack.i.h.bf16 %v9544_v24  ;;  %vm16156_vm13 = vmmov %vm16152_vm7  ;;  %v10449_v40 = vld [vmem:[%s15994_s1 + $0x38] sm:$0xff]  }
 0x55c   :  { %8853 = vmatmul.mubr.msk.bf16.vlgmr.msra.gmra.mrb[16].mxu1 %vm16148_vm12, %v2101_v58  ;;  %v2070_v22 = vsel %vm16055_vm3, %v12111_v20, %v9531_v6  ;;  %8860 = vmatprep.subr.bf16.mxu0 %v10449_v40 }
 0x55d   :  { %v2083_v58 = vsel %vm16149_vm14, %v2075_v38, %v9550_v16  ;;  %v2084_v54 = vsel %vm16150_vm8, %v2076_v2, %v9551_v56  ;;  %v2077_v53 = vsel %vm16062_vm6, %v2069_v7, %v9545_v60  ;;  %v2078_v50 = vsel %vm16062_vm6, %v2070_v22, %v9546_v51  ;;  %vm16157_vm14 = vmmov %vm16148_vm12  ;;  %8861 = vmatpush3.bf16.msra.mxu0 %v10449_v40  ;;  %v10450_v38 = vld [vmem:[%s15994_s1 + $0x40] sm:$0xff]  }
 0x55e   :  { %v9559_v12 = vpop.permute.xlu0 %9558  ;;  %v9554_v1 = vpop.permute.xlu1 %9553  ;;  %8862 = vmatprep.subr.bf16.mxu0 %v10450_v38  ;;  %vm16069_vm8 = vcmask 523264  }
 0x55f   :  { %v9561_v35 = vunpack.i.h.bf16 %v9559_v12  ;;  %v9560_v57 = vunpack.i.l.bf16 %v9559_v12  ;;  %v9556_v61 = vunpack.i.h.bf16 %v9554_v1  ;;  %v9555_v32 = vunpack.i.l.bf16 %v9554_v1 }
 0x561   :  { %v2091_v63 = vsel %vm16151_vm9, %v2083_v58, %v9555_v32  ;;  %v2092_v31 = vsel %vm16152_vm7, %v2084_v54, %v9556_v61  ;;  %v2085_v46 = vsel %vm16153_vm15, %v2077_v53, %v9560_v57  ;;  %v2086_v3 = vsel %vm16154_vm4, %v2078_v50, %v9561_v35  ;;  %8863 = vmatpush3.bf16.msra.mxu0 %v10450_v38  ;;  %vm16160_vm15 = vmmov %vm16152_vm7 }
 0x562   :  { %v9564_v36 = vpop.permute.xlu0 %9563  ;;  %v2102_v41 = vpack.c.bf16 %v2092_v31, %v2091_v63  ;;  %vm16061_vm9 = vcmask 392192   ;;  %vm16161_vm4 = vmmov %vm16152_vm7 }
 0x563   :  { %v9566_v25 = vunpack.i.h.bf16 %v9564_v36  ;;  %v9565_v23 = vunpack.i.l.bf16 %v9564_v36 }
 0x564   :  { %8856 = vmatprep.mubr.msk.bf16.mxu1 %vm16148_vm12, %v2102_v41  ;;  %vm16163_vm12 = vmmov %vm16161_vm4 }
 0x565   :  { %v2093_v9 = vsel %vm16155_vm10, %v2085_v46, %v9565_v23  ;;  %v2094_v20 = vsel %vm16156_vm13, %v2086_v3, %v9566_v25  ;;  %vm16162_vm10 = vmmov %vm16161_vm4  ;;  %vm16060_vm13 = vcmask 654336  }
 0x566   :  { %v2103_v29 = vpack.c.bf16 %v2094_v20, %v2093_v9 }
 0x568   :  { %8857 = vmatmul.mubr.msk.bf16.gmra.mrb[20].mxu1 %vm16157_vm14, %v2103_v29  ;;  %vm16164_vm14 = vmmov %vm16161_vm4 }
 0x569   :  { %8886 = vmatprep.mubr.msk.bf16.mxu1 %vm16069_vm8, %v11752_v17 }
 0x62f   :  { %v8854_v30 = vpop.f32.mrb[16].mxu1 }
 0x630   :  { %v2182_v24 = vadd.f32 %v8854_v30, %v12191_v49  ;;  %v2173_v15 = vpop.f32.mrb[17].mxu1 }
 0x631   :  { %v2174_v48 = vadd.f32 %v12191_v49, %v2173_v15  ;;  %v8855_v19 = vpop.f32.mrb[18].mxu1 }
 0x632   :  { %v2206_v10 = vmax.f32 %v2182_v24, 0.0  ;;  %v2185_v44 = vadd.f32 %v8855_v19, %v12191_v49  ;;  %v2176_v56 = vpop.f32.mrb[19].mxu1 }
 0x633   :  { %v12199_v16 = vmax.f32 %v2174_v48, 0.0  ;;  %v2177_v52 = vadd.f32 %v12191_v49, %v2176_v56 }
 0x634   :  { %v2214_v39 = vrot.slane %v2206_v10, 6  ;;  %v12202_v6 = vmax.f32 %v2185_v44, 0.0  ;;  %v2238_v60 = vrot.slane %v2206_v10, 7  ;;  %v2262_v12 = vrot.slane %v2206_v10, 1 }
 0x635   :  { %v2212_v2 = vrot.slane %v12199_v16, 6  ;;  %v2205_v51 = vmax.f32 %v2177_v52, 0.0  ;;  %v2260_v1 = vrot.slane %v12199_v16, 1  ;;  %v2284_v35 = vrot.slane %v12199_v16, 2 }
 0x636   :  { %v2215_v57 = vrot.slane %v12202_v6, 6  ;;  %v9567_v61 = vpack.i.bf16 %v12202_v6, %v2206_v10  ;;  %v2239_v32 = vrot.slane %v12202_v6, 7  ;;  %v2286_v7 = vrot.slane %v2206_v10, 2 }
 0x637   :  { %v2213_v58 = vrot.slane %v2205_v51, 6  ;;  %v9572_v54 = vpack.i.bf16 %v2205_v51, %v12199_v16  ;;  %v2237_v22 = vrot.slane %v2205_v51, 7  ;;  %v2261_v53 = vrot.slane %v2205_v51, 1 }
 0x638   :  { %9568 = vrot.lane.b32.xlu0 %v9567_v61, %s10600_s25  ;;  %v2248_v63 = vsel %vm16071_vm2, %v2238_v60, %v2239_v32  ;;  %v2285_v31 = vrot.slane %v2205_v51, 2  ;;  %v2263_v36 = vrot.slane %v12202_v6, 1  ;;  %v2287_v50 = vrot.slane %v12202_v6, 2 }
 0x639   :  { %9573 = vrot.lane.b32.xlu1 %v9572_v54, %s10600_s25  ;;  %v2249_v25 = vsel %vm16071_vm2, %v2237_v22, %v2238_v60  ;;  %v2273_v23 = vsel %vm16070_vm0, %v2261_v53, %v2262_v12  ;;  %v2274_v41 = vsel %vm16070_vm0, %v2260_v1, %v2261_v53  ;;  %v2236_v46 = vrot.slane %v12199_v16, 7 }
 0x63a   :  { %v9577_v9 = vpack.i.bf16 %v2248_v63, %v2249_v25  ;;  %v9582_v20 = vpack.i.bf16 %v2273_v23, %v2274_v41  ;;  %v2297_v29 = vsel %vm16068_vm1, %v2285_v31, %v2286_v7  ;;  %v2298_v30 = vsel %vm16068_vm1, %v2284_v35, %v2285_v31 }
 0x63b   :  { %v8858_v3 = vpop.f32.mrb[20].mxu1  ;;  %v9587_v48 = vpack.i.bf16 %v2297_v29, %v2298_v30  ;;  %v2272_v19 = vsel %vm16070_vm0, %v2262_v12, %v2263_v36  ;;  %v12242_v40 = vsel %vm16068_vm1, %v2286_v7, %v2287_v50  ;;  %v12248_v56 = vsel %vm16071_vm2, %v2236_v46, %v2237_v22  ;;  %v10451_v12 = vld [vmem:[%s15994_s1 + $0x48] sm:$0xff]   ;;  %v10452_v29 = vld [vmem:[%s15994_s1 + $0x50] sm:$0xff]  }
 0x63c   :  { %v2198_v24 = vadd.f32 %v8858_v3, %v12191_v49  ;;  %v2189_v15 = vpop.f32.mrb[21].mxu1  ;;  %9578 = vrot.lane.b32.xlu0 %v9577_v9, %s10598_s23  ;;  %v12254_v52 = vsel %vm16067_vm11, %v2214_v39, %v2215_v57  ;;  %v12258_v60 = vsel %vm16067_vm11, %v2213_v58, %v2214_v39  ;;  %8864 = vmatprep.subr.bf16.mxu0 %v10451_v12 }
 0x63d   :  { %v2190_v10 = vadd.f32 %v12191_v49, %v2189_v15  ;;  %v8859_v44 = vpop.f32.mrb[22].mxu1  ;;  %9583 = vrot.lane.b32.xlu1 %v9582_v20, %s10602_s22  ;;  %v12274_v39 = vsel %vm16067_vm11, %v2212_v2, %v2213_v58  ;;  %8865 = vmatpush3.bf16.msra.mxu0 %v10451_v12 }
 0x63e   :  { %v12263_v38 = vmax.f32 %v2198_v24, 0.0  ;;  %v2201_v51 = vadd.f32 %v8859_v44, %v12191_v49  ;;  %v2192_v61 = vpop.f32.mrb[23].mxu1  ;;  %8866 = vmatprep.subr.bf16.mxu0 %v10452_v29 }
 0x63f   :  { %v12267_v7 = vmax.f32 %v2190_v10, 0.0  ;;  %v2193_v54 = vadd.f32 %v12191_v49, %v2192_v61 }
 0x640   :  { %v12279_v53 = vmax.f32 %v2201_v51, 0.0  ;;  %v2242_v63 = vrot.slane %v12263_v38, 7  ;;  %v2266_v31 = vrot.slane %v12263_v38, 1 }
 0x641   :  { %v2216_v49 = vrot.slane %v12267_v7, 6  ;;  %v12284_v25 = vmax.f32 %v2193_v54, 0.0  ;;  %v2264_v23 = vrot.slane %v12267_v7, 1  ;;  %v2240_v58 = vrot.slane %v12267_v7, 7  ;;  %9588 = vrot.lane.b32.xlu1 %v9587_v48, %s10603_s26  ;;  %8867 = vmatpush3.bf16.msra.mxu0 %v10452_v29 }
 0x642   :  { %v2219_v41 = vrot.slane %v12279_v53, 6  ;;  %v2243_v3 = vrot.slane %v12279_v53, 7  ;;  %v2288_v9 = vrot.slane %v12267_v7, 2  ;;  %v9622_v20 = vpack.i.bf16 %v12279_v53, %v12263_v38 }
 0x643   :  { %v2217_v30 = vrot.slane %v12284_v25, 6  ;;  %v2271_v24 = vsel %vm16070_vm0, %v2263_v36, %v2264_v23  ;;  %v2241_v15 = vrot.slane %v12284_v25, 7  ;;  %v2247_v48 = vsel %vm16071_vm2, %v2239_v32, %v2240_v58 }
 0x644   :  { %v2279_v10 = vmul.f32 %v2271_v24, %v11936_v13  ;;  %v2256_v44 = vmul.f32 %v2247_v48, %v11941_v27  ;;  %v2295_v12 = vsel %vm16068_vm1, %v2287_v50, %v2288_v9  ;;  %v2251_v51 = vsel %vm16071_vm2, %v2243_v3, %v2236_v46  ;;  %v10453_v24 = vld [vmem:[%s15994_s1 + $0x58] sm:$0xff]  }
 0x645   :  { %v2246_v36 = vsel %vm16071_vm2, %v2240_v58, %v2241_v15  ;;  %v2303_v61 = vmul.f32 %v2295_v12, %v11944_v59  ;;  %v2252_v54 = vmul.f32 %v2251_v51, %v11947_v62  ;;  %v2244_v32 = vsel %vm16071_vm2, %v2242_v63, %v2243_v3  ;;  %8868 = vmatprep.subr.bf16.mxu0 %v10453_v24 }
 0x646   :  { %v9592_v50 = vpack.i.bf16 %v2279_v10, %v2272_v19  ;;  %v9602_v48 = vpack.i.bf16 %v2246_v36, %v2256_v44  ;;  %v2245_v46 = vsel %vm16071_vm2, %v2241_v15, %v2242_v63  ;;  %v9617_v58 = vpack.i.bf16 %v12284_v25, %v12267_v7  ;;  %8869 = vmatpush3.bf16.msra.mxu0 %v10453_v24 }
 0x647   :  { %v9597_v12 = vpack.i.bf16 %v2303_v61, %v12242_v40  ;;  %v9612_v51 = vpack.i.bf16 %v12248_v56, %v2252_v54  ;;  %v9607_v22 = vpack.i.bf16 %v2244_v32, %v2245_v46  ;;  %v2265_v3 = vrot.slane %v12284_v25, 1 }
 0x648   :  { %9593 = vrot.lane.b32.xlu0 %v9592_v50, %s10602_s22  ;;  %9603 = vrot.lane.b32.xlu1 %v9602_v48, %s10598_s23  ;;  %v2267_v19 = vrot.slane %v12279_v53, 1  ;;  %v2289_v29 = vrot.slane %v12284_v25, 2  ;;  %v2290_v63 = vrot.slane %v12263_v38, 2  ;;  %v2291_v7 = vrot.slane %v12279_v53, 2 }
 0x649   :  { %v2269_v40 = vsel %vm16070_vm0, %v2265_v3, %v2266_v31  ;;  %v2270_v56 = vsel %vm16070_vm0, %v2264_v23, %v2265_v3  ;;  %v12339_v15 = vsel %vm16067_vm11, %v2216_v49, %v2217_v30  ;;  %v12345_v10 = vsel %vm16067_vm11, %v2215_v57, %v2216_v49 }
 0x64a   :  { %v9627_v25 = vpack.i.bf16 %v2269_v40, %v2270_v56  ;;  %v2268_v53 = vsel %vm16070_vm0, %v2266_v31, %v2267_v19  ;;  %v2275_v23 = vsel %vm16070_vm0, %v2267_v19, %v2260_v1  ;;  %v2293_v44 = vsel %vm16068_vm1, %v2289_v29, %v2290_v63 }
 0x64b   :  { %v2283_v36 = vmul.f32 %v2275_v23, %v11950_v18  ;;  %v2294_v6 = vsel %vm16068_vm1, %v2288_v9, %v2289_v29  ;;  %v2292_v57 = vsel %vm16068_vm1, %v2290_v63, %v2291_v7  ;;  %v2299_v31 = vsel %vm16068_vm1, %v2291_v7, %v2284_v35 }
 0x64c   :  { %9598 = vrot.lane.b32.xlu0 %v9597_v12, %s10603_s26  ;;  %9613 = vrot.lane.b32.xlu1 %v9612_v51, %s10598_s23  ;;  %v9632_v1 = vpack.i.bf16 %v2293_v44, %v2294_v6  ;;  %v2307_v49 = vmul.f32 %v2299_v31, %v11961_v28  ;;  %v2227_v9 = vsel %vm16067_vm11, %v2219_v41, %v2212_v2  ;;  %v16158_v54 = vrot.slane %v12263_v38, 6 }
 0x64d   :  { %v9637_v61 = vpack.i.bf16 %v2283_v36, %v2268_v53 }
 0x64e   :  { %v12375_v32 = vsel %vm16067_vm11, %v16158_v54, %v2219_v41  ;;  %v16159_v35 = vmov %v16158_v54  ;;  %v9642_v50 = vpack.i.bf16 %v2307_v49, %v2292_v57 }
 0x64f   :  { %v12381_v24 = vsel %vm16067_vm11, %v2217_v30, %v16159_v35 }
 0x650   :  { %9608 = vrot.lane.b32.xlu0 %v9607_v22, %s10598_s23  ;;  %9618 = vrot.lane.b32.xlu1 %v9617_v58, %s10600_s25 }
 0x654   :  { %9623 = vrot.lane.b32.xlu0 %v9622_v20, %s10600_s25  ;;  %9628 = vrot.lane.b32.xlu1 %v9627_v25, %s10602_s22  ;;  %v2228_v25 = vmul.f32 %v2227_v9, %v12131_v43 }
 0x658   :  { %9638 = vrot.lane.b32.xlu0 %v9637_v61, %s10602_s22  ;;  %9633 = vrot.lane.b32.xlu1 %v9632_v1, %s10603_s26 }
 0x65c   :  { %9643 = vrot.lane.b32.xlu0 %v9642_v50, %s10603_s26 }
 0x6aa   :  { %v9569_v2 = vpop.permute.xlu0 %9568 }
 0x6ab   :  { %v9574_v16 = vpop.permute.xlu1 %9573  ;;  %v9571_v51 = vunpack.i.h.bf16 %v9569_v2  ;;  %v9570_v3 = vunpack.i.l.bf16 %v9569_v2 }
 0x6ac   :  { %v9576_v63 = vunpack.i.h.bf16 %v9574_v16  ;;  %v9575_v6 = vunpack.i.l.bf16 %v9574_v16 }
 0x6ae   :  { %v9579_v41 = vpop.permute.xlu0 %9578 }
 0x6af   :  { %v9584_v38 = vpop.permute.xlu1 %9583  ;;  %v9581_v48 = vunpack.i.h.bf16 %v9579_v41  ;;  %v9580_v46 = vunpack.i.l.bf16 %v9579_v41 }
 0x6b0   :  { %v9585_v54 = vunpack.i.l.bf16 %v9584_v38 }
 0x6b1   :  { %v2439_v20 = vsel %vm16062_vm6, %v12254_v52, %v9581_v48  ;;  %v2438_v58 = vsel %vm16062_vm6, %v12258_v60, %v9580_v46  ;;  %v9586_v60 = vunpack.i.h.bf16 %v9584_v38 }
 0x6b2   :  { %v2446_v7 = vsel %vm16152_vm7, %v2438_v58, %v9570_v3  ;;  %v2447_v40 = vsel %vm16160_vm15, %v2439_v20, %v9571_v51  ;;  %vm16165_vm7 = vmmov %vm16161_vm4 }
 0x6b3   :  { %v9589_v30 = vpop.permute.xlu1 %9588  ;;  %vm16166_vm15 = vmmov %vm16161_vm4 }
 0x6b4   :  { %v9591_v48 = vunpack.i.h.bf16 %v9589_v30  ;;  %v9590_v46 = vunpack.i.l.bf16 %v9589_v30 }
 0x6ba   :  { %v9594_v22 = vpop.permute.xlu0 %9593  ;;  %v9604_v12 = vpop.permute.xlu1 %9603 }
 0x6bb   :  { %v9596_v19 = vunpack.i.h.bf16 %v9594_v22  ;;  %v9595_v29 = vunpack.i.l.bf16 %v9594_v22  ;;  %v9606_v58 = vunpack.i.h.bf16 %v9604_v12  ;;  %v9605_v51 = vunpack.i.l.bf16 %v9604_v12 }
 0x6bd   :  { %v2456_v57 = vsel %vm16061_vm9, %v2447_v40, %v9596_v19  ;;  %v2455_v31 = vsel %vm16061_vm9, %v2446_v7, %v9595_v29  ;;  %v2232_v7 = vmul.f32 %v12345_v10, %v12159_v42  ;;  %v2441_v12 = vsel %vm16062_vm6, %v12339_v15, %v9606_v58 }
 0x6be   :  { %v9599_v56 = vpop.permute.xlu0 %9598  ;;  %v9614_v53 = vpop.permute.xlu1 %9613 }
 0x6bf   :  { %v9601_v23 = vunpack.i.h.bf16 %v9599_v56  ;;  %v9600_v44 = vunpack.i.l.bf16 %v9599_v56  ;;  %v9616_v52 = vunpack.i.h.bf16 %v9614_v53  ;;  %v9615_v36 = vunpack.i.l.bf16 %v9614_v53 }
 0x6c1   :  { %v2464_v1 = vsel %vm16069_vm8, %v2455_v31, %v9600_v44  ;;  %v2465_v49 = vsel %vm16069_vm8, %v2456_v57, %v9601_v23  ;;  %v2437_v61 = vsel %vm16062_vm6, %v12274_v39, %v9616_v52  ;;  %v2436_v9 = vsel %vm16062_vm6, %v2228_v25, %v9615_v36 }
 0x6c2   :  { %v2481_v35 = vpack.c.bf16 %v2465_v49, %v2464_v1  ;;  %v2445_v50 = vsel %vm16161_vm4, %v2437_v61, %v9576_v63  ;;  %v2444_v16 = vsel %vm16162_vm10, %v2436_v9, %v9575_v6  ;;  %v9609_v2 = vpop.permute.xlu0 %9608  ;;  %v9619_v41 = vpop.permute.xlu1 %9618  ;;  %v2440_v25 = vsel %vm16062_vm6, %v2232_v7, %v9605_v51 }
 0x6c3   :  { %v2453_v22 = vsel %vm16061_vm9, %v2444_v16, %v9585_v54  ;;  %v2454_v20 = vsel %vm16061_vm9, %v2445_v50, %v9586_v60  ;;  %v9621_v3 = vunpack.i.h.bf16 %v9619_v41  ;;  %v9620_v39 = vunpack.i.l.bf16 %v9619_v41 }
 0x6c4   :  { %v2462_v38 = vsel %vm16069_vm8, %v2453_v22, %v9590_v46  ;;  %v2463_v63 = vsel %vm16069_vm8, %v2454_v20, %v9591_v48  ;;  %v9611_v53 = vunpack.i.h.bf16 %v9609_v2  ;;  %v9610_v23 = vunpack.i.l.bf16 %v9609_v2 }
 0x6c5   :  { %v2480_v56 = vpack.c.bf16 %v2463_v63, %v2462_v38  ;;  %v2448_v44 = vsel %vm16163_vm12, %v2440_v25, %v9620_v39  ;;  %v2449_v52 = vsel %vm16164_vm14, %v2441_v12, %v9621_v3 }
 0x6c6   :  { %v9624_v19 = vpop.permute.xlu0 %9623  ;;  %v9629_v29 = vpop.permute.xlu1 %9628  ;;  %v2443_v50 = vsel %vm16062_vm6, %v12375_v32, %v9611_v53  ;;  %v2442_v16 = vsel %vm16062_vm6, %v12381_v24, %v9610_v23  ;;  %v8334_v24 = vld [vmem:[%s15995_s2 + $0x3] ss:$0 sm:$0xff] }
 0x6c7   :  { %v9631_v40 = vunpack.i.h.bf16 %v9629_v29  ;;  %v9630_v30 = vunpack.i.l.bf16 %v9629_v29  ;;  %8870 = vmatprep.mubr.msk.bf16.mxu0 %vm16060_vm13, %v2480_v56  ;;  %v9626_v10 = vunpack.i.h.bf16 %v9624_v19  ;;  %v9625_v60 = vunpack.i.l.bf16 %v9624_v19 }
 0x6c8   :  { %8871 = vmatmul.mubr.msk.bf16.vlgmr.msra.gmra.mrb[24].mxu0 %vm16060_vm13, %v2481_v35 }
 0x6c9   :  { %v2457_v1 = vsel %vm16061_vm9, %v2448_v44, %v9630_v30  ;;  %v2458_v15 = vsel %vm16061_vm9, %v2449_v52, %v9631_v40  ;;  %v2450_v41 = vsel %vm16165_vm7, %v2442_v16, %v9625_v60  ;;  %v2451_v48 = vsel %vm16166_vm15, %v2443_v50, %v9626_v10 }
 0x6ca   :  { %v9639_v36 = vpop.permute.xlu0 %9638  ;;  %v9634_v6 = vpop.permute.xlu1 %9633 }
 0x6cb   :  { %v9636_v57 = vunpack.i.h.bf16 %v9634_v6  ;;  %v9635_v31 = vunpack.i.l.bf16 %v9634_v6  ;;  %v9641_v49 = vunpack.i.h.bf16 %v9639_v36  ;;  %v9640_v61 = vunpack.i.l.bf16 %v9639_v36 }
 0x6cd   :  { %v2466_v9 = vsel %vm16069_vm8, %v2457_v1, %v9635_v31  ;;  %v2467_v54 = vsel %vm16069_vm8, %v2458_v15, %v9636_v57  ;;  %v2459_v20 = vsel %vm16061_vm9, %v2450_v41, %v9640_v61  ;;  %v2460_v58 = vsel %vm16061_vm9, %v2451_v48, %v9641_v49 }
 0x6ce   :  { %v9644_v2 = vpop.permute.xlu0 %9643  ;;  %v2482_v35 = vpack.c.bf16 %v2467_v54, %v2466_v9 }
 0x6cf   :  { %v9646_v46 = vunpack.i.h.bf16 %v9644_v2  ;;  %v9645_v22 = vunpack.i.l.bf16 %v9644_v2 }
 0x6d0   :  { %8874 = vmatprep.mubr.msk.bf16.mxu0 %vm16060_vm13, %v2482_v35 }
 0x6d1   :  { %v2468_v51 = vsel %vm16069_vm8, %v2459_v20, %v9645_v22  ;;  %v2469_v32 = vsel %vm16069_vm8, %v2460_v58, %v9646_v46 }
 0x6d2   :  { %v2483_v3 = vpack.c.bf16 %v2469_v32, %v2468_v51 }
 0x6d4   :  { %8875 = vmatmul.mubr.msk.bf16.gmra.mrb[28].mxu0 %vm16060_vm13, %v2483_v3 }
 0x79b   :  { %v8872_v39 = vpop.f32.mrb[24].mxu0 }
 0x79c   :  { %v2575_v19 = vadd.f32 %v8872_v39, %v8334_v24  ;;  %v2566_v29 = vpop.f32.mrb[25].mxu0 }
 0x79d   :  { %v2567_v38 = vadd.f32 %v8334_v24, %v2566_v29  ;;  %v8873_v63 = vpop.f32.mrb[26].mxu0 }
 0x79e   :  { %v2578_v7 = vadd.f32 %v8873_v63, %v8334_v24  ;;  %v2569_v40 = vpop.f32.mrb[27].mxu0  ;;  %v12438_v30 = vmax.f32 %v2575_v19, 0.0 }
 0x79f   :  { %v12440_v56 = vmax.f32 %v2567_v38, 0.0  ;;  %v2570_v25 = vadd.f32 %v8334_v24, %v2569_v40 }
 0x7a0   :  { %v12444_v53 = vmax.f32 %v2578_v7, 0.0  ;;  %v2607_v23 = vrot.slane %v12438_v30, 1 }
 0x7a1   :  { %v12442_v12 = vmax.f32 %v2570_v25, 0.0  ;;  %v2605_v44 = vrot.slane %v12440_v56, 1 }
 0x7a2   :  { %v2608_v31 = vrot.slane %v12444_v53, 1 }
 0x7a3   :  { %v2606_v52 = vrot.slane %v12442_v12, 1 }
 0x7a4   :  { %v2617_v22 = vsel %vm16070_vm0, %v2607_v23, %v2608_v31 }
 0x7a5   :  { %v2618_v6 = vsel %vm16070_vm0, %v2606_v52, %v2607_v23  ;;  %v2619_v57 = vsel %vm16070_vm0, %v2605_v44, %v2606_v52  ;;  %v2623_v3 = vmax.f32 %v12438_v30, %v2617_v22 }
 0x7a6   :  { %v2622_v1 = vmax.f32 %v12442_v12, %v2618_v6  ;;  %v2621_v61 = vmax.f32 %v12440_v56, %v2619_v57  ;;  %v10454_v6 = vld [vmem:[%s15994_s1 + $0x60] sm:$0xff]   ;;  %v2689_v57 = vand.u32 15, %v11723_v0 }
 0x7a7   :  { %v8876_v36 = vpop.f32.mrb[28].mxu0  ;;  %8890 = vmatprep.subr.bf16.mxu0 %v10454_v6 }
 0x7a8   :  { %v2591_v10 = vadd.f32 %v8876_v36, %v8334_v24  ;;  %v2582_v60 = vpop.f32.mrb[29].mxu0  ;;  %v2629_v35 = vpack.c.bf16 %v2622_v1, %v2621_v61  ;;  %v16167_v36 = vpack.c.bf16 %v11763_v5, %v11758_v11  ;;  %8891 = vmatpush3.bf16.msra.mxu0 %v10454_v6  ;;  %v10455_v11 = vld [vmem:[%s15994_s1 + $0x68] sm:$0xff]   ;;  %vm2709_vm12 = vcmp.lt.s32.totalorder %v2689_v57, 15 }
 0x7a9   :  { %v2583_v15 = vadd.f32 %v8334_v24, %v2582_v60  ;;  %v8877_v49 = vpop.f32.mrb[30].mxu0  ;;  %v16049_v60 = vand.u32 15, %v10657_v14  ;;  %8892 = vmatprep.subr.bf16.mxu0 %v10455_v11  ;;  %vm2717_vm7 = vcmp.lt.s32.totalorder %v2689_v57, 14 }
 0x7aa   :  { %v2594_v9 = vadd.f32 %v8877_v49, %v8334_v24  ;;  %v2585_v54 = vpop.f32.mrb[31].mxu0  ;;  %v12456_v50 = vmax.f32 %v2591_v10, 0.0  ;;  %8878 = vmatprep.subr.bf16.mxu1 %v2629_v35  ;;  %v2691_v10 = vand.u32 15, %v11733_v34  ;;  %v12513_v49 = vsel %vm2709_vm12, 1.0, %v16098_v47 }
 0x7ab   :  { %v12458_v16 = vmax.f32 %v2583_v15, 0.0  ;;  %v2586_v2 = vadd.f32 %v8334_v24, %v2585_v54  ;;  %8879 = vmatpush3.bf16.msra.mxu1 %v2629_v35  ;;  %vm2700_vm10 = vcmp.ge.s32.totalorder %v16049_v60, 1  ;;  %v10456_v54 = vld [vmem:[%s15994_s1 + $0x70] sm:$0xff]   ;;  %vm16170_vm12 = vcmask 261120  }
 0x7ac   :  { %v12460_v41 = vmax.f32 %v2594_v9, 0.0  ;;  %v2611_v58 = vrot.slane %v12456_v50, 1  ;;  %vm2711_vm4 = vcmp.lt.s32.totalorder %v2691_v10, 15  ;;  %8893 = vmatpush3.bf16.msra.mxu0 %v10455_v11  ;;  %vm2719_vm15 = vcmp.lt.s32.totalorder %v2691_v10, 14  ;;  %v10457_v10 = vld [vmem:[%s15994_s1 + $0x78] sm:$0xff]  }
 0x7ad   :  { %v2609_v48 = vrot.slane %v12458_v16, 1  ;;  %v12463_v46 = vmax.f32 %v2586_v2, 0.0  ;;  %v12505_v5 = vsel %vm2711_vm4, 1.0, %v16098_v47  ;;  %v12510_v15 = vsel %vm2700_vm10, 1.0, %v16098_v47  ;;  %8894 = vmatprep.subr.bf16.mxu0 %v10456_v54 }
 0x7ae   :  { %v2612_v20 = vrot.slane %v12460_v41, 1  ;;  %v12519_v9 = vsel %vm2717_vm7, 1.0, %v16098_v47  ;;  %vm16172_vm7 = vmmov %vm16170_vm12 }
 0x7af   :  { %v2610_v51 = vrot.slane %v12463_v46, 1  ;;  %v2616_v32 = vsel %vm16070_vm0, %v2608_v31, %v2609_v48  ;;  %v16048_v31 = vand.u32 15, %v11730_v26 }
 0x7b0   :  { %v2624_v24 = vmax.f32 %v12444_v53, %v2616_v32  ;;  %v2620_v39 = vsel %vm16070_vm0, %v2612_v20, %v2605_v44  ;;  %v2613_v38 = vsel %vm16070_vm0, %v2611_v58, %v2612_v20  ;;  %v12528_v20 = vsel %vm2719_vm15, 1.0, %v16098_v47  ;;  %8895 = vmatpush3.bf16.msra.mxu0 %v10456_v54  ;;  %vm16173_vm15 = vmmov %vm16172_vm7 }
 0x7b1   :  { %v2614_v19 = vsel %vm16070_vm0, %v2610_v51, %v2611_v58  ;;  %v2615_v29 = vsel %vm16070_vm0, %v2609_v48, %v2610_v51  ;;  %v2628_v25 = vmax.f32 %v12460_v41, %v2620_v39  ;;  %v2627_v44 = vmax.f32 %v12456_v50, %v2613_v38  ;;  %8896 = vmatprep.subr.bf16.mxu0 %v10457_v10 }
 0x7b2   :  { %v2626_v63 = vmax.f32 %v12463_v46, %v2614_v19  ;;  %v2630_v7 = vpack.c.bf16 %v2624_v24, %v2623_v3  ;;  %v2625_v40 = vmax.f32 %v12458_v16, %v2615_v29  ;;  %vm2702_vm14 = vcmp.ge.s32.totalorder %v16048_v31, 1 }
 0x7b3   :  { %v2632_v52 = vpack.c.bf16 %v2628_v25, %v2627_v44  ;;  %v12516_v61 = vsel %vm2702_vm14, 1.0, %v16098_v47  ;;  %vm16171_vm14 = vmmov %vm16170_vm12 }
 0x7b4   :  { %8880 = vmatprep.subr.bf16.mxu1 %v2630_v7  ;;  %v2631_v23 = vpack.c.bf16 %v2626_v63, %v2625_v40  ;;  %8897 = vmatpush3.bf16.msra.mxu0 %v10457_v10 }
 0x7b5   :  { %8881 = vmatpush3.bf16.msra.mxu1 %v2630_v7 }
 0x7b6   :  { %8882 = vmatprep.subr.bf16.mxu1 %v2631_v23 }
 0x7b9   :  { %8883 = vmatpush3.bf16.msra.mxu1 %v2631_v23 }
 0x7ba   :  { %8884 = vmatprep.subr.bf16.mxu1 %v2632_v52 }
 0x7bd   :  { %8885 = vmatpush3.bf16.msra.mxu1 %v2632_v52 }
 0x7c0   :  { %8887 = vmatmul.mubr.msk.bf16.vlgmr.msra.gmra.mrb[24].mxu1 %vm16069_vm8, %v16167_v36 }
 0x893   :  { %v12507_v1 = vpop.f32.mrb[24].mxu1 }
 0x894   :  { %v2726_v2 = vrot.slane %v12507_v1, 6  ;;  %v2738_v35 = vrot.slane %v12507_v1, 7  ;;  %v2750_v48 = vrot.slane %v12507_v1, 1  ;;  %v2673_v22 = vpop.f32.mrb[25].mxu1  ;;  %v2762_v58 = vrot.slane %v12507_v1, 2 }
 0x895   :  { %v2724_v51 = vrot.slane %v2673_v22, 6  ;;  %v2736_v32 = vrot.slane %v2673_v22, 7  ;;  %v2748_v3 = vrot.slane %v2673_v22, 1  ;;  %v8889_v24 = vpop.f32.mrb[26].mxu1 }
 0x896   :  { %v2727_v39 = vrot.slane %v8889_v24, 6  ;;  %v2739_v19 = vrot.slane %v8889_v24, 7  ;;  %v2751_v29 = vrot.slane %v8889_v24, 1  ;;  %v2763_v38 = vrot.slane %v8889_v24, 2  ;;  %v2676_v63 = vpop.f32.mrb[27].mxu1 }
 0x897   :  { %v2725_v7 = vrot.slane %v2676_v63, 6  ;;  %v2737_v40 = vrot.slane %v2676_v63, 7  ;;  %v2749_v25 = vrot.slane %v2676_v63, 1  ;;  %v2761_v23 = vrot.slane %v2676_v63, 2 }
 0x898   :  { %v2731_v44 = vsel %vm16067_vm11, %v2727_v39, %v2724_v51  ;;  %v9647_v52 = vpack.i.bf16 %v8889_v24, %v12507_v1  ;;  %v9652_v36 = vpack.i.bf16 %v2676_v63, %v2673_v22  ;;  %v2752_v6 = vsel %vm16070_vm0, %v2750_v48, %v2751_v29 }
 0x899   :  { %v2729_v57 = vsel %vm16067_vm11, %v2725_v7, %v2726_v2  ;;  %v2755_v11 = vsel %vm16070_vm0, %v2751_v29, %v2748_v3  ;;  %v2742_v54 = vsel %vm16071_vm2, %v2736_v32, %v2737_v40  ;;  %v2743_v1 = vsel %vm16071_vm2, %v2739_v19, %v2736_v32 }
 0x89a   :  { %v2760_v24 = vrot.slane %v2673_v22, 2  ;;  %9648 = vrot.lane.b32.xlu0 %v9647_v52, %s10600_s25  ;;  %9653 = vrot.lane.b32.xlu1 %v9652_v36, %s10600_s25  ;;  %v2759_v63 = vmul.f32 %v2755_v11, %v12505_v5  ;;  %v2744_v31 = vmul.f32 %v2743_v1, %v12510_v15  ;;  %v2753_v60 = vsel %vm16070_vm0, %v2749_v25, %v2750_v48  ;;  %v10458_v48 = vld [vmem:[%s15994_s1 + $0x80] sm:$0xff]  }
 0x89b   :  { %v2754_v29 = vsel %vm16070_vm0, %v2748_v3, %v2749_v25  ;;  %v2757_v8 = vmul.f32 %v2753_v60, %v12513_v49  ;;  %v2740_v32 = vsel %vm16071_vm2, %v2738_v35, %v2739_v19  ;;  %v2741_v22 = vsel %vm16071_vm2, %v2737_v40, %v2738_v35  ;;  %8898 = vmatprep.subr.bf16.mxu0 %v10458_v48 }
 0x89c   :  { %v9662_v52 = vpack.i.bf16 %v2759_v63, %v2752_v6  ;;  %v9657_v36 = vpack.i.bf16 %v2742_v54, %v2744_v31  ;;  %v2746_v11 = vmul.f32 %v2741_v22, %v12516_v61  ;;  %v2765_v1 = vsel %vm16068_vm1, %v2761_v23, %v2762_v58  ;;  %8899 = vmatpush3.bf16.msra.mxu0 %v10458_v48 }
 0x89d   :  { %v9672_v60 = vpack.i.bf16 %v2757_v8, %v2754_v29  ;;  %v2766_v3 = vsel %vm16068_vm1, %v2760_v24, %v2761_v23  ;;  %v2769_v19 = vmul.f32 %v2765_v1, %v12519_v9  ;;  %v2764_v35 = vsel %vm16068_vm1, %v2762_v58, %v2763_v38  ;;  %8904 = vmatprep.subr.bf16.mxu0 %v16098_v47 }
 0x89e   :  { %9663 = vrot.lane.b32.xlu0 %v9662_v52, %s10602_s22  ;;  %9658 = vrot.lane.b32.xlu1 %v9657_v36, %s10598_s23  ;;  %v9667_v31 = vpack.i.bf16 %v2740_v32, %v2746_v11  ;;  %v2767_v40 = vsel %vm16068_vm1, %v2763_v38, %v2760_v24  ;;  %v2730_v8 = vsel %vm16067_vm11, %v2724_v51, %v2725_v7  ;;  %v16168_v51 = vand.u32 15, %v10657_v14 }
 0x89f   :  { %v9677_v25 = vpack.i.bf16 %v2769_v19, %v2766_v3  ;;  %v2771_v6 = vmul.f32 %v2767_v40, %v12528_v20  ;;  %v2728_v23 = vsel %vm16067_vm11, %v2726_v2, %v2727_v39  ;;  %v16169_v2 = vand.u32 15, %v11730_v26 }
 0x8a0   :  { %vm2692_vm4 = vcmp.ge.s32.totalorder %v16168_v51, 2 }
 0x8a1   :  { %v9682_v58 = vpack.i.bf16 %v2771_v6, %v2764_v35  ;;  %vm2694_vm10 = vcmp.ge.s32.totalorder %v16169_v2, 2  ;;  %v12590_v7 = vsel %vm2692_vm4, 1.0, %v16098_v47  ;;  %vm16174_vm4 = vmmov %vm16172_vm7 }
 0x8a2   :  { %9673 = vrot.lane.b32.xlu1 %v9672_v60, %s10602_s22  ;;  %9668 = vrot.lane.b32.xlu0 %v9667_v31, %s10598_s23  ;;  %v12593_v29 = vsel %vm2694_vm10, 1.0, %v16098_v47  ;;  %v2732_v32 = vmul.f32 %v2731_v44, %v12590_v7  ;;  %vm16175_vm10 = vmmov %vm16174_vm4 }
 0x8a3   :  { %v2734_v1 = vmul.f32 %v2729_v57, %v12593_v29 }
 0x8a6   :  { %9678 = vrot.lane.b32.xlu1 %v9677_v25, %s10603_s26  ;;  %9683 = vrot.lane.b32.xlu0 %v9682_v58, %s10603_s26 }
 0x90c   :  { %v9649_v38 = vpop.permute.xlu0 %9648  ;;  %v9654_v10 = vpop.permute.xlu1 %9653 }
 0x90d   :  { %v9651_v22 = vunpack.i.h.bf16 %v9649_v38  ;;  %v9650_v52 = vunpack.i.l.bf16 %v9649_v38  ;;  %v9656_v35 = vunpack.i.h.bf16 %v9654_v10  ;;  %v9655_v31 = vunpack.i.l.bf16 %v9654_v10 }
 0x910   :  { %v9664_v39 = vpop.permute.xlu0 %9663  ;;  %v9659_v54 = vpop.permute.xlu1 %9658 }
 0x911   :  { %v9661_v24 = vunpack.i.h.bf16 %v9659_v54  ;;  %v9660_v63 = vunpack.i.l.bf16 %v9659_v54  ;;  %v9666_v6 = vunpack.i.h.bf16 %v9664_v39  ;;  %v9665_v58 = vunpack.i.l.bf16 %v9664_v39 }
 0x913   :  { %v2836_v48 = vsel %vm16062_vm6, %v2732_v32, %v9660_v63  ;;  %v2837_v60 = vsel %vm16062_vm6, %v2730_v8, %v9661_v24 }
 0x914   :  { %v9674_v36 = vpop.permute.xlu1 %9673  ;;  %v9669_v11 = vpop.permute.xlu0 %9668  ;;  %v2840_v51 = vsel %vm16170_vm12, %v2836_v48, %v9655_v31  ;;  %v2841_v57 = vsel %vm16171_vm14, %v2837_v60, %v9656_v35  ;;  %v10459_v35 = vld [vmem:[%s15994_s1 + $0x88] sm:$0xff]   ;;  %v16051_v31 = vmov 0   ;;  %vm16176_vm12 = vmmov %vm16174_vm4  ;;  %vm16065_vm14 = vcmask 785408  }
 0x915   :  { %v9671_v3 = vunpack.i.h.bf16 %v9669_v11  ;;  %v9670_v19 = vunpack.i.l.bf16 %v9669_v11  ;;  %v9676_v40 = vunpack.i.h.bf16 %v9674_v36  ;;  %v9675_v25 = vunpack.i.l.bf16 %v9674_v36  ;;  %3162 = vmatprep.subr.bf16.mxu1 %v16051_v31 }
 0x916   :  { %3163 = vmatpush1.bf16.msra.mxu1 %v10459_v35 }
 0x917   :  { %v2839_v44 = vsel %vm16062_vm6, %v2728_v23, %v9671_v3  ;;  %v2838_v38 = vsel %vm16062_vm6, %v2734_v1, %v9670_v19  ;;  %v2844_v39 = vsel %vm16061_vm9, %v2840_v51, %v9675_v25  ;;  %v2845_v23 = vsel %vm16061_vm9, %v2841_v57, %v9676_v40  ;;  %v10460_v40 = vld [vmem:[%s15994_s1 + $0x90] sm:$0xff]   ;;  %3164 = vmatprep.subr.bf16.mxu1 %v16051_v31  ;;  %v10461_v25 = vld [vmem:[%s15994_s1 + $0x98] sm:$0xff]   ;;  %v10466_v51 = vld [vmem:[%s15994_s1 + $0xc0] sm:$0xff]  }
 0x918   :  { %v2843_v2 = vsel %vm16172_vm7, %v2839_v44, %v9651_v22  ;;  %v2842_v8 = vsel %vm16173_vm15, %v2838_v38, %v9650_v52  ;;  %v9679_v54 = vpop.permute.xlu1 %9678  ;;  %v9684_v24 = vpop.permute.xlu0 %9683  ;;  %v10464_v44 = vld [vmem:[%s15994_s1 + $0xb0] sm:$0xff]   ;;  %v10465_v38 = vld [vmem:[%s15994_s1 + $0xb8] sm:$0xff]   ;;  %v8346_v57 = vld [vmem:[%s15995_s2 + $0x4] ss:$0 sm:$0xff] }
 0x919   :  { %v9681_v63 = vunpack.i.h.bf16 %v9679_v54  ;;  %v9680_v10 = vunpack.i.l.bf16 %v9679_v54  ;;  %v9686_v32 = vunpack.i.h.bf16 %v9684_v24  ;;  %v9685_v36 = vunpack.i.l.bf16 %v9684_v24  ;;  %vm16177_vm7 = vmmov %vm16174_vm4 }
 0x91a   :  { %v2846_v11 = vsel %vm16061_vm9, %v2842_v8, %v9665_v58  ;;  %v2847_v1 = vsel %vm16061_vm9, %v2843_v2, %v9666_v6  ;;  %3165 = vmatpush1.bf16.msra.mxu1 %v10460_v40  ;;  %v10462_v6 = vld [vmem:[%s15994_s1 + $0xa0] sm:$0xff]   ;;  %v10463_v58 = vld [vmem:[%s15994_s1 + $0xa8] sm:$0xff]   ;;  %vm16178_vm15 = vmmov %vm16174_vm4 }
 0x91b   :  { %v2848_v48 = vsel %vm16069_vm8, %v2844_v39, %v9680_v10  ;;  %v2849_v22 = vsel %vm16069_vm8, %v2845_v23, %v9681_v63  ;;  %v2850_v52 = vsel %vm16069_vm8, %v2846_v11, %v9685_v36  ;;  %v2851_v60 = vsel %vm16069_vm8, %v2847_v1, %v9686_v32  ;;  %3166 = vmatprep.subr.bf16.mxu1 %v16051_v31  ;;  %v10467_v11 = vld [vmem:[%s15994_s1 + $0xc8] sm:$0xff]  }
 0x91c   :  { %v2863_v3 = vpack.c.bf16 %v2851_v60, %v2850_v52  ;;  %v2862_v19 = vpack.c.bf16 %v2849_v22, %v2848_v48 }
 0x91e   :  { %8900 = vmatprep.mubr.msk.bf16.mxu0 %vm16060_vm13, %v2862_v19  ;;  %3167 = vmatpush1.bf16.msra.mxu1 %v10461_v25 }
 0x91f   :  { %8901 = vmatmul.mubr.msk.bf16.vlgmr.msra.gmra.mrb[32].mxu0 %vm16060_vm13, %v2863_v3  ;;  %3168 = vmatprep.subr.bf16.mxu1 %v16051_v31 }
 0x922   :  { %3169 = vmatpush1.bf16.msra.mxu1 %v10462_v6 }
 0x923   :  { %3170 = vmatprep.subr.bf16.mxu1 %v16051_v31 }
 0x926   :  { %3171 = vmatpush1.bf16.msra.mxu1 %v10463_v58 }
 0x927   :  { %3172 = vmatprep.subr.bf16.mxu1 %v16051_v31 }
 0x92a   :  { %3173 = vmatpush1.bf16.msra.mxu1 %v10464_v44  ;;  %v10468_v44 = vld [vmem:[%s15994_s1 + $0xd0] sm:$0xff]  }
 0x92b   :  { %3174 = vmatprep.subr.bf16.mxu1 %v16051_v31 }
 0x92e   :  { %3175 = vmatpush1.bf16.msra.mxu1 %v10465_v38 }
 0x92f   :  { %3176 = vmatprep.subr.bf16.mxu1 %v16051_v31 }
 0x932   :  { %3177 = vmatpush1.bf16.msra.mxu1 %v10466_v51 }
 0x933   :  { %3178 = vmatprep.subr.bf16.mxu1 %v16051_v31 }
 0x936   :  { %3179 = vmatpush1.bf16.msra.mxu1 %v10467_v11 }
 0x937   :  { %3180 = vmatprep.subr.bf16.mxu1 %v16051_v31 }
 0x93a   :  { %3181 = vmatpush1.bf16.msra.mxu1 %v10468_v44 }
 0x9f2   :  { %v8902_v2 = vpop.f32.mrb[32].mxu0 }
 0x9f3   :  { %v2948_v8 = vadd.f32 %v8902_v2, %v8346_v57  ;;  %v2939_v54 = vpop.f32.mrb[33].mxu0 }
 0x9f4   :  { %v2940_v24 = vadd.f32 %v8346_v57, %v2939_v54  ;;  %v8903_v63 = vpop.f32.mrb[34].mxu0 }
 0x9f5   :  { %v12651_v10 = vmax.f32 %v2948_v8, 0.0  ;;  %v2951_v32 = vadd.f32 %v8903_v63, %v8346_v57  ;;  %v2942_v36 = vpop.f32.mrb[35].mxu0 }
 0x9f6   :  { %v2954_v39 = vmax.f32 %v2940_v24, 0.0  ;;  %v2943_v23 = vadd.f32 %v8346_v57, %v2942_v36 }
 0x9f7   :  { %v2960_v1 = vrot.slane %v12651_v10, 6  ;;  %v2984_v48 = vrot.slane %v12651_v10, 1  ;;  %v2996_v22 = vrot.slane %v12651_v10, 2  ;;  %v2957_v52 = vmax.f32 %v2951_v32, 0.0 }
 0x9f8   :  { %v2958_v60 = vrot.slane %v2954_v39, 6  ;;  %v2955_v3 = vmax.f32 %v2943_v23, 0.0  ;;  %v2970_v19 = vrot.slane %v2954_v39, 7  ;;  %v2972_v35 = vrot.slane %v12651_v10, 7 }
 0x9f9   :  { %v2961_v40 = vrot.slane %v2957_v52, 6  ;;  %v2973_v25 = vrot.slane %v2957_v52, 7  ;;  %v2994_v6 = vrot.slane %v2954_v39, 2  ;;  %v2982_v58 = vrot.slane %v2954_v39, 1 }
 0x9fa   :  { %v2959_v38 = vrot.slane %v2955_v3, 6  ;;  %v9687_v51 = vpack.i.bf16 %v2955_v3, %v2954_v39  ;;  %v2971_v57 = vrot.slane %v2955_v3, 7  ;;  %v2995_v2 = vrot.slane %v2955_v3, 2 }
 0x9fb   :  { %v2977_v8 = vsel %vm16071_vm2, %v2973_v25, %v2970_v19  ;;  %v2974_v54 = vsel %vm16071_vm2, %v2972_v35, %v2973_v25  ;;  %v2983_v24 = vrot.slane %v2955_v3, 1  ;;  %v2985_v63 = vrot.slane %v2957_v52, 1 }
 0x9fc   :  { %9688 = vrot.lane.b32.xlu0 %v9687_v51, %s10603_s26  ;;  %v2976_v32 = vsel %vm16071_vm2, %v2970_v19, %v2971_v57  ;;  %v2978_v36 = vmul.f32 %v2977_v8, %v12510_v15  ;;  %v2975_v39 = vsel %vm16071_vm2, %v2971_v57, %v2972_v35  ;;  %v2999_v23 = vsel %vm16068_vm1, %v2995_v2, %v2996_v22 }
 0x9fd   :  { %v2980_v11 = vmul.f32 %v2975_v39, %v12516_v61  ;;  %v3000_v25 = vsel %vm16068_vm1, %v2994_v6, %v2995_v2  ;;  %v3003_v3 = vmul.f32 %v2999_v23, %v12519_v9  ;;  %v2987_v51 = vsel %vm16070_vm0, %v2983_v24, %v2984_v48 }
 0x9fe   :  { %v9692_v19 = vpack.i.bf16 %v2976_v32, %v2978_v36  ;;  %v2988_v8 = vsel %vm16070_vm0, %v2982_v58, %v2983_v24  ;;  %v2991_v35 = vmul.f32 %v2987_v51, %v12513_v49  ;;  %v2986_v57 = vsel %vm16070_vm0, %v2984_v48, %v2985_v63 }
 0x9ff   :  { %v9707_v31 = vpack.i.bf16 %v2974_v54, %v2980_v11  ;;  %v3088_v39 = vpack.c.bf16 %v3003_v3, %v3000_v25  ;;  %v2989_v2 = vsel %vm16070_vm0, %v2985_v63, %v2982_v58  ;;  %v9702_v23 = vpack.i.bf16 %v2957_v52, %v12651_v10 }
 0xa00   :  { %9693 = vrot.lane.b32.xlu1 %v9692_v19, %s10600_s25  ;;  %v9697_v33 = vpack.i.bf16 %v2991_v35, %v2988_v8  ;;  %v2993_v44 = vmul.f32 %v2989_v2, %v12505_v5  ;;  %v2964_v24 = vsel %vm16067_vm11, %v2958_v60, %v2959_v38  ;;  %v2965_v32 = vsel %vm16067_vm11, %v2961_v40, %v2958_v60 }
 0xa01   :  { %9708 = vrot.lane.b32.xlu0 %v9707_v31, %s10600_s25  ;;  %8365 = vmatprep.mubr.msk.bf16.mxu1 %vm16174_vm4, %v3088_v39  ;;  %v2962_v48 = vsel %vm16067_vm11, %v2960_v1, %v2961_v40  ;;  %v2963_v10 = vsel %vm16067_vm11, %v2959_v38, %v2960_v1  ;;  %v2997_v58 = vrot.slane %v2957_v52, 2  ;;  %v2966_v11 = vmul.f32 %v2965_v32, %v12590_v7 }
 0xa02   :  { %v9712_v54 = vpack.i.bf16 %v2993_v44, %v2986_v57 }
 0xa03   :  { %v2998_v63 = vsel %vm16068_vm1, %v2996_v22, %v2997_v58  ;;  %v3001_v36 = vsel %vm16068_vm1, %v2997_v58, %v2994_v6  ;;  %v2968_v58 = vmul.f32 %v2963_v10, %v12593_v29 }
 0xa04   :  { %9698 = vrot.lane.b32.xlu1 %v9697_v33, %s10605_s18  ;;  %v3005_v31 = vmul.f32 %v3001_v36, %v12528_v20 }
 0xa05   :  { %9713 = vrot.lane.b32.xlu0 %v9712_v54, %s10605_s18 }
 0xa06   :  { %v3090_v60 = vpack.c.bf16 %v3005_v31, %v2998_v63 }
 0xa08   :  { %9703 = vrot.lane.b32.xlu1 %v9702_v23, %s10603_s26 }
 0xa6e   :  { %v9689_v40 = vpop.permute.xlu0 %9688 }
 0xa6f   :  { %v9691_v3 = vunpack.i.h.bf16 %v9689_v40  ;;  %v9690_v33 = vunpack.i.l.bf16 %v9689_v40 }
 0xa72   :  { %v9694_v1 = vpop.permute.xlu1 %9693 }
 0xa73   :  { %v9696_v52 = vunpack.i.h.bf16 %v9694_v1  ;;  %v9695_v38 = vunpack.i.l.bf16 %v9694_v1  ;;  %v9709_v22 = vpop.permute.xlu0 %9708 }
 0xa74   :  { %v9711_v35 = vunpack.i.h.bf16 %v9709_v22  ;;  %v9710_v57 = vunpack.i.l.bf16 %v9709_v22 }
 0xa75   :  { %v3054_v25 = vsel %vm16175_vm10, %v2966_v11, %v9695_v38  ;;  %v3055_v6 = vsel %vm16176_vm12, %v2964_v24, %v9696_v52  ;;  %vm10606_vm10 = vmmov 0   ;;  %vm16180_vm12 = vmmov %vm16174_vm4 }
 0xa76   :  { %v9699_v51 = vpop.permute.xlu1 %9698  ;;  %v3058_v39 = vsel %vm16069_vm8, %v3054_v25, %v9690_v33  ;;  %v3059_v2 = vsel %vm16069_vm8, %v3055_v6, %v9691_v3  ;;  %v3057_v31 = vsel %vm16177_vm7, %v2962_v48, %v9711_v35  ;;  %v3056_v40 = vsel %vm16178_vm15, %v2968_v58, %v9710_v57  ;;  %8908 = vmatprep.mubr.msk.bf16.mxu0 %vm10606_vm10, %v16098_v47  ;;  %v8354_v48 = vld [vmem:[%s15995_s2 + $0x5] ss:$0 sm:$0xff] }
 0xa77   :  { %v9701_v19 = vunpack.i.h.bf16 %v9699_v51  ;;  %v9700_v8 = vunpack.i.l.bf16 %v9699_v51  ;;  %v9714_v32 = vpop.permute.xlu0 %9713 }
 0xa78   :  { %v9716_v1 = vunpack.i.h.bf16 %v9714_v32  ;;  %v9715_v52 = vunpack.i.l.bf16 %v9714_v32 }
 0xa79   :  { %v3063_v23 = vsel %vm16065_vm14, %v3058_v39, %v9700_v8  ;;  %v3064_v44 = vsel %vm16065_vm14, %v3059_v2, %v9701_v19 }
 0xa7a   :  { %v9704_v24 = vpop.permute.xlu1 %9703  ;;  %v3087_v54 = vpack.c.bf16 %v3064_v44, %v3063_v23 }
 0xa7b   :  { %v9706_v63 = vunpack.i.h.bf16 %v9704_v24  ;;  %v9705_v36 = vunpack.i.l.bf16 %v9704_v24 }
 0xa7c   :  { %3195 = vmatmul.mubr.bf16.vlgmr.msra.gmra.mrb[28].mxu1 %v3087_v54 }
 0xa7d   :  { %8366 = vmatprep.mubr.msk.bf16.mxu1 %vm16174_vm4, %v3090_v60  ;;  %v3060_v38 = vsel %vm16069_vm8, %v3056_v40, %v9705_v36  ;;  %v3061_v11 = vsel %vm16069_vm8, %v3057_v31, %v9706_v63 }
 0xa7e   :  { %v3065_v22 = vsel %vm16065_vm14, %v3060_v38, %v9715_v52  ;;  %v3066_v10 = vsel %vm16065_vm14, %v3061_v11, %v9716_v1 }
 0xa7f   :  { %v3089_v25 = vpack.c.bf16 %v3066_v10, %v3065_v22 }
 0xa84   :  { %3203 = vmatmul.mubr.bf16.gmra.mrb[32].mxu1 %v3089_v25 }
 0xb4f   :  { %v3196_v6 = vpop.f32.mrb[28].mxu1 }
 0xb50   :  { %v3198_v60 = vpop.f32.mrb[29].mxu1  ;;  %v3197_v33 = vadd.f32 %v8354_v48, %v3196_v6 }
 0xb51   :  { %v3199_v3 = vpop.f32.mrb[30].mxu1  ;;  %v16179_v60 = vmov 0  }
 0xb52   :  { %v3200_v51 = vadd.f32 %v8354_v48, %v3199_v3  ;;  %v3201_v19 = vpop.f32.mrb[31].mxu1  ;;  %v12732_v35 = vmax.f32 %v3197_v33, 0.0  ;;  %v10469_v3 = vld [vmem:[%s15994_s1 + $0xd8] sm:$0xff]   ;;  %v10470_v33 = vld [vmem:[%s15994_s1 + $0xe0] sm:$0xff]  }
 0xb53   :  { %v10473_v19 = vld [vmem:[%s15994_s1 + $0xf8] sm:$0xff]  }
 0xb54   :  { %v12730_v8 = vmax.f32 %v3200_v51, 0.0  ;;  %v3215_v32 = vrot.slane %v12732_v35, 1  ;;  %v10471_v51 = vld [vmem:[%s15994_s1 + $0xe8] sm:$0xff]  }
 0xb56   :  { %v3216_v39 = vrot.slane %v12730_v8, 1 }
 0xb57   :  { %v3204_v57 = vpop.f32.mrb[32].mxu1 }
 0xb58   :  { %v3205_v2 = vadd.f32 %v8354_v48, %v3204_v57  ;;  %v3206_v23 = vpop.f32.mrb[33].mxu1  ;;  %v3221_v63 = vsel %vm16070_vm0, %v3215_v32, %v3216_v39  ;;  %v10474_v57 = vld [vmem:[%s15994_s1 + $0x100] sm:$0xff]  }
 0xb59   :  { %v3207_v44 = vpop.f32.mrb[34].mxu1  ;;  %v3223_v52 = vmax.f32 %v12732_v35, %v3221_v63  ;;  %v3272_v23 = vand.u32 7, %v10657_v14 }
 0xb5a   :  { %v12736_v58 = vmax.f32 %v3205_v2, 0.0  ;;  %v3208_v24 = vadd.f32 %v8354_v48, %v3207_v44  ;;  %v3209_v54 = vpop.f32.mrb[35].mxu1  ;;  %v10476_v2 = vld [vmem:[%s15994_s1 + $0x110] sm:$0xff]   ;;  %v3273_v44 = vand.u32 7, %v11723_v0 }
 0xb5b   :  { %vm3286_vm7 = vcmp.lt.s32.totalorder %v3272_v23, 6  ;;  %vm3278_vm4 = vcmp.ge.s32.totalorder %v3272_v23, 1  ;;  %vm3282_vm5 = vcmp.lt.s32.totalorder %v3272_v23, 7 }
 0xb5c   :  { %v3217_v36 = vrot.slane %v12736_v58, 1  ;;  %v12741_v31 = vmax.f32 %v3208_v24, 0.0  ;;  %vm3287_vm15 = vcmp.lt.s32.totalorder %v3273_v44, 6  ;;  %v10477_v24 = vld [vmem:[%s15994_s1 + $0x118] sm:$0xff]   ;;  %v12796_v63 = vsel %vm3286_vm7, 1.0, %v16098_v47 }
 0xb5d   :  { %vm3283_vm3 = vcmp.lt.s32.totalorder %v3273_v44, 7  ;;  %vm3275_vm7 = vcmp.ge.s32.totalorder %v3273_v44, 2 }
 0xb5e   :  { %v3220_v40 = vsel %vm16070_vm0, %v3216_v39, %v3217_v36  ;;  %v3218_v1 = vrot.slane %v12741_v31, 1  ;;  %v10475_v39 = vld [vmem:[%s15994_s1 + $0x108] sm:$0xff]  }
 0xb5f   :  { %v3224_v38 = vmax.f32 %v12730_v8, %v3220_v40  ;;  %v12802_v40 = vsel %vm3278_vm4, 1.0, %v16098_v47 }
 0xb60   :  { %v3219_v11 = vsel %vm16070_vm0, %v3217_v36, %v3218_v1  ;;  %v3222_v22 = vsel %vm16070_vm0, %v3218_v1, %v3215_v32  ;;  %v12799_v36 = vsel %vm3287_vm15, 1.0, %v16098_v47 }
 0xb61   :  { %v3226_v10 = vmax.f32 %v12741_v31, %v3222_v22  ;;  %v3227_v25 = vpack.c.bf16 %v3224_v38, %v3223_v52  ;;  %v3225_v48 = vmax.f32 %v12736_v58, %v3219_v11  ;;  %v12808_v22 = vsel %vm3282_vm5, 1.0, %v16098_v47 }
 0xb62   :  { %vm3274_vm5 = vcmp.ge.s32.totalorder %v3272_v23, 2 }
 0xb63   :  { %8905 = vmatpush3.bf16.msra.mxu0 %v3227_v25  ;;  %v3228_v6 = vpack.c.bf16 %v3226_v10, %v3225_v48 }
 0xb64   :  { %8906 = vmatprep.subr.bf16.mxu0 %v16098_v47 }
 0xb67   :  { %8907 = vmatpush3.bf16.msra.mxu0 %v3228_v6 }
 0xb68   :  { %3434 = vmatprep.subr.bf16.mxu0 %v16179_v60 }
 0xb6a   :  { %8909 = vmatmul.mubr.msk.bf16.vlgmr.msra.gmra.mrb[36].mxu0 %vm16180_vm12, %v11752_v17  ;;  %v10472_v17 = vld [vmem:[%s15994_s1 + $0xf0] sm:$0xff]   ;;  %vm3279_vm12 = vcmp.ge.s32.totalorder %v3273_v44, 1 }
 0xb6b   :  { %3435 = vmatpush1.bf16.msra.mxu0 %v10469_v3  ;;  %v12805_v11 = vsel %vm3279_vm12, 1.0, %v16098_v47 }
 0xb6c   :  { %3436 = vmatprep.subr.bf16.mxu0 %v16179_v60 }
 0xb6f   :  { %3437 = vmatpush1.bf16.msra.mxu0 %v10470_v33 }
 0xb70   :  { %3438 = vmatprep.subr.bf16.mxu0 %v16179_v60 }
 0xb73   :  { %3439 = vmatpush1.bf16.msra.mxu0 %v10471_v51 }
 0xb74   :  { %3440 = vmatprep.subr.bf16.mxu0 %v16179_v60 }
 0xb77   :  { %3441 = vmatpush1.bf16.msra.mxu0 %v10472_v17 }
 0xb78   :  { %3442 = vmatprep.subr.bf16.mxu0 %v16179_v60 }
 0xb7b   :  { %3443 = vmatpush1.bf16.msra.mxu0 %v10473_v19  ;;  %v12813_v19 = vsel %vm3283_vm3, 1.0, %v16098_v47  ;;  %vm16181_vm3 = vcmask 261120  }
 0xb7c   :  { %3444 = vmatprep.subr.bf16.mxu0 %v16179_v60  ;;  %vm16182_vm15 = vmmov %vm16181_vm3 }
 0xb7d   :  { %vm16183_vm4 = vmmov %vm16181_vm3 }
 0xb7f   :  { %3445 = vmatpush1.bf16.msra.mxu0 %v10474_v57  ;;  %v10478_v57 = vld [vmem:[%s15994_s1 + $0x120] sm:$0xff]  }
 0xb80   :  { %3446 = vmatprep.subr.bf16.mxu0 %v16179_v60 }
 0xb83   :  { %3447 = vmatpush1.bf16.msra.mxu0 %v10475_v39 }
 0xb84   :  { %3448 = vmatprep.subr.bf16.mxu0 %v16179_v60 }
 0xb87   :  { %3449 = vmatpush1.bf16.msra.mxu0 %v10476_v2 }
 0xb88   :  { %3450 = vmatprep.subr.bf16.mxu0 %v16179_v60 }
 0xb8b   :  { %3451 = vmatpush1.bf16.msra.mxu0 %v10477_v24 }
 0xb8c   :  { %3452 = vmatprep.subr.bf16.mxu0 %v16179_v60 }
 0xb8f   :  { %3453 = vmatpush1.bf16.msra.mxu0 %v10478_v57 }
 0xb90   :  { %8912 = vmatprep.subr.bf16.mxu0 %v16098_v47 }
 0xc3d   :  { %v3265_v32 = vpop.f32.mrb[36].mxu0 }
 0xc3e   :  { %v8910_v54 = vpop.f32.mrb[37].mxu0  ;;  %v3290_v1 = vrot.slane %v3265_v32, 6  ;;  %v3308_v52 = vrot.slane %v3265_v32, 2  ;;  %v3296_v33 = vrot.slane %v3265_v32, 7  ;;  %v3302_v51 = vrot.slane %v3265_v32, 1 }
 0xc3f   :  { %v3268_v38 = vpop.f32.mrb[38].mxu0 }
 0xc40   :  { %v3291_v10 = vrot.slane %v3268_v38, 6  ;;  %v3297_v25 = vrot.slane %v3268_v38, 7  ;;  %v3303_v48 = vrot.slane %v3268_v38, 1  ;;  %v3309_v6 = vrot.slane %v3268_v38, 2  ;;  %v8911_v3 = vpop.f32.mrb[39].mxu0 }
 0xc41   :  { %v9717_v17 = vpack.i.bf16 %v3268_v38, %v3265_v32 }
 0xc42   :  { %v3292_v39 = vsel %vm16067_vm11, %v3290_v1, %v3291_v10  ;;  %v3293_v2 = vsel %vm16067_vm11, %v3291_v10, %v3290_v1  ;;  %v3310_v24 = vsel %vm16068_vm1, %v3308_v52, %v3309_v6  ;;  %v3311_v32 = vsel %vm16068_vm1, %v3309_v6, %v3308_v52 }
 0xc43   :  { %9718 = vrot.lane.b32.xlu0 %v9717_v17, %s10603_s26  ;;  %v3312_v54 = vmul.f32 %v3310_v24, %v12796_v63  ;;  %v3313_v38 = vmul.f32 %v3311_v32, %v12799_v36  ;;  %v3298_v3 = vsel %vm16071_vm2, %v3296_v33, %v3297_v25  ;;  %v3299_v42 = vsel %vm16071_vm2, %v3297_v25, %v3296_v33 }
 0xc44   :  { %v3300_v1 = vmul.f32 %v3299_v42, %v12802_v40  ;;  %v3301_v10 = vmul.f32 %v3298_v3, %v12805_v11  ;;  %v3304_v43 = vsel %vm16070_vm0, %v3302_v51, %v3303_v48  ;;  %v3305_v52 = vsel %vm16070_vm0, %v3303_v48, %v3302_v51 }
 0xc45   :  { %v3365_v6 = vpack.c.bf16 %v3313_v38, %v3312_v54  ;;  %v3306_v17 = vmul.f32 %v3304_v43, %v12808_v22  ;;  %v3307_v24 = vmul.f32 %v3305_v52, %v12813_v19  ;;  %v12846_v25 = vsel %vm3274_vm5, 1.0, %v16098_v47 }
 0xc46   :  { %v9722_v32 = vpack.i.bf16 %v3301_v10, %v3300_v1  ;;  %v12849_v48 = vsel %vm3275_vm7, 1.0, %v16098_v47  ;;  %v3294_v54 = vmul.f32 %v3293_v2, %v12846_v25 }
 0xc47   :  { %8379 = vmatprep.mubr.msk.bf16.mxu0 %vm16181_vm3, %v3365_v6  ;;  %v9727_v42 = vpack.i.bf16 %v3307_v24, %v3306_v17  ;;  %v3295_v38 = vmul.f32 %v3292_v39, %v12849_v48  ;;  %v10479_v39 = vld [vmem:[%s15994_s1 + $0x1a8] sm:$0xff]  }
 0xc48   :  { %9723 = vrot.lane.b32.xlu1 %v9722_v32, %s10600_s25 }
 0xc4c   :  { %9728 = vrot.lane.b32.xlu1 %v9727_v42, %s10605_s18 }
 0xcb5   :  { %v9719_v33 = vpop.permute.xlu0 %9718 }
 0xcb6   :  { %v9721_v23 = vunpack.i.h.bf16 %v9719_v33  ;;  %v9720_v44 = vunpack.i.l.bf16 %v9719_v33  ;;  %v10481_v33 = vld [vmem:[%s15994_s1 + $0x1b8] sm:$0xff]  }
 0xcba   :  { %v9724_v43 = vpop.permute.xlu1 %9723 }
 0xcbb   :  { %v9726_v51 = vunpack.i.h.bf16 %v9724_v43  ;;  %v9725_v57 = vunpack.i.l.bf16 %v9724_v43  ;;  %v10480_v43 = vld [vmem:[%s15994_s1 + $0x1b0] sm:$0xff]  }
 0xcbd   :  { %v3338_v3 = vsel %vm16182_vm15, %v3294_v54, %v9725_v57  ;;  %v3339_v1 = vsel %vm16183_vm4, %v3295_v38, %v9726_v51  ;;  %v10482_v51 = vld [vmem:[%s15994_s1 + $0x1c0] sm:$0xff]   ;;  %v10483_v57 = vld [vmem:[%s15994_s1 + $0x168] sm:$0xff]   ;;  %v10485_v38 = vld [vmem:[%s15994_s1 + $0x170] sm:$0xff]  }
 0xcbe   :  { %v9729_v10 = vpop.permute.xlu1 %9728  ;;  %v3340_v17 = vsel %vm16069_vm8, %v3338_v3, %v9720_v44  ;;  %v3341_v24 = vsel %vm16069_vm8, %v3339_v1, %v9721_v23  ;;  %v10484_v54 = vld [vmem:[%s15994_s1 + $0x128] sm:$0xff]   ;;  %8621 = vmatprep.subr.bf16.mxu1 %v10483_v57  ;;  %v10486_v3 = vld [vmem:[%s15994_s1 + $0x130] sm:$0xff]   ;;  %v10487_v1 = vld [vmem:[%s15994_s1 + $0x178] sm:$0xff]  }
 0xcbf   :  { %v9731_v52 = vunpack.i.h.bf16 %v9729_v10  ;;  %v9730_v6 = vunpack.i.l.bf16 %v9729_v10  ;;  %8622 = vmatpush3.bf16.msra.mxu1 %v10484_v54  ;;  %v10488_v23 = vld [vmem:[%s15994_s1 + $0x138] sm:$0xff]   ;;  %v10489_v44 = vld [vmem:[%s15994_s1 + $0x180] sm:$0xff]  }
 0xcc0   :  { %8623 = vmatprep.subr.bf16.mxu1 %v10485_v38  ;;  %v10490_v10 = vld [vmem:[%s15994_s1 + $0x140] sm:$0xff]  }
 0xcc1   :  { %v3342_v32 = vsel %vm16065_vm14, %v3340_v17, %v9730_v6  ;;  %v3343_v42 = vsel %vm16065_vm14, %v3341_v24, %v9731_v52  ;;  %v10491_v52 = vld [vmem:[%s15994_s1 + $0x188] sm:$0xff]   ;;  %v10493_v17 = vld [vmem:[%s15994_s1 + $0x190] sm:$0xff]  }
 0xcc2   :  { %v3364_v2 = vpack.c.bf16 %v3343_v42, %v3342_v32  ;;  %v10492_v6 = vld [vmem:[%s15994_s1 + $0x148] sm:$0xff]   ;;  %v10494_v24 = vld [vmem:[%s15994_s1 + $0x150] sm:$0xff]   ;;  %v10495_v32 = vld [vmem:[%s15994_s1 + $0x198] sm:$0xff]  }
 0xcc3   :  { %8624 = vmatpush3.bf16.msra.mxu1 %v10486_v3  ;;  %v10496_v42 = vld [vmem:[%s15994_s1 + $0x158] sm:$0xff]  }
 0xcc4   :  { %3467 = vmatmul.mubr.bf16.vlgmr.msra.gmra.mrb[40].mxu0 %v3364_v2  ;;  %8625 = vmatprep.subr.bf16.mxu1 %v10487_v1 }
 0xcc5   :  { %8913 = vmatpush3.bf16.msra.mxu0 %v10479_v39  ;;  %8920 = vmatprep.mubr.msk.bf16.mxu0 %vm10606_vm10, %v16098_v47  ;;  %v8368_v39 = vld [vmem:[%s15995_s2 + $0x6] ss:$0 sm:$0xff] }
 0xcc6   :  { %8914 = vmatprep.subr.bf16.mxu0 %v16098_v47 }
 0xcc7   :  { %8626 = vmatpush3.bf16.msra.mxu1 %v10488_v23  ;;  %v10497_v23 = vld [vmem:[%s15994_s1 + $0x1a0] sm:$0xff]  }
 0xcc8   :  { %8627 = vmatprep.subr.bf16.mxu1 %v10489_v44  ;;  %v10498_v44 = vld [vmem:[%s15994_s1 + $0x160] sm:$0xff]  }
 0xcc9   :  { %8915 = vmatpush3.bf16.msra.mxu0 %v10480_v43 }
 0xcca   :  { %8916 = vmatprep.subr.bf16.mxu0 %v16098_v47 }
 0xccb   :  { %8628 = vmatpush3.bf16.msra.mxu1 %v10490_v10 }
 0xccc   :  { %8629 = vmatprep.subr.bf16.mxu1 %v10491_v52 }
 0xccd   :  { %8917 = vmatpush3.bf16.msra.mxu0 %v10481_v33 }
 0xcce   :  { %8918 = vmatprep.subr.bf16.mxu0 %v16098_v47 }
 0xccf   :  { %8630 = vmatpush3.bf16.msra.mxu1 %v10492_v6 }
 0xcd0   :  { %8631 = vmatprep.subr.bf16.mxu1 %v10493_v17 }
 0xcd1   :  { %8919 = vmatpush3.bf16.msra.mxu0 %v10482_v51 }
 0xcd2   :  { %8936 = vmatprep.subr.bf16.mxu0 %v16098_v47 }
 0xcd3   :  { %8632 = vmatpush3.bf16.msra.mxu1 %v10494_v24 }
 0xcd4   :  { %8633 = vmatprep.subr.bf16.mxu1 %v10495_v32 }
 0xcd7   :  { %8634 = vmatpush3.bf16.msra.mxu1 %v10496_v42 }
 0xcd8   :  { %8635 = vmatprep.subr.bf16.mxu1 %v10497_v23 }
 0xcdb   :  { %8636 = vmatpush3.bf16.msra.mxu1 %v10498_v44 }
 0xcdc   :  { %8924 = vmatprep.subr.bf16.mxu1 %v16098_v47 }
 0xd97   :  { %v3468_v2 = vpop.f32.mrb[40].mxu0 }
 0xd98   :  { %v3469_v43 = vadd.f32 %v8368_v39, %v3468_v2  ;;  %v3470_v33 = vpop.f32.mrb[41].mxu0 }
 0xd99   :  { %v3471_v51 = vpop.f32.mrb[42].mxu0 }
 0xd9a   :  { %v3475_v57 = vmax.f32 %v3469_v43, 0.0  ;;  %v3472_v54 = vadd.f32 %v8368_v39, %v3471_v51  ;;  %v3473_v38 = vpop.f32.mrb[43].mxu0 }
 0xd9c   :  { %v3476_v3 = vmax.f32 %v3472_v54, 0.0  ;;  %v3489_v1 = vrot.slane %v3475_v57, 1  ;;  %v3495_v10 = vrot.slane %v3475_v57, 2  ;;  %v3483_v24 = vrot.slane %v3475_v57, 7 }
 0xd9e   :  { %v3484_v52 = vrot.slane %v3476_v3, 7  ;;  %v3490_v6 = vrot.slane %v3476_v3, 1  ;;  %v3496_v17 = vrot.slane %v3476_v3, 2 }
 0xda0   :  { %v3497_v32 = vsel %vm16068_vm1, %v3495_v10, %v3496_v17  ;;  %v3498_v42 = vsel %vm16068_vm1, %v3496_v17, %v3495_v10  ;;  %v3491_v39 = vsel %vm16070_vm0, %v3489_v1, %v3490_v6  ;;  %v3492_v2 = vsel %vm16070_vm0, %v3490_v6, %v3489_v1 }
 0xda1   :  { %v3499_v43 = vmul.f32 %v3497_v32, %v12796_v63  ;;  %v3500_v33 = vmul.f32 %v3498_v42, %v12799_v36  ;;  %v3493_v51 = vmul.f32 %v3491_v39, %v12808_v22  ;;  %v3494_v54 = vmul.f32 %v3492_v2, %v12813_v19 }
 0xda2   :  { %v3485_v38 = vsel %vm16071_vm2, %v3483_v24, %v3484_v52  ;;  %v3486_v23 = vsel %vm16071_vm2, %v3484_v52, %v3483_v24  ;;  %v3477_v22 = vrot.slane %v3475_v57, 6 }
 0xda3   :  { %v3563_v10 = vpack.c.bf16 %v3500_v33, %v3499_v43  ;;  %v9732_v17 = vpack.i.bf16 %v3494_v54, %v3493_v51  ;;  %v3487_v1 = vmul.f32 %v3486_v23, %v12802_v40  ;;  %v3488_v63 = vmul.f32 %v3485_v38, %v12805_v11  ;;  %v10500_v40 = vld [vmem:[%s15994_s1 + $0x3a8] sm:$0xff]   ;;  %v10501_v38 = vld [vmem:[%s15994_s1 + $0x390] sm:$0xff]  }
 0xda4   :  { %v3478_v11 = vrot.slane %v3476_v3, 6  ;;  %v10499_v51 = vld [vmem:[%s15994_s1 + $0x388] sm:$0xff]   ;;  %v10502_v23 = vld [vmem:[%s15994_s1 + $0x3b0] sm:$0xff]  }
 0xda5   :  { %8921 = vmatmul.mubr.msk.bf16.vlgmr.msra.gmra.mrb[44].mxu0 %vm16069_vm8, %v3563_v10  ;;  %9733 = vrot.lane.b32.xlu0 %v9732_v17, %s10603_s26  ;;  %v9737_v36 = vpack.i.bf16 %v3488_v63, %v3487_v1  ;;  %v10503_v10 = vld [vmem:[%s15994_s1 + $0x398] sm:$0xff]   ;;  %v10505_v1 = vld [vmem:[%s15994_s1 + $0x3a0] sm:$0xff]  }
 0xda6   :  { %8944 = vmatprep.mubr.msk.bf16.mxu0 %vm10606_vm10, %v16098_v47  ;;  %8937 = vmatpush3.bf16.msra.mxu0 %v10500_v40  ;;  %v10504_v17 = vld [vmem:[%s15994_s1 + $0x3b8] sm:$0xff]   ;;  %v10506_v63 = vld [vmem:[%s15994_s1 + $0x3c0] sm:$0xff]  }
 0xda7   :  { %9738 = vrot.lane.b32.xlu1 %v9737_v36, %s10603_s26  ;;  %8938 = vmatprep.subr.bf16.mxu0 %v16098_v47  ;;  %v8380_v40 = vld [vmem:[%s15995_s2 + $0x7] ss:$0 sm:$0xff] }
 0xda9   :  { %4016 = vrot.lane.b32.xlu0 %v12730_v8, %s10600_s25  ;;  %v3479_v8 = vsel %vm16067_vm11, %v3477_v22, %v3478_v11 }
 0xdaa   :  { %v3482_v6 = vmul.f32 %v3479_v8, %v12849_v48  ;;  %8939 = vmatpush3.bf16.msra.mxu0 %v10502_v23 }
 0xdab   :  { %4018 = vrot.lane.b32.xlu1 %v12736_v58, %s10600_s25  ;;  %v3480_v58 = vsel %vm16067_vm11, %v3478_v11, %v3477_v22  ;;  %8940 = vmatprep.subr.bf16.mxu0 %v16098_v47 }
 0xdad   :  { %4014 = vrot.lane.b32.xlu0 %v12732_v35, %s10600_s25 }
 0xdae   :  { %8941 = vmatpush3.bf16.msra.mxu0 %v10504_v17 }
 0xdaf   :  { %4020 = vrot.lane.b32.xlu1 %v12741_v31, %s10600_s25  ;;  %v3481_v31 = vmul.f32 %v3480_v58, %v12846_v25  ;;  %8942 = vmatprep.subr.bf16.mxu0 %v16098_v47 }
 0xdb2   :  { %8943 = vmatpush3.bf16.msra.mxu0 %v10506_v63 }
 0xe17   :  { %v9734_v19 = vpop.permute.xlu0 %9733 }
 0xe18   :  { %v9736_v35 = vunpack.i.h.bf16 %v9734_v19  ;;  %v9735_v44 = vunpack.i.l.bf16 %v9734_v19 }
 0xe19   :  { %v9739_v52 = vpop.permute.xlu1 %9738 }
 0xe1a   :  { %v9741_v24 = vunpack.i.h.bf16 %v9739_v52  ;;  %v9740_v32 = vunpack.i.l.bf16 %v9739_v52  ;;  %v3519_v42 = vsel %vm16069_vm8, %v3475_v57, %v9735_v44  ;;  %v3520_v39 = vsel %vm16069_vm8, %v3476_v3, %v9736_v35 }
 0xe1b   :  { %v3562_v2 = vpack.c.bf16 %v3520_v39, %v3519_v42  ;;  %v13008_v42 = vmul.u32 2, %v11726_v4  ;;  %v8412_v39 = vadd.s32 4294967280, %v11726_v4 }
 0xe1c   :  { %v3517_v43 = vsel %vm16069_vm8, %v3481_v31, %v9740_v32  ;;  %v3518_v33 = vsel %vm16069_vm8, %v3482_v6, %v9741_v24 }
 0xe1d   :  { %v3561_v54 = vpack.c.bf16 %v3518_v33, %v3517_v43  ;;  %3724 = vmatprep.mubr.bf16.mxu1 %v3562_v2  ;;  %v3932_v2 = vmul.u32 2, %v8412_v39  ;;  %vm16063_vm12 = vcmp.eq.s32.totalorder %v11723_v0, %v13008_v42  ;;  %vm3929_vm13 = vcmp.eq.s32.totalorder %v11730_v26, %v13008_v42  ;;  %v10518_v39 = vld [vmem:[%s15994_s1 + $0x1e0] sm:$0xff]  }
 0xe1f   :  { %3725 = vmatmul.mubr.bf16.vlgmr.msra.gmra.mrb[36].mxu1 %v3561_v54  ;;  %v3933_v43 = vadd.s32 1, %v3932_v2  ;;  %v10519_v2 = vld [vmem:[%s15994_s1 + $0x228] sm:$0xff]  }
 0xe20   :  { %8925 = vmatpush3.bf16.msra.mxu1 %v10499_v51  ;;  %8932 = vmatprep.mubr.msk.bf16.mxu1 %vm10606_vm10, %v16098_v47  ;;  %vm16064_vm10 = vcmp.eq.s32.totalorder %v10657_v14, %v13008_v42 }
 0xe21   :  { %8926 = vmatprep.subr.bf16.mxu1 %v16098_v47  ;;  %vm3934_vm3 = vcmp.eq.s32.totalorder %v10657_v14, %v3933_v43  ;;  %vm3935_vm5 = vcmp.eq.s32.totalorder %v11723_v0, %v3933_v43  ;;  %vm3936_vm9 = vcmp.eq.s32.totalorder %v11730_v26, %v3933_v43  ;;  %vm3937_vm6 = vcmp.eq.s32.totalorder %v11733_v34, %v3933_v43  ;;  %v10520_v43 = vld [vmem:[%s15994_s1 + $0x1e8] sm:$0xff]  }
 0xe22   :  { %vm3938_vm7 = vmor %vm16064_vm10, %vm3934_vm3  ;;  %vm3930_vm3 = vcmp.eq.s32.totalorder %v11733_v34, %v13008_v42 }
 0xe23   :  { %vm3939_vm15 = vmor %vm16063_vm12, %vm3935_vm5  ;;  %v3942_v33 = vsel %vm3938_vm7, 1.0, %v16098_v47 }
 0xe24   :  { %8927 = vmatpush3.bf16.msra.mxu1 %v10501_v38  ;;  %v3943_v51 = vsel %vm3939_vm15, 1.0, %v16098_v47  ;;  %vm3940_vm5 = vmor %vm3929_vm13, %vm3936_vm9 }
 0xe25   :  { %8928 = vmatprep.subr.bf16.mxu1 %v16098_v47  ;;  %v3946_v54 = vpack.c.bf16 %v3943_v51, %v3942_v33  ;;  %vm3941_vm7 = vmor %vm3930_vm3, %vm3937_vm6  ;;  %v10521_v33 = vld [vmem:[%s15994_s1 + $0x230] sm:$0xff]  }
 0xe26   :  { %vm16184_vm9 = vmmov %vm16183_vm4  ;;  %v10522_v51 = vld [vmem:[%s15994_s1 + $0x1f0] sm:$0xff]  }
 0xe27   :  { %vm16185_vm6 = vmmov %vm16183_vm4 }
 0xe28   :  { %8929 = vmatpush3.bf16.msra.mxu1 %v10503_v10  ;;  %vm16186_vm15 = vmmov %vm16183_vm4 }
 0xe29   :  { %8930 = vmatprep.subr.bf16.mxu1 %v16098_v47 }
 0xe2c   :  { %8931 = vmatpush3.bf16.msra.mxu1 %v10505_v1 }
 0xe78   :  { %v3767_v25 = vpop.f32.mrb[44].mxu0 }
 0xe79   :  { %v8922_v48 = vpop.f32.mrb[45].mxu0 }
 0xe7a   :  { %v3770_v57 = vpop.f32.mrb[46].mxu0 }
 0xe7b   :  { %v8923_v3 = vpop.f32.mrb[47].mxu0 }
 0xef2   :  { %v8637_v36 = vpop.f32.mrb[36].mxu1 }
 0xef3   :  { %v8638_v11 = vpop.f32.mrb[37].mxu1 }
 0xef4   :  { %v8639_v22 = vadd.f32 %v8638_v11, %v8637_v36  ;;  %v8640_v8 = vpop.f32.mrb[38].mxu1  ;;  %v3944_v36 = vsel %vm3940_vm5, 1.0, %v16098_v47  ;;  %v10507_v11 = vld [vmem:[%s15994_s1 + $0x248] sm:$0xff]   ;;  %vm16187_vm5 = vmmov %vm16183_vm4 }
 0xef5   :  { %v8641_v58 = vpop.f32.mrb[39].mxu1 }
 0xef6   :  { %v3727_v19 = vadd.f32 %v8639_v22, %v8380_v40  ;;  %v8642_v35 = vadd.f32 %v8641_v58, %v8640_v8  ;;  %v10508_v8 = vld [vmem:[%s15994_s1 + $0x250] sm:$0xff]   ;;  %v10509_v58 = vld [vmem:[%s15994_s1 + $0x258] sm:$0xff]  }
 0xef8   :  { %v3768_v44 = vadd.f32 %v3767_v25, %v3727_v19  ;;  %v3730_v52 = vadd.f32 %v8642_v35, %v8380_v40  ;;  %v3945_v40 = vsel %vm3941_vm7, 1.0, %v16098_v47  ;;  %v10510_v19 = vld [vmem:[%s15994_s1 + $0x260] sm:$0xff]   ;;  %v10511_v35 = vld [vmem:[%s15994_s1 + $0x208] sm:$0xff]   ;;  %vm16188_vm7 = vmmov %vm16183_vm4 }
 0xef9   :  { %v3947_v22 = vpack.c.bf16 %v3945_v40, %v3944_v36  ;;  %8662 = vmatprep.subr.bf16.mxu0 %v10511_v35 }
 0xefa   :  { %v3771_v31 = vadd.f32 %v3770_v57, %v3730_v52  ;;  %v3774_v6 = vmax.f32 %v3768_v44, 0.0  ;;  %v10512_v44 = vld [vmem:[%s15994_s1 + $0x1c8] sm:$0xff]   ;;  %v10513_v52 = vld [vmem:[%s15994_s1 + $0x210] sm:$0xff]  }
 0xefc   :  { %v3775_v24 = vmax.f32 %v3771_v31, 0.0  ;;  %v10514_v31 = vld [vmem:[%s15994_s1 + $0x1d0] sm:$0xff]  }
 0xefe   :  { %v3776_v32 = vpack.c.bf16 %v3775_v24, %v3774_v6  ;;  %v10515_v6 = vld [vmem:[%s15994_s1 + $0x218] sm:$0xff]  }
 0xeff   :  { %v10516_v24 = vld [vmem:[%s15994_s1 + $0x1d8] sm:$0xff]  }
 0xf00   :  { %8933 = vmatmul.mubr.msk.bf16.vlgmr.msra.gmra.mrb[40].mxu1 %vm16069_vm8, %v3776_v32  ;;  %8945 = vmatmul.mubr.msk.bf16.vlgmr.msra.gmra.mrb[48].mxu0 %vm16069_vm8, %v3776_v32  ;;  %v10517_v32 = vld [vmem:[%s15994_s1 + $0x220] sm:$0xff]  }
 0xf01   :  { %8952 = vmatprep.mubr.msk.bf16.mxu1 %vm16183_vm4, %v3946_v54  ;;  %8663 = vmatpush3.bf16.msra.mxu0 %v10512_v44  ;;  %v10523_v54 = vld [vmem:[%s15994_s1 + $0x238] sm:$0xff]  }
 0xf02   :  { %8664 = vmatprep.subr.bf16.mxu0 %v10513_v52 }
 0xf05   :  { %8665 = vmatpush3.bf16.msra.mxu0 %v10514_v31  ;;  %v10526_v31 = vld [vmem:[%s15994_s1 + $0x200] sm:$0xff]  }
 0xf06   :  { %8666 = vmatprep.subr.bf16.mxu0 %v10515_v6 }
 0xf09   :  { %8667 = vmatpush3.bf16.msra.mxu0 %v10516_v24 }
 0xf0a   :  { %8668 = vmatprep.subr.bf16.mxu0 %v10517_v32 }
 0xf0d   :  { %8669 = vmatpush3.bf16.msra.mxu0 %v10518_v39 }
 0xf0e   :  { %8670 = vmatprep.subr.bf16.mxu0 %v10519_v2 }
 0xf11   :  { %8671 = vmatpush3.bf16.msra.mxu0 %v10520_v43 }
 0xf12   :  { %8672 = vmatprep.subr.bf16.mxu0 %v10521_v33 }
 0xf15   :  { %8673 = vmatpush3.bf16.msra.mxu0 %v10522_v51 }
 0xf16   :  { %8674 = vmatprep.subr.bf16.mxu0 %v10523_v54 }
 0xfd3   :  { %v3846_v25 = vpop.f32.mrb[40].mxu1  ;;  %v3919_v48 = vpop.f32.mrb[48].mxu0 }
 0xfd4   :  { %v8934_v57 = vpop.f32.mrb[41].mxu1  ;;  %v8946_v3 = vpop.f32.mrb[49].mxu0 }
 0xfd5   :  { %v3849_v38 = vpop.f32.mrb[42].mxu1  ;;  %v3922_v23 = vpop.f32.mrb[50].mxu0  ;;  %v8413_v57 = vld [vmem:[%s15995_s2 + $0xf] ss:$0 sm:$0xff] }
 0xfd6   :  { %v3948_v10 = vpack.c.bf16 %v3849_v38, %v3846_v25  ;;  %v3949_v17 = vpack.c.bf16 %v3922_v23, %v3919_v48  ;;  %v8935_v1 = vpop.f32.mrb[43].mxu1  ;;  %v8947_v63 = vpop.f32.mrb[51].mxu0 }
 0xfd7   :  { %v4017_v25 = vpop.permute.xlu0 %4016  ;;  %v4019_v48 = vpop.permute.xlu1 %4018 }
 0xfd8   :  { %8948 = vmatprep.subr.bf16.mxu1 %v3948_v10 }
 0xfd9   :  { %8949 = vmatpush3.bf16.msra.mxu1 %v3948_v10 }
 0xfda   :  { %8950 = vmatprep.subr.bf16.mxu1 %v3949_v17 }
 0xfdb   :  { %v4015_v36 = vpop.permute.xlu0 %4014  ;;  %v4021_v40 = vpop.permute.xlu1 %4020 }
 0xfdd   :  { %8951 = vmatpush3.bf16.msra.mxu1 %v3949_v17 }
 0xfde   :  { %8956 = vmatprep.subr.bf16.mxu1 %v10507_v11 }
 0xfe0   :  { %8953 = vmatmul.mubr.msk.bf16.vlgmr.msra.gmra.mrb[44].mxu1 %vm16184_vm9, %v3947_v22  ;;  %v10525_v22 = vld [vmem:[%s15994_s1 + $0x240] sm:$0xff]   ;;  %vm16189_vm9 = vmmov %vm16183_vm4 }
 0xfe1   :  { %8957 = vmatpush3.bf16.msra.mxu1 %v10507_v11  ;;  %v10524_v11 = vld [vmem:[%s15994_s1 + $0x1f8] sm:$0xff]  }
 0xfe2   :  { %8958 = vmatprep.subr.bf16.mxu1 %v10508_v8  ;;  %8675 = vmatpush3.bf16.msra.mxu0 %v10524_v11 }
 0xfe3   :  { %8676 = vmatprep.subr.bf16.mxu0 %v10525_v22 }
 0xfe5   :  { %8959 = vmatpush3.bf16.msra.mxu1 %v10508_v8 }
 0xfe6   :  { %8960 = vmatprep.subr.bf16.mxu1 %v10509_v58  ;;  %8677 = vmatpush3.bf16.msra.mxu0 %v10526_v31 }
 0xfe9   :  { %8961 = vmatpush3.bf16.msra.mxu1 %v10509_v58 }
 0xfea   :  { %8962 = vmatprep.subr.bf16.mxu1 %v10510_v19 }
 0xfed   :  { %8963 = vmatpush3.bf16.msra.mxu1 %v10510_v19 }
 0xfee   :  { %4600 = vmatprep.subr.bf16.mxu1 %v16179_v60 }
0x10b3   :  { %v8954_v3 = vpop.f32.mrb[44].mxu1 }
0x10b4   :  { %v4004_v38 = vadd.f32 %v8954_v3, %v8413_v57  ;;  %v3995_v23 = vpop.f32.mrb[45].mxu1 }
0x10b5   :  { %v3996_v10 = vadd.f32 %v8413_v57, %v3995_v23  ;;  %v8955_v17 = vpop.f32.mrb[46].mxu1 }
0x10b6   :  { %v4007_v1 = vadd.f32 %v8955_v17, %v8413_v57  ;;  %v3998_v63 = vpop.f32.mrb[47].mxu1  ;;  %v13103_v8 = vsel %vm16185_vm6, %v4004_v38, %v4019_v48  ;;  %vm16190_vm6 = vmmov %vm16183_vm4 }
0x10b7   :  { %v13106_v58 = vsel %vm16186_vm15, %v3996_v10, %v4015_v36  ;;  %v3999_v35 = vadd.f32 %v8413_v57, %v3998_v63  ;;  %v4056_v32 = vrot.slane %v13103_v8, 1  ;;  %v4068_v2 = vrot.slane %v13103_v8, 2  ;;  %vm16191_vm15 = vmmov %vm16183_vm4 }
0x10b8   :  { %v13109_v19 = vsel %vm16183_vm4, %v4007_v1, %v4021_v40  ;;  %v4042_v44 = vrot.slane %v13106_v58, 7  ;;  %v4066_v52 = vrot.slane %v13106_v58, 2  ;;  %v4054_v54 = vrot.slane %v13106_v58, 1 }
0x10b9   :  { %v4045_v6 = vrot.slane %v13109_v19, 7  ;;  %v4069_v24 = vrot.slane %v13109_v19, 2  ;;  %v13120_v39 = vsel %vm16187_vm5, %v3999_v35, %v4017_v25  ;;  %v4057_v48 = vrot.slane %v13109_v19, 1  ;;  %vm16192_vm5 = vmmov %vm16183_vm4 }
0x10ba   :  { %v4043_v43 = vrot.slane %v13120_v39, 7  ;;  %v4055_v33 = vrot.slane %v13120_v39, 1  ;;  %v4067_v51 = vrot.slane %v13120_v39, 2  ;;  %v4044_v25 = vrot.slane %v13103_v8, 7 }
0x10bb   :  { %v4049_v57 = vsel %vm16071_vm2, %v4045_v6, %v4042_v44  ;;  %v4073_v3 = vsel %vm16068_vm1, %v4069_v24, %v4066_v52  ;;  %v4070_v63 = vsel %vm16068_vm1, %v4068_v2, %v4069_v24  ;;  %v4061_v24 = vsel %vm16070_vm0, %v4057_v48, %v4054_v54 }
0x10bc   :  { %v4048_v38 = vsel %vm16071_vm2, %v4042_v44, %v4043_v43  ;;  %v4050_v23 = vmul.f32 %v4049_v57, %v12510_v15  ;;  %v4071_v10 = vsel %vm16068_vm1, %v4067_v51, %v4068_v2  ;;  %v4059_v1 = vsel %vm16070_vm0, %v4055_v33, %v4056_v32 }
0x10bd   :  { %v4075_v17 = vmul.f32 %v4071_v10, %v12519_v9  ;;  %v4077_v36 = vmul.f32 %v4073_v3, %v12528_v20  ;;  %v4072_v11 = vsel %vm16068_vm1, %v4066_v52, %v4067_v51  ;;  %v4063_v22 = vmul.f32 %v4059_v1, %v12513_v49 }
0x10be   :  { %v9747_v40 = vpack.i.bf16 %v4048_v38, %v4050_v23  ;;  %v4047_v35 = vsel %vm16071_vm2, %v4043_v43, %v4044_v25  ;;  %v4060_v31 = vsel %vm16070_vm0, %v4054_v54, %v4055_v33  ;;  %v4065_v52 = vmul.f32 %v4061_v24, %v12505_v5 }
0x10bf   :  { %v4160_v44 = vpack.c.bf16 %v4075_v17, %v4072_v11  ;;  %v4052_v57 = vmul.f32 %v4047_v35, %v12516_v61  ;;  %v9742_v2 = vpack.i.bf16 %v4063_v22, %v4060_v31  ;;  %v4163_v3 = vpack.c.bf16 %v4077_v36, %v4070_v63 }
0x10c0   :  { %9748 = vrot.lane.b32.xlu1 %v9747_v40, %s10603_s26  ;;  %v4046_v43 = vsel %vm16071_vm2, %v4044_v25, %v4045_v6  ;;  %v4058_v51 = vsel %vm16070_vm0, %v4056_v32, %v4057_v48  ;;  %v4030_v38 = vrot.slane %v13106_v58, 6  ;;  %v4033_v23 = vrot.slane %v13109_v19, 6 }
0x10c1   :  { %8964 = vmatprep.mubr.msk.bf16.mxu1 %vm16069_vm8, %v4160_v44  ;;  %9743 = vrot.lane.b32.xlu0 %v9742_v2, %s10603_s26  ;;  %v9757_v33 = vpack.i.bf16 %v4046_v43, %v4052_v57  ;;  %v9752_v54 = vpack.i.bf16 %v4065_v52, %v4058_v51  ;;  %v4031_v10 = vrot.slane %v13120_v39, 6  ;;  %v4032_v35 = vrot.slane %v13103_v8, 6 }
0x10c2   :  { %8965 = vmatmul.mubr.msk.bf16.vlgmr.msra.gmra.mrb[48].mxu1 %vm16069_vm8, %v4163_v3  ;;  %v4037_v6 = vsel %vm16067_vm11, %v4033_v23, %v4030_v38 }
0x10c3   :  { %v4038_v63 = vmul.f32 %v4037_v6, %v12590_v7  ;;  %v4036_v48 = vsel %vm16067_vm11, %v4030_v38, %v4031_v10 }
0x10c4   :  { %9758 = vrot.lane.b32.xlu1 %v9757_v33, %s10603_s26  ;;  %v4035_v33 = vsel %vm16067_vm11, %v4031_v10, %v4032_v35 }
0x10c5   :  { %9753 = vrot.lane.b32.xlu0 %v9752_v54, %s10603_s26 }
0x1132   :  { %v9749_v25 = vpop.permute.xlu1 %9748 }
0x1133   :  { %v9751_v17 = vunpack.i.h.bf16 %v9749_v25  ;;  %v9750_v1 = vunpack.i.l.bf16 %v9749_v25  ;;  %v9744_v32 = vpop.permute.xlu0 %9743  ;;  %v4034_v25 = vsel %vm16067_vm11, %v4032_v35, %v4033_v23  ;;  %v10528_v23 = vld [vmem:[%s15994_s1 + $0x270] sm:$0xff]   ;;  %v8416_v35 = vld [vmem:[%s15995_s2 + $0x8] ss:$0 sm:$0xff] }
0x1134   :  { %v9746_v36 = vunpack.i.h.bf16 %v9744_v32  ;;  %v9745_v40 = vunpack.i.l.bf16 %v9744_v32 }
0x1135   :  { %v4110_v11 = vsel %vm16069_vm8, %v4038_v63, %v9750_v1  ;;  %v4111_v22 = vsel %vm16069_vm8, %v4036_v48, %v9751_v17 }
0x1136   :  { %v9759_v44 = vpop.permute.xlu1 %9758  ;;  %v4114_v31 = vsel %vm16069_vm8, %v13106_v58, %v9745_v40  ;;  %v4115_v57 = vsel %vm16069_vm8, %v13120_v39, %v9746_v36  ;;  %v4158_v43 = vpack.c.bf16 %v4111_v22, %v4110_v11  ;;  %v4040_v39 = vmul.f32 %v4035_v33, %v12593_v29  ;;  %v10529_v36 = vld [vmem:[%s15994_s1 + $0x278] sm:$0xff]   ;;  %v10530_v40 = vld [vmem:[%s15994_s1 + $0x280] sm:$0xff]   ;;  %v10531_v11 = vld [vmem:[%s15994_s1 + $0x288] sm:$0xff]  }
0x1137   :  { %v9754_v24 = vpop.permute.xlu0 %9753  ;;  %v4159_v2 = vpack.c.bf16 %v4115_v57, %v4114_v31  ;;  %v9761_v51 = vunpack.i.h.bf16 %v9759_v44  ;;  %v9760_v54 = vunpack.i.l.bf16 %v9759_v44  ;;  %v10532_v31 = vld [vmem:[%s15994_s1 + $0x290] sm:$0xff]  }
0x1138   :  { %v9756_v3 = vunpack.i.h.bf16 %v9754_v24  ;;  %v9755_v52 = vunpack.i.l.bf16 %v9754_v24 }
0x1139   :  { %4327 = vmatprep.mubr.bf16.mxu0 %v4159_v2  ;;  %v4112_v17 = vsel %vm16069_vm8, %v4040_v39, %v9760_v54  ;;  %v4113_v10 = vsel %vm16069_vm8, %v4034_v25, %v9761_v51 }
0x113a   :  { %4328 = vmatmul.mubr.bf16.vlgmr.msra.gmra.mrb[52].mxu0 %v4158_v43  ;;  %v4116_v38 = vsel %vm16069_vm8, %v13103_v8, %v9755_v52  ;;  %v4117_v58 = vsel %vm16069_vm8, %v13109_v19, %v9756_v3  ;;  %v4161_v1 = vpack.c.bf16 %v4113_v10, %v4112_v17  ;;  %v10527_v19 = vld [vmem:[%s15994_s1 + $0x268] sm:$0xff]   ;;  %v10533_v3 = vld [vmem:[%s15994_s1 + $0x298] sm:$0xff]  }
0x113b   :  { %v4162_v6 = vpack.c.bf16 %v4117_v58, %v4116_v38  ;;  %4601 = vmatpush1.bf16.msra.mxu1 %v10527_v19 }
0x113c   :  { %4602 = vmatprep.subr.bf16.mxu1 %v16179_v60 }
0x113d   :  { %4335 = vmatprep.mubr.bf16.mxu0 %v4162_v6 }
0x113f   :  { %4603 = vmatpush1.bf16.msra.mxu1 %v10528_v23 }
0x1140   :  { %4604 = vmatprep.subr.bf16.mxu1 %v16179_v60 }
0x1142   :  { %4336 = vmatmul.mubr.bf16.gmra.mrb[56].mxu0 %v4161_v1 }
0x1143   :  { %4605 = vmatpush1.bf16.msra.mxu1 %v10529_v36 }
0x1144   :  { %4606 = vmatprep.subr.bf16.mxu1 %v16179_v60 }
0x1147   :  { %4607 = vmatpush1.bf16.msra.mxu1 %v10530_v40 }
0x1148   :  { %4608 = vmatprep.subr.bf16.mxu1 %v16179_v60 }
0x114b   :  { %4609 = vmatpush1.bf16.msra.mxu1 %v10531_v11 }
0x114c   :  { %4610 = vmatprep.subr.bf16.mxu1 %v16179_v60 }
0x114f   :  { %4611 = vmatpush1.bf16.msra.mxu1 %v10532_v31 }
0x1150   :  { %4612 = vmatprep.subr.bf16.mxu1 %v16179_v60 }
0x1153   :  { %4613 = vmatpush1.bf16.msra.mxu1 %v10533_v3 }
0x1154   :  { %4614 = vmatprep.subr.bf16.mxu1 %v16179_v60 }
0x1195   :  { %v8966_v63 = vpop.f32.mrb[48].mxu1 }
0x1196   :  { %v4378_v32 = vpop.f32.mrb[49].mxu1 }
0x1197   :  { %v8967_v48 = vpop.f32.mrb[50].mxu1 }
0x1198   :  { %v4381_v8 = vpop.f32.mrb[51].mxu1 }
0x120d   :  { %v8678_v22 = vpop.f32.mrb[52].mxu0 }
0x120e   :  { %v8679_v44 = vpop.f32.mrb[53].mxu0 }
0x120f   :  { %v8680_v57 = vadd.f32 %v8679_v44, %v8678_v22  ;;  %v8681_v24 = vpop.f32.mrb[54].mxu0 }
0x1210   :  { %v8682_v2 = vpop.f32.mrb[55].mxu0 }
0x1211   :  { %v4330_v52 = vadd.f32 %v8680_v57, %v8416_v35  ;;  %v8683_v43 = vadd.f32 %v8682_v2, %v8681_v24  ;;  %v10534_v2 = vld [vmem:[%s15994_s1 + $0x2a0] sm:$0xff]  }
0x1212   :  { %4615 = vmatpush1.bf16.msra.mxu1 %v10534_v2 }
0x1213   :  { %v4379_v33 = vadd.f32 %v4378_v32, %v4330_v52  ;;  %v4333_v51 = vadd.f32 %v8683_v43, %v8416_v35  ;;  %4616 = vmatprep.subr.bf16.mxu1 %v16179_v60 }
0x1215   :  { %v13221_v54 = vmax.f32 %v4379_v33, 0.0  ;;  %v4382_v38 = vadd.f32 %v4381_v8, %v4333_v51  ;;  %v8684_v58 = vpop.f32.mrb[56].mxu0  ;;  %v10535_v51 = vld [vmem:[%s15994_s1 + $0x2a8] sm:$0xff]  }
0x1216   :  { %v8685_v6 = vpop.f32.mrb[57].mxu0  ;;  %4617 = vmatpush1.bf16.msra.mxu1 %v10535_v51 }
0x1217   :  { %v4394_v39 = vmax.f32 %v4382_v38, 0.0  ;;  %v8686_v25 = vadd.f32 %v8685_v6, %v8684_v58  ;;  %v8687_v17 = vpop.f32.mrb[58].mxu0  ;;  %v4433_v1 = vrot.slane %v13221_v54, 2  ;;  %v4409_v19 = vrot.slane %v13221_v54, 7  ;;  %4618 = vmatprep.subr.bf16.mxu1 %v16179_v60 }
0x1218   :  { %v8688_v10 = vpop.f32.mrb[59].mxu0  ;;  %v4397_v23 = vrot.slane %v13221_v54, 6  ;;  %v4421_v44 = vrot.slane %v13221_v54, 1 }
0x1219   :  { %v4398_v32 = vrot.slane %v4394_v39, 6  ;;  %v4338_v36 = vadd.f32 %v8686_v25, %v8416_v35  ;;  %v8689_v40 = vadd.f32 %v8688_v10, %v8687_v17  ;;  %v9762_v11 = vpack.i.bf16 %v4394_v39, %v13221_v54 }
0x121a   :  { %v4410_v8 = vrot.slane %v4394_v39, 7  ;;  %v4434_v22 = vrot.slane %v4394_v39, 2  ;;  %v4422_v31 = vrot.slane %v4394_v39, 1 }
0x121b   :  { %v4387_v57 = vadd.f32 %v8966_v63, %v4338_v36  ;;  %v4341_v24 = vadd.f32 %v8689_v40, %v8416_v35  ;;  %9763 = vrot.lane.b32.xlu1 %v9762_v11, %s10603_s26  ;;  %v13235_v3 = vsel %vm16067_vm11, %v4397_v23, %v4398_v32  ;;  %v10536_v40 = vld [vmem:[%s15994_s1 + $0x2b0] sm:$0xff]  }
0x121c   :  { %v4439_v52 = vsel %vm16068_vm1, %v4433_v1, %v4434_v22  ;;  %v4415_v43 = vsel %vm16071_vm2, %v4409_v19, %v4410_v8  ;;  %v4427_v63 = vsel %vm16070_vm0, %v4421_v44, %v4422_v31  ;;  %4619 = vmatpush1.bf16.msra.mxu1 %v10536_v40 }
0x121d   :  { %v4395_v35 = vmax.f32 %v4387_v57, 0.0  ;;  %v4390_v33 = vadd.f32 %v8967_v48, %v4341_v24  ;;  %5273 = vmatprep.subr.bf16.mxu1 %v16179_v60 }
0x121f   :  { %v4396_v38 = vmax.f32 %v4390_v33, 0.0  ;;  %v4411_v58 = vrot.slane %v4395_v35, 7  ;;  %v4435_v6 = vrot.slane %v4395_v35, 2  ;;  %v4423_v39 = vrot.slane %v4395_v35, 1 }
0x1220   :  { %v4399_v25 = vrot.slane %v4395_v35, 6 }
0x1221   :  { %v4412_v17 = vrot.slane %v4396_v38, 7  ;;  %v4414_v10 = vsel %vm16071_vm2, %v4410_v8, %v4411_v58  ;;  %v4438_v36 = vsel %vm16068_vm1, %v4434_v22, %v4435_v6  ;;  %v4424_v48 = vrot.slane %v4396_v38, 1 }
0x1222   :  { %v4419_v11 = vmul.f32 %v4414_v10, %v12516_v61  ;;  %v4442_v57 = vmul.f32 %v4438_v36, %v12519_v9  ;;  %v4426_v24 = vsel %vm16070_vm0, %v4422_v31, %v4423_v39  ;;  %v9782_v2 = vpack.i.bf16 %v4396_v38, %v4395_v35 }
0x1223   :  { %v4413_v8 = vsel %vm16071_vm2, %v4411_v58, %v4412_v17  ;;  %v4416_v22 = vsel %vm16071_vm2, %v4412_v17, %v4409_v19  ;;  %v4425_v33 = vsel %vm16070_vm0, %v4423_v39, %v4424_v48  ;;  %v4428_v61 = vsel %vm16070_vm0, %v4424_v48, %v4421_v44 }
0x1224   :  { %v9777_v51 = vpack.i.bf16 %v4413_v8, %v4419_v11  ;;  %v4526_v9 = vpack.c.bf16 %v4442_v57, %v4439_v52  ;;  %v4417_v10 = vmul.f32 %v4416_v22, %v12510_v15  ;;  %v4432_v31 = vmul.f32 %v4428_v61, %v12505_v5 }
0x1225   :  { %v4430_v35 = vmul.f32 %v4426_v24, %v12513_v49  ;;  %v4400_v36 = vrot.slane %v4396_v38, 6  ;;  %v4402_v58 = vsel %vm16067_vm11, %v4398_v32, %v4399_v25  ;;  %v4436_v19 = vrot.slane %v4396_v38, 2 }
0x1226   :  { %9778 = vrot.lane.b32.xlu1 %v9777_v51, %s10600_s25  ;;  %8450 = vmatprep.mubr.msk.bf16.mxu1 %vm16188_vm7, %v4526_v9  ;;  %v9767_v39 = vpack.i.bf16 %v4415_v43, %v4417_v10  ;;  %v9787_v44 = vpack.i.bf16 %v4432_v31, %v4425_v33  ;;  %v4407_v57 = vmul.f32 %v4402_v58, %v12593_v29  ;;  %v10538_v58 = vld [vmem:[%s15994_s1 + $0x3d0] sm:$0xff]   ;;  %vm16193_vm7 = vmmov %vm16183_vm4 }
0x1227   :  { %v9772_v17 = vpack.i.bf16 %v4430_v35, %v4427_v63  ;;  %v4401_v15 = vsel %vm16067_vm11, %v4399_v25, %v4400_v36  ;;  %v4404_v5 = vsel %vm16067_vm11, %v4400_v36, %v4397_v23  ;;  %v4437_v49 = vsel %vm16068_vm1, %v4435_v6, %v4436_v19  ;;  %v10537_v36 = vld [vmem:[%s15994_s1 + $0x3c8] sm:$0xff]  }
0x1228   :  { %9768 = vrot.lane.b32.xlu0 %v9767_v39, %s10600_s25  ;;  %v4440_v32 = vsel %vm16068_vm1, %v4436_v19, %v4433_v1  ;;  %v4405_v1 = vmul.f32 %v4404_v5, %v12590_v7  ;;  %8968 = vmatprep.subr.bf16.mxu0 %v10537_v36  ;;  %v10539_v19 = vld [vmem:[%s15994_s1 + $0x3d8] sm:$0xff]   ;;  %v8439_v39 = vld [vmem:[%s15995_s2 + $0x9] ss:$0 sm:$0xff] }
0x1229   :  { %v4444_v52 = vmul.f32 %v4440_v32, %v12528_v20  ;;  %8969 = vmatpush3.bf16.msra.mxu0 %v10537_v36 }
0x122a   :  { %9788 = vrot.lane.b32.xlu1 %v9787_v44, %s10605_s18  ;;  %8970 = vmatprep.subr.bf16.mxu0 %v10538_v58 }
0x122b   :  { %v4528_v43 = vpack.c.bf16 %v4444_v52, %v4437_v49 }
0x122c   :  { %9773 = vrot.lane.b32.xlu0 %v9772_v17, %s10605_s18 }
0x122d   :  { %8971 = vmatpush3.bf16.msra.mxu0 %v10538_v58 }
0x122e   :  { %4934 = vrot.lane.b32.xlu1 %v12460_v41, %s10598_s23  ;;  %8976 = vmatprep.subr.bf16.mxu0 %v10539_v19 }
0x1230   :  { %9783 = vrot.lane.b32.xlu0 %v9782_v2, %s10603_s26 }
0x1232   :  { %4924 = vrot.lane.b32.xlu1 %v12438_v30, %s10598_s23 }
0x1234   :  { %4920 = vrot.lane.b32.xlu0 %v12440_v56, %s10598_s23 }
0x1236   :  { %4928 = vrot.lane.b32.xlu1 %v12458_v16, %s10598_s23 }
0x1238   :  { %4922 = vrot.lane.b32.xlu0 %v12442_v12, %s10598_s23 }
0x123a   :  { %4932 = vrot.lane.b32.xlu1 %v12456_v50, %s10598_s23 }
0x123c   :  { %4926 = vrot.lane.b32.xlu0 %v12444_v53, %s10598_s23 }
0x1240   :  { %4930 = vrot.lane.b32.xlu0 %v12463_v46, %s10598_s23 }
0x128d   :  { %v9764_v41 = vpop.permute.xlu1 %9763 }
0x128e   :  { %v9766_v23 = vunpack.i.h.bf16 %v9764_v41  ;;  %v9765_v50 = vunpack.i.l.bf16 %v9764_v41 }
0x1298   :  { %v9779_v20 = vpop.permute.xlu1 %9778 }
0x1299   :  { %v9781_v6 = vunpack.i.h.bf16 %v9779_v20  ;;  %v9780_v25 = vunpack.i.l.bf16 %v9779_v20 }
0x129a   :  { %v9769_v30 = vpop.permute.xlu0 %9768 }
0x129b   :  { %v9771_v54 = vunpack.i.h.bf16 %v9769_v30  ;;  %v9770_v56 = vunpack.i.l.bf16 %v9769_v30  ;;  %v4496_v22 = vsel %vm16191_vm15, %v4401_v15, %v9781_v6  ;;  %v4495_v33 = vsel %vm16183_vm4, %v4407_v57, %v9780_v25  ;;  %vm16196_vm15 = vmmov %vm16183_vm4 }
0x129c   :  { %v9789_v40 = vpop.permute.xlu1 %9788 }
0x129d   :  { %v4493_v16 = vsel %vm16189_vm9, %v4405_v1, %v9770_v56  ;;  %v4494_v12 = vsel %vm16190_vm6, %v13235_v3, %v9771_v54  ;;  %v9791_v61 = vunpack.i.h.bf16 %v9789_v40  ;;  %v9790_v51 = vunpack.i.l.bf16 %v9789_v40  ;;  %vm16194_vm9 = vmmov %vm16183_vm4 }
0x129e   :  { %v9774_v63 = vpop.permute.xlu0 %9773  ;;  %v4497_v46 = vsel %vm16069_vm8, %v4493_v16, %v9765_v50  ;;  %v4498_v48 = vsel %vm16069_vm8, %v4494_v12, %v9766_v23  ;;  %vm16195_vm6 = vmmov %vm16183_vm4 }
0x129f   :  { %v9776_v38 = vunpack.i.h.bf16 %v9774_v63  ;;  %v9775_v53 = vunpack.i.l.bf16 %v9774_v63  ;;  %v10540_v63 = vld [vmem:[%s15994_s1 + $0x3e0] sm:$0xff]  }
0x12a1   :  { %v4501_v11 = vsel %vm16065_vm14, %v4497_v46, %v9775_v53  ;;  %v4502_v7 = vsel %vm16065_vm14, %v4498_v48, %v9776_v38  ;;  %v8460_v38 = vadd.s32 4294967264, %v11726_v4 }
0x12a2   :  { %v9784_v24 = vpop.permute.xlu0 %9783  ;;  %v4525_v3 = vpack.c.bf16 %v4502_v7, %v4501_v11 }
0x12a3   :  { %v9786_v2 = vunpack.i.h.bf16 %v9784_v24  ;;  %v9785_v8 = vunpack.i.l.bf16 %v9784_v24  ;;  %v4796_v53 = vmul.u32 2, %v8460_v38 }
0x12a4   :  { %4633 = vmatmul.mubr.bf16.vlgmr.msra.gmra.mrb[52].mxu1 %v4525_v3 }
0x12a5   :  { %8451 = vmatprep.mubr.msk.bf16.mxu1 %vm16192_vm5, %v4528_v43  ;;  %v4499_v9 = vsel %vm16069_vm8, %v4495_v33, %v9785_v8  ;;  %v4500_v10 = vsel %vm16069_vm8, %v4496_v22, %v9786_v2  ;;  %v4797_v6 = vadd.s32 1, %v4796_v53 }
0x12a6   :  { %v4503_v31 = vsel %vm16065_vm14, %v4499_v9, %v9790_v51  ;;  %v4504_v29 = vsel %vm16065_vm14, %v4500_v10, %v9791_v61 }
0x12a7   :  { %v4527_v35 = vpack.c.bf16 %v4504_v29, %v4503_v31  ;;  %vm4798_vm4 = vcmp.eq.s32.totalorder %v10657_v14, %v4797_v6  ;;  %vm4799_vm5 = vcmp.eq.s32.totalorder %v11723_v0, %v4797_v6 }
0x12ac   :  { %4641 = vmatmul.mubr.bf16.gmra.mrb[56].mxu1 %v4527_v35 }
0x1377   :  { %v4634_v44 = vpop.f32.mrb[52].mxu1 }
0x1378   :  { %v4635_v17 = vadd.f32 %v8439_v39, %v4634_v44  ;;  %v4636_v15 = vpop.f32.mrb[53].mxu1  ;;  %v10541_v44 = vld [vmem:[%s15994_s1 + $0x2b8] sm:$0xff]  }
0x1379   :  { %v4637_v5 = vpop.f32.mrb[54].mxu1  ;;  %5274 = vmatpush1.bf16.msra.mxu1 %v10541_v44  ;;  %v10543_v15 = vld [vmem:[%s15994_s1 + $0x2c8] sm:$0xff]  }
0x137a   :  { %v4638_v49 = vadd.f32 %v8439_v39, %v4637_v5  ;;  %v4639_v32 = vpop.f32.mrb[55].mxu1  ;;  %v4649_v52 = vmax.f32 %v4635_v17, 0.0  ;;  %v10542_v17 = vld [vmem:[%s15994_s1 + $0x2c0] sm:$0xff]   ;;  %5275 = vmatprep.subr.bf16.mxu1 %v16179_v60  ;;  %v10545_v5 = vld [vmem:[%s15994_s1 + $0x2d8] sm:$0xff]  }
0x137b   :  { %v13416_v32 = vpop.permute.xlu1 %4934 }
0x137c   :  { %v4650_v43 = vmax.f32 %v4638_v49, 0.0  ;;  %v4921_v49 = vpop.permute.xlu0 %4920 }
0x137d   :  { %5276 = vmatpush1.bf16.msra.mxu1 %v10542_v17 }
0x137e   :  { %v4653_v41 = vpack.c.bf16 %v4650_v43, %v4649_v52  ;;  %5277 = vmatprep.subr.bf16.mxu1 %v16179_v60  ;;  %v8461_v43 = vld [vmem:[%s15995_s2 + $0x10] ss:$0 sm:$0xff] }
0x137f   :  { %v4642_v30 = vpop.f32.mrb[56].mxu1 }
0x1380   :  { %v4643_v20 = vadd.f32 %v8439_v39, %v4642_v30  ;;  %v4644_v54 = vpop.f32.mrb[57].mxu1  ;;  %8972 = vmatprep.mubr.msk.bf16.mxu0 %vm16193_vm7, %v4653_v41  ;;  %vm4806_vm7 = vmor %vm16064_vm10, %vm4798_vm4  ;;  %vm16066_vm4 = vcmp.eq.s32.totalorder %v11899_v45, %v13008_v42  ;;  %v4923_v52 = vpop.permute.xlu0 %4922  ;;  %v10546_v30 = vld [vmem:[%s15994_s1 + $0x2e0] sm:$0xff]  }
0x1381   :  { %v4645_v56 = vpop.f32.mrb[58].mxu1  ;;  %v4814_v25 = vsel %vm4806_vm7, 1.0, %v16098_v47  ;;  %5278 = vmatpush1.bf16.msra.mxu1 %v10543_v15 }
0x1382   :  { %v4646_v1 = vadd.f32 %v8439_v39, %v4645_v56  ;;  %v4647_v16 = vpop.f32.mrb[59].mxu1  ;;  %v4651_v12 = vmax.f32 %v4643_v20, 0.0  ;;  %5279 = vmatprep.subr.bf16.mxu1 %v16179_v60 }
0x1384   :  { %v4652_v23 = vmax.f32 %v4646_v1, 0.0 }
0x1386   :  { %v4654_v50 = vpack.c.bf16 %v4652_v23, %v4651_v12 }
0x1388   :  { %8973 = vmatmul.mubr.msk.bf16.vlgmr.msra.gmra.mrb[60].mxu0 %vm16194_vm9, %v4654_v50  ;;  %vm4807_vm9 = vmor %vm16063_vm12, %vm4799_vm5  ;;  %vm4802_vm5 = vcmp.eq.s32.totalorder %v11899_v45, %v4797_v6  ;;  %vm4803_vm12 = vcmp.eq.s32.totalorder %v11902_v55, %v4797_v6 }
0x1389   :  { %8977 = vmatpush3.bf16.msra.mxu0 %v10539_v19  ;;  %8980 = vmatprep.mubr.msk.bf16.mxu0 %vm16195_vm6, %v4653_v41  ;;  %v4815_v46 = vsel %vm4807_vm9, 1.0, %v16098_v47  ;;  %vm4800_vm6 = vcmp.eq.s32.totalorder %v11730_v26, %v4797_v6  ;;  %vm4792_vm9 = vcmp.eq.s32.totalorder %v11902_v55, %v13008_v42  ;;  %vm4810_vm14 = vmor %vm16066_vm4, %vm4802_vm5  ;;  %vm4804_vm5 = vcmp.eq.s32.totalorder %v11909_v37, %v4797_v6  ;;  %v4925_v41 = vpop.permute.xlu1 %4924 }
0x138a   :  { %8978 = vmatprep.subr.bf16.mxu0 %v10540_v63  ;;  %v4822_v48 = vpack.c.bf16 %v4815_v46, %v4814_v25  ;;  %vm4808_vm7 = vmor %vm3929_vm13, %vm4800_vm6  ;;  %v4818_v31 = vsel %vm4810_vm14, 1.0, %v16098_v47  ;;  %vm4794_vm4 = vcmp.eq.s32.totalorder %v16119_v21, %v13008_v42 }
0x138b   :  { %vm4811_vm6 = vmor %vm4792_vm9, %vm4803_vm12  ;;  %v4816_v9 = vsel %vm4808_vm7, 1.0, %v16098_v47  ;;  %vm4805_vm12 = vcmp.eq.s32.totalorder %v16119_v21, %v4797_v6  ;;  %vm16197_vm7 = vcmask 130048  }
0x138c   :  { %v4819_v29 = vsel %vm4811_vm6, 1.0, %v16098_v47  ;;  %vm4813_vm14 = vmor %vm4794_vm4, %vm4805_vm12 }
0x138d   :  { %8979 = vmatpush3.bf16.msra.mxu0 %v10540_v63  ;;  %v4824_v36 = vpack.c.bf16 %v4819_v29, %v4818_v31  ;;  %v4821_v19 = vsel %vm4813_vm14, 1.0, %v16098_v47  ;;  %v4927_v63 = vpop.permute.xlu0 %4926  ;;  %v4929_v38 = vpop.permute.xlu1 %4928  ;;  %vm16198_vm6 = vmmov %vm16197_vm7 }
0x1390   :  { %8981 = vmatmul.mubr.msk.bf16.vlgmr.msra.gmra.mrb[64].mxu0 %vm16196_vm15, %v4654_v50  ;;  %vm4801_vm15 = vcmp.eq.s32.totalorder %v11733_v34, %v4797_v6 }
0x1391   :  { %8992 = vmatprep.mubr.msk.bf16.mxu0 %vm16069_vm8, %v4822_v48  ;;  %vm4809_vm10 = vmor %vm3930_vm3, %vm4801_vm15  ;;  %vm4793_vm15 = vcmp.eq.s32.totalorder %v11909_v37, %v13008_v42  ;;  %v4933_v15 = vpop.permute.xlu1 %4932 }
0x1392   :  { %v4817_v10 = vsel %vm4809_vm10, 1.0, %v16098_v47  ;;  %vm4812_vm10 = vmor %vm4793_vm15, %vm4804_vm5 }
0x1393   :  { %v4823_v35 = vpack.c.bf16 %v4817_v10, %v4816_v9  ;;  %v4820_v58 = vsel %vm4812_vm10, 1.0, %v16098_v47  ;;  %v10544_v47 = vld [vmem:[%s15994_s1 + $0x2d0] sm:$0xff]   ;;  %vm16199_vm5 = vmmov %vm16198_vm6 }
0x1394   :  { %v4825_v39 = vpack.c.bf16 %v4821_v19, %v4820_v58  ;;  %5280 = vmatpush1.bf16.msra.mxu1 %v10544_v47  ;;  %vm16200_vm12 = vmmov %vm16199_vm5 }
0x1395   :  { %5281 = vmatprep.subr.bf16.mxu1 %v16179_v60  ;;  %vm16201_vm10 = vmmov %vm16199_vm5 }
0x1396   :  { %vm16202_vm14 = vmmov %vm16199_vm5 }
0x1398   :  { %5282 = vmatpush1.bf16.msra.mxu1 %v10545_v5 }
0x1399   :  { %5283 = vmatprep.subr.bf16.mxu1 %v16179_v60 }
0x139c   :  { %5284 = vmatpush1.bf16.msra.mxu1 %v10546_v30 }
0x139d   :  { %5285 = vmatprep.subr.bf16.mxu1 %v16179_v60 }
0x145b   :  { %v8974_v40 = vpop.f32.mrb[60].mxu0 }
0x145c   :  { %v4711_v11 = vpop.f32.mrb[61].mxu0 }
0x145d   :  { %v8975_v7 = vpop.f32.mrb[62].mxu0 }
0x145e   :  { %v4827_v57 = vpack.c.bf16 %v8975_v7, %v8974_v40  ;;  %v4714_v24 = vpop.f32.mrb[63].mxu0  ;;  %v10547_v7 = vld [vmem:[%s15994_s1 + $0x2e8] sm:$0xff]  }
0x145f   :  { %v4826_v3 = vpack.c.bf16 %v4714_v24, %v4711_v11  ;;  %5286 = vmatpush1.bf16.msra.mxu1 %v10547_v7 }
0x1460   :  { %5287 = vmatprep.subr.bf16.mxu1 %v16179_v60 }
0x1461   :  { %8984 = vmatprep.subr.bf16.mxu0 %v4826_v3 }
0x1462   :  { %8985 = vmatpush3.bf16.msra.mxu0 %v4826_v3 }
0x1463   :  { %v8982_v2 = vpop.f32.mrb[64].mxu0  ;;  %8986 = vmatprep.subr.bf16.mxu0 %v4827_v57 }
0x1464   :  { %v4776_v8 = vpop.f32.mrb[65].mxu0 }
0x1465   :  { %v8983_v22 = vpop.f32.mrb[66].mxu0 }
0x1466   :  { %v4829_v33 = vpack.c.bf16 %v8983_v22, %v8982_v2  ;;  %v4779_v61 = vpop.f32.mrb[67].mxu0  ;;  %8987 = vmatpush3.bf16.msra.mxu0 %v4827_v57 }
0x1467   :  { %v4828_v51 = vpack.c.bf16 %v4779_v61, %v4776_v8 }
0x1469   :  { %8988 = vmatprep.subr.bf16.mxu0 %v4828_v51 }
0x146a   :  { %8989 = vmatpush3.bf16.msra.mxu0 %v4828_v51 }
0x146b   :  { %8990 = vmatprep.subr.bf16.mxu0 %v4829_v33 }
0x146e   :  { %8991 = vmatpush3.bf16.msra.mxu0 %v4829_v33 }
0x1471   :  { %8993 = vmatmul.mubr.msk.bf16.vlgmr.msra.gmra.mrb[68].mxu0 %vm16069_vm8, %v4823_v35 }
0x1472   :  { %8996 = vmatprep.mubr.msk.bf16.mxu0 %vm16069_vm8, %v4824_v36  ;;  %v10548_v36 = vld [vmem:[%s15994_s1 + $0x2f0] sm:$0xff]  }
0x1473   :  { %5288 = vmatpush1.bf16.msra.mxu1 %v10548_v36 }
0x1474   :  { %5289 = vmatprep.subr.bf16.mxu1 %v16179_v60 }
0x1479   :  { %8997 = vmatmul.mubr.msk.bf16.gmra.mrb[72].mxu0 %vm16069_vm8, %v4825_v39 }
0x1544   :  { %v8994_v20 = vpop.f32.mrb[68].mxu0 }
0x1545   :  { %v4890_v54 = vadd.f32 %v8994_v20, %v8461_v43  ;;  %v4881_v56 = vpop.f32.mrb[69].mxu0 }
0x1546   :  { %v4882_v1 = vadd.f32 %v8461_v43, %v4881_v56  ;;  %v8995_v16 = vpop.f32.mrb[70].mxu0 }
0x1547   :  { %v13426_v12 = vsel %vm16197_vm7, %v4890_v54, %v4925_v41  ;;  %v4893_v23 = vadd.f32 %v8995_v16, %v8461_v43  ;;  %v4884_v50 = vpop.f32.mrb[71].mxu0  ;;  %vm16203_vm7 = vcmask 261120  }
0x1548   :  { %v13429_v53 = vsel %vm16198_vm6, %v4882_v1, %v4921_v49  ;;  %v4885_v25 = vadd.f32 %v8461_v43, %v4884_v50  ;;  %v4954_v46 = vrot.slane %v13426_v12, 6  ;;  %v4978_v48 = vrot.slane %v13426_v12, 7  ;;  %vm16204_vm6 = vmmov %vm16199_vm5 }
0x1549   :  { %v13432_v6 = vsel %vm16199_vm5, %v4893_v23, %v4927_v63  ;;  %v5002_v40 = vrot.slane %v13426_v12, 1  ;;  %v5026_v11 = vrot.slane %v13426_v12, 2  ;;  %v4952_v57 = vrot.slane %v13429_v53, 6  ;;  %v10549_v63 = vld [vmem:[%s15994_s1 + $0x2f8] sm:$0xff]  }
0x154a   :  { %v4976_v24 = vrot.slane %v13429_v53, 7  ;;  %v5000_v3 = vrot.slane %v13429_v53, 1  ;;  %v4979_v2 = vrot.slane %v13432_v6, 7  ;;  %v5024_v8 = vrot.slane %v13429_v53, 2  ;;  %5290 = vmatpush1.bf16.msra.mxu1 %v10549_v63 }
0x154b   :  { %v4955_v22 = vrot.slane %v13432_v6, 6  ;;  %v13448_v33 = vsel %vm16200_vm12, %v4885_v25, %v4923_v52  ;;  %v9812_v51 = vpack.i.bf16 %v13432_v6, %v13426_v12  ;;  %v5003_v9 = vrot.slane %v13432_v6, 1  ;;  %v4931_v25 = vpop.permute.xlu0 %4930  ;;  %5291 = vmatprep.subr.bf16.mxu1 %v16179_v60  ;;  %vm16206_vm12 = vmmov %vm16203_vm7 }
0x154c   :  { %v8998_v61 = vpop.f32.mrb[72].mxu0  ;;  %v5027_v10 = vrot.slane %v13432_v6, 2  ;;  %v4977_v31 = vrot.slane %v13448_v33, 7  ;;  %v5025_v29 = vrot.slane %v13448_v33, 2  ;;  %v9792_v39 = vpack.i.bf16 %v13448_v33, %v13429_v53 }
0x154d   :  { %v4897_v35 = vpop.f32.mrb[73].mxu0  ;;  %v4906_v58 = vadd.f32 %v8998_v61, %v8461_v43  ;;  %v4988_v17 = vsel %vm16071_vm2, %v4978_v48, %v4979_v2  ;;  %v4953_v1 = vrot.slane %v13448_v33, 6  ;;  %v5001_v16 = vrot.slane %v13448_v33, 1 }
0x154e   :  { %v4898_v19 = vadd.f32 %v8461_v43, %v4897_v35  ;;  %v8999_v44 = vpop.f32.mrb[74].mxu0  ;;  %v5037_v49 = vsel %vm16068_vm1, %v5025_v29, %v5026_v11  ;;  %v5038_v52 = vsel %vm16068_vm1, %v5024_v8, %v5025_v29  ;;  %v4989_v41 = vsel %vm16071_vm2, %v4977_v31, %v4978_v48  ;;  %9793 = vrot.lane.b32.xlu1 %v9792_v39, %s10603_s26 }
0x154f   :  { %v4909_v47 = vadd.f32 %v8999_v44, %v8461_v43  ;;  %v4900_v5 = vpop.f32.mrb[75].mxu0  ;;  %v13477_v30 = vsel %vm16201_vm10, %v4906_v58, %v4933_v15  ;;  %v5189_v56 = vpack.c.bf16 %v5037_v49, %v5038_v52  ;;  %v9807_v29 = vpack.i.bf16 %v4988_v17, %v4989_v41  ;;  %v10550_v17 = vld [vmem:[%s15994_s1 + $0x300] sm:$0xff]   ;;  %vm16207_vm10 = vmmov %vm16203_vm7 }
0x1550   :  { %v13480_v20 = vsel %vm16202_vm14, %v4898_v19, %v4929_v38  ;;  %v4901_v54 = vadd.f32 %v8461_v43, %v4900_v5  ;;  %v4958_v23 = vrot.slane %v13477_v30, 6  ;;  %v4982_v50 = vrot.slane %v13477_v30, 7  ;;  %5292 = vmatpush1.bf16.msra.mxu1 %v10550_v17 }
0x1551   :  { %v5006_v38 = vrot.slane %v13477_v30, 1  ;;  %v4956_v48 = vrot.slane %v13480_v20, 6  ;;  %v4980_v43 = vrot.slane %v13480_v20, 7  ;;  %v5004_v7 = vrot.slane %v13480_v20, 1  ;;  %8477 = vmatprep.mubr.msk.bf16.mxu1 %vm16203_vm7, %v5189_v56 }
0x1552   :  { %v13498_v33 = vsel %vm16204_vm6, %v4909_v47, %v13416_v32  ;;  %v4949_v61 = vsel %vm16199_vm5, %v4901_v54, %v4931_v25  ;;  %v5012_v35 = vsel %vm16070_vm0, %v5002_v40, %v5003_v9  ;;  %v5028_v36 = vrot.slane %v13480_v20, 2  ;;  %9808 = vrot.lane.b32.xlu1 %v9807_v29, %s10600_s25  ;;  %vm16210_vm6 = vmmov %vm16207_vm10 }
0x1553   :  { %v4959_v58 = vrot.slane %v13498_v33, 6  ;;  %v4983_v19 = vrot.slane %v13498_v33, 7  ;;  %v5007_v39 = vrot.slane %v13498_v33, 1  ;;  %v5031_v44 = vrot.slane %v13498_v33, 2  ;;  %vm16211_vm5 = vmmov %vm16210_vm6 }
0x1554   :  { %v4957_v32 = vrot.slane %v4949_v61, 6  ;;  %v4981_v15 = vrot.slane %v4949_v61, 7  ;;  %v5005_v47 = vrot.slane %v4949_v61, 1  ;;  %v5011_v5 = vsel %vm16070_vm0, %v5003_v9, %v5004_v7 }
0x1555   :  { %v4990_v49 = vsel %vm16071_vm2, %v4976_v24, %v4977_v31  ;;  %v4991_v52 = vsel %vm16071_vm2, %v4983_v19, %v4976_v24  ;;  %v9827_v41 = vpack.i.bf16 %v4949_v61, %v13480_v20  ;;  %v5019_v54 = vmul.f32 %v5011_v5, %v11936_v13 }
0x1556   :  { %v4992_v56 = vmul.f32 %v4991_v52, %v11947_v62  ;;  %v5013_v9 = vsel %vm16070_vm0, %v5001_v16, %v5002_v40  ;;  %v5014_v31 = vsel %vm16070_vm0, %v5000_v3, %v5001_v16  ;;  %v4984_v24 = vsel %vm16071_vm2, %v4982_v50, %v4983_v19 }
0x1557   :  { %v9802_v63 = vpack.i.bf16 %v5013_v9, %v5014_v31  ;;  %v4985_v60 = vsel %vm16071_vm2, %v4981_v15, %v4982_v50  ;;  %v5008_v25 = vsel %vm16070_vm0, %v5006_v38, %v5007_v39  ;;  %v9817_v29 = vpack.i.bf16 %v5019_v54, %v5012_v35 }
0x1558   :  { %v9797_v5 = vpack.i.bf16 %v4990_v49, %v4992_v56  ;;  %v9837_v52 = vpack.i.bf16 %v4984_v24, %v4985_v60  ;;  %v5015_v40 = vsel %vm16070_vm0, %v5007_v39, %v5000_v3  ;;  %v4986_v19 = vsel %vm16071_vm2, %v4980_v43, %v4981_v15 }
0x1559   :  { %v5023_v16 = vmul.f32 %v5015_v40, %v11950_v18  ;;  %v4987_v50 = vsel %vm16071_vm2, %v4979_v2, %v4980_v43  ;;  %v5009_v35 = vsel %vm16070_vm0, %v5005_v47, %v5006_v38  ;;  %v5029_v49 = vrot.slane %v4949_v61, 2  ;;  %9818 = vrot.lane.b32.xlu1 %v9817_v29, %s10605_s18 }
0x155a   :  { %9798 = vrot.lane.b32.xlu0 %v9797_v5, %s10600_s25  ;;  %v4996_v3 = vmul.f32 %v4987_v50, %v11941_v27  ;;  %v5010_v39 = vsel %vm16070_vm0, %v5004_v7, %v5005_v47  ;;  %v9842_v15 = vpack.i.bf16 %v13498_v33, %v13477_v30  ;;  %v4964_v2 = vsel %vm16067_vm11, %v4954_v46, %v4955_v22 }
0x155b   :  { %v9847_v17 = vpack.i.bf16 %v5023_v16, %v5008_v25  ;;  %v9832_v54 = vpack.i.bf16 %v5009_v35, %v5010_v39  ;;  %v4965_v38 = vsel %vm16067_vm11, %v4953_v1, %v4954_v46  ;;  %v4966_v7 = vsel %vm16067_vm11, %v4952_v57, %v4953_v1 }
0x155c   :  { %v9822_v43 = vpack.i.bf16 %v4986_v19, %v4996_v3  ;;  %v4967_v33 = vsel %vm16067_vm11, %v4959_v58, %v4952_v57  ;;  %v13584_v61 = vsel %vm16067_vm11, %v4958_v23, %v4959_v58  ;;  %v5030_v47 = vrot.slane %v13477_v30, 2 }
0x155d   :  { %v13591_v46 = vsel %vm16067_vm11, %v4957_v32, %v4958_v23  ;;  %v5035_v1 = vsel %vm16068_vm1, %v5027_v10, %v5028_v36  ;;  %v5036_v57 = vsel %vm16068_vm1, %v5026_v11, %v5027_v10  ;;  %9828 = vrot.lane.b32.xlu1 %v9827_v41, %s10603_s26  ;;  %v4962_v23 = vsel %vm16067_vm11, %v4956_v48, %v4957_v32 }
0x155e   :  { %9803 = vrot.lane.b32.xlu0 %v9802_v63, %s10605_s18  ;;  %v5043_v30 = vmul.f32 %v5035_v1, %v11944_v59  ;;  %v4963_v58 = vsel %vm16067_vm11, %v4955_v22, %v4956_v48  ;;  %v13618_v11 = vsel %vm16068_vm1, %v5029_v49, %v5030_v47  ;;  %v13622_v10 = vsel %vm16068_vm1, %v5028_v36, %v5029_v49  ;;  %v16205_v63 = vld [vmem:[#allocation8_spill] sm:$0xff] }
0x155f   :  { %v13626_v41 = vsel %vm16068_vm1, %v5030_v47, %v5031_v44  ;;  %v5193_v20 = vpack.c.bf16 %v13618_v11, %v13622_v10  ;;  %v5039_v22 = vsel %vm16068_vm1, %v5031_v44, %v5024_v8  ;;  %v4968_v12 = vmul.f32 %v4967_v33, %v16205_v63 }
0x1560   :  { %v5191_v32 = vpack.c.bf16 %v5043_v30, %v5036_v57  ;;  %v13635_v48 = vmul.f32 %v5039_v22, %v11961_v28  ;;  %vm16208_vm14 = vcmask 785408  }
0x1561   :  { %9838 = vrot.lane.b32.xlu1 %v9837_v52, %s10600_s25  ;;  %vm16209_vm7 = vmmov %vm16208_vm14 }
0x1562   :  { %9813 = vrot.lane.b32.xlu0 %v9812_v51, %s10603_s26  ;;  %v5195_v36 = vpack.c.bf16 %v13635_v48, %v13626_v41 }
0x1565   :  { %9848 = vrot.lane.b32.xlu1 %v9847_v17, %s10605_s18 }
0x1566   :  { %9823 = vrot.lane.b32.xlu0 %v9822_v43, %s10600_s25 }
0x156a   :  { %9833 = vrot.lane.b32.xlu0 %v9832_v54, %s10605_s18 }
0x156e   :  { %9843 = vrot.lane.b32.xlu0 %v9842_v15, %s10603_s26 }
0x15c0   :  { %v9794_v53 = vpop.permute.xlu1 %9793 }
0x15c1   :  { %v9796_v24 = vunpack.i.h.bf16 %v9794_v53  ;;  %v9795_v60 = vunpack.i.l.bf16 %v9794_v53 }
0x15c4   :  { %v9809_v8 = vpop.permute.xlu1 %9808 }
0x15c5   :  { %v9811_v52 = vunpack.i.h.bf16 %v9809_v8  ;;  %v9810_v40 = vunpack.i.l.bf16 %v9809_v8  ;;  %v16215_v8 = vld [vmem:[#allocation32_spill] sm:$0xff] }
0x15c7   :  { %v5147_v54 = vsel %vm16210_vm6, %v4964_v2, %v9811_v52  ;;  %v5146_v43 = vsel %vm16211_vm5, %v4965_v38, %v9810_v40  ;;  %vm16217_vm6 = vmmov %vm16211_vm5 }
0x15cb   :  { %v9819_v56 = vpop.permute.xlu1 %9818 }
0x15cc   :  { %v9799_v44 = vpop.permute.xlu0 %9798  ;;  %v9820_v33 = vunpack.i.l.bf16 %v9819_v56 }
0x15cd   :  { %v9801_v9 = vunpack.i.h.bf16 %v9799_v44  ;;  %v9800_v31 = vunpack.i.l.bf16 %v9799_v44  ;;  %v4972_v44 = vmul.f32 %v4963_v58, %v16215_v8 }
0x15cf   :  { %v5144_v6 = vsel %vm16206_vm12, %v4968_v12, %v9800_v31  ;;  %v5145_v51 = vsel %vm16207_vm10, %v4966_v7, %v9801_v9  ;;  %v9829_v50 = vpop.permute.xlu1 %9828  ;;  %v9821_v7 = vunpack.i.h.bf16 %v9819_v56  ;;  %vm16212_vm12 = vmmov %vm16211_vm5 }
0x15d0   :  { %v9804_v25 = vpop.permute.xlu0 %9803  ;;  %v5152_v16 = vsel %vm16069_vm8, %v5144_v6, %v9795_v60  ;;  %v5153_v19 = vsel %vm16069_vm8, %v5145_v51, %v9796_v24  ;;  %vm16213_vm10 = vmmov %vm16209_vm7  ;;  %v9830_v12 = vunpack.i.l.bf16 %v9829_v50 }
0x15d1   :  { %v9806_v29 = vunpack.i.h.bf16 %v9804_v25  ;;  %v9805_v5 = vunpack.i.l.bf16 %v9804_v25 }
0x15d3   :  { %v5160_v35 = vsel %vm16208_vm14, %v5152_v16, %v9805_v5  ;;  %v5161_v49 = vsel %vm16209_vm7, %v5153_v19, %v9806_v29  ;;  %vm16214_vm14 = vmmov %vm16209_vm7  ;;  %v9839_v53 = vpop.permute.xlu1 %9838 }
0x15d4   :  { %v5188_v3 = vpack.c.bf16 %v5161_v49, %v5160_v35  ;;  %v9814_v39 = vpop.permute.xlu0 %9813  ;;  %vm16216_vm7 = vmmov %vm16211_vm5  ;;  %v9841_v60 = vunpack.i.h.bf16 %v9839_v53  ;;  %v9840_v25 = vunpack.i.l.bf16 %v9839_v53 }
0x15d5   :  { %v9816_v15 = vunpack.i.h.bf16 %v9814_v39  ;;  %v9815_v17 = vunpack.i.l.bf16 %v9814_v39 }
0x15d6   :  { %5306 = vmatmul.mubr.bf16.vlgmr.msra.gmra.mrb[60].mxu1 %v5188_v3 }
0x15d7   :  { %8478 = vmatprep.mubr.msk.bf16.mxu1 %vm16212_vm12, %v5191_v32  ;;  %v5154_v47 = vsel %vm16069_vm8, %v5146_v43, %v9815_v17  ;;  %v5155_v1 = vsel %vm16069_vm8, %v5147_v54, %v9816_v15  ;;  %v9831_v32 = vunpack.i.h.bf16 %v9829_v50  ;;  %v9849_v58 = vpop.permute.xlu1 %9848  ;;  %vm16218_vm12 = vmmov %vm16213_vm10 }
0x15d8   :  { %v9824_v57 = vpop.permute.xlu0 %9823  ;;  %v5162_v30 = vsel %vm16213_vm10, %v5154_v47, %v9820_v33  ;;  %v5163_v22 = vsel %vm16214_vm14, %v5155_v1, %v9821_v7  ;;  %vm16219_vm14 = vmmov %vm16211_vm5  ;;  %v9851_v3 = vunpack.i.h.bf16 %v9849_v58  ;;  %v9850_v39 = vunpack.i.l.bf16 %v9849_v58 }
0x15d9   :  { %v9826_v2 = vunpack.i.h.bf16 %v9824_v57  ;;  %v9825_v9 = vunpack.i.l.bf16 %v9824_v57  ;;  %v5190_v38 = vpack.c.bf16 %v5163_v22, %v5162_v30  ;;  %v5151_v35 = vsel %vm16219_vm14, %v13584_v61, %v9841_v60  ;;  %v13688_v61 = vld [vmem:[%s15995_s2 + $0xa] ss:$0 sm:$0xff] }
0x15da   :  { %v10551_v60 = vld [vmem:[%s15994_s1 + $0x308] sm:$0xff]  }
0x15db   :  { %v5149_v56 = vsel %vm16216_vm7, %v4962_v23, %v9826_v2  ;;  %v5148_v31 = vsel %vm16217_vm6, %v4972_v44, %v9825_v9  ;;  %vm16220_vm7 = vmmov %vm16211_vm5  ;;  %9000 = vmatprep.subr.bf16.mxu0 %v10551_v60 }
0x15dc   :  { %v9834_v6 = vpop.permute.xlu0 %9833  ;;  %v5156_v29 = vsel %vm16069_vm8, %v5148_v31, %v9830_v12  ;;  %v5157_v5 = vsel %vm16069_vm8, %v5149_v56, %v9831_v32  ;;  %v5150_v49 = vsel %vm16220_vm7, %v13591_v46, %v9840_v25  ;;  %vm16221_vm6 = vmmov %vm16213_vm10  ;;  %9001 = vmatpush3.bf16.msra.mxu0 %v10551_v60  ;;  %v10553_v60 = vld [vmem:[%s15994_s1 + $0x318] sm:$0xff]  }
0x15dd   :  { %v9836_v51 = vunpack.i.h.bf16 %v9834_v6  ;;  %v9835_v24 = vunpack.i.l.bf16 %v9834_v6 }
0x15de   :  { %5314 = vmatmul.mubr.bf16.gmra.mrb[64].mxu1 %v5190_v38 }
0x15df   :  { %8479 = vmatprep.mubr.msk.bf16.mxu1 %vm16211_vm5, %v5193_v20  ;;  %v5164_v23 = vsel %vm16218_vm12, %v5156_v29, %v9835_v24  ;;  %v5165_v52 = vsel %vm16213_vm10, %v5157_v5, %v9836_v51  ;;  %vm16222_vm5 = vmmov %vm16221_vm6  ;;  %vm16246_vm10 = vcmask 130048  }
0x15e0   :  { %v9844_v40 = vpop.permute.xlu0 %9843  ;;  %v5192_v16 = vpack.c.bf16 %v5165_v52, %v5164_v23  ;;  %vm16223_vm12 = vmmov %vm16220_vm7 }
0x15e1   :  { %v9846_v19 = vunpack.i.h.bf16 %v9844_v40  ;;  %v9845_v50 = vunpack.i.l.bf16 %v9844_v40  ;;  %vm16247_vm14 = vmmov %vm16246_vm10 }
0x15e3   :  { %v5158_v11 = vsel %vm16069_vm8, %v5150_v49, %v9845_v50  ;;  %v5159_v10 = vsel %vm16069_vm8, %v5151_v35, %v9846_v19 }
0x15e4   :  { %v5166_v20 = vsel %vm16221_vm6, %v5158_v11, %v9850_v39  ;;  %v5167_v15 = vsel %vm16222_vm5, %v5159_v10, %v9851_v3  ;;  %vm16248_vm6 = vmmov %vm16220_vm7  ;;  %vm16249_vm5 = vcmask 392192  }
0x15e5   :  { %v5194_v17 = vpack.c.bf16 %v5167_v15, %v5166_v20 }
0x15e6   :  { %5322 = vmatmul.mubr.bf16.gmra.mrb[68].mxu1 %v5192_v16 }
0x15e7   :  { %8480 = vmatprep.mubr.msk.bf16.mxu1 %vm16223_vm12, %v5195_v36  ;;  %vm16250_vm12 = vmmov %vm16249_vm5 }
0x15ee   :  { %5330 = vmatmul.mubr.bf16.gmra.mrb[72].mxu1 %v5194_v17 }
0x16a9   :  { %v5307_v46 = vpop.f32.mrb[60].mxu1 }
0x16aa   :  { %v5308_v54 = vadd.f32 %v13688_v61, %v5307_v46  ;;  %v5309_v43 = vpop.f32.mrb[61].mxu1 }
0x16ab   :  { %v5310_v7 = vpop.f32.mrb[62].mxu1 }
0x16ac   :  { %v13691_v33 = vmax.f32 %v5308_v54, 0.0  ;;  %v5311_v47 = vadd.f32 %v13688_v61, %v5310_v7  ;;  %v5312_v1 = vpop.f32.mrb[63].mxu1 }
0x16ae   :  { %v5339_v57 = vmax.f32 %v5311_v47, 0.0  ;;  %v5346_v41 = vrot.slane %v13691_v33, 6  ;;  %v5394_v48 = vrot.slane %v13691_v33, 1  ;;  %v5370_v36 = vrot.slane %v13691_v33, 7 }
0x16af   :  { %v5418_v9 = vrot.slane %v13691_v33, 2 }
0x16b0   :  { %v5347_v30 = vrot.slane %v5339_v57, 6  ;;  %v9852_v22 = vpack.i.bf16 %v5339_v57, %v13691_v33  ;;  %v5395_v53 = vrot.slane %v5339_v57, 1  ;;  %v5371_v44 = vrot.slane %v5339_v57, 7  ;;  %v16225_v33 = vld [vmem:[#allocation17_spill] sm:$0xff] }
0x16b1   :  { %v5315_v2 = vpop.f32.mrb[64].mxu1  ;;  %v5419_v38 = vrot.slane %v5339_v57, 2 }
0x16b2   :  { %v5316_v56 = vadd.f32 %v13688_v61, %v5315_v2  ;;  %v5317_v31 = vpop.f32.mrb[65].mxu1  ;;  %9853 = vrot.lane.b32.xlu0 %v9852_v22, %s10600_s25  ;;  %v5408_v32 = vsel %vm16070_vm0, %v5394_v48, %v5395_v53  ;;  %v13709_v12 = vsel %vm16071_vm2, %v5370_v36, %v5371_v44  ;;  %v13715_v6 = vsel %vm16067_vm11, %v5346_v41, %v5347_v30 }
0x16b3   :  { %v5318_v51 = vpop.f32.mrb[66].mxu1  ;;  %v5432_v24 = vsel %vm16068_vm1, %v5418_v9, %v5419_v38 }
0x16b4   :  { %v5340_v25 = vmax.f32 %v5316_v56, 0.0  ;;  %v5319_v29 = vadd.f32 %v13688_v61, %v5318_v51  ;;  %v5320_v5 = vpop.f32.mrb[67].mxu1 }
0x16b6   :  { %v13725_v58 = vmax.f32 %v5319_v29, 0.0  ;;  %v5396_v23 = vrot.slane %v5340_v25, 1  ;;  %v5372_v52 = vrot.slane %v5340_v25, 7  ;;  %v5348_v40 = vrot.slane %v5340_v25, 6 }
0x16b7   :  { %v5420_v16 = vrot.slane %v5340_v25, 2 }
0x16b8   :  { %v5349_v19 = vrot.slane %v13725_v58, 6  ;;  %v9857_v50 = vpack.i.bf16 %v13725_v58, %v5340_v25  ;;  %v5407_v35 = vsel %vm16070_vm0, %v5395_v53, %v5396_v23  ;;  %v5373_v49 = vrot.slane %v13725_v58, 7  ;;  %v10552_v53 = vld [vmem:[%s15994_s1 + $0x310] sm:$0xff]  }
0x16b9   :  { %v5323_v3 = vpop.f32.mrb[68].mxu1  ;;  %v9862_v39 = vpack.i.bf16 %v5407_v35, %v5408_v32  ;;  %v5383_v11 = vsel %vm16071_vm2, %v5371_v44, %v5372_v52  ;;  %v5431_v10 = vsel %vm16068_vm1, %v5419_v38, %v5420_v16  ;;  %v5397_v20 = vrot.slane %v13725_v58, 1  ;;  %9002 = vmatprep.subr.bf16.mxu0 %v10552_v53 }
0x16ba   :  { %v5324_v15 = vadd.f32 %v13688_v61, %v5323_v3  ;;  %v5325_v17 = vpop.f32.mrb[69].mxu1  ;;  %9858 = vrot.lane.b32.xlu1 %v9857_v50, %s10600_s25  ;;  %v5382_v46 = vsel %vm16071_vm2, %v5372_v52, %v5373_v49  ;;  %v9867_v54 = vpack.i.bf16 %v5431_v10, %v5432_v24  ;;  %v5421_v43 = vrot.slane %v13725_v58, 2  ;;  %9003 = vmatpush3.bf16.msra.mxu0 %v10552_v53 }
0x16bb   :  { %v5326_v7 = vpop.f32.mrb[70].mxu1  ;;  %9863 = vrot.lane.b32.xlu0 %v9862_v39, %s10602_s22  ;;  %v9872_v47 = vpack.i.bf16 %v5382_v46, %v5383_v11  ;;  %v5406_v1 = vsel %vm16070_vm0, %v5396_v23, %v5397_v20  ;;  %v13749_v57 = vsel %vm16067_vm11, %v5348_v40, %v5349_v19  ;;  %v13753_v22 = vsel %vm16067_vm11, %v5347_v30, %v5348_v40 }
0x16bc   :  { %v13758_v44 = vmax.f32 %v5324_v15, 0.0  ;;  %v5327_v2 = vadd.f32 %v13688_v61, %v5326_v7  ;;  %v5328_v38 = vpop.f32.mrb[71].mxu1  ;;  %v5430_v56 = vsel %vm16068_vm1, %v5420_v16, %v5421_v43  ;;  %9004 = vmatprep.subr.bf16.mxu0 %v10553_v60 }
0x16be   :  { %v5398_v31 = vrot.slane %v13758_v44, 1  ;;  %v5422_v32 = vrot.slane %v13758_v44, 2  ;;  %v13765_v51 = vmax.f32 %v5327_v2, 0.0  ;;  %9873 = vrot.lane.b32.xlu1 %v9872_v47, %s10598_s23  ;;  %v5350_v30 = vrot.slane %v13758_v44, 6  ;;  %9005 = vmatpush3.bf16.msra.mxu0 %v10553_v60 }
0x16bf   :  { %9868 = vrot.lane.b32.xlu0 %v9867_v54, %s10603_s26  ;;  %v5374_v24 = vrot.slane %v13758_v44, 7 }
0x16c0   :  { %v5351_v25 = vrot.slane %v13765_v51, 6  ;;  %v5405_v29 = vsel %vm16070_vm0, %v5397_v20, %v5398_v31  ;;  %v5375_v5 = vrot.slane %v13765_v51, 7  ;;  %v5429_v23 = vsel %vm16068_vm1, %v5421_v43, %v5422_v32 }
0x16c1   :  { %v5331_v52 = vpop.f32.mrb[72].mxu1  ;;  %v5413_v40 = vmul.f32 %v5405_v29, %v11936_v13  ;;  %v5381_v16 = vsel %vm16071_vm2, %v5373_v49, %v5374_v24  ;;  %v5437_v50 = vmul.f32 %v5429_v23, %v11944_v59  ;;  %v9902_v35 = vpack.i.bf16 %v13765_v51, %v13758_v44 }
0x16c2   :  { %v5332_v3 = vadd.f32 %v13688_v61, %v5331_v52  ;;  %v5333_v39 = vpop.f32.mrb[73].mxu1  ;;  %v5380_v11 = vsel %vm16071_vm2, %v5374_v24, %v5375_v5  ;;  %v5390_v10 = vmul.f32 %v5381_v16, %v11941_v27  ;;  %v5399_v20 = vrot.slane %v13765_v51, 1 }
0x16c3   :  { %v5334_v13 = vpop.f32.mrb[74].mxu1  ;;  %v9877_v15 = vpack.i.bf16 %v5413_v40, %v5406_v1  ;;  %v9882_v49 = vpack.i.bf16 %v5437_v50, %v5430_v56  ;;  %v5423_v59 = vrot.slane %v13765_v51, 2  ;;  %v13796_v17 = vsel %vm16067_vm11, %v5350_v30, %v5351_v25 }
0x16c4   :  { %v5344_v46 = vmax.f32 %v5332_v3, 0.0  ;;  %v5335_v54 = vadd.f32 %v13688_v61, %v5334_v13  ;;  %v5336_v43 = vpop.f32.mrb[75].mxu1  ;;  %v9887_v7 = vpack.i.bf16 %v5380_v11, %v5390_v10  ;;  %v5404_v27 = vsel %vm16070_vm0, %v5398_v31, %v5399_v20  ;;  %v10554_v61 = vld [vmem:[%s15994_s1 + $0x320] sm:$0xff]  }
0x16c5   :  { %9878 = vrot.lane.b32.xlu1 %v9877_v15, %s10602_s22  ;;  %v5428_v47 = vsel %vm16068_vm1, %v5422_v32, %v5423_v59  ;;  %v13808_v1 = vsel %vm16067_vm11, %v5349_v19, %v5350_v30  ;;  %9006 = vmatprep.subr.bf16.mxu0 %v10554_v61  ;;  %v10555_v19 = vld [vmem:[%s15994_s1 + $0x328] sm:$0xff]   ;;  %v16233_v43 = vld [vmem:[#allocation20_spill] sm:$0xff] }
0x16c6   :  { %v5345_v53 = vmax.f32 %v5335_v54, 0.0  ;;  %9888 = vrot.lane.b32.xlu0 %v9887_v7, %s10598_s23  ;;  %v5376_v44 = vrot.slane %v5344_v46, 7  ;;  %v5400_v2 = vrot.slane %v5344_v46, 1  ;;  %v5352_v38 = vrot.slane %v5344_v46, 6  ;;  %9007 = vmatpush3.bf16.msra.mxu0 %v10554_v61  ;;  %v16232_v54 = vld [vmem:[#allocation22_spill] sm:$0xff]  ;;  %v16234_v7 = vld [vmem:[#allocation23_spill] sm:$0xff] }
0x16c7   :  { %v5424_v56 = vrot.slane %v5344_v46, 2  ;;  %9008 = vmatprep.subr.bf16.mxu0 %v10555_v19  ;;  %v16237_v61 = vld [vmem:[#allocation27_spill] sm:$0xff] }
0x16c8   :  { %v5353_v31 = vrot.slane %v5345_v53, 6  ;;  %v5377_v32 = vrot.slane %v5345_v53, 7  ;;  %v5379_v58 = vsel %vm16071_vm2, %v5375_v5, %v5376_v44  ;;  %v9907_v24 = vpack.i.bf16 %v5345_v53, %v5344_v46 }
0x16c9   :  { %9883 = vrot.lane.b32.xlu1 %v9882_v49, %s10603_s26  ;;  %v5401_v30 = vrot.slane %v5345_v53, 1  ;;  %v5403_v60 = vsel %vm16070_vm0, %v5399_v20, %v5400_v2  ;;  %v5425_v29 = vrot.slane %v5345_v53, 2  ;;  %v5427_v23 = vsel %vm16068_vm1, %v5423_v59, %v5424_v56  ;;  %v16230_v59 = vld [vmem:[#allocation19_spill] sm:$0xff] }
0x16ca   :  { %v5378_v52 = vsel %vm16071_vm2, %v5376_v44, %v5377_v32  ;;  %v5385_v5 = vsel %vm16071_vm2, %v5377_v32, %v5370_v36  ;;  %v9912_v40 = vpack.i.bf16 %v5403_v60, %v5404_v27  ;;  %v9917_v16 = vpack.i.bf16 %v5427_v23, %v5428_v47  ;;  %9009 = vmatpush3.bf16.msra.mxu0 %v10555_v19  ;;  %v16236_v47 = vld [vmem:[#allocation24_spill] sm:$0xff]  ;;  %v16239_v44 = vld [vmem:[#allocation25_spill] sm:$0xff]  ;;  %v16244_v32 = vld [vmem:[#allocation26_spill] sm:$0xff] }
0x16cb   :  { %v9892_v50 = vpack.i.bf16 %v5378_v52, %v5379_v58  ;;  %v5386_v3 = vmul.f32 %v5385_v5, %v11947_v62  ;;  %v5402_v39 = vsel %vm16070_vm0, %v5400_v2, %v5401_v30  ;;  %v5409_v11 = vsel %vm16070_vm0, %v5401_v30, %v5394_v48  ;;  %v16240_v2 = vld [vmem:[#allocation28_spill] sm:$0xff] }
0x16cc   :  { %v5417_v10 = vmul.f32 %v5409_v11, %v11950_v18  ;;  %v5426_v20 = vsel %vm16068_vm1, %v5424_v56, %v5425_v29  ;;  %v5433_v36 = vsel %vm16068_vm1, %v5425_v29, %v5418_v9  ;;  %v13846_v62 = vsel %vm16067_vm11, %v5352_v38, %v5353_v31 }
0x16cd   :  { %9893 = vrot.lane.b32.xlu1 %v9892_v50, %s10598_s23  ;;  %v9897_v13 = vpack.i.bf16 %v13709_v12, %v5386_v3  ;;  %v5441_v48 = vmul.f32 %v5433_v36, %v11961_v28  ;;  %v13855_v18 = vsel %vm16067_vm11, %v5351_v25, %v5352_v38  ;;  %v5361_v9 = vsel %vm16067_vm11, %v5353_v31, %v5346_v41  ;;  %v16224_v28 = vld [vmem:[#allocation30_spill] sm:$0xff]  ;;  %v16226_v41 = vld [vmem:[#allocation21_spill] sm:$0xff]  ;;  %v16241_v38 = vld [vmem:[#allocation31_spill] sm:$0xff] }
0x16ce   :  { %v9922_v15 = vpack.i.bf16 %v5417_v10, %v5402_v39  ;;  %v16227_v12 = vld [vmem:[#allocation18_spill] sm:$0xff]  ;;  %v13879_v25 = vld [vmem:[%s15994_s1 + $0x3e8] sm:$0xff]   ;;  %v16235_v27 = vpack.i.bf16 %v16233_v43, %v16234_v7  ;;  %v16238_v53 = vpack.i.bf16 %v16236_v47, %v16237_v61  ;;  %v16242_v56 = vpack.i.bf16 %v16240_v2, %v16241_v38 }
0x16cf   :  { %9898 = vrot.lane.b32.xlu0 %v9897_v13, %s10598_s23  ;;  %v9927_v49 = vpack.i.bf16 %v5441_v48, %v5426_v20  ;;  %v16228_v51 = vpack.i.bf16 %v16226_v41, %v16227_v12  ;;  %9018 = vmatprep.subr.bf16.mxu0 %v13879_v25  ;;  %v16243_v31 = vld [vmem:[#allocation29_spill] sm:$0xff]  ;;  %v5366_v7 = vmul.f32 %v13808_v1, %v16215_v8  ;;  %vm16263_vm1 = vcmask 654336  }
0x16d0   :  { %v16245_v58 = vpack.i.bf16 %v16243_v31, %v16244_v32 }
0x16d1   :  { %9908 = vrot.lane.b32.xlu1 %v9907_v24, %s10600_s25 }
0x16d3   :  { %9903 = vrot.lane.b32.xlu0 %v9902_v35, %s10600_s25  ;;  %v16229_v35 = vld [vmem:[#allocation16_spill] sm:$0xff] }
0x16d4   :  { %v16231_v46 = vpack.i.bf16 %v16229_v35, %v16230_v59  ;;  %v5362_v59 = vmul.f32 %v5361_v9, %v16205_v63 }
0x16d5   :  { %9923 = vrot.lane.b32.xlu1 %v9922_v15, %s10602_s22 }
0x16d7   :  { %9913 = vrot.lane.b32.xlu0 %v9912_v40, %s10602_s22 }
0x16d9   :  { %9928 = vrot.lane.b32.xlu1 %v9927_v49, %s10603_s26 }
0x16db   :  { %9918 = vrot.lane.b32.xlu0 %v9917_v16, %s10603_s26 }
0x16dd   :  { %6121 = vrot.lane.b32.xlu1 %v16224_v28, %s10595_s17 }
0x16df   :  { %6091 = vrot.lane.b32.xlu0 %v16225_v33, %s10595_s17 }
0x16e1   :  { %9938 = vrot.lane.b32.xlu1 %v16228_v51, %s10595_s17 }
0x16e3   :  { %9933 = vrot.lane.b32.xlu0 %v16231_v46, %s10595_s17 }
0x16e5   :  { %6105 = vrot.lane.b32.xlu1 %v16232_v54, %s10595_s17 }
0x16e7   :  { %9943 = vrot.lane.b32.xlu0 %v16235_v27, %s10595_s17 }
0x16e9   :  { %9948 = vrot.lane.b32.xlu1 %v16238_v53, %s10595_s17 }
0x16eb   :  { %6107 = vrot.lane.b32.xlu0 %v16239_v44, %s10595_s17 }
0x16ed   :  { %9958 = vrot.lane.b32.xlu1 %v16242_v56, %s10595_s17 }
0x16ef   :  { %9953 = vrot.lane.b32.xlu0 %v16245_v58, %s10595_s17 }
0x1724   :  { %v9854_v19 = vpop.permute.xlu0 %9853 }
0x1725   :  { %v9856_v46 = vunpack.i.h.bf16 %v9854_v19  ;;  %v9855_v54 = vunpack.i.l.bf16 %v9854_v19 }
0x172c   :  { %v9859_v24 = vpop.permute.xlu1 %9858 }
0x172d   :  { %v9864_v60 = vpop.permute.xlu0 %9863  ;;  %v9861_v39 = vunpack.i.h.bf16 %v9859_v24  ;;  %v9860_v11 = vunpack.i.l.bf16 %v9859_v24 }
0x172e   :  { %v9866_v61 = vunpack.i.h.bf16 %v9864_v60  ;;  %v9865_v53 = vunpack.i.l.bf16 %v9864_v60 }
0x1730   :  { %v9874_v30 = vpop.permute.xlu1 %9873 }
0x1731   :  { %v9876_v29 = vunpack.i.h.bf16 %v9874_v30  ;;  %v9875_v23 = vunpack.i.l.bf16 %v9874_v30  ;;  %v9869_v16 = vpop.permute.xlu0 %9868 }
0x1732   :  { %v9871_v56 = vunpack.i.h.bf16 %v9869_v16  ;;  %v9870_v32 = vunpack.i.l.bf16 %v9869_v16 }
0x1733   :  { %v5573_v5 = vsel %vm16246_vm10, %v13749_v57, %v9876_v29  ;;  %v5572_v40 = vsel %vm16247_vm14, %v13753_v22, %v9875_v23  ;;  %vm16251_vm14 = vmmov %vm16246_vm10 }
0x1734   :  { %v5580_v20 = vsel %vm16220_vm7, %v5572_v40, %v9860_v11  ;;  %v5581_v36 = vsel %vm16248_vm6, %v5573_v5, %v9861_v39  ;;  %vm16252_vm7 = vmmov %vm16248_vm6 }
0x1737   :  { %v9879_v52 = vpop.permute.xlu1 %9878 }
0x1738   :  { %v9881_v50 = vunpack.i.h.bf16 %v9879_v52  ;;  %v9880_v3 = vunpack.i.l.bf16 %v9879_v52  ;;  %v9889_v57 = vpop.permute.xlu0 %9888 }
0x1739   :  { %v9891_v63 = vunpack.i.h.bf16 %v9889_v57  ;;  %v9890_v9 = vunpack.i.l.bf16 %v9889_v57 }
0x173a   :  { %v5588_v15 = vsel %vm16249_vm5, %v5580_v20, %v9880_v3  ;;  %v5589_v49 = vsel %vm16250_vm12, %v5581_v36, %v9881_v50  ;;  %vm16253_vm12 = vmmov %vm16249_vm5 }
0x173b   :  { %v9884_v10 = vpop.permute.xlu1 %9883  ;;  %v5575_v16 = vsel %vm16246_vm10, %v13796_v17, %v9891_v63 }
0x173c   :  { %v9886_v13 = vunpack.i.h.bf16 %v9884_v10  ;;  %v9885_v48 = vunpack.i.l.bf16 %v9884_v10 }
0x173e   :  { %v5596_v28 = vsel %vm16069_vm8, %v5588_v15, %v9885_v48  ;;  %v5597_v22 = vsel %vm16069_vm8, %v5589_v49, %v9886_v13 }
0x173f   :  { %v5613_v33 = vpack.c.bf16 %v5597_v22, %v5596_v28  ;;  %v9894_v41 = vpop.permute.xlu1 %9893 }
0x1740   :  { %v9896_v31 = vunpack.i.h.bf16 %v9894_v41  ;;  %v9895_v58 = vunpack.i.l.bf16 %v9894_v41 }
0x1741   :  { %v9899_v12 = vpop.permute.xlu0 %9898 }
0x1742   :  { %v9901_v51 = vunpack.i.h.bf16 %v9899_v12  ;;  %v9900_v35 = vunpack.i.l.bf16 %v9899_v12 }
0x1743   :  { %v9909_v43 = vpop.permute.xlu1 %9908 }
0x1744   :  { %v5570_v27 = vsel %vm16246_vm10, %v5362_v59, %v9900_v35  ;;  %v5571_v47 = vsel %vm16251_vm14, %v13715_v6, %v9901_v51  ;;  %v9911_v19 = vunpack.i.h.bf16 %v9909_v43  ;;  %v9910_v6 = vunpack.i.l.bf16 %v9909_v43  ;;  %vm16254_vm14 = vmmov %vm16246_vm10 }
0x1745   :  { %v5578_v44 = vsel %vm16252_vm7, %v5570_v27, %v9855_v54  ;;  %v5579_v2 = vsel %vm16248_vm6, %v5571_v47, %v9856_v46  ;;  %v9904_v38 = vpop.permute.xlu0 %9903  ;;  %v5574_v50 = vsel %vm16254_vm14, %v5366_v7, %v9890_v9  ;;  %vm16255_vm7 = vmmov %vm16246_vm10  ;;  %vm16261_vm14 = vcmask 392192   ;;  %v8481_v27 = vld [vmem:[%s15995_s2 + $0xb] ss:$0 sm:$0xff] }
0x1746   :  { %v5586_v8 = vsel %vm16249_vm5, %v5578_v44, %v9865_v53  ;;  %v5587_v1 = vsel %vm16253_vm12, %v5579_v2, %v9866_v61  ;;  %v9906_v30 = vunpack.i.h.bf16 %v9904_v38  ;;  %v9905_v60 = vunpack.i.l.bf16 %v9904_v38  ;;  %vm16256_vm6 = vmmov %vm16255_vm7 }
0x1747   :  { %v9924_v24 = vpop.permute.xlu1 %9923  ;;  %v5594_v5 = vsel %vm16069_vm8, %v5586_v8, %v9870_v32  ;;  %v5595_v40 = vsel %vm16069_vm8, %v5587_v1, %v9871_v56  ;;  %v5577_v3 = vsel %vm16255_vm7, %v13846_v62, %v9896_v31  ;;  %v5576_v39 = vsel %vm16256_vm6, %v13855_v18, %v9895_v58  ;;  %vm16262_vm7 = vmmov %vm16261_vm14 }
0x1748   :  { %v9926_v29 = vunpack.i.h.bf16 %v9924_v24  ;;  %v9925_v23 = vunpack.i.l.bf16 %v9924_v24  ;;  %v5612_v20 = vpack.c.bf16 %v5595_v40, %v5594_v5  ;;  %vm16257_vm5 = vcmask 261120   ;;  %vm16264_vm6 = vmmov %vm16263_vm1 }
0x1749   :  { %v9914_v52 = vpop.permute.xlu0 %9913  ;;  %v5584_v13 = vsel %vm16257_vm5, %v5576_v39, %v9910_v6  ;;  %vm16258_vm12 = vmmov %vm16257_vm5  ;;  %v8501_v39 = vadd.s32 4294967232, %v11726_v4 }
0x174a   :  { %v9916_v11 = vunpack.i.h.bf16 %v9914_v52  ;;  %v9915_v10 = vunpack.i.l.bf16 %v9914_v52  ;;  %v5585_v48 = vsel %vm16258_vm12, %v5577_v3, %v9911_v19  ;;  %vm16259_vm11 = vmmov %vm16257_vm5  ;;  %v5592_v62 = vsel %vm16262_vm7, %v5584_v13, %v9925_v23  ;;  %9010 = vmatprep.mubr.msk.bf16.mxu0 %vm16263_vm1, %v5612_v20 }
0x174b   :  { %v9929_v36 = vpop.permute.xlu1 %9928  ;;  %v5583_v17 = vsel %vm16259_vm11, %v5575_v16, %v9906_v30  ;;  %vm16260_vm10 = vmmov %vm16257_vm5  ;;  %v5593_v28 = vsel %vm16261_vm14, %v5585_v48, %v9926_v29  ;;  %9011 = vmatmul.mubr.msk.bf16.vlgmr.msra.gmra.mrb[76].mxu0 %vm16264_vm6, %v5613_v33  ;;  %v10557_v33 = vld [vmem:[%s15994_s1 + $0x3f0] sm:$0xff]   ;;  %v16278_v20 = vmov 1.0|1.0  }
0x174c   :  { %v9931_v15 = vunpack.i.h.bf16 %v9929_v36  ;;  %v9930_v49 = vunpack.i.l.bf16 %v9929_v36  ;;  %v5582_v57 = vsel %vm16260_vm10, %v5574_v50, %v9905_v60  ;;  %vm16265_vm5 = vmmov %vm16262_vm7  ;;  %9019 = vmatpush3.bf16.msra.mxu0 %v13879_v25  ;;  %vm16268_vm10 = vcmask 130048  }
0x174d   :  { %v9919_v18 = vpop.permute.xlu0 %9918  ;;  %v5590_v35 = vsel %vm16265_vm5, %v5582_v57, %v9915_v10  ;;  %vm16266_vm11 = vmmov %vm16265_vm5  ;;  %9028 = vmatprep.subr.bf16.mxu0 %v10557_v33 }
0x174e   :  { %v5600_v22 = vsel %vm16069_vm8, %v5592_v62, %v9930_v49  ;;  %v5601_v41 = vsel %vm16069_vm8, %v5593_v28, %v9931_v15  ;;  %v9921_v12 = vunpack.i.h.bf16 %v9919_v18  ;;  %v9920_v51 = vunpack.i.l.bf16 %v9919_v18  ;;  %vm16267_vm12 = vmmov %vm16263_vm1 }
0x174f   :  { %v5591_v59 = vsel %vm16266_vm11, %v5583_v17, %v9916_v11  ;;  %v5615_v46 = vpack.c.bf16 %v5601_v41, %v5600_v22  ;;  %vm16269_vm14 = vmmov %vm16268_vm10  ;;  %v5907_v11 = vmul.u32 2, %v8501_v39 }
0x1750   :  { %v5598_v54 = vsel %vm16069_vm8, %v5590_v35, %v9920_v51  ;;  %v5599_v43 = vsel %vm16069_vm8, %v5591_v59, %v9921_v12  ;;  %vm16270_vm7 = vmmov %vm16268_vm10 }
0x1751   :  { %v5614_v7 = vpack.c.bf16 %v5599_v43, %v5598_v54  ;;  %vm16271_vm6 = vmmov %vm16270_vm7  ;;  %v13967_v10 = vadd.s32 1, %v5907_v11 }
0x1752   :  { %vm16272_vm5 = vmmov %vm16271_vm6 }
0x1753   :  { %9014 = vmatprep.mubr.msk.bf16.mxu0 %vm16263_vm1, %v5614_v7  ;;  %vm16273_vm11 = vmmov %vm16272_vm5  ;;  %vm5915_vm8 = vcmp.eq.s32.totalorder %v11909_v37, %v13967_v10 }
0x1754   :  { %9015 = vmatmul.mubr.msk.bf16.gmra.mrb[80].mxu0 %vm16267_vm12, %v5615_v46  ;;  %vm16274_vm1 = vmmov %vm16272_vm5 }
0x1755   :  { %vm16275_vm12 = vmmov %vm16274_vm1 }
0x181e   :  { %v9012_v47 = vpop.f32.mrb[76].mxu0 }
0x181f   :  { %v5706_v25 = vadd.f32 %v9012_v47, %v8481_v27  ;;  %v5697_v61 = vpop.f32.mrb[77].mxu0 }
0x1820   :  { %v5698_v53 = vadd.f32 %v8481_v27, %v5697_v61  ;;  %v9013_v44 = vpop.f32.mrb[78].mxu0  ;;  %v95_v61 = vadd.s32 88, %v10657_v14 }
0x1821   :  { %v5709_v2 = vadd.f32 %v9013_v44, %v8481_v27  ;;  %v5700_v38 = vpop.f32.mrb[79].mxu0  ;;  %v5730_v63 = vmax.f32 %v5706_v25, 0.0  ;;  %v94_v25 = vadd.s32 80, %v10657_v14  ;;  %v96_v44 = vadd.s32 96, %v10657_v14 }
0x1822   :  { %v5701_v56 = vadd.f32 %v8481_v27, %v5700_v38  ;;  %v5728_v31 = vmax.f32 %v5698_v53, 0.0  ;;  %v16291_v38 = vld [vmem:[#allocation5_spill] sm:$0xff] }
0x1823   :  { %v5731_v9 = vmax.f32 %v5709_v2, 0.0  ;;  %v98_v2 = vadd.s32 112, %v10657_v14 }
0x1824   :  { %v5729_v32 = vmax.f32 %v5701_v56, 0.0  ;;  %v14073_v56 = vpop.permute.xlu1 %6121 }
0x1825   :  { %v5737_v58 = vpack.c.bf16 %v5731_v9, %v5730_v63  ;;  %v6092_v63 = vpop.permute.xlu0 %6091 }
0x1826   :  { %v5736_v24 = vpack.c.bf16 %v5729_v32, %v5728_v31 }
0x1827   :  { %v9016_v8 = vpop.f32.mrb[80].mxu0 }
0x1828   :  { %v5722_v1 = vadd.f32 %v9016_v8, %v8481_v27  ;;  %v5713_v19 = vpop.f32.mrb[81].mxu0  ;;  %9020 = vmatprep.mubr.msk.bf16.mxu0 %vm16268_vm10, %v5736_v24  ;;  %vm5909_vm10 = vcmp.eq.s32.totalorder %v10657_v14, %v13967_v10  ;;  %v14075_v9 = vpop.permute.xlu1 %9938  ;;  %v14088_v8 = vld [vmem:[%s15995_s2 + $0x11] ss:$0 sm:$0xff] }
0x1829   :  { %v5714_v6 = vadd.f32 %v8481_v27, %v5713_v19  ;;  %v9017_v30 = vpop.f32.mrb[82].mxu0  ;;  %9021 = vmatmul.mubr.msk.bf16.vlgmr.msra.gmra.mrb[84].mxu0 %vm16269_vm14, %v5737_v58  ;;  %vm5910_vm14 = vcmp.eq.s32.totalorder %v11723_v0, %v13967_v10  ;;  %v9934_v31 = vpop.permute.xlu0 %9933 }
0x182a   :  { %v5725_v60 = vadd.f32 %v9017_v30, %v8481_v27  ;;  %v5716_v29 = vpop.f32.mrb[83].mxu0  ;;  %9029 = vmatpush3.bf16.msra.mxu0 %v10557_v33  ;;  %v5734_v52 = vmax.f32 %v5722_v1, 0.0  ;;  %v9941_v1 = vunpack.i.h.bf16 %v14075_v9  ;;  %v9940_v30 = vunpack.i.l.bf16 %v14075_v9 }
0x182b   :  { %v5717_v23 = vadd.f32 %v8481_v27, %v5716_v29  ;;  %v5732_v40 = vmax.f32 %v5714_v6, 0.0  ;;  %v9935_v29 = vunpack.i.l.bf16 %v9934_v31 }
0x182c   :  { %v5735_v5 = vmax.f32 %v5725_v60, 0.0  ;;  %v14077_v32 = vpop.permute.xlu1 %6105  ;;  %v9936_v60 = vunpack.i.h.bf16 %v9934_v31 }
0x182d   :  { %v5733_v16 = vmax.f32 %v5717_v23, 0.0 }
0x182e   :  { %v5739_v50 = vpack.c.bf16 %v5735_v5, %v5734_v52 }
0x182f   :  { %v5738_v3 = vpack.c.bf16 %v5733_v16, %v5732_v40 }
0x1831   :  { %9024 = vmatprep.mubr.msk.bf16.mxu0 %vm16270_vm7, %v5738_v3  ;;  %vm16276_vm7 = vcmp.eq.s32.totalorder %v10657_v14, %v13008_v42 }
0x1832   :  { %9025 = vmatmul.mubr.msk.bf16.gmra.mrb[88].mxu0 %vm16271_vm6, %v5739_v50  ;;  %vm5925_vm6 = vmor %vm16276_vm7, %vm5909_vm10  ;;  %vm5912_vm10 = vcmp.eq.s32.totalorder %v11733_v34, %v13967_v10  ;;  %v16282_v34 = vld [vmem:[#allocation10_spill] sm:$0xff] }
0x1833   :  { %9030 = vmatprep.mubr.msk.bf16.mxu0 %vm16272_vm5, %v5736_v24  ;;  %vm16277_vm5 = vcmp.eq.s32.totalorder %v11723_v0, %v13008_v42 }
0x183a   :  { %9031 = vmatmul.mubr.msk.bf16.vlgmr.msra.gmra.mrb[92].mxu0 %vm16273_vm11, %v5737_v58  ;;  %vm5926_vm11 = vmor %vm16277_vm5, %vm5910_vm14  ;;  %vm5913_vm14 = vcmp.eq.s32.totalorder %v11899_v45, %v13967_v10  ;;  %v14081_v58 = vpop.permute.xlu1 %9948 }
0x183b   :  { %9034 = vmatprep.mubr.msk.bf16.mxu0 %vm16274_vm1, %v5738_v3  ;;  %vm8503_vm1 = vmpackc.low %vm5926_vm11, %vm5925_vm6  ;;  %vm5914_vm6 = vcmp.eq.s32.totalorder %v11902_v55, %v13967_v10  ;;  %vm16281_vm11 = vcmp.eq.s32.totalorder %v11899_v45, %v13008_v42  ;;  %v9950_v11 = vunpack.i.l.bf16 %v14081_v58 }
0x183c   :  { %9054 = vmatprep.mubr.msk.bf16.mxu1 %vm8503_vm1, %v16278_v20  ;;  %vm5928_vm5 = vmor %vm3930_vm3, %vm5912_vm10  ;;  %vm5916_vm3 = vcmp.eq.s32.totalorder %v16119_v21, %v13967_v10  ;;  %vm5898_vm10 = vcmp.eq.s32.totalorder %v16282_v34, %v13008_v42  ;;  %v97_v21 = vadd.s32 104, %v10657_v14 }
0x183d   :  { %vm5929_vm1 = vmor %vm16281_vm11, %vm5913_vm14  ;;  %vm5917_vm14 = vcmp.eq.s32.totalorder %v16282_v34, %v13967_v10 }
0x183e   :  { %vm14034_vm11 = vmor %vm5898_vm10, %vm5917_vm14  ;;  %vm5921_vm10 = vcmp.eq.s32.totalorder %v96_v44, %v13967_v10  ;;  %v14091_v19 = vpop.permute.xlu1 %9958 }
0x1842   :  { %9035 = vmatmul.mubr.msk.bf16.gmra.mrb[96].mxu0 %vm16275_vm12, %v5739_v50  ;;  %vm5911_vm12 = vcmp.eq.s32.totalorder %v11730_v26, %v13967_v10  ;;  %v93_v26 = vadd.s32 72, %v10657_v14  ;;  %v9951_v50 = vunpack.i.h.bf16 %v14081_v58 }
0x1843   :  { %vm13989_vm7 = vmor %vm3929_vm13, %vm5911_vm12 }
0x1844   :  { %vm5930_vm13 = vmor %vm4792_vm9, %vm5914_vm6  ;;  %vm5918_vm6 = vcmp.eq.s32.totalorder %v93_v26, %v13967_v10 }
0x1845   :  { %vm8505_vm12 = vmpackc.low %vm5928_vm5, %vm13989_vm7  ;;  %vm5899_vm7 = vcmp.eq.s32.totalorder %v93_v26, %v13008_v42 }
0x1846   :  { %vm8507_vm0 = vmpackc.low %vm5930_vm13, %vm5929_vm1  ;;  %vm5901_vm13 = vcmp.eq.s32.totalorder %v95_v61, %v13008_v42 }
0x1847   :  { %vm14019_vm9 = vmor %vm4793_vm15, %vm5915_vm8  ;;  %vm5919_vm15 = vcmp.eq.s32.totalorder %v94_v25, %v13967_v10 }
0x1848   :  { %vm14029_vm5 = vmor %vm4794_vm4, %vm5916_vm3  ;;  %vm5900_vm4 = vcmp.eq.s32.totalorder %v94_v25, %v13008_v42  ;;  %vm5902_vm3 = vcmp.eq.s32.totalorder %v96_v44, %v13008_v42 }
0x1849   :  { %vm14039_vm8 = vmor %vm5899_vm7, %vm5918_vm6  ;;  %vm5922_vm7 = vcmp.eq.s32.totalorder %v97_v21, %v13967_v10 }
0x184a   :  { %vm8511_vm1 = vmpackc.low %vm14039_vm8, %vm14034_vm11 }
0x184b   :  { %vm5935_vm14 = vmor %vm5900_vm4, %vm5919_vm15  ;;  %vm5923_vm4 = vcmp.eq.s32.totalorder %v98_v2, %v13967_v10  ;;  %vm5905_vm15 = vcmp.eq.s32.totalorder %v16291_v38, %v13008_v42 }
0x18fc   :  { %v9022_v4 = vpop.f32.mrb[84].mxu0 }
0x18fd   :  { %v5794_v36 = vpop.f32.mrb[85].mxu0 }
0x18fe   :  { %v9023_v13 = vpop.f32.mrb[86].mxu0 }
0x18ff   :  { %v5966_v48 = vpack.c.bf16 %v9023_v13, %v9022_v4  ;;  %v5797_v15 = vpop.f32.mrb[87].mxu0  ;;  %v9960_v13 = vunpack.i.l.bf16 %v14091_v19 }
0x1900   :  { %v5965_v49 = vpack.c.bf16 %v5797_v15, %v5794_v36 }
0x1902   :  { %9038 = vmatprep.subr.bf16.mxu1 %v5965_v49 }
0x1903   :  { %9039 = vmatpush3.bf16.msra.mxu1 %v5965_v49 }
0x1904   :  { %9040 = vmatprep.subr.bf16.mxu1 %v5966_v48 }
0x1905   :  { %v9026_v17 = vpop.f32.mrb[88].mxu0 }
0x1906   :  { %v5810_v57 = vpop.f32.mrb[89].mxu0 }
0x1907   :  { %v9027_v28 = vpop.f32.mrb[90].mxu0  ;;  %9041 = vmatpush3.bf16.msra.mxu1 %v5966_v48 }
0x1908   :  { %v5968_v62 = vpack.c.bf16 %v9027_v28, %v9026_v17  ;;  %v5813_v18 = vpop.f32.mrb[91].mxu0 }
0x1909   :  { %v5967_v0 = vpack.c.bf16 %v5813_v18, %v5810_v57 }
0x190b   :  { %9042 = vmatprep.subr.bf16.mxu1 %v5967_v0 }
0x190c   :  { %9043 = vmatpush3.bf16.msra.mxu1 %v5967_v0 }
0x190d   :  { %v9032_v22 = vpop.f32.mrb[92].mxu0  ;;  %9044 = vmatprep.subr.bf16.mxu1 %v5968_v62 }
0x190e   :  { %v5867_v41 = vpop.f32.mrb[93].mxu0 }
0x190f   :  { %v9033_v12 = vpop.f32.mrb[94].mxu0 }
0x1910   :  { %v5970_v51 = vpack.c.bf16 %v9033_v12, %v9032_v22  ;;  %v5870_v35 = vpop.f32.mrb[95].mxu0  ;;  %9045 = vmatpush3.bf16.msra.mxu1 %v5968_v62 }
0x1911   :  { %v5969_v59 = vpack.c.bf16 %v5870_v35, %v5867_v41 }
0x1913   :  { %9046 = vmatprep.subr.bf16.mxu1 %v5969_v59 }
0x1914   :  { %9047 = vmatpush3.bf16.msra.mxu1 %v5969_v59 }
0x1915   :  { %v9036_v46 = vpop.f32.mrb[96].mxu0  ;;  %9048 = vmatprep.subr.bf16.mxu1 %v5970_v51 }
0x1916   :  { %v5883_v54 = vpop.f32.mrb[97].mxu0 }
0x1917   :  { %v9037_v43 = vpop.f32.mrb[98].mxu0 }
0x1918   :  { %v5972_v7 = vpack.c.bf16 %v9037_v43, %v9036_v46  ;;  %v5886_v33 = vpop.f32.mrb[99].mxu0  ;;  %9049 = vmatpush3.bf16.msra.mxu1 %v5970_v51 }
0x1919   :  { %v5971_v27 = vpack.c.bf16 %v5886_v33, %v5883_v54 }
0x191b   :  { %9050 = vmatprep.subr.bf16.mxu1 %v5971_v27 }
0x191c   :  { %9051 = vmatpush3.bf16.msra.mxu1 %v5971_v27 }
0x191d   :  { %9052 = vmatprep.subr.bf16.mxu1 %v5972_v7 }
0x1920   :  { %9053 = vmatpush3.bf16.msra.mxu1 %v5972_v7 }
0x1923   :  { %9055 = vmatmul.mubr.msk.bf16.vlgmr.msra.gmra.mrb[76].mxu1 %vm8505_vm12, %v16278_v20  ;;  %vm5920_vm12 = vcmp.eq.s32.totalorder %v95_v61, %v13967_v10 }
0x1924   :  { %9058 = vmatprep.mubr.msk.bf16.mxu1 %vm8507_vm0, %v16278_v20  ;;  %vm8509_vm0 = vmpackc.low %vm14029_vm5, %vm14019_vm9  ;;  %vm5903_vm9 = vcmp.eq.s32.totalorder %v97_v21, %v13008_v42 }
0x1925   :  { %vm5936_vm6 = vmor %vm5901_vm13, %vm5920_vm12 }
0x1926   :  { %vm5937_vm5 = vmor %vm5902_vm3, %vm5921_vm10 }
0x1927   :  { %vm5938_vm11 = vmor %vm5903_vm9, %vm5922_vm7  ;;  %vm16296_vm7 = vcmp.lt.s32.totalorder %v10657_v14, 1 }
0x1928   :  { %vm8513_vm8 = vmpackc.low %vm5936_vm6, %vm5935_vm14 }
0x1929   :  { %vm8515_vm2 = vmpackc.low %vm5938_vm11, %vm5937_vm5  ;;  %vm16298_vm5 = vcmp.lt.s32.totalorder %v10657_v14, 7 }
0x192a   :  { %vm16297_vm6 = vmmov %vm16296_vm7 }
0x192b   :  { %9059 = vmatmul.mubr.msk.bf16.gmra.mrb[80].mxu1 %vm8509_vm0, %v16278_v20  ;;  %vm5904_vm0 = vcmp.eq.s32.totalorder %v98_v2, %v13008_v42  ;;  %v14079_v42 = vpop.permute.xlu0 %9943  ;;  %vm16299_vm11 = vmmov %vm16298_vm5 }
0x192c   :  { %9062 = vmatprep.mubr.msk.bf16.mxu1 %vm8511_vm1, %v16278_v20  ;;  %vm5924_vm1 = vcmp.eq.s32.totalorder %v16291_v38, %v13967_v10  ;;  %vm5939_vm13 = vmor %vm5904_vm0, %vm5923_vm4  ;;  %v9946_v40 = vunpack.i.h.bf16 %v14079_v42  ;;  %v9945_v16 = vunpack.i.l.bf16 %v14079_v42  ;;  %v9961_v10 = vunpack.i.h.bf16 %v14091_v19  ;;  %v10559_v19 = vld [vmem:[%s15994_s1 + $0x338] sm:$0xff]  }
0x192d   :  { %vm5940_vm12 = vmor %vm5905_vm15, %vm5924_vm1  ;;  %vm16304_vm1 = vcmp.lt.s32.totalorder %v10657_v14, 6 }
0x192e   :  { %vm8517_vm3 = vmpackc.low %vm5940_vm12, %vm5939_vm13 }
0x192f   :  { %v14083_v24 = vpop.permute.xlu0 %6107  ;;  %vm16305_vm13 = vmmov %vm16304_vm1 }
0x1930   :  { %vm16306_vm12 = vmmov %vm16298_vm5 }
0x1933   :  { %9063 = vmatmul.mubr.msk.bf16.gmra.mrb[84].mxu1 %vm8513_vm8, %v16278_v20  ;;  %v14094_v23 = vpop.permute.xlu0 %9953 }
0x1934   :  { %9066 = vmatprep.mubr.msk.bf16.mxu1 %vm8515_vm2, %v16278_v20  ;;  %vm16292_vm2 = vcmask 64512   ;;  %v9956_v48 = vunpack.i.h.bf16 %v14094_v23  ;;  %v9955_v15 = vunpack.i.l.bf16 %v14094_v23 }
0x1935   :  { %vm16293_vm10 = vmmov %vm16292_vm2 }
0x1936   :  { %vm16294_vm14 = vmmov %vm16292_vm2 }
0x1937   :  { %vm16295_vm9 = vmmov %vm16292_vm2 }
0x1938   :  { %vm16300_vm8 = vmmov %vm16292_vm2 }
0x1939   :  { %vm16301_vm0 = vmmov %vm16292_vm2 }
0x193a   :  { %vm16302_vm4 = vmmov %vm16301_vm0 }
0x193b   :  { %9067 = vmatmul.mubr.msk.bf16.gmra.mrb[88].mxu1 %vm8517_vm3, %v16278_v20  ;;  %vm16303_vm15 = vmmov %vm16301_vm0 }
0x193c   :  { %vm16307_vm3 = vmmov %vm16298_vm5 }
0x19f6   :  { %v9056_v6 = vpop.f32.mrb[76].mxu1 }
0x19f7   :  { %v6021_v52 = vadd.f32 %v9056_v6, %v14088_v8  ;;  %v6012_v5 = vpop.f32.mrb[77].mxu1 }
0x19f8   :  { %v6013_v3 = vadd.f32 %v14088_v8, %v6012_v5  ;;  %v9057_v39 = vpop.f32.mrb[78].mxu1 }
0x19f9   :  { %v14104_v20 = vsel %vm16292_vm2, %v6021_v52, %v9936_v60  ;;  %v6024_v4 = vadd.f32 %v9057_v39, %v14088_v8  ;;  %v6015_v36 = vpop.f32.mrb[79].mxu1  ;;  %vm16308_vm2 = vmmov %vm16301_vm0 }
0x19fa   :  { %v6205_v17 = vrot.slane %v14104_v20, 7  ;;  %v14113_v57 = vsel %vm16293_vm10, %v6013_v3, %v6092_v63  ;;  %v6016_v62 = vadd.f32 %v14088_v8, %v6015_v36  ;;  %v6253_v18 = vrot.slane %v14104_v20, 1  ;;  %vm16309_vm10 = vmmov %vm16301_vm0 }
0x19fb   :  { %v14116_v28 = vsel %vm16294_vm14, %v6024_v4, %v9940_v30  ;;  %v6301_v0 = vrot.slane %v14104_v20, 2  ;;  %v6203_v41 = vrot.slane %v14113_v57, 7  ;;  %v6251_v12 = vrot.slane %v14113_v57, 1  ;;  %vm16310_vm14 = vmmov %vm16301_vm0 }
0x19fc   :  { %v6299_v51 = vrot.slane %v14113_v57, 2  ;;  %v6206_v59 = vrot.slane %v14116_v28, 7  ;;  %v6254_v46 = vrot.slane %v14116_v28, 1  ;;  %v6302_v54 = vrot.slane %v14116_v28, 2 }
0x19fd   :  { %v14130_v43 = vsel %vm16295_vm9, %v6016_v62, %v9935_v29  ;;  %v9962_v7 = vpack.i.bf16 %v14116_v28, %v14104_v20  ;;  %vm16311_vm9 = vmmov %vm16301_vm0 }
0x19fe   :  { %v9060_v33 = vpop.f32.mrb[80].mxu1  ;;  %v6204_v47 = vrot.slane %v14130_v43, 7  ;;  %v6252_v26 = vrot.slane %v14130_v43, 1  ;;  %v6300_v34 = vrot.slane %v14130_v43, 2  ;;  %v9967_v37 = vpack.i.bf16 %v14130_v43, %v14113_v57 }
0x19ff   :  { %v6028_v45 = vpop.f32.mrb[81].mxu1  ;;  %9963 = vrot.lane.b32.xlu1 %v9962_v7, %s10600_s25  ;;  %v6037_v55 = vadd.f32 %v9060_v33, %v14088_v8  ;;  %v6231_v53 = vsel %vm16296_vm7, %v6205_v17, %v6206_v59  ;;  %vm16312_vm7 = vmmov %vm16304_vm1 }
0x1a00   :  { %v6029_v25 = vadd.f32 %v14088_v8, %v6028_v45  ;;  %v9061_v61 = vpop.f32.mrb[82].mxu1  ;;  %v6232_v2 = vsel %vm16297_vm6, %v6204_v47, %v6205_v17  ;;  %v6280_v38 = vsel %vm16298_vm5, %v6252_v26, %v6253_v18  ;;  %v6281_v63 = vsel %vm16299_vm11, %v6251_v12, %v6252_v26  ;;  %9968 = vrot.lane.b32.xlu0 %v9967_v37, %s10600_s25  ;;  %vm16313_vm6 = vmmov %vm16304_vm1 }
0x1a01   :  { %v6040_v44 = vadd.f32 %v9061_v61, %v14088_v8  ;;  %v6031_v21 = vpop.f32.mrb[83].mxu1  ;;  %v14161_v9 = vsel %vm16300_vm8, %v6037_v55, %v9946_v40  ;;  %v9972_v6 = vpack.i.bf16 %v6231_v53, %v6232_v2  ;;  %v9977_v36 = vpack.i.bf16 %v6280_v38, %v6281_v63 }
0x1a02   :  { %v14164_v31 = vsel %vm16301_vm0, %v6029_v25, %v9941_v1  ;;  %v6032_v42 = vadd.f32 %v14088_v8, %v6031_v21  ;;  %v6209_v60 = vrot.slane %v14161_v9, 7  ;;  %v6257_v29 = vrot.slane %v14161_v9, 1 }
0x1a03   :  { %v6305_v52 = vrot.slane %v14161_v9, 2  ;;  %v6207_v40 = vrot.slane %v14164_v31, 7  ;;  %v6255_v1 = vrot.slane %v14164_v31, 1  ;;  %v6303_v3 = vrot.slane %v14164_v31, 2  ;;  %9973 = vrot.lane.b32.xlu1 %v9972_v6, %s10598_s23 }
0x1a04   :  { %v14179_v39 = vsel %vm16302_vm4, %v6040_v44, %v14077_v32  ;;  %v14182_v4 = vsel %vm16303_vm15, %v6032_v42, %v9945_v16  ;;  %v6328_v17 = vsel %vm16304_vm1, %v6300_v34, %v6301_v0  ;;  %9978 = vrot.lane.b32.xlu0 %v9977_v36, %s10602_s22  ;;  %v6329_v21 = vsel %vm16305_vm13, %v6299_v51, %v6300_v34  ;;  %vm16317_vm4 = vmmov %vm16301_vm0 }
0x1a05   :  { %v6210_v7 = vrot.slane %v14179_v39, 7  ;;  %v6258_v33 = vrot.slane %v14179_v39, 1  ;;  %v6306_v26 = vrot.slane %v14179_v39, 2  ;;  %v6208_v16 = vrot.slane %v14182_v4, 7  ;;  %vm16318_vm15 = vmmov %vm16301_vm0 }
0x1a06   :  { %v9064_v45 = vpop.f32.mrb[84].mxu1  ;;  %v6256_v55 = vrot.slane %v14182_v4, 1  ;;  %v6304_v25 = vrot.slane %v14182_v4, 2  ;;  %v9987_v53 = vpack.i.bf16 %v14179_v39, %v14161_v9  ;;  %v9982_v38 = vpack.i.bf16 %v6328_v17, %v6329_v21  ;;  %vm16319_vm1 = vmmov %vm16301_vm0 }
0x1a07   :  { %v6044_v37 = vpop.f32.mrb[85].mxu1  ;;  %v6053_v61 = vadd.f32 %v9064_v45, %v14088_v8  ;;  %v6278_v6 = vsel %vm16306_vm12, %v6254_v46, %v6255_v1  ;;  %v6279_v36 = vsel %vm16307_vm3, %v6253_v18, %v6254_v46  ;;  %vm16314_vm5 = vcmp.lt.s32.totalorder %v10657_v14, 1  ;;  %vm16321_vm12 = vmmov %vm16307_vm3 }
0x1a08   :  { %v6045_v44 = vadd.f32 %v14088_v8, %v6044_v37  ;;  %v9065_v2 = vpop.f32.mrb[86].mxu1  ;;  %9988 = vrot.lane.b32.xlu1 %v9987_v53, %s10600_s25  ;;  %v9997_v37 = vpack.i.bf16 %v6278_v6, %v6279_v36  ;;  %9983 = vrot.lane.b32.xlu0 %v9982_v38, %s10603_s26  ;;  %v9992_v38 = vpack.i.bf16 %v14182_v4, %v14164_v31  ;;  %vm16315_vm11 = vmmov %vm16314_vm5 }
0x1a09   :  { %v6056_v63 = vadd.f32 %v9065_v2, %v14088_v8  ;;  %v6047_v42 = vpop.f32.mrb[87].mxu1  ;;  %v14217_v45 = vsel %vm16308_vm2, %v6053_v61, %v9951_v50  ;;  %v6326_v6 = vsel %vm16312_vm7, %v6302_v54, %v6303_v3  ;;  %v6229_v62 = vsel %vm16314_vm5, %v6207_v40, %v6208_v16  ;;  %vm16316_vm8 = vmmov %vm16314_vm5 }
0x1a0a   :  { %v14222_v34 = vsel %vm16309_vm10, %v6045_v44, %v14083_v24  ;;  %v6048_v17 = vadd.f32 %v14088_v8, %v6047_v42  ;;  %v6213_v2 = vrot.slane %v14217_v45, 7  ;;  %v6261_v18 = vrot.slane %v14217_v45, 1  ;;  %vm16320_vm13 = vmmov %vm16314_vm5 }
0x1a0b   :  { %v6309_v46 = vrot.slane %v14217_v45, 2  ;;  %v6211_v61 = vrot.slane %v14222_v34, 7  ;;  %v6259_v24 = vrot.slane %v14222_v34, 1  ;;  %v6307_v53 = vrot.slane %v14222_v34, 2  ;;  %vm16322_vm2 = vmmov %vm16307_vm3 }
0x1a0c   :  { %v14237_v44 = vsel %vm16310_vm14, %v6056_v63, %v9955_v15  ;;  %v14242_v42 = vsel %vm16311_vm9, %v6048_v17, %v9950_v11  ;;  %9998 = vrot.lane.b32.xlu1 %v9997_v37, %s10602_s22  ;;  %9993 = vrot.lane.b32.xlu0 %v9992_v38, %s10600_s25  ;;  %v6327_v37 = vsel %vm16313_vm6, %v6301_v0, %v6302_v54  ;;  %vm16323_vm10 = vmmov %vm16322_vm2 }
0x1a0d   :  { %v6214_v15 = vrot.slane %v14237_v44, 7  ;;  %v6262_v63 = vrot.slane %v14237_v44, 1  ;;  %v6310_v58 = vrot.slane %v14237_v44, 2  ;;  %v6212_v22 = vrot.slane %v14242_v42, 7  ;;  %vm16325_vm14 = vmmov %vm16313_vm6 }
0x1a0e   :  { %v9068_v11 = vpop.f32.mrb[88].mxu1  ;;  %v6260_v21 = vrot.slane %v14242_v42, 1  ;;  %v6308_v50 = vrot.slane %v14242_v42, 2  ;;  %v10002_v5 = vpack.i.bf16 %v6326_v6, %v6327_v37  ;;  %v6230_v0 = vsel %vm16315_vm11, %v6206_v59, %v6207_v40  ;;  %vm16326_vm9 = vmmov %vm16313_vm6 }
0x1a0f   :  { %v6060_v36 = vpop.f32.mrb[89].mxu1  ;;  %v6069_v30 = vadd.f32 %v9068_v11, %v14088_v8  ;;  %v10558_v11 = vld [vmem:[%s15994_s1 + $0x330] sm:$0xff]   ;;  %v6227_v32 = vsel %vm16316_vm8, %v6209_v60, %v6210_v7  ;;  %v10007_v59 = vpack.i.bf16 %v6229_v62, %v6230_v0  ;;  %v6274_v23 = vsel %vm16322_vm2, %v6258_v33, %v6259_v24  ;;  %vm16327_vm7 = vmmov %vm16313_vm6 }
0x1a10   :  { %v6061_v17 = vadd.f32 %v14088_v8, %v6060_v36  ;;  %v9069_v38 = vpop.f32.mrb[90].mxu1  ;;  %9070 = vmatprep.subr.bf16.mxu0 %v10558_v11  ;;  %10003 = vrot.lane.b32.xlu1 %v10002_v5, %s10603_s26  ;;  %v6228_v5 = vsel %vm16320_vm13, %v6208_v16, %v6209_v60  ;;  %vm16329_vm11 = vmmov %vm16314_vm5 }
0x1a11   :  { %v6072_v54 = vadd.f32 %v9069_v38, %v14088_v8  ;;  %v6063_v36 = vpop.f32.mrb[91].mxu1  ;;  %v14295_v6 = vsel %vm16301_vm0, %v6069_v30, %v9961_v10  ;;  %9071 = vmatpush3.bf16.msra.mxu0 %v10558_v11  ;;  %10008 = vrot.lane.b32.xlu0 %v10007_v59, %s10598_s23  ;;  %v10012_v59 = vpack.i.bf16 %v6227_v32, %v6228_v5  ;;  %v10560_v5 = vld [vmem:[%s15994_s1 + $0x340] sm:$0xff]   ;;  %vm16330_vm8 = vmmov %vm16314_vm5 }
0x1a12   :  { %v14300_v37 = vsel %vm16317_vm4, %v6061_v17, %v9956_v48  ;;  %v6064_v40 = vadd.f32 %v14088_v8, %v6063_v36  ;;  %v6217_v27 = vrot.slane %v14295_v6, 7  ;;  %v6265_v49 = vrot.slane %v14295_v6, 1  ;;  %9072 = vmatprep.subr.bf16.mxu0 %v10559_v19  ;;  %vm16332_vm0 = vmmov %vm16314_vm5 }
0x1a13   :  { %v6313_v35 = vrot.slane %v14295_v6, 2  ;;  %v6215_v10 = vrot.slane %v14300_v37, 7  ;;  %v6263_v48 = vrot.slane %v14300_v37, 1  ;;  %v6311_v8 = vrot.slane %v14300_v37, 2  ;;  %vm16333_vm4 = vmmov %vm16332_vm0 }
0x1a14   :  { %v14315_v30 = vsel %vm16318_vm15, %v6072_v54, %v14073_v56  ;;  %v14320_v62 = vsel %vm16319_vm1, %v6064_v40, %v9960_v13  ;;  %v6276_v56 = vsel %vm16321_vm12, %v6256_v55, %v6257_v29  ;;  %v6277_v40 = vsel %vm16307_vm3, %v6255_v1, %v6256_v55  ;;  %v16324_v55 = vld [vmem:[#allocation11_spill] sm:$0xff]  ;;  %10013 = vrot.lane.b32.xlu1 %v10012_v59, %s10598_s23  ;;  %vm16334_vm15 = vmmov %vm16332_vm0 }
0x1a15   :  { %v6170_v13 = vrot.slane %v14315_v30, 6  ;;  %v6218_v17 = vrot.slane %v14315_v30, 7  ;;  %v6266_v11 = vrot.slane %v14315_v30, 1  ;;  %v6314_v0 = vrot.slane %v14315_v30, 2  ;;  %9073 = vmatpush3.bf16.msra.mxu0 %v10559_v19  ;;  %vm16336_vm1 = vmmov %vm16322_vm2 }
0x1a16   :  { %v6216_v16 = vrot.slane %v14320_v62, 7  ;;  %v6264_v54 = vrot.slane %v14320_v62, 1  ;;  %v6312_v36 = vrot.slane %v14320_v62, 2  ;;  %v6275_v32 = vsel %vm16323_vm10, %v6257_v29, %v6258_v33  ;;  %9074 = vmatprep.subr.bf16.mxu0 %v10560_v5  ;;  %vm16337_vm13 = vmmov %vm16336_vm1 }
0x1a17   :  { %v10017_v1 = vpack.i.bf16 %v6276_v56, %v6277_v40  ;;  %v6290_v60 = vmul.f32 %v6274_v23, %v16324_v55  ;;  %v6324_v38 = vsel %vm16325_vm14, %v6304_v25, %v6305_v52  ;;  %v6325_v29 = vsel %vm16326_vm9, %v6303_v3, %v6304_v25  ;;  %vm16338_vm12 = vmmov %vm16336_vm1 }
0x1a18   :  { %v10022_v33 = vpack.i.bf16 %v6324_v38, %v6325_v29  ;;  %v6322_v23 = vsel %vm16327_vm7, %v6306_v26, %v6307_v53  ;;  %v6323_v56 = vsel %vm16313_vm6, %v6305_v52, %v6306_v26  ;;  %v6225_v3 = vsel %vm16314_vm5, %v6211_v61, %v6212_v22  ;;  %v16328_v38 = vld [vmem:[#allocation12_spill] sm:$0xff]  ;;  %v16331_v26 = vld [vmem:[#allocation13_spill] sm:$0xff]  ;;  %vm16339_vm3 = vmmov %vm16336_vm1 }
0x1a19   :  { %10018 = vrot.lane.b32.xlu0 %v10017_v1, %s10602_s22  ;;  %v10027_v25 = vpack.i.bf16 %v6290_v60, %v6275_v32  ;;  %v6338_v19 = vmul.f32 %v6322_v23, %v16328_v38  ;;  %v6226_v59 = vsel %vm16329_vm11, %v6210_v7, %v6211_v61  ;;  %v6223_v52 = vsel %vm16330_vm8, %v6213_v2, %v6214_v15  ;;  %v16335_v29 = vld [vmem:[#allocation9_spill] sm:$0xff]  ;;  %vm16340_vm2 = vmmov %vm16313_vm6 }
0x1a1a   :  { %v6243_v40 = vmul.f32 %v6226_v59, %v16331_v26  ;;  %v6224_v60 = vsel %vm16332_vm0, %v6212_v22, %v6213_v2  ;;  %v6233_v7 = vsel %vm16333_vm4, %v6203_v41, %v6204_v47  ;;  %v6234_v61 = vsel %vm16334_vm15, %v6218_v17, %v6203_v41  ;;  %9075 = vmatpush3.bf16.msra.mxu0 %v10560_v5  ;;  %v10561_v2 = vld [vmem:[%s15994_s1 + $0x348] sm:$0xff]   ;;  %vm16341_vm10 = vmmov %vm16340_vm2 }
0x1a1b   :  { %v10032_v32 = vpack.i.bf16 %v6338_v19, %v6323_v56  ;;  %v10042_v1 = vpack.i.bf16 %v6223_v52, %v6224_v60  ;;  %v6235_v23 = vmul.f32 %v6234_v61, %v16335_v29  ;;  %v10057_v22 = vpack.i.bf16 %v14237_v44, %v14217_v45  ;;  %10028 = vrot.lane.b32.xlu1 %v10027_v25, %s10602_s22  ;;  %vm16342_vm14 = vmmov %vm16340_vm2 }
0x1a1c   :  { %v10037_v47 = vpack.i.bf16 %v6225_v3, %v6243_v40  ;;  %v10052_v59 = vpack.i.bf16 %v14242_v42, %v14222_v34  ;;  %v14444_v41 = vsel %vm16336_vm1, %v6262_v63, %v6263_v48  ;;  %v14452_v5 = vsel %vm16337_vm13, %v6261_v18, %v6262_v63  ;;  %9076 = vmatprep.subr.bf16.mxu0 %v10561_v2  ;;  %vm16343_vm9 = vmmov %vm16340_vm2 }
0x1a1d   :  { %10023 = vrot.lane.b32.xlu0 %v10022_v33, %s10603_s26  ;;  %v10047_v56 = vpack.i.bf16 %v6233_v7, %v6235_v23  ;;  %v10067_v3 = vpack.i.bf16 %v14444_v41, %v14452_v5  ;;  %v6272_v25 = vsel %vm16338_vm12, %v6260_v21, %v6261_v18  ;;  %v6273_v63 = vsel %vm16339_vm3, %v6259_v24, %v6260_v21  ;;  %v10562_v24 = vld [vmem:[%s15994_s1 + $0x350] sm:$0xff]   ;;  %vm16344_vm7 = vmmov %vm16332_vm0 }
0x1a1e   :  { %v10062_v19 = vpack.i.bf16 %v6272_v25, %v6273_v63  ;;  %v6318_v33 = vsel %vm16340_vm2, %v6310_v58, %v6311_v8  ;;  %v6319_v18 = vsel %vm16341_vm10, %v6309_v46, %v6310_v58  ;;  %v6320_v21 = vsel %vm16342_vm14, %v6308_v50, %v6309_v46  ;;  %vm16345_vm6 = vmmov %vm16332_vm0  ;;  %9077 = vmatpush3.bf16.msra.mxu0 %v10561_v2 }
0x1a1f   :  { %v10077_v52 = vpack.i.bf16 %v6318_v33, %v6319_v18  ;;  %v6321_v58 = vsel %vm16343_vm9, %v6307_v53, %v6308_v50  ;;  %v6219_v40 = vsel %vm16344_vm7, %v6217_v27, %v6218_v17  ;;  %v6220_v46 = vsel %vm16345_vm6, %v6216_v16, %v6217_v27  ;;  %10033 = vrot.lane.b32.xlu1 %v10032_v32, %s10603_s26  ;;  %vm16346_vm5 = vmmov %vm16332_vm0 }
0x1a20   :  { %v10072_v60 = vpack.i.bf16 %v6320_v21, %v6321_v58  ;;  %v10087_v7 = vpack.i.bf16 %v6219_v40, %v6220_v46  ;;  %v6221_v50 = vsel %vm16346_vm5, %v6215_v10, %v6216_v16  ;;  %vm16347_vm11 = vmmov %vm16332_vm0  ;;  %v10097_v17 = vpack.i.bf16 %v14315_v30, %v14295_v6  ;;  %9078 = vmatprep.subr.bf16.mxu0 %v10562_v24 }
0x1a21   :  { %v6222_v53 = vsel %vm16347_vm11, %v6214_v15, %v6215_v10  ;;  %10038 = vrot.lane.b32.xlu0 %v10037_v47, %s10598_s23  ;;  %v10092_v61 = vpack.i.bf16 %v14320_v62, %v14300_v37  ;;  %vm16348_vm8 = vmmov %vm16336_vm1  ;;  %v16371_v40 = vrot.slane %v14161_v9, 6  ;;  %v16399_v30 = vrot.slane %v14300_v37, 6 }
0x1a22   :  { %v10082_v27 = vpack.i.bf16 %v6221_v50, %v6222_v53  ;;  %v6267_v16 = vsel %vm16348_vm8, %v6265_v49, %v6266_v11  ;;  %vm16349_vm0 = vmmov %vm16336_vm1  ;;  %9079 = vmatpush3.bf16.msra.mxu0 %v10562_v24 }
0x1a23   :  { %v6282_v15 = vsel %vm16349_vm0, %v6266_v11, %v6251_v12  ;;  %vm16350_vm4 = vmmov %vm16349_vm0  ;;  %v16353_v11 = vld [vmem:[#allocation6_spill] sm:$0xff]  ;;  %10043 = vrot.lane.b32.xlu1 %v10042_v1, %s10598_s23  ;;  %v16362_v1 = vrot.slane %v14130_v43, 6  ;;  %v16373_v50 = vmov %v16371_v40  ;;  %v16393_v43 = vrot.slane %v14295_v6, 6 }
0x1a24   :  { %v6268_v10 = vsel %vm16350_vm4, %v6264_v54, %v6265_v49  ;;  %vm16351_vm15 = vmmov %vm16349_vm0  ;;  %v6298_v23 = vmul.f32 %v6282_v15, %v16353_v11 }
0x1a25   :  { %v6269_v32 = vsel %vm16351_vm15, %v6263_v48, %v6264_v54  ;;  %vm16352_vm1 = vmmov %vm16340_vm2  ;;  %v16356_v54 = vld [vmem:[#allocation7_spill] sm:$0xff]  ;;  %vm16360_vm2 = vcmp.lt.s32.totalorder %v10657_v14, 2  ;;  %10048 = vrot.lane.b32.xlu0 %v10047_v56, %s10598_s23  ;;  %v16370_v56 = vrot.slane %v14179_v39, 6  ;;  %v16388_v39 = vmov %v16362_v1 }
0x1a26   :  { %v6315_v12 = vsel %vm16352_vm1, %v6313_v35, %v6314_v0  ;;  %v10102_v2 = vpack.i.bf16 %v6268_v10, %v6269_v32  ;;  %vm16354_vm13 = vmmov %vm16352_vm1  ;;  %v10112_v63 = vpack.i.bf16 %v6298_v23, %v6267_v16  ;;  %v16377_v16 = vrot.slane %v14222_v34, 6 }
0x1a27   :  { %v6330_v49 = vsel %vm16354_vm13, %v6314_v0, %v6299_v51  ;;  %vm16355_vm12 = vmmov %vm16352_vm1  ;;  %v16358_v51 = vrot.slane %v14116_v28, 6  ;;  %v16359_v0 = vrot.slane %v14104_v20, 6  ;;  %v16380_v32 = vmov %v16370_v56  ;;  %10058 = vrot.lane.b32.xlu1 %v10057_v22, %s10600_s25 }
0x1a28   :  { %v6316_v48 = vsel %vm16355_vm12, %v6312_v36, %v6313_v35  ;;  %v6346_v47 = vmul.f32 %v6330_v49, %v16356_v54  ;;  %vm16357_vm3 = vmmov %vm16352_vm1  ;;  %v16379_v10 = vmov %v16377_v16 }
0x1a29   :  { %v6317_v41 = vsel %vm16357_vm3, %v6311_v8, %v6312_v36  ;;  %v6183_v5 = vsel %vm16360_vm2, %v16359_v0, %v16358_v51  ;;  %v16361_v35 = vmov %v16359_v0  ;;  %vm16363_vm10 = vmmov %vm16360_vm2  ;;  %v16364_v8 = vrot.slane %v14182_v4, 6  ;;  %10053 = vrot.lane.b32.xlu0 %v10052_v59, %s10600_s25 }
0x1a2a   :  { %v6184_v25 = vsel %vm16363_vm10, %v16362_v1, %v16361_v35  ;;  %v10107_v33 = vpack.i.bf16 %v6316_v48, %v6317_v41  ;;  %v16365_v36 = vrot.slane %v14164_v31, 6  ;;  %vm16366_vm14 = vmmov %vm16360_vm2  ;;  %v16368_v20 = vmov %v16358_v51 }
0x1a2b   :  { %vm16369_vm9 = vmmov %vm16360_vm2  ;;  %v10117_v58 = vpack.i.bf16 %v6346_v47, %v6315_v12  ;;  %v16374_v53 = vmov %v16364_v8  ;;  %v16376_v31 = vrot.slane %v14242_v42, 6  ;;  %v16382_v4 = vrot.slane %v14237_v44, 6  ;;  %10068 = vrot.lane.b32.xlu1 %v10067_v3, %s10602_s22 }
0x1a2c   :  { %v14590_v18 = vsel %vm16366_vm14, %v16365_v36, %v16364_v8  ;;  %v16367_v21 = vmov %v16365_v36  ;;  %vm16372_vm7 = vmmov %vm16360_vm2  ;;  %v16383_v12 = vrot.slane %v14217_v45, 6  ;;  %v16389_v47 = vrot.slane %v14113_v57, 6 }
0x1a2d   :  { %v14598_v24 = vsel %vm16369_vm9, %v16368_v20, %v16367_v21  ;;  %v14606_v46 = vsel %vm16372_vm7, %v16371_v40, %v16370_v56  ;;  %vm16375_vm6 = vmmov %vm16360_vm2  ;;  %v16386_v48 = vmov %v16376_v31  ;;  %v16395_v35 = vmov %v16393_v43  ;;  %10063 = vrot.lane.b32.xlu0 %v10062_v19, %s10602_s22 }
0x1a2e   :  { %v14614_v28 = vsel %vm16375_vm6, %v16374_v53, %v16373_v50  ;;  %vm16378_vm5 = vmmov %vm16360_vm2  ;;  %v16385_v49 = vmov %v16383_v12  ;;  %v16391_v51 = vmov %v16389_v47  ;;  %v16396_v45 = vrot.slane %v14320_v62, 6 }
0x1a2f   :  { %v14622_v15 = vsel %vm16378_vm5, %v16377_v16, %v16376_v31  ;;  %vm16381_vm11 = vmmov %vm16360_vm2  ;;  %v16402_v6 = vmov %v16382_v4  ;;  %10078 = vrot.lane.b32.xlu1 %v10077_v52, %s10603_s26  ;;  %vm16406_vm14 = vcmask 261120   ;;  %vm16408_vm7 = vcmask 392192  }
0x1a30   :  { %v14630_v9 = vsel %vm16381_vm11, %v16380_v32, %v16379_v10  ;;  %vm16384_vm8 = vmmov %vm16360_vm2  ;;  %v16398_v22 = vmov %v16396_v45  ;;  %vm16410_vm5 = vcmask 523264  }
0x1a31   :  { %v14638_v23 = vsel %vm16384_vm8, %v16383_v12, %v16382_v4  ;;  %vm16387_vm0 = vmmov %vm16360_vm2  ;;  %10073 = vrot.lane.b32.xlu0 %v10072_v60, %s10603_s26  ;;  %vm16404_vm2 = vcmask 130048  }
0x1a32   :  { %v14646_v34 = vsel %vm16387_vm0, %v16386_v48, %v16385_v49  ;;  %vm16390_vm4 = vmmov %vm16387_vm0 }
0x1a33   :  { %v14654_v41 = vsel %vm16390_vm4, %v16389_v47, %v16388_v39  ;;  %vm16392_vm15 = vmmov %vm16387_vm0  ;;  %10088 = vrot.lane.b32.xlu1 %v10087_v7, %s10598_s23 }
0x1a34   :  { %v14666_v42 = vsel %vm16392_vm15, %v6170_v13, %v16391_v51  ;;  %vm16394_vm1 = vmmov %vm16387_vm0 }
0x1a35   :  { %v14674_v0 = vsel %vm16394_vm1, %v16393_v43, %v6170_v13  ;;  %vm16397_vm13 = vmmov %vm16387_vm0  ;;  %v16401_v13 = vmov %v16399_v30  ;;  %10083 = vrot.lane.b32.xlu0 %v10082_v27, %s10598_s23 }
0x1a36   :  { %v14682_v57 = vsel %vm16397_vm13, %v16396_v45, %v16395_v35  ;;  %vm16400_vm12 = vmmov %vm16387_vm0 }
0x1a37   :  { %v14691_v1 = vsel %vm16400_vm12, %v16399_v30, %v16398_v22  ;;  %vm16403_vm3 = vmmov %vm16387_vm0  ;;  %10098 = vrot.lane.b32.xlu1 %v10097_v17, %s10600_s25 }
0x1a38   :  { %v14699_v8 = vsel %vm16403_vm3, %v16402_v6, %v16401_v13  ;;  %vm16405_vm10 = vmmov %vm16404_vm2 }
0x1a39   :  { %10093 = vrot.lane.b32.xlu0 %v10092_v61, %s10600_s25  ;;  %vm16407_vm9 = vmmov %vm16406_vm14 }
0x1a3a   :  { %vm16409_vm6 = vmmov %vm16408_vm7 }
0x1a3b   :  { %10113 = vrot.lane.b32.xlu1 %v10112_v63, %s10602_s22  ;;  %vm16411_vm11 = vmmov %vm16410_vm5 }
0x1a3c   :  { %vm16412_vm8 = vmmov %vm16404_vm2 }
0x1a3d   :  { %10103 = vrot.lane.b32.xlu0 %v10102_v2, %s10602_s22  ;;  %vm16413_vm0 = vmmov %vm16404_vm2 }
0x1a3e   :  { %vm16414_vm4 = vmmov %vm16413_vm0 }
0x1a3f   :  { %10118 = vrot.lane.b32.xlu1 %v10117_v58, %s10603_s26  ;;  %vm16415_vm15 = vmmov %vm16413_vm0 }
0x1a40   :  { %vm16416_vm1 = vmmov %vm16407_vm9 }
0x1a41   :  { %10108 = vrot.lane.b32.xlu0 %v10107_v33, %s10603_s26  ;;  %vm16417_vm13 = vmmov %vm16416_vm1 }
0x1a42   :  { %vm16418_vm12 = vmmov %vm16409_vm6 }
0x1a43   :  { %vm16419_vm3 = vmmov %vm16409_vm6 }
0x1a71   :  { %v9964_v44 = vpop.permute.xlu1 %9963 }
0x1a72   :  { %v14713_v37 = vpop.permute.xlu0 %9968  ;;  %v9966_v33 = vunpack.i.h.bf16 %v9964_v44  ;;  %v9965_v36 = vunpack.i.l.bf16 %v9964_v44 }
0x1a75   :  { %v9974_v62 = vpop.permute.xlu1 %9973 }
0x1a76   :  { %v14715_v59 = vpop.permute.xlu0 %9978  ;;  %v9976_v52 = vunpack.i.h.bf16 %v9974_v62  ;;  %v9975_v60 = vunpack.i.l.bf16 %v9974_v62 }
0x1a78   :  { %v6606_v17 = vsel %vm16404_vm2, %v6183_v5, %v9976_v52  ;;  %v6605_v61 = vsel %vm16405_vm10, %v6184_v25, %v9975_v60  ;;  %vm16420_vm2 = vmmov %vm16416_vm1 }
0x1a79   :  { %v6621_v20 = vsel %vm16406_vm14, %v6605_v61, %v9965_v36  ;;  %v6622_v58 = vsel %vm16407_vm9, %v6606_v17, %v9966_v33  ;;  %vm16421_vm10 = vmmov %vm16410_vm5 }
0x1a7a   :  { %v9989_v3 = vpop.permute.xlu1 %9988  ;;  %v14717_v19 = vpop.permute.xlu0 %9983  ;;  %vm16422_vm14 = vmmov %vm16410_vm5 }
0x1a7b   :  { %v9990_v22 = vunpack.i.l.bf16 %v9989_v3  ;;  %vm16423_vm9 = vmmov %vm16416_vm1 }
0x1a7e   :  { %v9999_v7 = vpop.permute.xlu1 %9998  ;;  %v9994_v27 = vpop.permute.xlu0 %9993 }
0x1a7f   :  { %v10001_v2 = vunpack.i.h.bf16 %v9999_v7  ;;  %v10000_v63 = vunpack.i.l.bf16 %v9999_v7  ;;  %v9996_v51 = vunpack.i.h.bf16 %v9994_v27  ;;  %v9995_v43 = vunpack.i.l.bf16 %v9994_v27 }
0x1a80   :  { %v9991_v27 = vunpack.i.h.bf16 %v9989_v3 }
0x1a81   :  { %v6637_v50 = vsel %vm16408_vm7, %v6621_v20, %v10000_v63  ;;  %v6638_v53 = vsel %vm16409_vm6, %v6622_v58, %v10001_v2  ;;  %vm16424_vm7 = vmmov %vm16419_vm3 }
0x1a82   :  { %v10004_v21 = vpop.permute.xlu1 %10003  ;;  %vm16425_vm6 = vmmov %vm16419_vm3 }
0x1a83   :  { %v10006_v56 = vunpack.i.h.bf16 %v10004_v21  ;;  %v10005_v40 = vunpack.i.l.bf16 %v10004_v21  ;;  %v10009_v31 = vpop.permute.xlu0 %10008 }
0x1a84   :  { %v10011_v10 = vunpack.i.h.bf16 %v10009_v31  ;;  %v10010_v32 = vunpack.i.l.bf16 %v10009_v31 }
0x1a85   :  { %v14726_v5 = vsel %vm16410_vm5, %v6637_v50, %v10005_v40  ;;  %v14729_v25 = vsel %vm16411_vm11, %v6638_v53, %v10006_v56  ;;  %vm16426_vm11 = vmmov %vm16410_vm5 }
0x1a86   :  { %v6678_v16 = vpack.c.bf16 %v14729_v25, %v14726_v5  ;;  %v10014_v4 = vpop.permute.xlu1 %10013  ;;  %v6608_v39 = vsel %vm16412_vm8, %v14590_v18, %v10011_v10  ;;  %v6607_v47 = vsel %vm16413_vm0, %v14598_v24, %v10010_v32  ;;  %vm16428_vm8 = vmmov %vm16413_vm0 }
0x1a87   :  { %v10016_v12 = vunpack.i.h.bf16 %v10014_v4  ;;  %v10015_v49 = vunpack.i.l.bf16 %v10014_v4  ;;  %v6623_v44 = vsel %vm16416_vm1, %v6607_v47, %v9995_v43  ;;  %v6624_v62 = vsel %vm16417_vm13, %v6608_v39, %v9996_v51 }
0x1a88   :  { %v9970_v39 = vunpack.i.l.bf16 %v14713_v37  ;;  %v9981_v47 = vunpack.i.h.bf16 %v14715_v59  ;;  %v9980_v51 = vunpack.i.l.bf16 %v14715_v59 }
0x1a89   :  { %v6610_v13 = vsel %vm16414_vm4, %v14606_v46, %v10016_v12  ;;  %v6609_v6 = vsel %vm16415_vm15, %v14614_v28, %v10015_v49  ;;  %v16427_v12 = vld [vmem:[#allocation14_spill] sm:$0xff]  ;;  %vm16429_vm4 = vmmov %vm16416_vm1 }
0x1a8a   :  { %v6625_v2 = vsel %vm16420_vm2, %v6609_v6, %v9990_v22  ;;  %v6626_v33 = vsel %vm16423_vm9, %v6610_v13, %v9991_v27  ;;  %v6187_v49 = vmul.f32 %v14666_v42, %v16427_v12  ;;  %v9986_v22 = vunpack.i.h.bf16 %v14717_v19  ;;  %vm16430_vm15 = vmmov %vm16416_vm1 }
0x1a8b   :  { %v10019_v48 = vpop.permute.xlu0 %10018  ;;  %vm16431_vm1 = vmmov %vm16419_vm3  ;;  %vm16436_vm2 = vcmask 654336  }
0x1a8c   :  { %v10021_v35 = vunpack.i.h.bf16 %v10019_v48  ;;  %v10020_v45 = vunpack.i.l.bf16 %v10019_v48  ;;  %v9971_v48 = vunpack.i.h.bf16 %v14713_v37  ;;  %vm16432_vm13 = vmmov %vm16431_vm1 }
0x1a8d   :  { %v10029_v30 = vpop.permute.xlu1 %10028  ;;  %vm16439_vm9 = vmmov %vm16436_vm2 }
0x1a8e   :  { %v10031_v52 = vunpack.i.h.bf16 %v10029_v30  ;;  %v10030_v60 = vunpack.i.l.bf16 %v10029_v30  ;;  %v6639_v17 = vsel %vm16418_vm12, %v6623_v44, %v10020_v45  ;;  %v6640_v61 = vsel %vm16419_vm3, %v6624_v62, %v10021_v35  ;;  %vm16433_vm12 = vmmov %vm16410_vm5 }
0x1a8f   :  { %v10024_v18 = vpop.permute.xlu0 %10023  ;;  %v9985_v30 = vunpack.i.l.bf16 %v14717_v19  ;;  %vm16434_vm3 = vmmov %vm16410_vm5 }
0x1a90   :  { %v10026_v24 = vunpack.i.h.bf16 %v10024_v18  ;;  %v10025_v7 = vunpack.i.l.bf16 %v10024_v18  ;;  %v6641_v56 = vsel %vm16424_vm7, %v6625_v2, %v10030_v60  ;;  %v6642_v3 = vsel %vm16425_vm6, %v6626_v33, %v10031_v52  ;;  %vm16440_vm7 = vmmov %vm16413_vm0 }
0x1a91   :  { %v10034_v63 = vpop.permute.xlu1 %10033  ;;  %vm16441_vm6 = vmmov %vm16413_vm0 }
0x1a92   :  { %v6655_v46 = vsel %vm16421_vm10, %v6639_v17, %v10025_v7  ;;  %v6656_v28 = vsel %vm16422_vm14, %v6640_v61, %v10026_v24  ;;  %v10036_v21 = vunpack.i.h.bf16 %v10034_v63  ;;  %v10035_v20 = vunpack.i.l.bf16 %v10034_v63  ;;  %vm16437_vm10 = vmmov %vm16413_vm0 }
0x1a93   :  { %v6679_v36 = vpack.c.bf16 %v6656_v28, %v6655_v46  ;;  %v10039_v58 = vpop.permute.xlu0 %10038  ;;  %v16435_v46 = vld [vmem:[#allocation15_spill] sm:$0xff]  ;;  %vm16438_vm14 = vmmov %vm16413_vm0 }
0x1a94   :  { %v14752_v40 = vsel %vm16410_vm5, %v6641_v56, %v10035_v20  ;;  %v14755_v50 = vsel %vm16426_vm11, %v6642_v3, %v10036_v21  ;;  %v10041_v37 = vunpack.i.h.bf16 %v10039_v58  ;;  %v10040_v60 = vunpack.i.l.bf16 %v10039_v58  ;;  %vm16442_vm5 = vmmov %vm16429_vm4 }
0x1a95   :  { %v6680_v53 = vpack.c.bf16 %v14755_v50, %v14752_v40  ;;  %v10044_v31 = vpop.permute.xlu1 %10043  ;;  %v6195_v28 = vmul.f32 %v14630_v9, %v16435_v46  ;;  %vm16443_vm11 = vmmov %vm16429_vm4 }
0x1a96   :  { %v10046_v62 = vunpack.i.h.bf16 %v10044_v31  ;;  %v10045_v18 = vunpack.i.l.bf16 %v10044_v31  ;;  %v6612_v9 = vsel %vm16440_vm7, %v14622_v15, %v10041_v37 }
0x1a97   :  { %v10049_v10 = vpop.permute.xlu0 %10048  ;;  %v6611_v3 = vsel %vm16441_vm6, %v6195_v28, %v10040_v60 }
0x1a98   :  { %v10051_v32 = vunpack.i.h.bf16 %v10049_v10  ;;  %v10050_v4 = vunpack.i.l.bf16 %v10049_v10  ;;  %v6614_v21 = vsel %vm16437_vm10, %v14638_v23, %v10046_v62  ;;  %v6613_v20 = vsel %vm16438_vm14, %v14646_v34, %v10045_v18 }
0x1a99   :  { %v10059_v45 = vpop.permute.xlu1 %10058 }
0x1a9a   :  { %v6603_v43 = vsel %vm16428_vm8, %v6187_v49, %v10050_v4  ;;  %v6604_v35 = vsel %vm16413_vm0, %v14654_v41, %v10051_v32  ;;  %v10061_v24 = vunpack.i.h.bf16 %v10059_v45  ;;  %v10060_v7 = vunpack.i.l.bf16 %v10059_v45  ;;  %vm16444_vm8 = vmmov %vm16436_vm2 }
0x1a9b   :  { %v6619_v42 = vsel %vm16429_vm4, %v6603_v43, %v9970_v39  ;;  %v6620_v13 = vsel %vm16430_vm15, %v6604_v35, %v9971_v48  ;;  %v10054_v6 = vpop.permute.xlu0 %10053  ;;  %vm16445_vm0 = vmmov %vm16429_vm4 }
0x1a9c   :  { %v6635_v44 = vsel %vm16431_vm1, %v6619_v42, %v9980_v51  ;;  %v6636_v59 = vsel %vm16432_vm13, %v6620_v13, %v9981_v47  ;;  %v10056_v17 = vunpack.i.h.bf16 %v10054_v6  ;;  %v10055_v61 = vunpack.i.l.bf16 %v10054_v6  ;;  %vm16446_vm4 = vmmov %vm16445_vm0 }
0x1a9d   :  { %v6651_v52 = vsel %vm16433_vm12, %v6635_v44, %v9985_v30  ;;  %v6652_v41 = vsel %vm16434_vm3, %v6636_v59, %v9986_v22  ;;  %v10069_v19 = vpop.permute.xlu1 %10068  ;;  %v6629_v31 = vsel %vm16442_vm5, %v6613_v20, %v10060_v7  ;;  %v6630_v10 = vsel %vm16443_vm11, %v6614_v21, %v10061_v24  ;;  %vm16447_vm15 = vmmov %vm16431_vm1 }
0x1a9e   :  { %v6677_v27 = vpack.c.bf16 %v6652_v41, %v6651_v52  ;;  %v10071_v63 = vunpack.i.h.bf16 %v10069_v19  ;;  %v10070_v33 = vunpack.i.l.bf16 %v10069_v19  ;;  %v6628_v34 = vsel %vm16445_vm0, %v6612_v9, %v10056_v17  ;;  %vm16448_vm13 = vmmov %vm16431_vm1 }
0x1a9f   :  { %v10064_v2 = vpop.permute.xlu0 %10063  ;;  %v6627_v32 = vsel %vm16446_vm4, %v6611_v3, %v10055_v61  ;;  %vm16449_vm12 = vmmov %vm16431_vm1 }
0x1aa0   :  { %9080 = vmatprep.mubr.msk.bf16.mxu0 %vm16436_vm2, %v6677_v27  ;;  %v10066_v58 = vunpack.i.h.bf16 %v10064_v2  ;;  %v10065_v56 = vunpack.i.l.bf16 %v10064_v2  ;;  %v6646_v15 = vsel %vm16431_vm1, %v6630_v10, %v10071_v63  ;;  %vm16450_vm2 = vmmov %vm16434_vm3 }
0x1aa1   :  { %9081 = vmatmul.mubr.msk.bf16.vlgmr.msra.gmra.mrb[100].mxu0 %vm16439_vm9, %v6678_v16  ;;  %v10079_v23 = vpop.permute.xlu1 %10078  ;;  %v6645_v16 = vsel %vm16447_vm15, %v6629_v31, %v10070_v33  ;;  %vm16451_vm10 = vmmov %vm16450_vm2 }
0x1aa2   :  { %9084 = vmatprep.mubr.msk.bf16.mxu0 %vm16444_vm8, %v6679_v36  ;;  %v10081_v4 = vunpack.i.h.bf16 %v10079_v23  ;;  %v10080_v5 = vunpack.i.l.bf16 %v10079_v23  ;;  %v6643_v39 = vsel %vm16448_vm13, %v6627_v32, %v10065_v56  ;;  %v6644_v47 = vsel %vm16449_vm12, %v6628_v34, %v10066_v58  ;;  %vm16452_vm14 = vmmov %vm16450_vm2 }
0x1aa3   :  { %v10074_v25 = vpop.permute.xlu0 %10073  ;;  %vm16453_vm9 = vmmov %vm16444_vm8 }
0x1aa4   :  { %v10076_v49 = vunpack.i.h.bf16 %v10074_v25  ;;  %v10075_v48 = vunpack.i.l.bf16 %v10074_v25  ;;  %v6661_v51 = vsel %vm16434_vm3, %v6645_v16, %v10080_v5  ;;  %v6662_v36 = vsel %vm16450_vm2, %v6646_v15, %v10081_v4  ;;  %vm16454_vm7 = vmmov %vm16444_vm8  ;;  %v14834_v25 = vld [vmem:[%s15995_s2 + $0xc] ss:$0 sm:$0xff] }
0x1aa5   :  { %v6682_v43 = vpack.c.bf16 %v6662_v36, %v6661_v51  ;;  %v10089_v22 = vpop.permute.xlu1 %10088  ;;  %vm16455_vm5 = vmmov %vm16441_vm6 }
0x1aa6   :  { %v6659_v35 = vsel %vm16451_vm10, %v6643_v39, %v10075_v48  ;;  %v6660_v45 = vsel %vm16452_vm14, %v6644_v47, %v10076_v49  ;;  %v10091_v37 = vunpack.i.h.bf16 %v10089_v22  ;;  %v10090_v44 = vunpack.i.l.bf16 %v10089_v22  ;;  %vm16456_vm11 = vmmov %vm16454_vm7 }
0x1aa7   :  { %v6681_v30 = vpack.c.bf16 %v6660_v45, %v6659_v35  ;;  %v10084_v42 = vpop.permute.xlu0 %10083  ;;  %vm16457_vm8 = vmmov %vm16455_vm5 }
0x1aa8   :  { %v10086_v59 = vunpack.i.h.bf16 %v10084_v42  ;;  %v10085_v62 = vunpack.i.l.bf16 %v10084_v42  ;;  %v6618_v40 = vsel %vm16441_vm6, %v14674_v0, %v10091_v37  ;;  %v6617_v50 = vsel %vm16455_vm5, %v14682_v57, %v10090_v44  ;;  %vm16458_vm0 = vmmov %vm16455_vm5 }
0x1aa9   :  { %9085 = vmatmul.mubr.msk.bf16.gmra.mrb[104].mxu0 %vm16453_vm9, %v6680_v53  ;;  %v10099_v13 = vpop.permute.xlu1 %10098  ;;  %vm16459_vm15 = vmmov %vm16446_vm4 }
0x1aaa   :  { %9088 = vmatprep.mubr.msk.bf16.mxu0 %vm16454_vm7, %v6681_v30  ;;  %v10101_v18 = vunpack.i.h.bf16 %v10099_v13  ;;  %v10100_v52 = vunpack.i.l.bf16 %v10099_v13  ;;  %v6616_v61 = vsel %vm16457_vm8, %v14691_v1, %v10086_v59  ;;  %v6615_v2 = vsel %vm16458_vm0, %v14699_v8, %v10085_v62  ;;  %vm16460_vm1 = vmmov %vm16446_vm4  ;;  %v10563_v13 = vld [vmem:[%s15994_s1 + $0x358] sm:$0xff]  }
0x1aab   :  { %v10094_v6 = vpop.permute.xlu0 %10093  ;;  %vm16461_vm13 = vmmov %vm16460_vm1  ;;  %9096 = vmatprep.subr.bf16.mxu1 %v10563_v13  ;;  %vm16470_vm8 = vcmp.lt.s32.totalorder %v10657_v14, 1  ;;  %vm16471_vm0 = vcmp.lt.s32.totalorder %v10657_v14, 7 }
0x1aac   :  { %v10096_v60 = vunpack.i.h.bf16 %v10094_v6  ;;  %v10095_v24 = vunpack.i.l.bf16 %v10094_v6  ;;  %v6633_v28 = vsel %vm16446_vm4, %v6617_v50, %v10100_v52  ;;  %v6634_v63 = vsel %vm16459_vm15, %v6618_v40, %v10101_v18  ;;  %vm16462_vm3 = vmmov %vm16449_vm12  ;;  %9097 = vmatpush3.bf16.msra.mxu1 %v10563_v13 }
0x1aad   :  { %v10114_v41 = vpop.permute.xlu1 %10113  ;;  %vm16463_vm2 = vmmov %vm16462_vm3  ;;  %vm16472_vm4 = vcmp.lt.s32.totalorder %v10657_v14, 6 }
0x1aae   :  { %v10116_v19 = vunpack.i.h.bf16 %v10114_v41  ;;  %v10115_v27 = vunpack.i.l.bf16 %v10114_v41  ;;  %v6631_v0 = vsel %vm16460_vm1, %v6615_v2, %v10095_v24  ;;  %v6632_v21 = vsel %vm16461_vm13, %v6616_v61, %v10096_v60  ;;  %vm16464_vm10 = vmmov %vm16463_vm2 }
0x1aaf   :  { %v10104_v7 = vpop.permute.xlu0 %10103  ;;  %vm16465_vm9 = vmmov %vm16452_vm14 }
0x1ab0   :  { %v10106_v53 = vunpack.i.h.bf16 %v10104_v7  ;;  %v10105_v17 = vunpack.i.l.bf16 %v10104_v7  ;;  %v6650_v56 = vsel %vm16449_vm12, %v6634_v63, %v10116_v19  ;;  %v6649_v9 = vsel %vm16462_vm3, %v6633_v28, %v10115_v27  ;;  %vm16466_vm7 = vmmov %vm16465_vm9 }
0x1ab1   :  { %9089 = vmatmul.mubr.msk.bf16.gmra.mrb[108].mxu0 %vm16456_vm11, %v6682_v43  ;;  %v10119_v33 = vpop.permute.xlu1 %10118  ;;  %vm16467_vm6 = vmmov %vm16466_vm7 }
0x1ab2   :  { %v10121_v57 = vunpack.i.h.bf16 %v10119_v33  ;;  %v10120_v20 = vunpack.i.l.bf16 %v10119_v33  ;;  %v6647_v8 = vsel %vm16463_vm2, %v6631_v0, %v10105_v17  ;;  %v6648_v31 = vsel %vm16464_vm10, %v6632_v21, %v10106_v53  ;;  %vm16468_vm5 = vmmov %vm16456_vm11 }
0x1ab3   :  { %v10109_v58 = vpop.permute.xlu0 %10108  ;;  %vm16469_vm11 = vmmov %vm16468_vm5 }
0x1ab4   :  { %v10111_v1 = vunpack.i.h.bf16 %v10109_v58  ;;  %v10110_v3 = vunpack.i.l.bf16 %v10109_v58  ;;  %v6665_v10 = vsel %vm16452_vm14, %v6649_v9, %v10120_v20  ;;  %v6666_v23 = vsel %vm16465_vm9, %v6650_v56, %v10121_v57  ;;  %vm16473_vm15 = vmmov %vm16470_vm8 }
0x1ab5   :  { %v6684_v34 = vpack.c.bf16 %v6666_v23, %v6665_v10  ;;  %vm16474_vm1 = vmmov %vm16471_vm0 }
0x1ab6   :  { %v6663_v32 = vsel %vm16466_vm7, %v6647_v8, %v10110_v3  ;;  %v6664_v4 = vsel %vm16467_vm6, %v6648_v31, %v10111_v1  ;;  %vm16475_vm13 = vmmov %vm16471_vm0 }
0x1ab7   :  { %v6683_v5 = vpack.c.bf16 %v6664_v4, %v6663_v32  ;;  %vm16476_vm12 = vmmov %vm16472_vm4 }
0x1ab8   :  { %vm16477_vm3 = vmmov %vm16472_vm4 }
0x1ab9   :  { %9092 = vmatprep.mubr.msk.bf16.mxu0 %vm16468_vm5, %v6683_v5  ;;  %vm16478_vm2 = vmmov %vm16471_vm0 }
0x1aba   :  { %9093 = vmatmul.mubr.msk.bf16.gmra.mrb[112].mxu0 %vm16469_vm11, %v6684_v34  ;;  %vm16479_vm10 = vmmov %vm16477_vm3 }
0x1abb   :  { %vm16480_vm14 = vmmov %vm16470_vm8 }
0x1abc   :  { %vm16481_vm9 = vmmov %vm16470_vm8 }
0x1abd   :  { %vm16482_vm7 = vmmov %vm16470_vm8 }
0x1abe   :  { %vm16483_vm6 = vmmov %vm16482_vm7 }
0x1abf   :  { %vm16484_vm5 = vmmov %vm16471_vm0 }
0x1ac0   :  { %vm16485_vm11 = vmmov %vm16471_vm0 }
0x1b74   :  { %v9082_v16 = vpop.f32.mrb[100].mxu0 }
0x1b75   :  { %v6787_v15 = vadd.f32 %v9082_v16, %v14834_v25  ;;  %v6778_v49 = vpop.f32.mrb[101].mxu0 }
0x1b76   :  { %v6779_v48 = vadd.f32 %v14834_v25, %v6778_v49  ;;  %v9083_v39 = vpop.f32.mrb[102].mxu0 }
0x1b77   :  { %v14838_v47 = vmax.f32 %v6787_v15, 0.0  ;;  %v6790_v51 = vadd.f32 %v9083_v39, %v14834_v25  ;;  %v6781_v36 = vpop.f32.mrb[103].mxu0 }
0x1b78   :  { %v14841_v43 = vmax.f32 %v6779_v48, 0.0  ;;  %v6782_v35 = vadd.f32 %v14834_v25, %v6781_v36 }
0x1b79   :  { %v14844_v45 = vmax.f32 %v6790_v51, 0.0  ;;  %v6907_v22 = vrot.slane %v14838_v47, 7  ;;  %v6955_v30 = vrot.slane %v14838_v47, 1  ;;  %v7003_v42 = vrot.slane %v14838_v47, 2 }
0x1b7a   :  { %v14852_v6 = vmax.f32 %v6782_v35, 0.0  ;;  %v6953_v37 = vrot.slane %v14841_v43, 1  ;;  %v7001_v44 = vrot.slane %v14841_v43, 2  ;;  %v6905_v59 = vrot.slane %v14841_v43, 7 }
0x1b7b   :  { %v10122_v62 = vpack.i.bf16 %v14844_v45, %v14838_v47  ;;  %v6908_v18 = vrot.slane %v14844_v45, 7  ;;  %v6956_v52 = vrot.slane %v14844_v45, 1  ;;  %v7004_v41 = vrot.slane %v14844_v45, 2 }
0x1b7c   :  { %v9086_v60 = vpop.f32.mrb[104].mxu0  ;;  %v10127_v24 = vpack.i.bf16 %v14852_v6, %v14841_v43  ;;  %v6906_v7 = vrot.slane %v14852_v6, 7  ;;  %v6954_v19 = vrot.slane %v14852_v6, 1  ;;  %v7002_v27 = vrot.slane %v14852_v6, 2 }
0x1b7d   :  { %v6803_v40 = vadd.f32 %v9086_v60, %v14834_v25  ;;  %10123 = vrot.lane.b32.xlu1 %v10122_v62, %s10598_s23  ;;  %v6794_v50 = vpop.f32.mrb[105].mxu0  ;;  %v6933_v53 = vsel %vm16470_vm8, %v6907_v22, %v6908_v18  ;;  %v6981_v17 = vsel %vm16471_vm0, %v6955_v30, %v6956_v52  ;;  %v14875_v61 = vsel %vm16472_vm4, %v7003_v42, %v7004_v41  ;;  %vm16486_vm8 = vmmov %vm16471_vm0 }
0x1b7e   :  { %v6795_v2 = vadd.f32 %v14834_v25, %v6794_v50  ;;  %v9087_v28 = vpop.f32.mrb[106].mxu0  ;;  %10128 = vrot.lane.b32.xlu0 %v10127_v24, %s10598_s23  ;;  %v6934_v63 = vsel %vm16473_vm15, %v6906_v7, %v6907_v22  ;;  %v6982_v33 = vsel %vm16474_vm1, %v6954_v19, %v6955_v30  ;;  %v6983_v0 = vsel %vm16475_vm13, %v6953_v37, %v6954_v19  ;;  %vm16487_vm0 = vmmov %vm16477_vm3 }
0x1b7f   :  { %v14889_v21 = vmax.f32 %v6803_v40, 0.0  ;;  %v6806_v57 = vadd.f32 %v9087_v28, %v14834_v25  ;;  %v6797_v20 = vpop.f32.mrb[107].mxu0  ;;  %v10132_v58 = vpack.i.bf16 %v6933_v53, %v6934_v63  ;;  %v10137_v56 = vpack.i.bf16 %v6982_v33, %v6983_v0  ;;  %vm16488_vm4 = vmmov %vm16487_vm0 }
0x1b80   :  { %v14892_v9 = vmax.f32 %v6795_v2, 0.0  ;;  %v6798_v1 = vadd.f32 %v14834_v25, %v6797_v20  ;;  %v7030_v3 = vsel %vm16476_vm12, %v7002_v27, %v7003_v42  ;;  %v7031_v8 = vsel %vm16477_vm3, %v7001_v44, %v7002_v27  ;;  %v10564_v2 = vld [vmem:[%s15994_s1 + $0x360] sm:$0xff]   ;;  %vm16489_vm15 = vmmov %vm16487_vm0 }
0x1b81   :  { %v14901_v31 = vmax.f32 %v6806_v57, 0.0  ;;  %10133 = vrot.lane.b32.xlu1 %v10132_v58, %s10595_s17  ;;  %v10142_v10 = vpack.i.bf16 %v7030_v3, %v7031_v8  ;;  %v6911_v23 = vrot.slane %v14889_v21, 7  ;;  %v6959_v34 = vrot.slane %v14889_v21, 1  ;;  %9098 = vmatprep.subr.bf16.mxu1 %v10564_v2  ;;  %vm16490_vm13 = vmmov %vm16487_vm0 }
0x1b82   :  { %v14906_v32 = vmax.f32 %v6798_v1, 0.0  ;;  %10138 = vrot.lane.b32.xlu0 %v10137_v56, %s10599_s24  ;;  %v6957_v4 = vrot.slane %v14892_v9, 1  ;;  %v7005_v5 = vrot.slane %v14892_v9, 2  ;;  %v6909_v16 = vrot.slane %v14892_v9, 7  ;;  %9099 = vmatpush3.bf16.msra.mxu1 %v10564_v2  ;;  %vm16491_vm12 = vmmov %vm16483_vm6 }
0x1b83   :  { %v10147_v15 = vpack.i.bf16 %v14901_v31, %v14889_v21  ;;  %v6912_v49 = vrot.slane %v14901_v31, 7  ;;  %v6960_v48 = vrot.slane %v14901_v31, 1  ;;  %v7007_v39 = vrot.slane %v14889_v21, 2  ;;  %vm16492_vm3 = vmmov %vm16483_vm6 }
0x1b84   :  { %v9090_v51 = vpop.f32.mrb[108].mxu0  ;;  %v6980_v36 = vsel %vm16478_vm2, %v6956_v52, %v6957_v4  ;;  %v10152_v35 = vpack.i.bf16 %v14906_v32, %v14892_v9  ;;  %v7028_v22 = vsel %vm16479_vm10, %v7004_v41, %v7005_v5  ;;  %v6910_v30 = vrot.slane %v14906_v32, 7  ;;  %vm16493_vm2 = vmmov %vm16492_vm3 }
0x1b85   :  { %v6819_v42 = vadd.f32 %v9090_v51, %v14834_v25  ;;  %v6810_v13 = vpop.f32.mrb[109].mxu0  ;;  %10148 = vrot.lane.b32.xlu1 %v10147_v15, %s10598_s23  ;;  %v10157_v62 = vpack.i.bf16 %v6980_v36, %v6981_v17  ;;  %v10162_v60 = vpack.i.bf16 %v7028_v22, %v14875_v61  ;;  %v6932_v24 = vsel %vm16480_vm14, %v6908_v18, %v6909_v16  ;;  %vm16494_vm10 = vmmov %vm16493_vm2 }
0x1b86   :  { %v6811_v52 = vadd.f32 %v14834_v25, %v6810_v13  ;;  %v9091_v19 = vpop.f32.mrb[110].mxu0  ;;  %10143 = vrot.lane.b32.xlu0 %v10142_v10, %s10600_s25  ;;  %v6931_v41 = vsel %vm16481_vm9, %v6909_v16, %v6910_v30  ;;  %v6929_v27 = vsel %vm16482_vm7, %v6911_v23, %v6912_v49  ;;  %v6930_v40 = vsel %vm16483_vm6, %v6910_v30, %v6911_v23  ;;  %vm16495_vm14 = vmmov %vm16493_vm2 }
0x1b87   :  { %v14939_v50 = vmax.f32 %v6819_v42, 0.0  ;;  %v6822_v18 = vadd.f32 %v9091_v19, %v14834_v25  ;;  %v6813_v53 = vpop.f32.mrb[111].mxu0  ;;  %v10167_v17 = vpack.i.bf16 %v6931_v41, %v6932_v24  ;;  %v10172_v61 = vpack.i.bf16 %v6929_v27, %v6930_v40  ;;  %vm16497_vm7 = vmmov %vm16474_vm1 }
0x1b88   :  { %v14945_v28 = vmax.f32 %v6811_v52, 0.0  ;;  %v6814_v63 = vadd.f32 %v14834_v25, %v6813_v53  ;;  %v6958_v33 = vrot.slane %v14906_v32, 1  ;;  %v14951_v0 = vsel %vm16484_vm5, %v6959_v34, %v6960_v48  ;;  %vm16498_vm6 = vmmov %vm16474_vm1 }
0x1b89   :  { %v14953_v57 = vmax.f32 %v6822_v18, 0.0  ;;  %10158 = vrot.lane.b32.xlu1 %v10157_v62, %s10599_s24  ;;  %v7006_v20 = vrot.slane %v14906_v32, 2  ;;  %v7008_v58 = vrot.slane %v14901_v31, 2  ;;  %v6915_v56 = vrot.slane %v14939_v50, 7  ;;  %vm16499_vm5 = vmmov %vm16493_vm2 }
0x1b8a   :  { %v6961_v1 = vrot.slane %v14945_v28, 1  ;;  %v7009_v3 = vrot.slane %v14945_v28, 2  ;;  %v14961_v8 = vmax.f32 %v6814_v63, 0.0  ;;  %10153 = vrot.lane.b32.xlu0 %v10152_v35, %s10598_s23  ;;  %v6978_v10 = vsel %vm16485_vm11, %v6958_v33, %v6959_v34  ;;  %vm16500_vm11 = vmmov %vm16474_vm1 }
0x1b8b   :  { %v6979_v23 = vsel %vm16486_vm8, %v6957_v4, %v6958_v33  ;;  %v7026_v16 = vsel %vm16487_vm0, %v7006_v20, %v7007_v39  ;;  %v7027_v15 = vsel %vm16488_vm4, %v7005_v5, %v7006_v20  ;;  %v14974_v51 = vsel %vm16489_vm15, %v7007_v39, %v7008_v58  ;;  %vm16501_vm8 = vmmov %vm16474_vm1 }
0x1b8c   :  { %v10177_v36 = vpack.i.bf16 %v6978_v10, %v6979_v23  ;;  %v6976_v34 = vsel %vm16474_vm1, %v6960_v48, %v6961_v1  ;;  %v10182_v35 = vpack.i.bf16 %v7026_v16, %v7027_v15  ;;  %v7024_v4 = vsel %vm16490_vm13, %v7008_v58, %v7009_v3  ;;  %vm16502_vm4 = vmmov %vm16487_vm0 }
0x1b8d   :  { %v9094_v22 = vpop.f32.mrb[112].mxu0  ;;  %10163 = vrot.lane.b32.xlu1 %v10162_v60, %s10600_s25  ;;  %v6992_v5 = vmul.f32 %v6976_v34, %v16324_v55  ;;  %v7040_v39 = vmul.f32 %v7024_v4, %v16328_v38  ;;  %v6913_v30 = vrot.slane %v14945_v28, 7  ;;  %v6914_v42 = vrot.slane %v14961_v8, 7  ;;  %vm16503_vm15 = vmmov %vm16487_vm0 }
0x1b8e   :  { %v6835_v13 = vadd.f32 %v9094_v22, %v14834_v25  ;;  %v6826_v48 = vpop.f32.mrb[113].mxu0  ;;  %10168 = vrot.lane.b32.xlu0 %v10167_v17, %s10595_s17  ;;  %v6916_v62 = vrot.slane %v14953_v57, 7  ;;  %v14998_v60 = vsel %vm16491_vm12, %v6905_v59, %v6906_v7  ;;  %v10217_v24 = vpack.i.bf16 %v14953_v57, %v14939_v50  ;;  %vm16504_vm1 = vmmov %vm16487_vm0 }
0x1b8f   :  { %v6827_v52 = vadd.f32 %v14834_v25, %v6826_v48  ;;  %v9095_v19 = vpop.f32.mrb[114].mxu0  ;;  %v10187_v41 = vpack.i.bf16 %v6992_v5, %v14951_v0  ;;  %v10192_v27 = vpack.i.bf16 %v7040_v39, %v14974_v51  ;;  %v6927_v40 = vsel %vm16492_vm3, %v6913_v30, %v6914_v42  ;;  %vm16505_vm13 = vmmov %vm16493_vm2 }
0x1b90   :  { %v15007_v18 = vmax.f32 %v6835_v13, 0.0  ;;  %v6838_v53 = vadd.f32 %v9095_v19, %v14834_v25  ;;  %v6829_v17 = vpop.f32.mrb[115].mxu0  ;;  %v6928_v7 = vsel %vm16493_vm2, %v6912_v49, %v6913_v30  ;;  %v6925_v2 = vsel %vm16494_vm10, %v6915_v56, %v6916_v62  ;;  %vm16506_vm12 = vmmov %vm16493_vm2 }
0x1b91   :  { %v15018_v63 = vmax.f32 %v6827_v52, 0.0  ;;  %v6830_v33 = vadd.f32 %v14834_v25, %v6829_v17  ;;  %10173 = vrot.lane.b32.xlu1 %v10172_v61, %s10595_s17  ;;  %v6945_v0 = vmul.f32 %v6928_v7, %v16331_v26  ;;  %v6926_v20 = vsel %vm16495_vm14, %v6914_v42, %v6915_v56  ;;  %v15034_v25 = vld [vmem:[%s15994_s1 + $0x368] ss:$0 sps:$4 sm:$0xff]   ;;  %vm16507_vm3 = vmmov %vm16493_vm2 }
0x1b92   :  { %v15025_v58 = vmax.f32 %v6838_v53, 0.0  ;;  %10178 = vrot.lane.b32.xlu0 %v10177_v36, %s10599_s24  ;;  %v10202_v49 = vpack.i.bf16 %v6925_v2, %v6926_v20  ;;  %v10212_v10 = vpack.i.bf16 %v14961_v8, %v14945_v28  ;;  %v6963_v23 = vrot.slane %v14939_v50, 1  ;;  %vm16508_vm10 = vmmov %vm16498_vm6 }
0x1b93   :  { %v15036_v61 = vmax.f32 %v6830_v33, 0.0  ;;  %v10197_v16 = vpack.i.bf16 %v6927_v40, %v6945_v0  ;;  %v6964_v56 = vrot.slane %v14953_v57, 1  ;;  %v6965_v15 = vrot.slane %v15018_v63, 1  ;;  %vm16509_vm14 = vmmov %vm16498_vm6 }
0x1b94   :  { %v6872_v51 = vrot.slane %v15025_v58, 6  ;;  %v6920_v36 = vrot.slane %v15025_v58, 7  ;;  %v6962_v34 = vrot.slane %v14961_v8, 1  ;;  %v7011_v4 = vrot.slane %v14939_v50, 2 }
0x1b95   :  { %vm16496_vm9 = vcmask 1043456   ;;  %10188 = vrot.lane.b32.xlu1 %v10187_v41, %s10599_s24  ;;  %v15049_v22 = vsel %vm16497_vm7, %v6964_v56, %v6965_v15  ;;  %v15053_v5 = vsel %vm16498_vm6, %v6963_v23, %v6964_v56  ;;  %v7012_v39 = vrot.slane %v14953_v57, 2  ;;  %vm16511_vm7 = vmmov %vm16498_vm6 }
0x1b96   :  { %9149 = vmatprep.subr.msk.bf16.mxu1 %vm16496_vm9, %v15034_v25  ;;  %v7013_v30 = vrot.slane %v15018_v63, 2  ;;  %10183 = vrot.lane.b32.xlu0 %v10182_v35, %s10600_s25  ;;  %v6936_v42 = vsel %vm16499_vm5, %v6920_v36, %v6905_v59  ;;  %v10227_v13 = vpack.i.bf16 %v15049_v22, %v15053_v5  ;;  %v15066_v48 = vsel %vm16500_vm11, %v6962_v34, %v6963_v23  ;;  %vm16510_vm9 = vmmov %vm16498_vm6 }
0x1b97   :  { %v15072_v52 = vsel %vm16501_vm8, %v6961_v1, %v6962_v34  ;;  %v6937_v35 = vmul.f32 %v6936_v42, %v16335_v29  ;;  %v15083_v41 = vsel %vm16502_vm4, %v7011_v4, %v7012_v39  ;;  %v7010_v53 = vrot.slane %v14961_v8, 2  ;;  %vm16512_vm6 = vmmov %vm16487_vm0 }
0x1b98   :  { %v10222_v19 = vpack.i.bf16 %v15066_v48, %v15072_v52  ;;  %v15079_v59 = vsel %vm16487_vm0, %v7012_v39, %v7013_v30  ;;  %v6918_v1 = vrot.slane %v15036_v61, 7  ;;  %v6919_v17 = vrot.slane %v15007_v18, 7  ;;  %vm16513_vm5 = vmmov %vm16487_vm0 }
0x1b99   :  { %v10237_v40 = vpack.i.bf16 %v15079_v59, %v15083_v41  ;;  %10193 = vrot.lane.b32.xlu1 %v10192_v27, %s10600_s25  ;;  %v10207_v7 = vpack.i.bf16 %v14998_v60, %v6937_v35  ;;  %v6917_v2 = vrot.slane %v15018_v63, 7  ;;  %v15100_v20 = vsel %vm16503_vm15, %v7010_v53, %v7011_v4  ;;  %vm16514_vm11 = vmmov %vm16487_vm0 }
0x1b9a   :  { %10198 = vrot.lane.b32.xlu0 %v10197_v16, %s10595_s17  ;;  %v15106_v27 = vsel %vm16504_vm1, %v7009_v3, %v7010_v53  ;;  %v15110_v60 = vsel %vm16505_vm13, %v6919_v17, %v6920_v36  ;;  %v15114_v23 = vsel %vm16506_vm12, %v6918_v1, %v6919_v17  ;;  %v6967_v4 = vrot.slane %v15007_v18, 1  ;;  %vm16515_vm8 = vmmov %vm16487_vm0 }
0x1b9b   :  { %v10232_v16 = vpack.i.bf16 %v15100_v20, %v15106_v27  ;;  %v10247_v56 = vpack.i.bf16 %v15110_v60, %v15114_v23  ;;  %v15122_v34 = vsel %vm16507_vm3, %v6917_v2, %v6918_v1  ;;  %v15128_v3 = vsel %vm16493_vm2, %v6916_v62, %v6917_v2 }
0x1b9c   :  { %v10242_v36 = vpack.i.bf16 %v15122_v34, %v15128_v3  ;;  %v6968_v39 = vrot.slane %v15025_v58, 1  ;;  %v6966_v42 = vrot.slane %v15036_v61, 1  ;;  %v7015_v35 = vrot.slane %v15007_v18, 2 }
0x1b9d   :  { %10203 = vrot.lane.b32.xlu1 %v10202_v49, %s10595_s17  ;;  %v7016_v53 = vrot.slane %v15025_v58, 2  ;;  %v7014_v1 = vrot.slane %v15036_v61, 2  ;;  %v6859_v62 = vrot.slane %v14838_v47, 6  ;;  %vm16516_vm0 = vcmp.lt.s32.totalorder %v10657_v14, 2 }
0x1b9e   :  { %10208 = vrot.lane.b32.xlu0 %v10207_v7, %s10595_s17  ;;  %v6969_v17 = vsel %vm16508_vm10, %v6967_v4, %v6968_v39  ;;  %v6984_v2 = vsel %vm16509_vm14, %v6968_v39, %v6953_v37  ;;  %v6970_v49 = vsel %vm16510_vm9, %v6966_v42, %v6967_v4  ;;  %v6971_v20 = vsel %vm16511_vm7, %v6965_v15, %v6966_v42  ;;  %vm16517_vm4 = vmmov %vm16516_vm0 }
0x1b9f   :  { %v7000_v27 = vmul.f32 %v6984_v2, %v16353_v11  ;;  %v10262_v0 = vpack.i.bf16 %v6970_v49, %v6971_v20  ;;  %v7017_v47 = vsel %vm16512_vm6, %v7015_v35, %v7016_v53  ;;  %v7032_v7 = vsel %vm16513_vm5, %v7016_v53, %v7001_v44  ;;  %vm16518_vm15 = vmmov %vm16516_vm0 }
0x1ba0   :  { %v7048_v33 = vmul.f32 %v7032_v7, %v16356_v54  ;;  %v7018_v37 = vsel %vm16514_vm11, %v7014_v1, %v7015_v35  ;;  %v7019_v4 = vsel %vm16515_vm8, %v7013_v30, %v7014_v1  ;;  %v6860_v15 = vrot.slane %v14844_v45, 6  ;;  %vm16519_vm1 = vmmov %vm16516_vm0 }
0x1ba1   :  { %10218 = vrot.lane.b32.xlu1 %v10217_v24, %s10598_s23  ;;  %v10272_v39 = vpack.i.bf16 %v7000_v27, %v6969_v17  ;;  %v10267_v42 = vpack.i.bf16 %v7018_v37, %v7019_v4  ;;  %v6858_v2 = vrot.slane %v14852_v6, 6  ;;  %v6861_v44 = vrot.slane %v14892_v9, 6  ;;  %vm16520_vm13 = vmmov %vm16516_vm0 }
0x1ba2   :  { %10213 = vrot.lane.b32.xlu0 %v10212_v10, %s10598_s23  ;;  %v10277_v35 = vpack.i.bf16 %v7048_v33, %v7017_v47  ;;  %v6885_v45 = vsel %vm16516_vm0, %v6859_v62, %v6860_v15  ;;  %v6862_v30 = vrot.slane %v14906_v32, 6  ;;  %v6863_v53 = vrot.slane %v14889_v21, 6  ;;  %vm16521_vm12 = vmmov %vm16516_vm0 }
0x1ba3   :  { %v6886_v24 = vsel %vm16517_vm4, %v6858_v2, %v6859_v62  ;;  %v15182_v6 = vsel %vm16518_vm15, %v6860_v15, %v6861_v44  ;;  %v6864_v9 = vrot.slane %v14901_v31, 6  ;;  %v6865_v1 = vrot.slane %v14945_v28, 6  ;;  %vm16522_vm3 = vmmov %vm16516_vm0 }
0x1ba4   :  { %v15188_v10 = vsel %vm16519_vm1, %v6861_v44, %v6862_v30  ;;  %v15192_v32 = vsel %vm16520_vm13, %v6862_v30, %v6863_v53  ;;  %v6866_v21 = vrot.slane %v14961_v8, 6  ;;  %v6867_v33 = vrot.slane %v14939_v50, 6  ;;  %vm16523_vm2 = vmmov %vm16516_vm0 }
0x1ba5   :  { %10228 = vrot.lane.b32.xlu1 %v10227_v13, %s10599_s24  ;;  %v15202_v31 = vsel %vm16521_vm12, %v6863_v53, %v6864_v9  ;;  %v15206_v28 = vsel %vm16522_vm3, %v6864_v9, %v6865_v1  ;;  %v6868_v62 = vrot.slane %v14953_v57, 6  ;;  %v6857_v17 = vrot.slane %v14841_v43, 6  ;;  %vm16524_vm10 = vmmov %vm16516_vm0 }
0x1ba6   :  { %10223 = vrot.lane.b32.xlu0 %v10222_v19, %s10599_s24  ;;  %v15216_v50 = vsel %vm16523_vm2, %v6865_v1, %v6866_v21  ;;  %v15220_v8 = vsel %vm16524_vm10, %v6866_v21, %v6867_v33  ;;  %vm16525_vm14 = vcmask 1043456   ;;  %vm16526_vm9 = vmmov %vm16516_vm0  ;;  %v6870_v13 = vrot.slane %v15036_v61, 6 }
0x1ba7   :  { %v7427_v22 = vsel %vm16525_vm14, %v15034_v25, 0  ;;  %v15226_v57 = vsel %vm16526_vm9, %v6867_v33, %v6868_v62  ;;  %vm16527_vm7 = vmmov %vm16516_vm0  ;;  %v6871_v48 = vrot.slane %v15007_v18, 6  ;;  %v6869_v25 = vrot.slane %v15018_v63, 6 }
0x1ba8   :  { %v15230_v43 = vsel %vm16527_vm7, %v6857_v17, %v6858_v2  ;;  %vm16528_vm6 = vmmov %vm16516_vm0  ;;  %9101 = vmatpush3.bf16.msra.mxu1 %v7427_v22  ;;  %v16533_v41 = vpack.i.bf16 %v15036_v61, %v15018_v63  ;;  %vm16534_vm4 = vcmask 64512   ;;  %vm16536_vm1 = vcmask 130048  }
0x1ba9   :  { %v15236_v5 = vsel %vm16528_vm6, %v6872_v51, %v6857_v17  ;;  %10238 = vrot.lane.b32.xlu1 %v10237_v40, %s10600_s25  ;;  %vm16529_vm5 = vmmov %vm16516_vm0  ;;  %v15262_v59 = vsel %vm16516_vm0, %v6868_v62, %v6869_v25  ;;  %vm16538_vm12 = vcmask 195584   ;;  %vm16540_vm2 = vcmask 261120  }
0x1baa   :  { %10233 = vrot.lane.b32.xlu0 %v10232_v16, %s10600_s25  ;;  %v15250_v52 = vsel %vm16529_vm5, %v6871_v48, %v6872_v51  ;;  %vm16530_vm11 = vmmov %vm16516_vm0  ;;  %v16532_v51 = vpack.i.bf16 %v15025_v58, %v15007_v18 }
0x1bab   :  { %v15254_v19 = vsel %vm16530_vm11, %v6870_v13, %v6871_v48  ;;  %vm16531_vm8 = vmmov %vm16516_vm0 }
0x1bac   :  { %v15258_v49 = vsel %vm16531_vm8, %v6869_v25, %v6870_v13  ;;  %vm16535_vm15 = vmmov %vm16534_vm4 }
0x1bad   :  { %10248 = vrot.lane.b32.xlu1 %v10247_v56, %s10595_s17  ;;  %vm16537_vm13 = vmmov %vm16536_vm1 }
0x1bae   :  { %10243 = vrot.lane.b32.xlu0 %v10242_v36, %s10595_s17  ;;  %vm16539_vm3 = vmmov %vm16538_vm12 }
0x1baf   :  { %vm16541_vm10 = vmmov %vm16540_vm2 }
0x1bb0   :  { %vm16542_vm14 = vmmov %vm16534_vm4 }
0x1bb1   :  { %10258 = vrot.lane.b32.xlu1 %v16532_v51, %s10598_s23  ;;  %vm16543_vm9 = vmmov %vm16534_vm4 }
0x1bb2   :  { %10253 = vrot.lane.b32.xlu0 %v16533_v41, %s10598_s23  ;;  %vm16544_vm7 = vmmov %vm16534_vm4 }
0x1bb3   :  { %vm16545_vm6 = vmmov %vm16534_vm4 }
0x1bb4   :  { %vm16546_vm5 = vmmov %vm16536_vm1 }
0x1bb5   :  { %10273 = vrot.lane.b32.xlu1 %v10272_v39, %s10599_s24  ;;  %vm16547_vm11 = vmmov %vm16536_vm1 }
0x1bb6   :  { %10263 = vrot.lane.b32.xlu0 %v10262_v0, %s10599_s24  ;;  %vm16548_vm8 = vmmov %vm16539_vm3 }
0x1bb7   :  { %vm16549_vm0 = vmmov %vm16539_vm3 }
0x1bb9   :  { %10278 = vrot.lane.b32.xlu1 %v10277_v35, %s10600_s25 }
0x1bba   :  { %10268 = vrot.lane.b32.xlu0 %v10267_v42, %s10600_s25 }
0x1bef   :  { %v10124_v40 = vpop.permute.xlu1 %10123 }
0x1bf0   :  { %v15284_v60 = vpop.permute.xlu0 %10128  ;;  %v10126_v27 = vunpack.i.h.bf16 %v10124_v40  ;;  %v10125_v47 = vunpack.i.l.bf16 %v10124_v40 }
0x1bf3   :  { %v10134_v23 = vpop.permute.xlu1 %10133 }
0x1bf4   :  { %v15286_v16 = vpop.permute.xlu0 %10138  ;;  %v10136_v56 = vunpack.i.h.bf16 %v10134_v23  ;;  %v10135_v63 = vunpack.i.l.bf16 %v10134_v23 }
0x1bf6   :  { %v7308_v3 = vsel %vm16534_vm4, %v6885_v45, %v10136_v56  ;;  %v7307_v0 = vsel %vm16535_vm15, %v6886_v24, %v10135_v63  ;;  %vm16550_vm4 = vmmov %vm16536_vm1 }
0x1bf7   :  { %v10149_v18 = vpop.permute.xlu1 %10148  ;;  %v7323_v37 = vsel %vm16536_vm1, %v7307_v0, %v10125_v47  ;;  %v7324_v4 = vsel %vm16537_vm13, %v7308_v3, %v10126_v27  ;;  %vm16551_vm15 = vmmov %vm16540_vm2 }
0x1bf8   :  { %v15288_v58 = vpop.permute.xlu0 %10143  ;;  %v10150_v51 = vunpack.i.l.bf16 %v10149_v18  ;;  %vm16552_vm1 = vmmov %vm16540_vm2 }
0x1bf9   :  { %vm16553_vm13 = vmmov %vm16550_vm4 }
0x1bfb   :  { %v10159_v61 = vpop.permute.xlu1 %10158 }
0x1bfc   :  { %v10154_v34 = vpop.permute.xlu0 %10153  ;;  %v10161_v36 = vunpack.i.h.bf16 %v10159_v61  ;;  %v10160_v20 = vunpack.i.l.bf16 %v10159_v61 }
0x1bfd   :  { %v10156_v22 = vunpack.i.h.bf16 %v10154_v34  ;;  %v10155_v13 = vunpack.i.l.bf16 %v10154_v34  ;;  %v10151_v34 = vunpack.i.h.bf16 %v10149_v18 }
0x1bfe   :  { %v7339_v2 = vsel %vm16538_vm12, %v7323_v37, %v10160_v20  ;;  %v7340_v44 = vsel %vm16539_vm3, %v7324_v4, %v10161_v36  ;;  %vm16554_vm12 = vmmov %vm16549_vm0 }
0x1bff   :  { %v10164_v7 = vpop.permute.xlu1 %10163  ;;  %vm16555_vm3 = vmmov %vm16549_vm0 }
0x1c00   :  { %v10166_v15 = vunpack.i.h.bf16 %v10164_v7  ;;  %v10165_v39 = vunpack.i.l.bf16 %v10164_v7  ;;  %v10169_v42 = vpop.permute.xlu0 %10168 }
0x1c01   :  { %v10171_v35 = vunpack.i.h.bf16 %v10169_v42  ;;  %v10170_v45 = vunpack.i.l.bf16 %v10169_v42 }
0x1c02   :  { %v15297_v30 = vsel %vm16540_vm2, %v7339_v2, %v10165_v39  ;;  %v15300_v53 = vsel %vm16541_vm10, %v7340_v44, %v10166_v15  ;;  %vm16556_vm2 = vmmov %vm16552_vm1 }
0x1c03   :  { %v7375_v24 = vpack.c.bf16 %v15300_v53, %v15297_v30  ;;  %v10174_v9 = vpop.permute.xlu1 %10173  ;;  %v7310_v62 = vsel %vm16542_vm14, %v15188_v10, %v10171_v35  ;;  %v7309_v17 = vsel %vm16543_vm9, %v15182_v6, %v10170_v45  ;;  %vm16557_vm10 = vmmov %vm16552_vm1 }
0x1c04   :  { %v10176_v1 = vunpack.i.h.bf16 %v10174_v9  ;;  %v10175_v21 = vunpack.i.l.bf16 %v10174_v9  ;;  %v10179_v33 = vpop.permute.xlu0 %10178  ;;  %v7325_v56 = vsel %vm16546_vm5, %v7309_v17, %v10155_v13  ;;  %v7326_v63 = vsel %vm16547_vm11, %v7310_v62, %v10156_v22  ;;  %vm16558_vm14 = vmmov %vm16545_vm6 }
0x1c05   :  { %v10181_v48 = vunpack.i.h.bf16 %v10179_v33  ;;  %v10180_v25 = vunpack.i.l.bf16 %v10179_v33  ;;  %v6889_v33 = vmul.f32 %v15236_v5, %v16427_v12  ;;  %v10131_v62 = vunpack.i.h.bf16 %v15284_v60  ;;  %vm16559_vm9 = vmmov %vm16545_vm6 }
0x1c06   :  { %v7312_v40 = vsel %vm16544_vm7, %v15202_v31, %v10176_v1  ;;  %v7311_v23 = vsel %vm16545_vm6, %v15192_v32, %v10175_v21  ;;  %v10130_v17 = vunpack.i.l.bf16 %v15284_v60  ;;  %v10141_v22 = vunpack.i.h.bf16 %v15286_v16  ;;  %vm16560_vm7 = vmmov %vm16550_vm4 }
0x1c07   :  { %v10189_v41 = vpop.permute.xlu1 %10188  ;;  %v7341_v36 = vsel %vm16548_vm8, %v7325_v56, %v10180_v25  ;;  %v7342_v20 = vsel %vm16549_vm0, %v7326_v63, %v10181_v48  ;;  %v7327_v27 = vsel %vm16550_vm4, %v7311_v23, %v10150_v51  ;;  %v7328_v7 = vsel %vm16553_vm13, %v7312_v40, %v10151_v34  ;;  %vm16561_vm6 = vmmov %vm16550_vm4 }
0x1c08   :  { %v10184_v10 = vpop.permute.xlu0 %10183  ;;  %v10191_v61 = vunpack.i.h.bf16 %v10189_v41  ;;  %v10190_v3 = vunpack.i.l.bf16 %v10189_v41  ;;  %v10140_v13 = vunpack.i.l.bf16 %v15286_v16  ;;  %v10146_v41 = vunpack.i.h.bf16 %v15288_v58  ;;  %vm16562_vm5 = vmmov %vm16549_vm0 }
0x1c09   :  { %v10186_v6 = vunpack.i.h.bf16 %v10184_v10  ;;  %v10185_v0 = vunpack.i.l.bf16 %v10184_v10  ;;  %v10145_v40 = vunpack.i.l.bf16 %v15288_v58  ;;  %vm16563_vm11 = vmmov %vm16549_vm0  ;;  %vm16566_vm4 = vcmask 326656  }
0x1c0a   :  { %v7343_v42 = vsel %vm16554_vm12, %v7327_v27, %v10190_v3  ;;  %v7344_v18 = vsel %vm16555_vm3, %v7328_v7, %v10191_v61  ;;  %vm16564_vm8 = vmmov %vm16552_vm1 }
0x1c0b   :  { %v7357_v31 = vsel %vm16551_vm15, %v7341_v36, %v10185_v0  ;;  %v7358_v32 = vsel %vm16552_vm1, %v7342_v20, %v10186_v6  ;;  %v10194_v47 = vpop.permute.xlu1 %10193  ;;  %vm16565_vm0 = vmmov %vm16552_vm1 }
0x1c0c   :  { %v7376_v37 = vpack.c.bf16 %v7358_v32, %v7357_v31  ;;  %v10196_v4 = vunpack.i.h.bf16 %v10194_v47  ;;  %v10195_v15 = vunpack.i.l.bf16 %v10194_v47  ;;  %v10199_v39 = vpop.permute.xlu0 %10198  ;;  %v6897_v32 = vmul.f32 %v15206_v28, %v16435_v46  ;;  %vm16567_vm15 = vmmov %vm16559_vm9 }
0x1c0d   :  { %v10201_v60 = vunpack.i.h.bf16 %v10199_v39  ;;  %v10200_v6 = vunpack.i.l.bf16 %v10199_v39  ;;  %vm16568_vm1 = vmmov %vm16559_vm9 }
0x1c0e   :  { %v15323_v2 = vsel %vm16556_vm2, %v7343_v42, %v10195_v15  ;;  %v15326_v44 = vsel %vm16557_vm10, %v7344_v18, %v10196_v4  ;;  %vm16569_vm13 = vmmov %vm16566_vm4 }
0x1c0f   :  { %v7377_v35 = vpack.c.bf16 %v15326_v44, %v15323_v2  ;;  %v10204_v45 = vpop.permute.xlu1 %10203  ;;  %vm16570_vm12 = vmmov %vm16568_vm1 }
0x1c10   :  { %v10209_v9 = vpop.permute.xlu0 %10208  ;;  %v10206_v10 = vunpack.i.h.bf16 %v10204_v45  ;;  %v10205_v61 = vunpack.i.l.bf16 %v10204_v45  ;;  %v7314_v28 = vsel %vm16570_vm12, %v15216_v50, %v10201_v60  ;;  %vm16571_vm3 = vmmov %vm16568_vm1 }
0x1c11   :  { %v10211_v1 = vunpack.i.h.bf16 %v10209_v9  ;;  %v10210_v21 = vunpack.i.l.bf16 %v10209_v9  ;;  %v7313_v18 = vsel %vm16571_vm3, %v6897_v32, %v10200_v6  ;;  %vm16572_vm2 = vmmov %vm16561_vm6 }
0x1c12   :  { %v7316_v4 = vsel %vm16567_vm15, %v15226_v57, %v10206_v10  ;;  %v7315_v15 = vsel %vm16568_vm1, %v15220_v8, %v10205_v61  ;;  %vm16573_vm10 = vmmov %vm16572_vm2 }
0x1c13   :  { %v7305_v48 = vsel %vm16558_vm14, %v6889_v33, %v10210_v21  ;;  %v7306_v25 = vsel %vm16559_vm9, %v15230_v43, %v10211_v1  ;;  %v10219_v51 = vpop.permute.xlu1 %10218  ;;  %vm16574_vm14 = vmmov %vm16566_vm4 }
0x1c14   :  { %v7321_v5 = vsel %vm16560_vm7, %v7305_v48, %v10130_v17  ;;  %v7322_v23 = vsel %vm16561_vm6, %v7306_v25, %v10131_v62  ;;  %v10214_v56 = vpop.permute.xlu0 %10213  ;;  %v10221_v0 = vunpack.i.h.bf16 %v10219_v51  ;;  %v10220_v34 = vunpack.i.l.bf16 %v10219_v51  ;;  %vm16575_vm9 = vmmov %vm16572_vm2 }
0x1c15   :  { %v7337_v63 = vsel %vm16562_vm5, %v7321_v5, %v10140_v13  ;;  %v7338_v16 = vsel %vm16563_vm11, %v7322_v23, %v10141_v22  ;;  %v10216_v20 = vunpack.i.h.bf16 %v10214_v56  ;;  %v10215_v27 = vunpack.i.l.bf16 %v10214_v56  ;;  %vm16576_vm7 = vmmov %vm16572_vm2 }
0x1c16   :  { %v7353_v3 = vsel %vm16564_vm8, %v7337_v63, %v10145_v40  ;;  %v7354_v43 = vsel %vm16565_vm0, %v7338_v16, %v10146_v41  ;;  %v7331_v45 = vsel %vm16572_vm2, %v7315_v15, %v10220_v34  ;;  %v7332_v9 = vsel %vm16573_vm10, %v7316_v4, %v10221_v0  ;;  %vm16577_vm6 = vmmov %vm16562_vm5 }
0x1c17   :  { %v10229_v58 = vpop.permute.xlu1 %10228  ;;  %v7374_v36 = vpack.c.bf16 %v7354_v43, %v7353_v3  ;;  %v7330_v8 = vsel %vm16575_vm9, %v7314_v28, %v10216_v20  ;;  %v7329_v1 = vsel %vm16576_vm7, %v7313_v18, %v10215_v27  ;;  %vm16578_vm11 = vmmov %vm16562_vm5 }
0x1c18   :  { %v10224_v31 = vpop.permute.xlu0 %10223  ;;  %v10231_v47 = vunpack.i.h.bf16 %v10229_v58  ;;  %v10230_v7 = vunpack.i.l.bf16 %v10229_v58  ;;  %vm16579_vm8 = vmmov %vm16562_vm5 }
0x1c19   :  { %9102 = vmatprep.mubr.msk.bf16.mxu1 %vm16566_vm4, %v7374_v36  ;;  %v10226_v39 = vunpack.i.h.bf16 %v10224_v31  ;;  %v10225_v42 = vunpack.i.l.bf16 %v10224_v31  ;;  %vm16580_vm4 = vmmov %vm16565_vm0 }
0x1c1a   :  { %9103 = vmatmul.mubr.msk.bf16.vlgmr.msra.gmra.mrb[92].mxu1 %vm16569_vm13, %v7375_v24  ;;  %v7347_v24 = vsel %vm16577_vm6, %v7331_v45, %v10230_v7  ;;  %v7348_v50 = vsel %vm16562_vm5, %v7332_v9, %v10231_v47  ;;  %vm16581_vm15 = vmmov %vm16565_vm0 }
0x1c1b   :  { %v10239_v57 = vpop.permute.xlu1 %10238  ;;  %9106 = vmatprep.mubr.msk.bf16.mxu1 %vm16574_vm14, %v7376_v37  ;;  %v7345_v17 = vsel %vm16578_vm11, %v7329_v1, %v10225_v42  ;;  %v7346_v22 = vsel %vm16579_vm8, %v7330_v8, %v10226_v39  ;;  %vm16582_vm1 = vmmov %vm16565_vm0 }
0x1c1c   :  { %v10241_v21 = vunpack.i.h.bf16 %v10239_v57  ;;  %v10240_v30 = vunpack.i.l.bf16 %v10239_v57  ;;  %v10234_v53 = vpop.permute.xlu0 %10233  ;;  %vm16583_vm12 = vmmov %vm16569_vm13 }
0x1c1d   :  { %v10236_v33 = vunpack.i.h.bf16 %v10234_v53  ;;  %v10235_v62 = vunpack.i.l.bf16 %v10234_v53  ;;  %vm16584_vm2 = vmmov %vm16571_vm3  ;;  %v15405_v53 = vld [vmem:[%s15995_s2 + $0xd] ss:$0 sm:$0xff] }
0x1c1e   :  { %v7363_v13 = vsel %vm16565_vm0, %v7347_v24, %v10240_v30  ;;  %v7364_v37 = vsel %vm16580_vm4, %v7348_v50, %v10241_v21  ;;  %vm16585_vm10 = vmmov %vm16583_vm12 }
0x1c1f   :  { %v7379_v48 = vpack.c.bf16 %v7364_v37, %v7363_v13  ;;  %v7361_v25 = vsel %vm16581_vm15, %v7345_v17, %v10235_v62  ;;  %v7362_v51 = vsel %vm16582_vm1, %v7346_v22, %v10236_v33  ;;  %v10249_v41 = vpop.permute.xlu1 %10248  ;;  %vm16586_vm14 = vmmov %vm16584_vm2 }
0x1c20   :  { %v7378_v40 = vpack.c.bf16 %v7362_v51, %v7361_v25  ;;  %v10244_v5 = vpop.permute.xlu0 %10243  ;;  %v10251_v60 = vunpack.i.h.bf16 %v10249_v41  ;;  %v10250_v63 = vunpack.i.l.bf16 %v10249_v41  ;;  %vm16587_vm9 = vmmov %vm16584_vm2 }
0x1c21   :  { %v10246_v16 = vunpack.i.h.bf16 %v10244_v5  ;;  %v10245_v10 = vunpack.i.l.bf16 %v10244_v5  ;;  %vm16588_vm6 = vmmov %vm16576_vm7 }
0x1c22   :  { %9107 = vmatmul.mubr.msk.bf16.gmra.mrb[96].mxu1 %vm16569_vm13, %v7377_v35  ;;  %v7320_v2 = vsel %vm16571_vm3, %v15250_v52, %v10251_v60  ;;  %v7319_v44 = vsel %vm16584_vm2, %v15254_v19, %v10250_v63  ;;  %vm16589_vm5 = vmmov %vm16588_vm6 }
0x1c23   :  { %v10259_v23 = vpop.permute.xlu1 %10258  ;;  %9110 = vmatprep.mubr.msk.bf16.mxu1 %vm16583_vm12, %v7378_v40  ;;  %v7318_v27 = vsel %vm16586_vm14, %v15258_v49, %v10246_v16  ;;  %v7317_v31 = vsel %vm16587_vm9, %v15262_v59, %v10245_v10  ;;  %vm16590_vm11 = vmmov %vm16589_vm5  ;;  %vm16599_vm14 = vcmp.lt.s32.totalorder %v10657_v14, 1  ;;  %vm16600_vm9 = vcmp.lt.s32.totalorder %v10657_v14, 7 }
0x1c24   :  { %v10254_v56 = vpop.permute.xlu0 %10253  ;;  %v10261_v61 = vunpack.i.h.bf16 %v10259_v23  ;;  %v10260_v3 = vunpack.i.l.bf16 %v10259_v23  ;;  %vm16591_vm0 = vmmov %vm16579_vm8  ;;  %v10566_v23 = vld [vmem:[%s15994_s1 + $0x370] sm:$0xff]  }
0x1c25   :  { %v10256_v6 = vunpack.i.h.bf16 %v10254_v56  ;;  %v10255_v0 = vunpack.i.l.bf16 %v10254_v56  ;;  %vm16592_vm4 = vmmov %vm16591_vm0  ;;  %9118 = vmatprep.subr.bf16.mxu0 %v10566_v23  ;;  %9140 = vmatprep.subr.bf16.mxu1 %v10566_v23 }
0x1c26   :  { %v7335_v32 = vsel %vm16576_vm7, %v7319_v44, %v10260_v3  ;;  %v7336_v47 = vsel %vm16588_vm6, %v7320_v2, %v10261_v61  ;;  %vm16593_vm15 = vmmov %vm16591_vm0  ;;  %9119 = vmatpush3.bf16.msra.mxu0 %v10566_v23  ;;  %9143 = vmatpush3.bf16.msra.mxu1 %v10566_v23  ;;  %vm16601_vm7 = vcmp.lt.s32.totalorder %v10657_v14, 6 }
0x1c27   :  { %v10274_v43 = vpop.permute.xlu1 %10273  ;;  %v7333_v52 = vsel %vm16589_vm5, %v7317_v31, %v10255_v0  ;;  %v7334_v4 = vsel %vm16590_vm11, %v7318_v27, %v10256_v6  ;;  %vm16594_vm13 = vmmov %vm16582_vm1 }
0x1c28   :  { %v10264_v34 = vpop.permute.xlu0 %10263  ;;  %v10276_v58 = vunpack.i.h.bf16 %v10274_v43  ;;  %v10275_v36 = vunpack.i.l.bf16 %v10274_v43  ;;  %vm16595_vm12 = vmmov %vm16582_vm1 }
0x1c29   :  { %v10266_v35 = vunpack.i.h.bf16 %v10264_v34  ;;  %v10265_v20 = vunpack.i.l.bf16 %v10264_v34  ;;  %vm16596_vm3 = vmmov %vm16582_vm1 }
0x1c2a   :  { %9111 = vmatmul.mubr.msk.bf16.gmra.mrb[100].mxu1 %vm16585_vm10, %v7379_v48  ;;  %v7352_v42 = vsel %vm16579_vm8, %v7336_v47, %v10276_v58  ;;  %v7351_v28 = vsel %vm16591_vm0, %v7335_v32, %v10275_v36  ;;  %vm16597_vm2 = vmmov %vm16585_vm10 }
0x1c2b   :  { %v10279_v7 = vpop.permute.xlu1 %10278  ;;  %v7349_v59 = vsel %vm16592_vm4, %v7333_v52, %v10265_v20  ;;  %v7350_v45 = vsel %vm16593_vm15, %v7334_v4, %v10266_v35  ;;  %vm16598_vm10 = vmmov %vm16597_vm2 }
0x1c2c   :  { %v10281_v19 = vunpack.i.h.bf16 %v10279_v7  ;;  %v10280_v15 = vunpack.i.l.bf16 %v10279_v7  ;;  %v10269_v39 = vpop.permute.xlu0 %10268  ;;  %vm16602_vm6 = vmmov %vm16599_vm14 }
0x1c2d   :  { %v10271_v49 = vunpack.i.h.bf16 %v10269_v39  ;;  %v10270_v18 = vunpack.i.l.bf16 %v10269_v39  ;;  %vm16603_vm5 = vmmov %vm16600_vm9 }
0x1c2e   :  { %v7367_v9 = vsel %vm16582_vm1, %v7351_v28, %v10280_v15  ;;  %v7368_v57 = vsel %vm16594_vm13, %v7352_v42, %v10281_v19  ;;  %vm16604_vm11 = vmmov %vm16603_vm5 }
0x1c2f   :  { %v7381_v8 = vpack.c.bf16 %v7368_v57, %v7367_v9  ;;  %v7365_v1 = vsel %vm16595_vm12, %v7349_v59, %v10270_v18  ;;  %v7366_v21 = vsel %vm16596_vm3, %v7350_v45, %v10271_v49  ;;  %vm16605_vm8 = vmmov %vm16601_vm7 }
0x1c30   :  { %v7380_v30 = vpack.c.bf16 %v7366_v21, %v7365_v1  ;;  %vm16606_vm0 = vmmov %vm16601_vm7 }
0x1c31   :  { %vm16607_vm4 = vmmov %vm16603_vm5 }
0x1c32   :  { %9114 = vmatprep.mubr.msk.bf16.mxu1 %vm16597_vm2, %v7380_v30  ;;  %vm16608_vm15 = vmmov %vm16606_vm0 }
0x1c33   :  { %9115 = vmatmul.mubr.msk.bf16.gmra.mrb[104].mxu1 %vm16598_vm10, %v7381_v8  ;;  %vm16609_vm1 = vmmov %vm16602_vm6 }
0x1c34   :  { %vm16610_vm13 = vmmov %vm16609_vm1 }
0x1c35   :  { %vm16611_vm12 = vmmov %vm16609_vm1 }
0x1c36   :  { %vm16612_vm3 = vmmov %vm16609_vm1 }
0x1c37   :  { %vm16613_vm2 = vmmov %vm16607_vm4 }
0x1c38   :  { %vm16614_vm10 = vmmov %vm16613_vm2 }
0x1ced   :  { %v9104_v24 = vpop.f32.mrb[92].mxu1 }
0x1cee   :  { %v7472_v50 = vadd.f32 %v9104_v24, %v15405_v53  ;;  %v7463_v33 = vpop.f32.mrb[93].mxu1 }
0x1cef   :  { %v7464_v62 = vadd.f32 %v15405_v53, %v7463_v33  ;;  %v9105_v17 = vpop.f32.mrb[94].mxu1 }
0x1cf0   :  { %v15409_v22 = vmax.f32 %v7472_v50, 0.0  ;;  %v7475_v13 = vadd.f32 %v9105_v17, %v15405_v53  ;;  %v7466_v37 = vpop.f32.mrb[95].mxu1 }
0x1cf1   :  { %v15412_v48 = vmax.f32 %v7464_v62, 0.0  ;;  %v7467_v25 = vadd.f32 %v15405_v53, %v7466_v37 }
0x1cf2   :  { %v15415_v51 = vmax.f32 %v7475_v13, 0.0  ;;  %v7592_v41 = vrot.slane %v15409_v22, 7  ;;  %v7640_v40 = vrot.slane %v15409_v22, 1  ;;  %v7688_v5 = vrot.slane %v15409_v22, 2 }
0x1cf3   :  { %v15423_v56 = vmax.f32 %v7467_v25, 0.0  ;;  %v7638_v60 = vrot.slane %v15412_v48, 1  ;;  %v7686_v63 = vrot.slane %v15412_v48, 2  ;;  %v7590_v16 = vrot.slane %v15412_v48, 7 }
0x1cf4   :  { %v10282_v10 = vpack.i.bf16 %v15415_v51, %v15409_v22  ;;  %v7593_v61 = vrot.slane %v15415_v51, 7  ;;  %v7641_v3 = vrot.slane %v15415_v51, 1  ;;  %v7689_v43 = vrot.slane %v15415_v51, 2 }
0x1cf5   :  { %v9108_v6 = vpop.f32.mrb[96].mxu1  ;;  %v10287_v0 = vpack.i.bf16 %v15423_v56, %v15412_v48  ;;  %v7591_v34 = vrot.slane %v15423_v56, 7  ;;  %v7639_v58 = vrot.slane %v15423_v56, 1  ;;  %v7687_v36 = vrot.slane %v15423_v56, 2 }
0x1cf6   :  { %v7488_v2 = vadd.f32 %v9108_v6, %v15405_v53  ;;  %10283 = vrot.lane.b32.xlu1 %v10282_v10, %s10598_s23  ;;  %v7479_v44 = vpop.f32.mrb[97].mxu1  ;;  %v7618_v35 = vsel %vm16599_vm14, %v7592_v41, %v7593_v61  ;;  %v7666_v20 = vsel %vm16600_vm9, %v7640_v40, %v7641_v3  ;;  %v15446_v27 = vsel %vm16601_vm7, %v7688_v5, %v7689_v43  ;;  %vm16615_vm14 = vmmov %vm16613_vm2 }
0x1cf7   :  { %v7480_v31 = vadd.f32 %v15405_v53, %v7479_v44  ;;  %v9109_v32 = vpop.f32.mrb[98].mxu1  ;;  %10288 = vrot.lane.b32.xlu0 %v10287_v0, %s10598_s23  ;;  %v7619_v47 = vsel %vm16602_vm6, %v7591_v34, %v7592_v41  ;;  %v7667_v7 = vsel %vm16603_vm5, %v7639_v58, %v7640_v40  ;;  %v7668_v52 = vsel %vm16604_vm11, %v7638_v60, %v7639_v58  ;;  %vm16616_vm9 = vmmov %vm16606_vm0 }
0x1cf8   :  { %v15460_v4 = vmax.f32 %v7488_v2, 0.0  ;;  %v7491_v19 = vadd.f32 %v9109_v32, %v15405_v53  ;;  %v7482_v15 = vpop.f32.mrb[99].mxu1  ;;  %v10292_v39 = vpack.i.bf16 %v7618_v35, %v7619_v47  ;;  %v10297_v42 = vpack.i.bf16 %v7667_v7, %v7668_v52  ;;  %vm16617_vm7 = vmmov %vm16606_vm0 }
0x1cf9   :  { %v15463_v28 = vmax.f32 %v7480_v31, 0.0  ;;  %v7483_v49 = vadd.f32 %v15405_v53, %v7482_v15  ;;  %v7715_v18 = vsel %vm16605_vm8, %v7687_v36, %v7688_v5  ;;  %v7716_v59 = vsel %vm16606_vm0, %v7686_v63, %v7687_v36  ;;  %v10567_v31 = vld [vmem:[%s15994_s1 + $0x378] sm:$0xff]   ;;  %vm16618_vm6 = vmmov %vm16606_vm0 }
0x1cfa   :  { %v15472_v45 = vmax.f32 %v7491_v19, 0.0  ;;  %10293 = vrot.lane.b32.xlu1 %v10292_v39, %s10595_s17  ;;  %v10302_v9 = vpack.i.bf16 %v7715_v18, %v7716_v59  ;;  %v7596_v57 = vrot.slane %v15460_v4, 7  ;;  %v7644_v8 = vrot.slane %v15460_v4, 1  ;;  %9120 = vmatprep.subr.bf16.mxu0 %v10567_v31  ;;  %vm16619_vm5 = vmmov %vm16613_vm2 }
0x1cfb   :  { %v15477_v1 = vmax.f32 %v7483_v49, 0.0  ;;  %10298 = vrot.lane.b32.xlu0 %v10297_v42, %s10599_s24  ;;  %v7642_v21 = vrot.slane %v15463_v28, 1  ;;  %v7690_v30 = vrot.slane %v15463_v28, 2  ;;  %v7594_v24 = vrot.slane %v15463_v28, 7  ;;  %9121 = vmatpush3.bf16.msra.mxu0 %v10567_v31  ;;  %vm16620_vm11 = vmmov %vm16606_vm0 }
0x1cfc   :  { %v10307_v50 = vpack.i.bf16 %v15472_v45, %v15460_v4  ;;  %v7597_v33 = vrot.slane %v15472_v45, 7  ;;  %v7645_v62 = vrot.slane %v15472_v45, 1  ;;  %v7692_v17 = vrot.slane %v15460_v4, 2  ;;  %9141 = vmatprep.subr.bf16.mxu1 %v10567_v31  ;;  %vm16621_vm8 = vmmov %vm16609_vm1 }
0x1cfd   :  { %v9112_v13 = vpop.f32.mrb[100].mxu1  ;;  %v7665_v37 = vsel %vm16607_vm4, %v7641_v3, %v7642_v21  ;;  %v10312_v25 = vpack.i.bf16 %v15477_v1, %v15463_v28  ;;  %v7713_v41 = vsel %vm16608_vm15, %v7689_v43, %v7690_v30  ;;  %v7595_v40 = vrot.slane %v15477_v1, 7  ;;  %9144 = vmatpush3.bf16.msra.mxu1 %v10567_v31  ;;  %vm16622_vm0 = vmmov %vm16609_vm1 }
0x1cfe   :  { %v7504_v5 = vadd.f32 %v9112_v13, %v15405_v53  ;;  %v7495_v23 = vpop.f32.mrb[101].mxu1  ;;  %10308 = vrot.lane.b32.xlu1 %v10307_v50, %s10598_s23  ;;  %v10317_v10 = vpack.i.bf16 %v7665_v37, %v7666_v20  ;;  %v10322_v6 = vpack.i.bf16 %v7713_v41, %v15446_v27  ;;  %v7617_v0 = vsel %vm16609_vm1, %v7593_v61, %v7594_v24  ;;  %vm16623_vm4 = vmmov %vm16622_vm0 }
0x1cff   :  { %v7496_v3 = vadd.f32 %v15405_v53, %v7495_v23  ;;  %v9113_v58 = vpop.f32.mrb[102].mxu1  ;;  %10303 = vrot.lane.b32.xlu0 %v10302_v9, %s10600_s25  ;;  %v7616_v43 = vsel %vm16610_vm13, %v7594_v24, %v7595_v40  ;;  %v7614_v36 = vsel %vm16611_vm12, %v7596_v57, %v7597_v33  ;;  %v7615_v2 = vsel %vm16612_vm3, %v7595_v40, %v7596_v57  ;;  %vm16624_vm15 = vmmov %vm16622_vm0 }
0x1d00   :  { %v15510_v44 = vmax.f32 %v7504_v5, 0.0  ;;  %v7507_v61 = vadd.f32 %v9113_v58, %v15405_v53  ;;  %v7498_v35 = vpop.f32.mrb[103].mxu1  ;;  %v10327_v20 = vpack.i.bf16 %v7616_v43, %v7617_v0  ;;  %v10332_v27 = vpack.i.bf16 %v7614_v36, %v7615_v2  ;;  %vm16625_vm1 = vmmov %vm16622_vm0 }
0x1d01   :  { %v15516_v32 = vmax.f32 %v7496_v3, 0.0  ;;  %v7499_v47 = vadd.f32 %v15405_v53, %v7498_v35  ;;  %v7643_v7 = vrot.slane %v15477_v1, 1  ;;  %v15522_v52 = vsel %vm16613_vm2, %v7644_v8, %v7645_v62  ;;  %vm16628_vm3 = vmmov %vm16613_vm2 }
0x1d02   :  { %v15524_v19 = vmax.f32 %v7507_v61, 0.0  ;;  %10318 = vrot.lane.b32.xlu1 %v10317_v10, %s10599_s24  ;;  %v7691_v15 = vrot.slane %v15477_v1, 2  ;;  %v7693_v39 = vrot.slane %v15472_v45, 2  ;;  %v7600_v42 = vrot.slane %v15510_v44, 7 }
0x1d03   :  { %v7646_v49 = vrot.slane %v15516_v32, 1  ;;  %v7694_v18 = vrot.slane %v15516_v32, 2  ;;  %v15532_v59 = vmax.f32 %v7499_v47, 0.0  ;;  %10313 = vrot.lane.b32.xlu0 %v10312_v25, %s10598_s23  ;;  %v7663_v9 = vsel %vm16614_vm10, %v7643_v7, %v7644_v8  ;;  %vm16629_vm10 = vmmov %vm16622_vm0 }
0x1d04   :  { %v7664_v57 = vsel %vm16615_vm14, %v7642_v21, %v7643_v7  ;;  %v7711_v24 = vsel %vm16616_vm9, %v7691_v15, %v7692_v17  ;;  %v7712_v50 = vsel %vm16617_vm7, %v7690_v30, %v7691_v15  ;;  %v15545_v13 = vsel %vm16618_vm6, %v7692_v17, %v7693_v39  ;;  %vm16630_vm14 = vmmov %vm16613_vm2 }
0x1d05   :  { %v10337_v37 = vpack.i.bf16 %v7663_v9, %v7664_v57  ;;  %v7661_v8 = vsel %vm16619_vm5, %v7645_v62, %v7646_v49  ;;  %v10342_v25 = vpack.i.bf16 %v7711_v24, %v7712_v50  ;;  %v7709_v21 = vsel %vm16620_vm11, %v7693_v39, %v7694_v18  ;;  %vm16631_vm9 = vmmov %vm16613_vm2 }
0x1d06   :  { %v9116_v41 = vpop.f32.mrb[104].mxu1  ;;  %10323 = vrot.lane.b32.xlu1 %v10322_v6, %s10600_s25  ;;  %v7677_v30 = vmul.f32 %v7661_v8, %v16324_v55  ;;  %v7725_v17 = vmul.f32 %v7709_v21, %v16328_v38  ;;  %v7598_v40 = vrot.slane %v15516_v32, 7  ;;  %v7599_v5 = vrot.slane %v15532_v59, 7  ;;  %vm16632_vm7 = vmmov %vm16618_vm6 }
0x1d07   :  { %v7520_v62 = vadd.f32 %v9116_v41, %v15405_v53  ;;  %v7511_v23 = vpop.f32.mrb[105].mxu1  ;;  %10328 = vrot.lane.b32.xlu0 %v10327_v20, %s10595_s17  ;;  %v7601_v10 = vrot.slane %v15524_v19, 7  ;;  %v15569_v55 = vsel %vm16621_vm8, %v7590_v16, %v7591_v34  ;;  %v10377_v38 = vpack.i.bf16 %v15524_v19, %v15510_v44  ;;  %vm16633_vm5 = vmmov %vm16618_vm6 }
0x1d08   :  { %v7512_v6 = vadd.f32 %v15405_v53, %v7511_v23  ;;  %v9117_v0 = vpop.f32.mrb[106].mxu1  ;;  %v10347_v3 = vpack.i.bf16 %v7677_v30, %v15522_v52  ;;  %v10352_v58 = vpack.i.bf16 %v7725_v17, %v15545_v13  ;;  %v7612_v43 = vsel %vm16622_vm0, %v7598_v40, %v7599_v5  ;;  %vm16634_vm11 = vmmov %vm16633_vm5 }
0x1d09   :  { %v15578_v36 = vmax.f32 %v7520_v62, 0.0  ;;  %v7523_v2 = vadd.f32 %v9117_v0, %v15405_v53  ;;  %v7514_v61 = vpop.f32.mrb[107].mxu1  ;;  %v7613_v34 = vsel %vm16623_vm4, %v7597_v33, %v7598_v40  ;;  %v7610_v35 = vsel %vm16624_vm15, %v7600_v42, %v7601_v10  ;;  %vm16635_vm8 = vmmov %vm16622_vm0 }
0x1d0a   :  { %v15589_v20 = vmax.f32 %v7512_v6, 0.0  ;;  %v7515_v31 = vadd.f32 %v15405_v53, %v7514_v61  ;;  %10333 = vrot.lane.b32.xlu1 %v10332_v27, %s10595_s17  ;;  %v7630_v47 = vmul.f32 %v7613_v34, %v16331_v26  ;;  %v7611_v7 = vsel %vm16625_vm1, %v7599_v5, %v7600_v42  ;;  %v15605_v53 = vld [vmem:[%s15994_s1 + $0x380] ss:$0 sps:$4 sm:$0xff]   ;;  %vm16636_vm4 = vmmov %vm16622_vm0 }
0x1d0b   :  { %v15596_v52 = vmax.f32 %v7523_v2, 0.0  ;;  %10338 = vrot.lane.b32.xlu0 %v10337_v37, %s10599_s24  ;;  %v10362_v33 = vpack.i.bf16 %v7610_v35, %v7611_v7  ;;  %v10372_v15 = vpack.i.bf16 %v15532_v59, %v15516_v32  ;;  %v7648_v39 = vrot.slane %v15510_v44, 1  ;;  %vm16637_vm15 = vmmov %vm16622_vm0 }
0x1d0c   :  { %v15607_v27 = vmax.f32 %v7515_v31, 0.0  ;;  %v10357_v26 = vpack.i.bf16 %v7612_v43, %v7630_v47  ;;  %v7649_v42 = vrot.slane %v15524_v19, 1  ;;  %v7650_v9 = vrot.slane %v15589_v20, 1  ;;  %vm16638_vm1 = vmmov %vm16613_vm2 }
0x1d0d   :  { %v7557_v57 = vrot.slane %v15596_v52, 6  ;;  %v7605_v24 = vrot.slane %v15596_v52, 7  ;;  %v7647_v50 = vrot.slane %v15532_v59, 1  ;;  %v7696_v13 = vrot.slane %v15510_v44, 2 }
0x1d0e   :  { %vm16626_vm13 = vcmask 1043456   ;;  %10348 = vrot.lane.b32.xlu1 %v10347_v3, %s10599_s24  ;;  %v15622_v37 = vsel %vm16628_vm3, %v7649_v42, %v7650_v9  ;;  %v15626_v8 = vsel %vm16613_vm2, %v7648_v39, %v7649_v42  ;;  %v7697_v21 = vrot.slane %v15524_v19, 2  ;;  %vm16641_vm3 = vmmov %vm16638_vm1 }
0x1d0f   :  { %9150 = vmatprep.subr.msk.bf16.mxu0 %vm16626_vm13, %v15605_v53  ;;  %vm16627_vm12 = vmmov %vm16626_vm13  ;;  %v7698_v41 = vrot.slane %v15589_v20, 2  ;;  %10343 = vrot.lane.b32.xlu0 %v10342_v25, %s10600_s25  ;;  %v7621_v30 = vsel %vm16629_vm10, %v7605_v24, %v7590_v16  ;;  %v10387_v17 = vpack.i.bf16 %v15622_v37, %v15626_v8  ;;  %v15639_v40 = vsel %vm16630_vm14, %v7647_v50, %v7648_v39 }
0x1d10   :  { %9151 = vmatprep.subr.msk.bf16.mxu1 %vm16627_vm12, %v15605_v53  ;;  %v15645_v5 = vsel %vm16631_vm9, %v7646_v49, %v7647_v50  ;;  %v7622_v25 = vmul.f32 %v7621_v30, %v16335_v29  ;;  %v15656_v23 = vsel %vm16618_vm6, %v7696_v13, %v7697_v21  ;;  %v7695_v0 = vrot.slane %v15532_v59, 2  ;;  %vm16639_vm13 = vmmov %vm16638_vm1 }
0x1d11   :  { %v10382_v62 = vpack.i.bf16 %v15639_v40, %v15645_v5  ;;  %v15652_v16 = vsel %vm16632_vm7, %v7697_v21, %v7698_v41  ;;  %v7603_v49 = vrot.slane %v15607_v27, 7  ;;  %v7604_v29 = vrot.slane %v15578_v36, 7  ;;  %vm16640_vm12 = vmmov %vm16638_vm1 }
0x1d12   :  { %v10397_v6 = vpack.i.bf16 %v15652_v16, %v15656_v23  ;;  %10353 = vrot.lane.b32.xlu1 %v10352_v58, %s10600_s25  ;;  %v10367_v3 = vpack.i.bf16 %v15569_v55, %v7622_v25  ;;  %v7602_v43 = vrot.slane %v15589_v20, 7  ;;  %v10417_v2 = vpack.i.bf16 %v15596_v52, %v15578_v36  ;;  %vm16642_vm2 = vmmov %vm16633_vm5 }
0x1d13   :  { %v10412_v61 = vpack.i.bf16 %v15607_v27, %v15589_v20  ;;  %10358 = vrot.lane.b32.xlu0 %v10357_v26, %s10595_s17  ;;  %v15673_v34 = vsel %vm16633_vm5, %v7695_v0, %v7696_v13  ;;  %v15679_v58 = vsel %vm16634_vm11, %v7694_v18, %v7695_v0  ;;  %v15683_v55 = vsel %vm16635_vm8, %v7604_v29, %v7605_v24  ;;  %vm16643_vm10 = vmmov %vm16642_vm2 }
0x1d14   :  { %v15687_v35 = vsel %vm16622_vm0, %v7603_v49, %v7604_v29  ;;  %v10392_v31 = vpack.i.bf16 %v15673_v34, %v15679_v58  ;;  %v15695_v7 = vsel %vm16636_vm4, %v7602_v43, %v7603_v49  ;;  %v15701_v18 = vsel %vm16637_vm15, %v7601_v10, %v7602_v43  ;;  %vm16644_vm14 = vmmov %vm16642_vm2 }
0x1d15   :  { %v10407_v47 = vpack.i.bf16 %v15683_v55, %v15687_v35  ;;  %v10402_v39 = vpack.i.bf16 %v15695_v7, %v15701_v18  ;;  %v7652_v26 = vrot.slane %v15578_v36, 1  ;;  %v7653_v42 = vrot.slane %v15596_v52, 1  ;;  %vm16645_vm9 = vmmov %vm16642_vm2 }
0x1d16   :  { %v7651_v24 = vrot.slane %v15607_v27, 1  ;;  %10363 = vrot.lane.b32.xlu1 %v10362_v33, %s10595_s17  ;;  %v7700_v50 = vrot.slane %v15578_v36, 2  ;;  %v7701_v13 = vrot.slane %v15596_v52, 2  ;;  %v7699_v21 = vrot.slane %v15607_v27, 2 }
0x1d17   :  { %v7544_v10 = vrot.slane %v15409_v22, 6  ;;  %10368 = vrot.lane.b32.xlu0 %v10367_v3, %s10595_s17  ;;  %v7654_v30 = vsel %vm16638_vm1, %v7652_v26, %v7653_v42  ;;  %v7669_v25 = vsel %vm16639_vm13, %v7653_v42, %v7638_v60  ;;  %vm16646_vm7 = vcmp.lt.s32.totalorder %v10657_v14, 2 }
0x1d18   :  { %v7655_v33 = vsel %vm16640_vm12, %v7651_v24, %v7652_v26  ;;  %v7656_v0 = vsel %vm16641_vm3, %v7650_v9, %v7651_v24  ;;  %v7685_v49 = vmul.f32 %v7669_v25, %v16353_v11  ;;  %v7702_v22 = vsel %vm16642_vm2, %v7700_v50, %v7701_v13  ;;  %vm16647_vm6 = vmmov %vm16646_vm7 }
0x1d19   :  { %v10422_v29 = vpack.i.bf16 %v7655_v33, %v7656_v0  ;;  %v7717_v3 = vsel %vm16643_vm10, %v7701_v13, %v7686_v63  ;;  %v7703_v60 = vsel %vm16644_vm14, %v7699_v21, %v7700_v50  ;;  %v7704_v34 = vsel %vm16645_vm9, %v7698_v41, %v7699_v21  ;;  %vm16648_vm5 = vmmov %vm16647_vm6 }
0x1d1a   :  { %v7733_v43 = vmul.f32 %v7717_v3, %v16356_v54  ;;  %v7545_v9 = vrot.slane %v15415_v51, 6  ;;  %10378 = vrot.lane.b32.xlu1 %v10377_v38, %s10598_s23  ;;  %v10432_v11 = vpack.i.bf16 %v7685_v49, %v7654_v30  ;;  %v10427_v58 = vpack.i.bf16 %v7703_v60, %v7704_v34  ;;  %vm16649_vm11 = vmmov %vm16648_vm5 }
0x1d1b   :  { %v7543_v26 = vrot.slane %v15423_v56, 6  ;;  %v7546_v63 = vrot.slane %v15463_v28, 6  ;;  %10373 = vrot.lane.b32.xlu0 %v10372_v15, %s10598_s23  ;;  %v7547_v41 = vrot.slane %v15477_v1, 6  ;;  %v7548_v42 = vrot.slane %v15460_v4, 6  ;;  %vm16650_vm8 = vmmov %vm16648_vm5 }
0x1d1c   :  { %v10437_v54 = vpack.i.bf16 %v7733_v43, %v7702_v22  ;;  %v7570_v51 = vsel %vm16646_vm7, %v7544_v10, %v7545_v9  ;;  %v7549_v28 = vrot.slane %v15472_v45, 6  ;;  %v7550_v24 = vrot.slane %v15516_v32, 6  ;;  %vm16651_vm0 = vmmov %vm16648_vm5 }
0x1d1d   :  { %v7571_v38 = vsel %vm16647_vm6, %v7543_v26, %v7544_v10  ;;  %v15755_v56 = vsel %vm16648_vm5, %v7545_v9, %v7546_v63  ;;  %v15761_v15 = vsel %vm16649_vm11, %v7546_v63, %v7547_v41  ;;  %v15765_v1 = vsel %vm16650_vm8, %v7547_v41, %v7548_v42  ;;  %vm16652_vm4 = vmmov %vm16651_vm0 }
0x1d1e   :  { %v7551_v4 = vrot.slane %v15532_v59, 6  ;;  %v7552_v50 = vrot.slane %v15510_v44, 6  ;;  %10388 = vrot.lane.b32.xlu1 %v10387_v17, %s10599_s24  ;;  %v15775_v45 = vsel %vm16651_vm0, %v7548_v42, %v7549_v28  ;;  %v15779_v32 = vsel %vm16652_vm4, %v7549_v28, %v7550_v24  ;;  %vm16653_vm15 = vmmov %vm16651_vm0 }
0x1d1f   :  { %v7553_v13 = vrot.slane %v15524_v19, 6  ;;  %v7542_v21 = vrot.slane %v15412_v48, 6  ;;  %10383 = vrot.lane.b32.xlu0 %v10382_v62, %s10599_s24  ;;  %vm16654_vm1 = vmmov %vm16651_vm0  ;;  %vm16655_vm13 = vcmask 1043456   ;;  %v7555_v17 = vrot.slane %v15607_v27, 6 }
0x1d20   :  { %v15789_v44 = vsel %vm16653_vm15, %v7550_v24, %v7551_v4  ;;  %v15793_v59 = vsel %vm16654_vm1, %v7551_v4, %v7552_v50  ;;  %v8112_v37 = vsel %vm16655_vm13, %v15605_v53, 0  ;;  %vm16656_vm12 = vmmov %vm16651_vm0  ;;  %v7556_v53 = vrot.slane %v15578_v36, 6 }
0x1d21   :  { %v15799_v19 = vsel %vm16656_vm12, %v7552_v50, %v7553_v13  ;;  %vm16657_vm3 = vmmov %vm16651_vm0  ;;  %9123 = vmatpush3.bf16.msra.mxu0 %v8112_v37  ;;  %9145 = vmatpush3.bf16.msra.mxu1 %v8112_v37  ;;  %v7554_v40 = vrot.slane %v15589_v20, 6  ;;  %vm16663_vm6 = vcmask 64512   ;;  %vm16665_vm11 = vcmask 130048  }
0x1d22   :  { %v15803_v48 = vsel %vm16657_vm3, %v7542_v21, %v7543_v26  ;;  %vm16658_vm2 = vmmov %vm16651_vm0  ;;  %10398 = vrot.lane.b32.xlu1 %v10397_v6, %s10600_s25  ;;  %vm16669_vm15 = vcmask 261120  }
0x1d23   :  { %v15809_v8 = vsel %vm16658_vm2, %v7557_v57, %v7542_v21  ;;  %10393 = vrot.lane.b32.xlu0 %v10392_v31, %s10600_s25  ;;  %vm16659_vm10 = vmmov %vm16651_vm0 }
0x1d24   :  { %v15823_v5 = vsel %vm16659_vm10, %v7556_v53, %v7557_v57  ;;  %vm16660_vm14 = vmmov %vm16651_vm0 }
0x1d25   :  { %v15827_v62 = vsel %vm16660_vm14, %v7555_v17, %v7556_v53  ;;  %vm16661_vm9 = vmmov %vm16651_vm0 }
0x1d26   :  { %v15831_v10 = vsel %vm16661_vm9, %v7554_v40, %v7555_v17  ;;  %vm16662_vm7 = vmmov %vm16651_vm0  ;;  %10408 = vrot.lane.b32.xlu1 %v10407_v47, %s10595_s17  ;;  %vm16667_vm0 = vcmask 195584  }
0x1d27   :  { %v15835_v16 = vsel %vm16662_vm7, %v7553_v13, %v7554_v40  ;;  %10403 = vrot.lane.b32.xlu0 %v10402_v39, %s10595_s17  ;;  %vm16664_vm5 = vmmov %vm16663_vm6 }
0x1d28   :  { %vm16666_vm8 = vmmov %vm16665_vm11 }
0x1d29   :  { %vm16668_vm4 = vmmov %vm16667_vm0 }
0x1d2a   :  { %10418 = vrot.lane.b32.xlu1 %v10417_v2, %s10598_s23  ;;  %vm16670_vm1 = vmmov %vm16669_vm15 }
0x1d2b   :  { %10413 = vrot.lane.b32.xlu0 %v10412_v61, %s10598_s23  ;;  %vm16671_vm13 = vmmov %vm16664_vm5 }
0x1d2c   :  { %vm16672_vm12 = vmmov %vm16664_vm5 }
0x1d2d   :  { %vm16673_vm3 = vmmov %vm16664_vm5 }
0x1d2e   :  { %10433 = vrot.lane.b32.xlu1 %v10432_v11, %s10599_s24  ;;  %vm16674_vm2 = vmmov %vm16673_vm3 }
0x1d2f   :  { %10423 = vrot.lane.b32.xlu0 %v10422_v29, %s10599_s24  ;;  %vm16675_vm10 = vmmov %vm16666_vm8 }
0x1d30   :  { %vm16676_vm14 = vmmov %vm16666_vm8 }
0x1d31   :  { %vm16677_vm9 = vmmov %vm16667_vm0 }
0x1d32   :  { %10438 = vrot.lane.b32.xlu1 %v10437_v54, %s10600_s25  ;;  %vm16678_vm7 = vmmov %vm16667_vm0 }
0x1d33   :  { %10428 = vrot.lane.b32.xlu0 %v10427_v58, %s10600_s25 }
0x1d68   :  { %v10284_v14 = vpop.permute.xlu1 %10283 }
0x1d69   :  { %v15857_v57 = vpop.permute.xlu0 %10288  ;;  %v10286_v7 = vunpack.i.h.bf16 %v10284_v14  ;;  %v10285_v18 = vunpack.i.l.bf16 %v10284_v14 }
0x1d6c   :  { %v10294_v23 = vpop.permute.xlu1 %10293 }
0x1d6d   :  { %v15859_v6 = vpop.permute.xlu0 %10298  ;;  %v10296_v2 = vunpack.i.h.bf16 %v10294_v23  ;;  %v10295_v20 = vunpack.i.l.bf16 %v10294_v23 }
0x1d6f   :  { %v7993_v55 = vsel %vm16663_vm6, %v7570_v51, %v10296_v2  ;;  %v7992_v35 = vsel %vm16664_vm5, %v7571_v38, %v10295_v20  ;;  %vm16679_vm6 = vmmov %vm16666_vm8 }
0x1d70   :  { %v10309_v36 = vpop.permute.xlu1 %10308  ;;  %v8008_v30 = vsel %vm16665_vm11, %v7992_v35, %v10285_v18  ;;  %v8009_v25 = vsel %vm16666_vm8, %v7993_v55, %v10286_v7  ;;  %vm16680_vm5 = vmmov %vm16670_vm1 }
0x1d71   :  { %v15861_v52 = vpop.permute.xlu0 %10303  ;;  %v10310_v24 = vunpack.i.l.bf16 %v10309_v36  ;;  %v10311_v14 = vunpack.i.h.bf16 %v10309_v36  ;;  %vm16681_vm11 = vmmov %vm16670_vm1 }
0x1d72   :  { %vm16682_vm8 = vmmov %vm16679_vm6 }
0x1d74   :  { %v10319_v27 = vpop.permute.xlu1 %10318 }
0x1d75   :  { %v10314_v61 = vpop.permute.xlu0 %10313  ;;  %v10321_v31 = vunpack.i.h.bf16 %v10319_v27  ;;  %v10320_v47 = vunpack.i.l.bf16 %v10319_v27 }
0x1d76   :  { %v10316_v41 = vunpack.i.h.bf16 %v10314_v61  ;;  %v10315_v42 = vunpack.i.l.bf16 %v10314_v61 }
0x1d77   :  { %v8024_v29 = vsel %vm16667_vm0, %v8008_v30, %v10320_v47  ;;  %v8025_v22 = vsel %vm16668_vm4, %v8009_v25, %v10321_v31  ;;  %vm16683_vm4 = vmmov %vm16667_vm0 }
0x1d78   :  { %v10324_v39 = vpop.permute.xlu1 %10323 }
0x1d79   :  { %v10326_v33 = vunpack.i.h.bf16 %v10324_v39  ;;  %v10325_v0 = vunpack.i.l.bf16 %v10324_v39  ;;  %v10329_v49 = vpop.permute.xlu0 %10328 }
0x1d7a   :  { %v10331_v3 = vunpack.i.h.bf16 %v10329_v49  ;;  %v10330_v43 = vunpack.i.l.bf16 %v10329_v49 }
0x1d7b   :  { %v15870_v60 = vsel %vm16669_vm15, %v8024_v29, %v10325_v0  ;;  %v15873_v34 = vsel %vm16670_vm1, %v8025_v22, %v10326_v33  ;;  %vm16684_vm15 = vmmov %vm16670_vm1  ;;  %v7574_v29 = vmul.f32 %v15809_v8, %v16427_v12  ;;  %v10291_v22 = vunpack.i.h.bf16 %v15857_v57 }
0x1d7c   :  { %v8060_v9 = vpack.c.bf16 %v15873_v34, %v15870_v60  ;;  %v10334_v11 = vpop.permute.xlu1 %10333  ;;  %v7995_v54 = vsel %vm16671_vm13, %v15761_v15, %v10331_v3  ;;  %v7994_v51 = vsel %vm16672_vm12, %v15755_v56, %v10330_v43  ;;  %v10290_v3 = vunpack.i.l.bf16 %v15857_v57  ;;  %vm16685_vm13 = vmmov %vm16674_vm2 }
0x1d7d   :  { %v10336_v58 = vunpack.i.h.bf16 %v10334_v11  ;;  %v10335_v26 = vunpack.i.l.bf16 %v10334_v11  ;;  %v10339_v63 = vpop.permute.xlu0 %10338  ;;  %v8010_v21 = vsel %vm16675_vm10, %v7994_v51, %v10315_v42  ;;  %v8011_v37 = vsel %vm16676_vm14, %v7995_v54, %v10316_v41  ;;  %vm16686_vm12 = vmmov %vm16674_vm2 }
0x1d7e   :  { %v10341_v38 = vunpack.i.h.bf16 %v10339_v63  ;;  %v10340_v28 = vunpack.i.l.bf16 %v10339_v63  ;;  %v10301_v43 = vunpack.i.h.bf16 %v15859_v6  ;;  %v10300_v11 = vunpack.i.l.bf16 %v15859_v6  ;;  %vm16689_vm10 = vmmov %vm16667_vm0 }
0x1d7f   :  { %v7997_v50 = vsel %vm16673_vm3, %v15775_v45, %v10336_v58  ;;  %v7996_v13 = vsel %vm16674_vm2, %v15765_v1, %v10335_v26  ;;  %v10306_v54 = vunpack.i.h.bf16 %v15861_v52  ;;  %v10305_v51 = vunpack.i.l.bf16 %v15861_v52  ;;  %vm16687_vm3 = vmmov %vm16679_vm6 }
0x1d80   :  { %v10349_v4 = vpop.permute.xlu1 %10348  ;;  %v8026_v23 = vsel %vm16677_vm9, %v8010_v21, %v10340_v28  ;;  %v8027_v2 = vsel %vm16678_vm7, %v8011_v37, %v10341_v38  ;;  %v8012_v20 = vsel %vm16679_vm6, %v7996_v13, %v10310_v24  ;;  %v8013_v61 = vsel %vm16682_vm8, %v7997_v50, %v10311_v14  ;;  %vm16688_vm2 = vmmov %vm16687_vm3 }
0x1d81   :  { %v10344_v15 = vpop.permute.xlu0 %10343  ;;  %v10351_v17 = vunpack.i.h.bf16 %v10349_v4  ;;  %v10350_v53 = vunpack.i.l.bf16 %v10349_v4  ;;  %vm16690_vm14 = vmmov %vm16667_vm0  ;;  %vm16693_vm6 = vcmask 326656  }
0x1d82   :  { %v10346_v56 = vunpack.i.h.bf16 %v10344_v15  ;;  %v10345_v40 = vunpack.i.l.bf16 %v10344_v15  ;;  %vm16691_vm9 = vmmov %vm16670_vm1 }
0x1d83   :  { %v8028_v7 = vsel %vm16667_vm0, %v8012_v20, %v10350_v53  ;;  %v8029_v36 = vsel %vm16683_vm4, %v8013_v61, %v10351_v17  ;;  %vm16692_vm7 = vmmov %vm16670_vm1  ;;  %v7582_v53 = vmul.f32 %v15779_v32, %v16435_v46 }
0x1d84   :  { %v8042_v45 = vsel %vm16680_vm5, %v8026_v23, %v10345_v40  ;;  %v8043_v1 = vsel %vm16681_vm11, %v8027_v2, %v10346_v56  ;;  %v10354_v27 = vpop.permute.xlu1 %10353  ;;  %vm16694_vm5 = vmmov %vm16686_vm12 }
0x1d85   :  { %v8061_v55 = vpack.c.bf16 %v8043_v1, %v8042_v45  ;;  %v10356_v35 = vunpack.i.h.bf16 %v10354_v27  ;;  %v10355_v31 = vunpack.i.l.bf16 %v10354_v27  ;;  %v10359_v47 = vpop.permute.xlu0 %10358  ;;  %vm16695_vm11 = vmmov %vm16694_vm5 }
0x1d86   :  { %v10361_v57 = vunpack.i.h.bf16 %v10359_v47  ;;  %v10360_v4 = vunpack.i.l.bf16 %v10359_v47  ;;  %vm16696_vm8 = vmmov %vm16693_vm6 }
0x1d87   :  { %v15896_v18 = vsel %vm16684_vm15, %v8028_v7, %v10355_v31  ;;  %v15899_v39 = vsel %vm16670_vm1, %v8029_v36, %v10356_v35  ;;  %vm16697_vm0 = vmmov %vm16694_vm5 }
0x1d88   :  { %v8062_v30 = vpack.c.bf16 %v15899_v39, %v15896_v18  ;;  %v10364_v25 = vpop.permute.xlu1 %10363  ;;  %v7999_v46 = vsel %vm16697_vm0, %v15789_v44, %v10361_v57  ;;  %vm16698_vm4 = vmmov %vm16697_vm0 }
0x1d89   :  { %v10369_v33 = vpop.permute.xlu0 %10368  ;;  %v10366_v38 = vunpack.i.h.bf16 %v10364_v25  ;;  %v10365_v28 = vunpack.i.l.bf16 %v10364_v25  ;;  %v7998_v32 = vsel %vm16698_vm4, %v7582_v53, %v10360_v4  ;;  %vm16699_vm15 = vmmov %vm16688_vm2 }
0x1d8a   :  { %v10371_v0 = vunpack.i.h.bf16 %v10369_v33  ;;  %v10370_v49 = vunpack.i.l.bf16 %v10369_v33  ;;  %vm16700_vm1 = vmmov %vm16688_vm2 }
0x1d8b   :  { %v8001_v14 = vsel %vm16694_vm5, %v15799_v19, %v10366_v38  ;;  %v8000_v23 = vsel %vm16695_vm11, %v15793_v59, %v10365_v28  ;;  %vm16711_vm0 = vmmov %vm16696_vm8 }
0x1d8c   :  { %v7990_v58 = vsel %vm16685_vm13, %v7574_v29, %v10370_v49  ;;  %v7991_v26 = vsel %vm16686_vm12, %v15803_v48, %v10371_v0  ;;  %v10379_v63 = vpop.permute.xlu1 %10378  ;;  %vm16701_vm13 = vmmov %vm16693_vm6 }
0x1d8d   :  { %v8006_v12 = vsel %vm16687_vm3, %v7990_v58, %v10290_v3  ;;  %v8007_v8 = vsel %vm16688_vm2, %v7991_v26, %v10291_v22  ;;  %v10374_v41 = vpop.permute.xlu0 %10373  ;;  %v10381_v50 = vunpack.i.h.bf16 %v10379_v63  ;;  %v10380_v13 = vunpack.i.l.bf16 %v10379_v63  ;;  %vm16702_vm12 = vmmov %vm16700_vm1 }
0x1d8e   :  { %v8022_v42 = vsel %vm16689_vm10, %v8006_v12, %v10300_v11  ;;  %v8023_v6 = vsel %vm16690_vm14, %v8007_v8, %v10301_v43  ;;  %v10376_v37 = vunpack.i.h.bf16 %v10374_v41  ;;  %v10375_v15 = vunpack.i.l.bf16 %v10374_v41  ;;  %vm16703_vm3 = vmmov %vm16700_vm1 }
0x1d8f   :  { %v8038_v24 = vsel %vm16691_vm9, %v8022_v42, %v10305_v51  ;;  %v8039_v48 = vsel %vm16692_vm7, %v8023_v6, %v10306_v54  ;;  %v8016_v45 = vsel %vm16699_vm15, %v8000_v23, %v10380_v13  ;;  %v8017_v1 = vsel %vm16700_vm1, %v8001_v14, %v10381_v50  ;;  %vm16704_vm2 = vmmov %vm16689_vm10 }
0x1d90   :  { %v10389_v52 = vpop.permute.xlu1 %10388  ;;  %v8059_v21 = vpack.c.bf16 %v8039_v48, %v8038_v24  ;;  %v8015_v59 = vsel %vm16702_vm12, %v7999_v46, %v10376_v37  ;;  %v8014_v27 = vsel %vm16703_vm3, %v7998_v32, %v10375_v15  ;;  %vm16705_vm10 = vmmov %vm16704_vm2  ;;  %v8545_v46 = vld [vmem:[%s15995_s2 + $0xe] ss:$0 sm:$0xff]  ;;  %s10607_s2 = smov [#allocation2]  }
0x1d91   :  { %v10384_v17 = vpop.permute.xlu0 %10383  ;;  %v10391_v56 = vunpack.i.h.bf16 %v10389_v52  ;;  %v10390_v40 = vunpack.i.l.bf16 %v10389_v52  ;;  %vm16706_vm14 = vmmov %vm16704_vm2  ;;  %s8284_s23 = sshll.u32 %s10607_s2, 4  ;;  %s8285_s23 = int_to_ptr.vmem [resolvable:$true] %s8284_s23 }
0x1d92   :  { %9124 = vmatprep.mubr.msk.bf16.mxu0 %vm16693_vm6, %v8059_v21  ;;  %v10386_v2 = vunpack.i.h.bf16 %v10384_v17  ;;  %v10385_v20 = vunpack.i.l.bf16 %v10384_v17  ;;  %vm16707_vm9 = vmmov %vm16704_vm2  ;;  %s10569_s24 = scalar_lea.vmem %s8285_s23, 128  ;;  %p10574_p1 = scmp.lt.s32.totalorder %s8285_s23, %s8285_s23 }
0x1d93   :  { %9125 = vmatmul.mubr.msk.bf16.vlgmr.msra.gmra.mrb[116].mxu0 %vm16696_vm8, %v8060_v9  ;;  %v8032_v9 = vsel %vm16704_vm2, %v8016_v45, %v10390_v40  ;;  %v8033_v44 = vsel %vm16705_vm10, %v8017_v1, %v10391_v56  ;;  %vm16708_vm6 = vmmov %vm16692_vm7  ;;  %p10570_p0 = scmp.ne.s32.totalorder %s8285_s23, %s10569_s24  ;;  %p10575_p2 = scmp.lt.s32.totalorder %s10569_s24, %s10569_s24 }
0x1d94   :  { %v10399_v19 = vpop.permute.xlu1 %10398  ;;  %9128 = vmatprep.mubr.msk.bf16.mxu0 %vm16701_vm13, %v8061_v55  ;;  %v8030_v47 = vsel %vm16706_vm14, %v8014_v27, %v10385_v20  ;;  %v8031_v7 = vsel %vm16707_vm9, %v8015_v59, %v10386_v2  ;;  %vm16709_vm5 = vmmov %vm16708_vm6 }
0x1d95   :  { %v10401_v61 = vunpack.i.h.bf16 %v10399_v19  ;;  %v10400_v60 = vunpack.i.l.bf16 %v10399_v19  ;;  %v10394_v34 = vpop.permute.xlu0 %10393  ;;  %vm16710_vm11 = vmmov %vm16709_vm5  ;;  %p10576_p3 = por %p10575_p2, %p10574_p1 }
0x1d96   :  { %v10396_v35 = vunpack.i.h.bf16 %v10394_v34  ;;  %v10395_v31 = vunpack.i.l.bf16 %v10394_v34  ;;  %vm16712_vm15 = vmmov %vm16698_vm4 }
0x1d97   :  { %v8048_v36 = vsel %vm16692_vm7, %v8032_v9, %v10400_v60  ;;  %v8049_v55 = vsel %vm16708_vm6, %v8033_v44, %v10401_v61  ;;  %vm16713_vm1 = vmmov %vm16711_vm0  ;;  %p10577_p4 = pnand %p10576_p3, %p10570_p0 }
0x1d98   :  { %v8064_v25 = vpack.c.bf16 %v8049_v55, %v8048_v36  ;;  %v8046_v33 = vsel %vm16709_vm5, %v8030_v47, %v10395_v31  ;;  %v8047_v0 = vsel %vm16710_vm11, %v8031_v7, %v10396_v35  ;;  %v10409_v49 = vpop.permute.xlu1 %10408  ;;  %vm16714_vm13 = vmmov %vm16698_vm4 }
0x1d99   :  { %v8063_v29 = vpack.c.bf16 %v8047_v0, %v8046_v33  ;;  %v10404_v22 = vpop.permute.xlu0 %10403  ;;  %v10411_v11 = vunpack.i.h.bf16 %v10409_v49  ;;  %v10410_v58 = vunpack.i.l.bf16 %v10409_v49  ;;  %vm16715_vm12 = vmmov %vm16698_vm4 }
0x1d9a   :  { %v10406_v26 = vunpack.i.h.bf16 %v10404_v22  ;;  %v10405_v63 = vunpack.i.l.bf16 %v10404_v22  ;;  %vm16716_vm2 = vmmov %vm16703_vm3 }
0x1d9b   :  { %9129 = vmatmul.mubr.msk.bf16.gmra.mrb[120].mxu0 %vm16696_vm8, %v8062_v30  ;;  %v8005_v18 = vsel %vm16698_vm4, %v15823_v5, %v10411_v11  ;;  %v8004_v39 = vsel %vm16712_vm15, %v15827_v62, %v10410_v58  ;;  %vm16717_vm10 = vmmov %vm16716_vm2 }
0x1d9c   :  { %v10419_v3 = vpop.permute.xlu1 %10418  ;;  %9132 = vmatprep.mubr.msk.bf16.mxu0 %vm16711_vm0, %v8063_v29  ;;  %v8003_v28 = vsel %vm16714_vm13, %v15831_v10, %v10406_v26  ;;  %v8002_v24 = vsel %vm16715_vm12, %v15835_v16, %v10405_v63  ;;  %vm16718_vm14 = vmmov %vm16716_vm2  ;;  %vm8243_vm13 = vcmask 519168  }
0x1d9d   :  { %v10414_v43 = vpop.permute.xlu0 %10413  ;;  %v10421_v54 = vunpack.i.h.bf16 %v10419_v3  ;;  %v10420_v51 = vunpack.i.l.bf16 %v10419_v3  ;;  %vm16719_vm7 = vmmov %vm16707_vm9 }
0x1d9e   :  { %v10416_v8 = vunpack.i.h.bf16 %v10414_v43  ;;  %v10415_v41 = vunpack.i.l.bf16 %v10414_v43  ;;  %vm16720_vm6 = vmmov %vm16719_vm7 }
0x1d9f   :  { %v8020_v48 = vsel %vm16703_vm3, %v8004_v39, %v10420_v51  ;;  %v8021_v4 = vsel %vm16716_vm2, %v8005_v18, %v10421_v54  ;;  %vm16721_vm5 = vmmov %vm16720_vm6 }
0x1da0   :  { %v10434_v12 = vpop.permute.xlu1 %10433  ;;  %v8018_v5 = vsel %vm16717_vm10, %v8002_v24, %v10415_v41  ;;  %v8019_v13 = vsel %vm16718_vm14, %v8003_v28, %v10416_v8  ;;  %vm16722_vm8 = vmmov %vm16710_vm11 }
0x1da1   :  { %v10424_v57 = vpop.permute.xlu0 %10423  ;;  %v10436_v42 = vunpack.i.h.bf16 %v10434_v12  ;;  %v10435_v6 = vunpack.i.l.bf16 %v10434_v12  ;;  %vm16723_vm0 = vmmov %vm16722_vm8 }
0x1da2   :  { %v10426_v30 = vunpack.i.h.bf16 %v10424_v57  ;;  %v10425_v38 = vunpack.i.l.bf16 %v10424_v57  ;;  %vm16724_vm4 = vmmov %vm16723_vm0 }
0x1da3   :  { %9133 = vmatmul.mubr.msk.bf16.gmra.mrb[124].mxu0 %vm16713_vm1, %v8064_v25  ;;  %v8037_v37 = vsel %vm16707_vm9, %v8021_v4, %v10436_v42  ;;  %v8036_v15 = vsel %vm16719_vm7, %v8020_v48, %v10435_v6  ;;  %vm16725_vm15 = vmmov %vm16713_vm1 }
0x1da4   :  { %v10439_v50 = vpop.permute.xlu1 %10438  ;;  %v8034_v16 = vsel %vm16720_vm6, %v8018_v5, %v10425_v38  ;;  %v8035_v53 = vsel %vm16721_vm5, %v8019_v13, %v10426_v30 }
0x1da5   :  { %v10441_v62 = vunpack.i.h.bf16 %v10439_v50  ;;  %v10440_v52 = vunpack.i.l.bf16 %v10439_v50  ;;  %v10429_v21 = vpop.permute.xlu0 %10428 }
0x1da6   :  { %v10431_v10 = vunpack.i.h.bf16 %v10429_v21  ;;  %v10430_v17 = vunpack.i.l.bf16 %v10429_v21 }
0x1da7   :  { %v8052_v56 = vsel %vm16710_vm11, %v8036_v15, %v10440_v52  ;;  %v8053_v40 = vsel %vm16722_vm8, %v8037_v37, %v10441_v62 }
0x1da8   :  { %v8066_v14 = vpack.c.bf16 %v8053_v40, %v8052_v56  ;;  %v8050_v23 = vsel %vm16723_vm0, %v8034_v16, %v10430_v17  ;;  %v8051_v2 = vsel %vm16724_vm4, %v8035_v53, %v10431_v10 }
0x1da9   :  { %v8065_v20 = vpack.c.bf16 %v8051_v2, %v8050_v23 }
0x1dab   :  { %9136 = vmatprep.mubr.msk.bf16.mxu1 %vm16725_vm15, %v8065_v20 }
0x1dac   :  { %9137 = vmatmul.mubr.msk.bf16.vlgmr.msra.gmra.mrb[108].mxu1 %vm16713_vm1, %v8066_v14 }
0x1e66   :  { %v9126_v32 = vpop.f32.mrb[116].mxu0 }
0x1e67   :  { %v8148_v45 = vpop.f32.mrb[117].mxu0  ;;  %v8157_v34 = vadd.f32 %v9126_v32, %v8545_v46 }
0x1e68   :  { %v8149_v1 = vadd.f32 %v8545_v46, %v8148_v45  ;;  %v9127_v19 = vpop.f32.mrb[118].mxu0 }
0x1e69   :  { %v8151_v59 = vpop.f32.mrb[119].mxu0  ;;  %v8160_v35 = vadd.f32 %v9127_v19, %v8545_v46 }
0x1e6a   :  { %8211 = vxpose.xlu0.b32.start [1/8] (short) (narrow) %v8149_v1, 8  ;;  %v8152_v27 = vadd.f32 %v8545_v46, %v8151_v59 }
0x1e6e   :  { %v9130_v61 = vpop.f32.mrb[120].mxu0  ;;  %8212 = vxpose.xlu0.b32.cont [2/8] (short) (narrow) %v8152_v27, 8 }
0x1e6f   :  { %v8164_v60 = vpop.f32.mrb[121].mxu0  ;;  %v8173_v29 = vadd.f32 %v9130_v61, %v8545_v46 }
0x1e70   :  { %v9131_v9 = vpop.f32.mrb[122].mxu0  ;;  %v8165_v7 = vadd.f32 %v8545_v46, %v8164_v60 }
0x1e71   :  { %v8167_v44 = vpop.f32.mrb[123].mxu0  ;;  %v8176_v58 = vadd.f32 %v9131_v9, %v8545_v46 }
0x1e72   :  { %8213 = vxpose.xlu0.b32.cont [3/8] (short) (narrow) %v8157_v34, 8  ;;  %v8168_v33 = vadd.f32 %v8545_v46, %v8167_v44 }
0x1e76   :  { %v9134_v31 = vpop.f32.mrb[124].mxu0  ;;  %8214 = vxpose.xlu0.b32.cont [4/8] (short) (narrow) %v8160_v35, 8 }
0x1e77   :  { %v8180_v47 = vpop.f32.mrb[125].mxu0  ;;  %v8189_v22 = vadd.f32 %v9134_v31, %v8545_v46 }
0x1e78   :  { %v8181_v36 = vadd.f32 %v8545_v46, %v8180_v47  ;;  %v9135_v55 = vpop.f32.mrb[126].mxu0 }
0x1e79   :  { %v8183_v25 = vpop.f32.mrb[127].mxu0  ;;  %v8192_v26 = vadd.f32 %v9135_v55, %v8545_v46 }
0x1e7a   :  { %8245 = vxpose.xlu1.b32.start [1/8] (short) (narrow) %v8181_v36, 8  ;;  %8215 = vxpose.xlu0.b32.cont [5/8] (short) (narrow) %v8165_v7, 8  ;;  %v8184_v0 = vadd.f32 %v8545_v46, %v8183_v25 }
0x1e7e   :  { %8246 = vxpose.xlu1.b32.cont [2/8] (short) (narrow) %v8184_v0, 8  ;;  %8216 = vxpose.xlu0.b32.cont [6/8] (short) (narrow) %v8168_v33, 8 }
0x1e7f   :  { %v9138_v49 = vpop.f32.mrb[108].mxu1 }
0x1e80   :  { %v8196_v3 = vpop.f32.mrb[109].mxu1  ;;  %v8205_v51 = vadd.f32 %v9138_v49, %v8545_v46 }
0x1e81   :  { %v9139_v43 = vpop.f32.mrb[110].mxu1  ;;  %v8197_v63 = vadd.f32 %v8545_v46, %v8196_v3 }
0x1e82   :  { %v8199_v11 = vpop.f32.mrb[111].mxu1  ;;  %8247 = vxpose.xlu1.b32.cont [3/8] (short) (narrow) %v8189_v22, 8  ;;  %8217 = vxpose.xlu0.b32.cont [7/8] (short) (narrow) %v8173_v29, 8  ;;  %v8208_v12 = vadd.f32 %v9139_v43, %v8545_v46 }
0x1e83   :  { %v8200_v54 = vadd.f32 %v8545_v46, %v8199_v11 }
0x1e86   :  { %8248 = vxpose.xlu1.b32.cont [4/8] (short) (narrow) %v8192_v26, 8  ;;  %8218 = vxpose.xlu0.b32.end [8/8] (short) (narrow) %v8176_v58, 8 }
0x1e8a   :  { %8249 = vxpose.xlu1.b32.cont [5/8] (short) (narrow) %v8197_v63, 8 }
0x1e8e   :  { %8250 = vxpose.xlu1.b32.cont [6/8] (short) (narrow) %v8200_v54, 8 }
0x1e92   :  { %8251 = vxpose.xlu1.b32.cont [7/8] (short) (narrow) %v8205_v51, 8 }
0x1e96   :  { %8252 = vxpose.xlu1.b32.end [8/8] (short) (narrow) %v8208_v12, 8 }
0x1eea   :  { %v8227_v8 = vpop.trf.xlu0 }
0x1eeb   :  { %8244 = vst.msk [vmem:[#allocation2] sm:$0xf] %vm8243_vm13, %v8227_v8 }
0x1efa   :  { %v8261_v41 = vpop.trf.xlu1 }
0x1efb   :  { %8278 = vst.msk [vmem:[#allocation2 + $0x4] sm:$0xf] %vm8243_vm13, %v8261_v41 }
0x1efc   :  { %10580 = shalt.err (!%p10577_p4)
}
0x1efd   :  { %s10581_s20 = scalar_lea.hbm %s15996_s3, 128 }
0x1efe   :  { %p10582_p5 = scmp.ne.s32.totalorder %s15996_s3, %s10581_s20  ;;  %p10585_p6 = scmp.lt.u32.totalorder %s10581_s20, %s15996_s3 }
0x1f00   :  { %p10587_p7 = pnand %p10585_p6, %p10582_p5 }
0x1f02   :  { %10590 = shalt.err (!%p10587_p7)
}
0x1f03   :  { %8290 = dma.vmem_to_hbm [thread:$0]  %s8285_s23, 128, %s15996_s3, [#allocation3], %s10603_s26, %s10603_s26, %s10593_s0  }
0x1f04   :  { %10591 = dma.done.wait [#allocation3], 128  }
0x1f05   :  { %10592 = vsyncadd [#allocation3], 4294967168 }
0x1f06   :  { %8294 = vsyncpa [#allocation3], 1 }

</bundles_post_ra>
